<compile_context>
chip_gen: v6e
topology: v6e:2x2x1
jax: 0.10.0
libtpu: 0.0.40
codegen_flags: <defaults>
</compile_context>

<pallas_src>
import functools
import math

import jax
import jax.numpy as jnp
from jax import lax
from jax.experimental import pallas as pl
from jax.experimental.pallas import tpu as pltpu

BASE_CHANNEL = 3
BN_EPS = 1e-5

CONV_CFG = [
    # (cin, cout, kernel, stride, pad)
    (BASE_CHANNEL,     BASE_CHANNEL * 2, 7, 1, 3),
    (BASE_CHANNEL * 2, BASE_CHANNEL * 4, 7, 1, 3),
    (BASE_CHANNEL * 4, BASE_CHANNEL * 6, 3, 2, 1),
    (BASE_CHANNEL * 6, BASE_CHANNEL * 4, 3, 1, 1),
    (BASE_CHANNEL * 4, BASE_CHANNEL * 2, 3, 1, 1),
    (BASE_CHANNEL * 2, BASE_CHANNEL,     3, 1, 1),
]
FC_CFG = [(3 * 7 * 7, 2 ** 7), (2 ** 7, 2 ** 6), (2 ** 6, 2 ** 5),
          (2 ** 5, 2 ** 4), (2 ** 4, 2 ** 3)]


# ---------------- fused Conv + BatchNorm(eval) + ReLU + 2x2 MaxPool ----------------

def _conv_bn_relu_pool_kernel(xs_ref, w_ref, scale_ref, bias_ref, o_ref, *, k, stride):
    """One image per grid step.

    xs_ref   : (2*stride, cin, hp, ws) f32  column-phase split of the padded input,
               xs[j, c, r, i] == x_padded[c, r, (2*stride)*i + j]
    w_ref    : (k*k, cout, cin)        f32  conv taps, index kh*k + kw
    scale_ref: (cout, 1) f32, bias_ref: (cout, 1) f32   folded BatchNorm (eval stats)
    o_ref    : (cout, ho2, wo2)        f32  conv + BN + ReLU + 2x2 max-pool output
    """
    nsplit = 2 * stride
    cout, ho2, wo2 = o_ref.shape
    scale = scale_ref[...]
    bias = bias_ref[...]

    def row_body(pr, carry):
        # The 2x2 pool window at pooled row `pr` covers conv rows (2*pr + sr) and
        # conv cols (2*w' + p), for sr, p in {0, 1}.
        ys = []
        for sr in range(2):
            def kh_body(kh, accs):
                a0, a1 = accs
                row = (2 * stride) * pr + (stride * sr + kh)
                # Lane-contiguous slices: taps[t][c, w'] == x_padded[c, row, 2*stride*w' + t]
                taps = [
                    xs_ref[t % nsplit, :, row, pl.ds(t // nsplit, wo2)]
                    for t in range(k + stride)
                ]
                for kw in range(k):
                    w_tap = w_ref[kh * k + kw]                    # (cout, cin)
                    a0 = a0 + jnp.dot(w_tap, taps[kw],
                                      preferred_element_type=jnp.float32)
                    a1 = a1 + jnp.dot(w_tap, taps[kw + stride],
                                      preferred_element_type=jnp.float32)
                return a0, a1

            zero = jnp.zeros((cout, wo2), jnp.float32)
            a0, a1 = lax.fori_loop(0, k, kh_body, (zero, zero))
            ys.append(jnp.maximum(a0 * scale + bias, 0.0))
            ys.append(jnp.maximum(a1 * scale + bias, 0.0))
        pooled = jnp.maximum(jnp.maximum(ys[0], ys[1]), jnp.maximum(ys[2], ys[3]))
        o_ref[:, pr, :] = pooled.astype(o_ref.dtype)
        return carry

    lax.fori_loop(0, ho2, row_body, 0)


def conv_bn_relu_pool(xs, w_taps, scale, bias, *, k, stride, cout, ho2, wo2):
    """xs: (N, 2*stride, cin, hp, ws) column-phase split of the padded NCHW input."""
    n, nsplit, cin, hp, ws = xs.shape
    kernel = functools.partial(_conv_bn_relu_pool_kernel, k=k, stride=stride)
    flops = 2 * n * (2 * ho2) * (2 * wo2) * cout * k * k * cin
    bytes_accessed = (xs.size + n * cout * ho2 * wo2 + w_taps.size) * 4
    return pl.pallas_call(
        kernel,
        out_shape=jax.ShapeDtypeStruct((n, cout, ho2, wo2), jnp.float32),
        grid=(n,),
        in_specs=[
            pl.BlockSpec((None, nsplit, cin, hp, ws), lambda i: (i, 0, 0, 0, 0)),
            pl.BlockSpec((k * k, cout, cin), lambda i: (0, 0, 0)),
            pl.BlockSpec((cout, 1), lambda i: (0, 0)),
            pl.BlockSpec((cout, 1), lambda i: (0, 0)),
        ],
        out_specs=pl.BlockSpec((None, cout, ho2, wo2), lambda i: (i, 0, 0, 0)),
        compiler_params=pltpu.CompilerParams(
            dimension_semantics=("parallel",),
            vmem_limit_bytes=48 * 1024 * 1024,
        ),
        cost_estimate=pl.CostEstimate(
            flops=int(flops), transcendentals=0, bytes_accessed=int(bytes_accessed)),
    )(xs, w_taps, scale, bias)


def _split_columns(x, k, stride, pad):
    """NCHW -> (N, 2*stride, C, H+2p, ceil((W+2p)/(2*stride))) column-phase split.

    Splitting the padded width into its 2*stride phases lets the kernel fuse the
    2x2 max-pool (and the stride-2 conv) using only contiguous lane slices.
    """
    n, c, h, w = x.shape
    ns = 2 * stride
    wp = w + 2 * pad
    extra = (-wp) % ns
    xp = jnp.pad(x, ((0, 0), (0, 0), (pad, pad), (pad, pad + extra)))
    ws = (wp + extra) // ns
    xs = xp.reshape(n, c, h + 2 * pad, ws, ns)
    return jnp.transpose(xs, (0, 4, 1, 2, 3))


# ------------------------------ fused Linear stack ------------------------------

def _fc_stack_kernel(x_ref, *refs):
    o_ref = refs[-1]
    wb = refs[:-1]
    h = x_ref[...]
    n_layers = len(wb) // 2
    for i in range(n_layers):
        w = wb[2 * i][...]
        b = wb[2 * i + 1][...]
        h = jnp.dot(h, w, preferred_element_type=jnp.float32) + b
        if i < n_layers - 1:
            h = jnp.maximum(h, 0.0)
    o_ref[...] = h.astype(o_ref.dtype)


def fc_stack(x, weights, biases):
    """All five Linear layers fused in one kernel (weights total < 120 KB of VMEM)."""
    n = x.shape[0]
    args, in_specs = [x], [pl.BlockSpec(x.shape, lambda i: (0, 0))]
    for w, b in zip(weights, biases):
        b2 = b.reshape(1, -1)
        args.extend([w, b2])
        in_specs.append(pl.BlockSpec(w.shape, lambda i: (0, 0)))
        in_specs.append(pl.BlockSpec(b2.shape, lambda i: (0, 0)))
    n_out = weights[-1].shape[1]
    return pl.pallas_call(
        _fc_stack_kernel,
        out_shape=jax.ShapeDtypeStruct((n, n_out), jnp.float32),
        grid=(1,),
        in_specs=in_specs,
        out_specs=pl.BlockSpec((n, n_out), lambda i: (0, 0)),
        compiler_params=pltpu.CompilerParams(dimension_semantics=("arbitrary",)),
    )(*args)


# ---------------------------------- parameters ----------------------------------

def init_params(key):
    params = {"conv": [], "fc": []}
    for (cin, cout, k, _s, _p) in CONV_CFG:
        key, kw_, kb, kg, kbe, km, kv = jax.random.split(key, 7)
        fan_in = cin * k * k
        params["conv"].append(dict(
            w=jax.random.normal(kw_, (cout, cin, k, k), jnp.float32) / math.sqrt(fan_in),
            b=0.05 * jax.random.normal(kb, (cout,), jnp.float32),
            gamma=1.0 + 0.1 * jax.random.normal(kg, (cout,), jnp.float32),
            beta=0.1 * jax.random.normal(kbe, (cout,), jnp.float32),
            mean=0.1 * jax.random.normal(km, (cout,), jnp.float32),
            var=jax.random.uniform(kv, (cout,), jnp.float32, 0.5, 1.5),
        ))
    for (fin, fout) in FC_CFG:
        key, kw_, kb = jax.random.split(key, 3)
        params["fc"].append(dict(
            w=jax.random.normal(kw_, (fout, fin), jnp.float32) / math.sqrt(fin),
            b=0.05 * jax.random.normal(kb, (fout,), jnp.float32),
        ))
    return params


# ------------------------------------ forward ------------------------------------

def forward(params, x_nchw):
    # TODO(synk): BatchNorm runs in eval mode (running stats folded into the conv
    # epilogue); train-mode batch statistics would need an extra reduction pass.
    x = x_nchw
    n = x.shape[0]
    for layer, (cin, cout, k, stride, pad) in zip(params["conv"], CONV_CFG):
        h_in, w_in = x.shape[2], x.shape[3]
        conv_h = (h_in + 2 * pad - k) // stride + 1
        conv_w = (w_in + 2 * pad - k) // stride + 1
        ho2, wo2 = conv_h // 2, conv_w // 2
        xs = _split_columns(x, k, stride, pad)
        # PyTorch weight (Cout, Cin, KH, KW) -> per-tap (Cout, Cin) matrices.
        w_taps = jnp.transpose(layer["w"], (2, 3, 0, 1)).reshape(k * k, cout, cin)
        scale = layer["gamma"] / jnp.sqrt(layer["var"] + BN_EPS)
        bias = (layer["b"] - layer["mean"]) * scale + layer["beta"]
        x = conv_bn_relu_pool(xs, w_taps, scale.reshape(cout, 1), bias.reshape(cout, 1),
                              k=k, stride=stride, cout=cout, ho2=ho2, wo2=wo2)
    # torch.flatten(x, 1): our layout is already NCHW, so a plain reshape matches.
    x = x.reshape(n, -1)
    weights = [layer["w"].T for layer in params["fc"]]   # (in, out)
    biases = [layer["b"] for layer in params["fc"]]
    return fc_stack(x, weights, biases)


if __name__ == "__main__":
    key = jax.random.PRNGKey(0)
    k_param, k_x = jax.random.split(key)
    params = init_params(k_param)
    # 896x896 is the smallest spatial size whose conv/pool stack produces the
    # 3*7*7 = 147 flattened features that linear1 expects.
    x = jax.random.normal(k_x, (2, BASE_CHANNEL, 896, 896), jnp.float32)
    fwd = jax.jit(forward)
    out = jax.block_until_ready(fwd(params, x))
    assert out.shape == (2, 8) and out.dtype == jnp.float32
    print("KERNEL_OK")
</pallas_src>

<mosaic_0001>
module attributes {stable_mosaic.version = 11 : i64} {
  func.func @_conv_bn_relu_pool_kernel(%arg0: i32, %arg1: memref<1x2x3x902x451xf32, #tpu.memory_space<vmem>>, %arg2: memref<49x6x3xf32, #tpu.memory_space<vmem>>, %arg3: memref<6x1xf32, #tpu.memory_space<vmem>>, %arg4: memref<6x1xf32, #tpu.memory_space<vmem>>, %arg5: memref<1x6x448x448xf32, #tpu.memory_space<vmem>>) attributes {dimension_semantics = [#tpu.dimension_semantics<parallel>], iteration_bounds = array<i64: 2>, scalar_prefetch = 0 : i64, scratch_operands = 0 : i64, tpu.core_type = #tpu.core_type<tc>, window_params = [{transform_indices = @transform_0, window_bounds = array<i64: 1, 2, 3, 902, 451>}, {pipeline_mode = #tpu.pipeline_mode<synchronous>, transform_indices = @transform_1, window_bounds = array<i64: 49, 6, 3>}, {pipeline_mode = #tpu.pipeline_mode<synchronous>, transform_indices = @transform_2, window_bounds = array<i64: 6, 1>}, {pipeline_mode = #tpu.pipeline_mode<synchronous>, transform_indices = @transform_3, window_bounds = array<i64: 6, 1>}, {transform_indices = @transform_4, window_bounds = array<i64: 1, 6, 448, 448>}]} {
    %c0 = arith.constant 0 : index
    %c0_0 = arith.constant 0 : index
    %0 = vector.load %arg3[%c0, %c0_0] : memref<6x1xf32, #tpu.memory_space<vmem>>, vector<6x1xf32>
    %c0_1 = arith.constant 0 : index
    %c0_2 = arith.constant 0 : index
    %1 = vector.load %arg4[%c0_1, %c0_2] : memref<6x1xf32, #tpu.memory_space<vmem>>, vector<6x1xf32>
    %c0_i32 = arith.constant 0 : i32
    %c448_i32 = arith.constant 448 : i32
    %2 = arith.addi %c0_i32, %c448_i32 : i32
    %c1_i32 = arith.constant 1 : i32
    scf.for %arg6 = %c0_i32 to %2 step %c1_i32  : i32 {
      %cst = arith.constant 0.000000e+00 : f32
      %3 = vector.broadcast %cst : f32 to vector<6x448xf32>
      %c0_i32_4 = arith.constant 0 : i32
      %c7_i32 = arith.constant 7 : i32
      %4 = arith.addi %c0_i32_4, %c7_i32 : i32
      %c1_i32_5 = arith.constant 1 : i32
      %5:2 = scf.for %arg7 = %c0_i32_4 to %4 step %c1_i32_5 iter_args(%arg8 = %3, %arg9 = %3) -> (vector<6x448xf32>, vector<6x448xf32>)  : i32 {
        %c2_i32 = arith.constant 2 : i32
        %40 = arith.muli %c2_i32, %arg6 : i32
        %c0_i32_19 = arith.constant 0 : i32
        %41 = arith.addi %c0_i32_19, %arg7 : i32
        %42 = arith.addi %40, %41 : i32
        %c0_20 = arith.constant 0 : index
        %c0_21 = arith.constant 0 : index
        %c0_22 = arith.constant 0 : index
        %43 = arith.index_cast %42 : i32 to index
        %c0_23 = arith.constant 0 : index
        %44 = vector.load %arg1[%c0_20, %c0_21, %c0_22, %43, %c0_23] : memref<1x2x3x902x451xf32, #tpu.memory_space<vmem>>, vector<1x1x3x1x448xf32>
        %45 = vector.shape_cast %44 : vector<1x1x3x1x448xf32> to vector<3x448xf32>
        %c0_24 = arith.constant 0 : index
        %c1 = arith.constant 1 : index
        %c0_25 = arith.constant 0 : index
        %46 = arith.index_cast %42 : i32 to index
        %c0_26 = arith.constant 0 : index
        %47 = vector.load %arg1[%c0_24, %c1, %c0_25, %46, %c0_26] : memref<1x2x3x902x451xf32, #tpu.memory_space<vmem>>, vector<1x1x3x1x448xf32>
        %48 = vector.shape_cast %47 : vector<1x1x3x1x448xf32> to vector<3x448xf32>
        %c0_27 = arith.constant 0 : index
        %c0_28 = arith.constant 0 : index
        %c0_29 = arith.constant 0 : index
        %49 = arith.index_cast %42 : i32 to index
        %c1_30 = arith.constant 1 : index
        %50 = vector.load %arg1[%c0_27, %c0_28, %c0_29, %49, %c1_30] : memref<1x2x3x902x451xf32, #tpu.memory_space<vmem>>, vector<1x1x3x1x448xf32>
        %51 = vector.shape_cast %50 : vector<1x1x3x1x448xf32> to vector<3x448xf32>
        %c0_31 = arith.constant 0 : index
        %c1_32 = arith.constant 1 : index
        %c0_33 = arith.constant 0 : index
        %52 = arith.index_cast %42 : i32 to index
        %c1_34 = arith.constant 1 : index
        %53 = vector.load %arg1[%c0_31, %c1_32, %c0_33, %52, %c1_34] : memref<1x2x3x902x451xf32, #tpu.memory_space<vmem>>, vector<1x1x3x1x448xf32>
        %54 = vector.shape_cast %53 : vector<1x1x3x1x448xf32> to vector<3x448xf32>
        %c0_35 = arith.constant 0 : index
        %c0_36 = arith.constant 0 : index
        %c0_37 = arith.constant 0 : index
        %55 = arith.index_cast %42 : i32 to index
        %c2 = arith.constant 2 : index
        %56 = vector.load %arg1[%c0_35, %c0_36, %c0_37, %55, %c2] : memref<1x2x3x902x451xf32, #tpu.memory_space<vmem>>, vector<1x1x3x1x448xf32>
        %57 = vector.shape_cast %56 : vector<1x1x3x1x448xf32> to vector<3x448xf32>
        %c0_38 = arith.constant 0 : index
        %c1_39 = arith.constant 1 : index
        %c0_40 = arith.constant 0 : index
        %58 = arith.index_cast %42 : i32 to index
        %c2_41 = arith.constant 2 : index
        %59 = vector.load %arg1[%c0_38, %c1_39, %c0_40, %58, %c2_41] : memref<1x2x3x902x451xf32, #tpu.memory_space<vmem>>, vector<1x1x3x1x448xf32>
        %60 = vector.shape_cast %59 : vector<1x1x3x1x448xf32> to vector<3x448xf32>
        %c0_42 = arith.constant 0 : index
        %c0_43 = arith.constant 0 : index
        %c0_44 = arith.constant 0 : index
        %61 = arith.index_cast %42 : i32 to index
        %c3 = arith.constant 3 : index
        %62 = vector.load %arg1[%c0_42, %c0_43, %c0_44, %61, %c3] : memref<1x2x3x902x451xf32, #tpu.memory_space<vmem>>, vector<1x1x3x1x448xf32>
        %63 = vector.shape_cast %62 : vector<1x1x3x1x448xf32> to vector<3x448xf32>
        %c0_45 = arith.constant 0 : index
        %c1_46 = arith.constant 1 : index
        %c0_47 = arith.constant 0 : index
        %64 = arith.index_cast %42 : i32 to index
        %c3_48 = arith.constant 3 : index
        %65 = vector.load %arg1[%c0_45, %c1_46, %c0_47, %64, %c3_48] : memref<1x2x3x902x451xf32, #tpu.memory_space<vmem>>, vector<1x1x3x1x448xf32>
        %66 = vector.shape_cast %65 : vector<1x1x3x1x448xf32> to vector<3x448xf32>
        %c7_i32_49 = arith.constant 7 : i32
        %67 = arith.muli %arg7, %c7_i32_49 : i32
        %c0_i32_50 = arith.constant 0 : i32
        %68 = arith.addi %67, %c0_i32_50 : i32
        %69 = arith.index_cast %68 : i32 to index
        %c0_51 = arith.constant 0 : index
        %c0_52 = arith.constant 0 : index
        %70 = vector.load %arg2[%69, %c0_51, %c0_52] : memref<49x6x3xf32, #tpu.memory_space<vmem>>, vector<1x6x3xf32>
        %71 = vector.shape_cast %70 : vector<1x6x3xf32> to vector<6x3xf32>
        %cst_53 = arith.constant dense<0.000000e+00> : vector<6x448xf32>
        %72 = tpu.matmul %71, %45, %cst_53 {dimension_numbers = #tpu.dot_dimension_numbers<[1], [0], [0], [1], [0, 0, 1, 1], [], []>} : vector<6x3xf32>, vector<3x448xf32>, vector<6x448xf32> -> vector<6x448xf32>
        %73 = arith.addf %arg8, %72 : vector<6x448xf32>
        %cst_54 = arith.constant dense<0.000000e+00> : vector<6x448xf32>
        %74 = tpu.matmul %71, %48, %cst_54 {dimension_numbers = #tpu.dot_dimension_numbers<[1], [0], [0], [1], [0, 0, 1, 1], [], []>} : vector<6x3xf32>, vector<3x448xf32>, vector<6x448xf32> -> vector<6x448xf32>
        %75 = arith.addf %arg9, %74 : vector<6x448xf32>
        %c7_i32_55 = arith.constant 7 : i32
        %76 = arith.muli %arg7, %c7_i32_55 : i32
        %c1_i32_56 = arith.constant 1 : i32
        %77 = arith.addi %76, %c1_i32_56 : i32
        %78 = arith.index_cast %77 : i32 to index
        %c0_57 = arith.constant 0 : index
        %c0_58 = arith.constant 0 : index
        %79 = vector.load %arg2[%78, %c0_57, %c0_58] : memref<49x6x3xf32, #tpu.memory_space<vmem>>, vector<1x6x3xf32>
        %80 = vector.shape_cast %79 : vector<1x6x3xf32> to vector<6x3xf32>
        %cst_59 = arith.constant dense<0.000000e+00> : vector<6x448xf32>
        %81 = tpu.matmul %80, %48, %cst_59 {dimension_numbers = #tpu.dot_dimension_numbers<[1], [0], [0], [1], [0, 0, 1, 1], [], []>} : vector<6x3xf32>, vector<3x448xf32>, vector<6x448xf32> -> vector<6x448xf32>
        %82 = arith.addf %73, %81 : vector<6x448xf32>
        %cst_60 = arith.constant dense<0.000000e+00> : vector<6x448xf32>
        %83 = tpu.matmul %80, %51, %cst_60 {dimension_numbers = #tpu.dot_dimension_numbers<[1], [0], [0], [1], [0, 0, 1, 1], [], []>} : vector<6x3xf32>, vector<3x448xf32>, vector<6x448xf32> -> vector<6x448xf32>
        %84 = arith.addf %75, %83 : vector<6x448xf32>
        %c7_i32_61 = arith.constant 7 : i32
        %85 = arith.muli %arg7, %c7_i32_61 : i32
        %c2_i32_62 = arith.constant 2 : i32
        %86 = arith.addi %85, %c2_i32_62 : i32
        %87 = arith.index_cast %86 : i32 to index
        %c0_63 = arith.constant 0 : index
        %c0_64 = arith.constant 0 : index
        %88 = vector.load %arg2[%87, %c0_63, %c0_64] : memref<49x6x3xf32, #tpu.memory_space<vmem>>, vector<1x6x3xf32>
        %89 = vector.shape_cast %88 : vector<1x6x3xf32> to vector<6x3xf32>
        %cst_65 = arith.constant dense<0.000000e+00> : vector<6x448xf32>
        %90 = tpu.matmul %89, %51, %cst_65 {dimension_numbers = #tpu.dot_dimension_numbers<[1], [0], [0], [1], [0, 0, 1, 1], [], []>} : vector<6x3xf32>, vector<3x448xf32>, vector<6x448xf32> -> vector<6x448xf32>
        %91 = arith.addf %82, %90 : vector<6x448xf32>
        %cst_66 = arith.constant dense<0.000000e+00> : vector<6x448xf32>
        %92 = tpu.matmul %89, %54, %cst_66 {dimension_numbers = #tpu.dot_dimension_numbers<[1], [0], [0], [1], [0, 0, 1, 1], [], []>} : vector<6x3xf32>, vector<3x448xf32>, vector<6x448xf32> -> vector<6x448xf32>
        %93 = arith.addf %84, %92 : vector<6x448xf32>
        %c7_i32_67 = arith.constant 7 : i32
        %94 = arith.muli %arg7, %c7_i32_67 : i32
        %c3_i32 = arith.constant 3 : i32
        %95 = arith.addi %94, %c3_i32 : i32
        %96 = arith.index_cast %95 : i32 to index
        %c0_68 = arith.constant 0 : index
        %c0_69 = arith.constant 0 : index
        %97 = vector.load %arg2[%96, %c0_68, %c0_69] : memref<49x6x3xf32, #tpu.memory_space<vmem>>, vector<1x6x3xf32>
        %98 = vector.shape_cast %97 : vector<1x6x3xf32> to vector<6x3xf32>
        %cst_70 = arith.constant dense<0.000000e+00> : vector<6x448xf32>
        %99 = tpu.matmul %98, %54, %cst_70 {dimension_numbers = #tpu.dot_dimension_numbers<[1], [0], [0], [1], [0, 0, 1, 1], [], []>} : vector<6x3xf32>, vector<3x448xf32>, vector<6x448xf32> -> vector<6x448xf32>
        %100 = arith.addf %91, %99 : vector<6x448xf32>
        %cst_71 = arith.constant dense<0.000000e+00> : vector<6x448xf32>
        %101 = tpu.matmul %98, %57, %cst_71 {dimension_numbers = #tpu.dot_dimension_numbers<[1], [0], [0], [1], [0, 0, 1, 1], [], []>} : vector<6x3xf32>, vector<3x448xf32>, vector<6x448xf32> -> vector<6x448xf32>
        %102 = arith.addf %93, %101 : vector<6x448xf32>
        %c7_i32_72 = arith.constant 7 : i32
        %103 = arith.muli %arg7, %c7_i32_72 : i32
        %c4_i32 = arith.constant 4 : i32
        %104 = arith.addi %103, %c4_i32 : i32
        %105 = arith.index_cast %104 : i32 to index
        %c0_73 = arith.constant 0 : index
        %c0_74 = arith.constant 0 : index
        %106 = vector.load %arg2[%105, %c0_73, %c0_74] : memref<49x6x3xf32, #tpu.memory_space<vmem>>, vector<1x6x3xf32>
        %107 = vector.shape_cast %106 : vector<1x6x3xf32> to vector<6x3xf32>
        %cst_75 = arith.constant dense<0.000000e+00> : vector<6x448xf32>
        %108 = tpu.matmul %107, %57, %cst_75 {dimension_numbers = #tpu.dot_dimension_numbers<[1], [0], [0], [1], [0, 0, 1, 1], [], []>} : vector<6x3xf32>, vector<3x448xf32>, vector<6x448xf32> -> vector<6x448xf32>
        %109 = arith.addf %100, %108 : vector<6x448xf32>
        %cst_76 = arith.constant dense<0.000000e+00> : vector<6x448xf32>
        %110 = tpu.matmul %107, %60, %cst_76 {dimension_numbers = #tpu.dot_dimension_numbers<[1], [0], [0], [1], [0, 0, 1, 1], [], []>} : vector<6x3xf32>, vector<3x448xf32>, vector<6x448xf32> -> vector<6x448xf32>
        %111 = arith.addf %102, %110 : vector<6x448xf32>
        %c7_i32_77 = arith.constant 7 : i32
        %112 = arith.muli %arg7, %c7_i32_77 : i32
        %c5_i32 = arith.constant 5 : i32
        %113 = arith.addi %112, %c5_i32 : i32
        %114 = arith.index_cast %113 : i32 to index
        %c0_78 = arith.constant 0 : index
        %c0_79 = arith.constant 0 : index
        %115 = vector.load %arg2[%114, %c0_78, %c0_79] : memref<49x6x3xf32, #tpu.memory_space<vmem>>, vector<1x6x3xf32>
        %116 = vector.shape_cast %115 : vector<1x6x3xf32> to vector<6x3xf32>
        %cst_80 = arith.constant dense<0.000000e+00> : vector<6x448xf32>
        %117 = tpu.matmul %116, %60, %cst_80 {dimension_numbers = #tpu.dot_dimension_numbers<[1], [0], [0], [1], [0, 0, 1, 1], [], []>} : vector<6x3xf32>, vector<3x448xf32>, vector<6x448xf32> -> vector<6x448xf32>
        %118 = arith.addf %109, %117 : vector<6x448xf32>
        %cst_81 = arith.constant dense<0.000000e+00> : vector<6x448xf32>
        %119 = tpu.matmul %116, %63, %cst_81 {dimension_numbers = #tpu.dot_dimension_numbers<[1], [0], [0], [1], [0, 0, 1, 1], [], []>} : vector<6x3xf32>, vector<3x448xf32>, vector<6x448xf32> -> vector<6x448xf32>
        %120 = arith.addf %111, %119 : vector<6x448xf32>
        %c7_i32_82 = arith.constant 7 : i32
        %121 = arith.muli %arg7, %c7_i32_82 : i32
        %c6_i32 = arith.constant 6 : i32
        %122 = arith.addi %121, %c6_i32 : i32
        %123 = arith.index_cast %122 : i32 to index
        %c0_83 = arith.constant 0 : index
        %c0_84 = arith.constant 0 : index
        %124 = vector.load %arg2[%123, %c0_83, %c0_84] : memref<49x6x3xf32, #tpu.memory_space<vmem>>, vector<1x6x3xf32>
        %125 = vector.shape_cast %124 : vector<1x6x3xf32> to vector<6x3xf32>
        %cst_85 = arith.constant dense<0.000000e+00> : vector<6x448xf32>
        %126 = tpu.matmul %125, %63, %cst_85 {dimension_numbers = #tpu.dot_dimension_numbers<[1], [0], [0], [1], [0, 0, 1, 1], [], []>} : vector<6x3xf32>, vector<3x448xf32>, vector<6x448xf32> -> vector<6x448xf32>
        %127 = arith.addf %118, %126 : vector<6x448xf32>
        %cst_86 = arith.constant dense<0.000000e+00> : vector<6x448xf32>
        %128 = tpu.matmul %125, %66, %cst_86 {dimension_numbers = #tpu.dot_dimension_numbers<[1], [0], [0], [1], [0, 0, 1, 1], [], []>} : vector<6x3xf32>, vector<3x448xf32>, vector<6x448xf32> -> vector<6x448xf32>
        %129 = arith.addf %120, %128 : vector<6x448xf32>
        scf.yield %127, %129 : vector<6x448xf32>, vector<6x448xf32>
      }
      %c7_i32_6 = arith.constant 7 : i32
      %6 = vector.broadcast %0 : vector<6x1xf32> to vector<6x448xf32>
      %7 = arith.mulf %5#0, %6 : vector<6x448xf32>
      %8 = vector.broadcast %1 : vector<6x1xf32> to vector<6x448xf32>
      %9 = arith.addf %7, %8 : vector<6x448xf32>
      %cst_7 = arith.constant 0.000000e+00 : f32
      %10 = vector.broadcast %cst_7 : f32 to vector<6x448xf32>
      %11 = arith.maximumf %9, %10 : vector<6x448xf32>
      %12 = vector.broadcast %0 : vector<6x1xf32> to vector<6x448xf32>
      %13 = arith.mulf %5#1, %12 : vector<6x448xf32>
      %14 = vector.broadcast %1 : vector<6x1xf32> to vector<6x448xf32>
      %15 = arith.addf %13, %14 : vector<6x448xf32>
      %cst_8 = arith.constant 0.000000e+00 : f32
      %16 = vector.broadcast %cst_8 : f32 to vector<6x448xf32>
      %17 = arith.maximumf %15, %16 : vector<6x448xf32>
      %cst_9 = arith.constant 0.000000e+00 : f32
      %18 = vector.broadcast %cst_9 : f32 to vector<6x448xf32>
      %c0_i32_10 = arith.constant 0 : i32
      %c7_i32_11 = arith.constant 7 : i32
      %19 = arith.addi %c0_i32_10, %c7_i32_11 : i32
      %c1_i32_12 = arith.constant 1 : i32
      %20:2 = scf.for %arg7 = %c0_i32_10 to %19 step %c1_i32_12 iter_args(%arg8 = %18, %arg9 = %18) -> (vector<6x448xf32>, vector<6x448xf32>)  : i32 {
        %c2_i32 = arith.constant 2 : i32
        %40 = arith.muli %c2_i32, %arg6 : i32
        %c1_i32_19 = arith.constant 1 : i32
        %41 = arith.addi %c1_i32_19, %arg7 : i32
        %42 = arith.addi %40, %41 : i32
        %c0_20 = arith.constant 0 : index
        %c0_21 = arith.constant 0 : index
        %c0_22 = arith.constant 0 : index
        %43 = arith.index_cast %42 : i32 to index
        %c0_23 = arith.constant 0 : index
        %44 = vector.load %arg1[%c0_20, %c0_21, %c0_22, %43, %c0_23] : memref<1x2x3x902x451xf32, #tpu.memory_space<vmem>>, vector<1x1x3x1x448xf32>
        %45 = vector.shape_cast %44 : vector<1x1x3x1x448xf32> to vector<3x448xf32>
        %c0_24 = arith.constant 0 : index
        %c1 = arith.constant 1 : index
        %c0_25 = arith.constant 0 : index
        %46 = arith.index_cast %42 : i32 to index
        %c0_26 = arith.constant 0 : index
        %47 = vector.load %arg1[%c0_24, %c1, %c0_25, %46, %c0_26] : memref<1x2x3x902x451xf32, #tpu.memory_space<vmem>>, vector<1x1x3x1x448xf32>
        %48 = vector.shape_cast %47 : vector<1x1x3x1x448xf32> to vector<3x448xf32>
        %c0_27 = arith.constant 0 : index
        %c0_28 = arith.constant 0 : index
        %c0_29 = arith.constant 0 : index
        %49 = arith.index_cast %42 : i32 to index
        %c1_30 = arith.constant 1 : index
        %50 = vector.load %arg1[%c0_27, %c0_28, %c0_29, %49, %c1_30] : memref<1x2x3x902x451xf32, #tpu.memory_space<vmem>>, vector<1x1x3x1x448xf32>
        %51 = vector.shape_cast %50 : vector<1x1x3x1x448xf32> to vector<3x448xf32>
        %c0_31 = arith.constant 0 : index
        %c1_32 = arith.constant 1 : index
        %c0_33 = arith.constant 0 : index
        %52 = arith.index_cast %42 : i32 to index
        %c1_34 = arith.constant 1 : index
        %53 = vector.load %arg1[%c0_31, %c1_32, %c0_33, %52, %c1_34] : memref<1x2x3x902x451xf32, #tpu.memory_space<vmem>>, vector<1x1x3x1x448xf32>
        %54 = vector.shape_cast %53 : vector<1x1x3x1x448xf32> to vector<3x448xf32>
        %c0_35 = arith.constant 0 : index
        %c0_36 = arith.constant 0 : index
        %c0_37 = arith.constant 0 : index
        %55 = arith.index_cast %42 : i32 to index
        %c2 = arith.constant 2 : index
        %56 = vector.load %arg1[%c0_35, %c0_36, %c0_37, %55, %c2] : memref<1x2x3x902x451xf32, #tpu.memory_space<vmem>>, vector<1x1x3x1x448xf32>
        %57 = vector.shape_cast %56 : vector<1x1x3x1x448xf32> to vector<3x448xf32>
        %c0_38 = arith.constant 0 : index
        %c1_39 = arith.constant 1 : index
        %c0_40 = arith.constant 0 : index
        %58 = arith.index_cast %42 : i32 to index
        %c2_41 = arith.constant 2 : index
        %59 = vector.load %arg1[%c0_38, %c1_39, %c0_40, %58, %c2_41] : memref<1x2x3x902x451xf32, #tpu.memory_space<vmem>>, vector<1x1x3x1x448xf32>
        %60 = vector.shape_cast %59 : vector<1x1x3x1x448xf32> to vector<3x448xf32>
        %c0_42 = arith.constant 0 : index
        %c0_43 = arith.constant 0 : index
        %c0_44 = arith.constant 0 : index
        %61 = arith.index_cast %42 : i32 to index
        %c3 = arith.constant 3 : index
        %62 = vector.load %arg1[%c0_42, %c0_43, %c0_44, %61, %c3] : memref<1x2x3x902x451xf32, #tpu.memory_space<vmem>>, vector<1x1x3x1x448xf32>
        %63 = vector.shape_cast %62 : vector<1x1x3x1x448xf32> to vector<3x448xf32>
        %c0_45 = arith.constant 0 : index
        %c1_46 = arith.constant 1 : index
        %c0_47 = arith.constant 0 : index
        %64 = arith.index_cast %42 : i32 to index
        %c3_48 = arith.constant 3 : index
        %65 = vector.load %arg1[%c0_45, %c1_46, %c0_47, %64, %c3_48] : memref<1x2x3x902x451xf32, #tpu.memory_space<vmem>>, vector<1x1x3x1x448xf32>
        %66 = vector.shape_cast %65 : vector<1x1x3x1x448xf32> to vector<3x448xf32>
        %c7_i32_49 = arith.constant 7 : i32
        %67 = arith.muli %arg7, %c7_i32_49 : i32
        %c0_i32_50 = arith.constant 0 : i32
        %68 = arith.addi %67, %c0_i32_50 : i32
        %69 = arith.index_cast %68 : i32 to index
        %c0_51 = arith.constant 0 : index
        %c0_52 = arith.constant 0 : index
        %70 = vector.load %arg2[%69, %c0_51, %c0_52] : memref<49x6x3xf32, #tpu.memory_space<vmem>>, vector<1x6x3xf32>
        %71 = vector.shape_cast %70 : vector<1x6x3xf32> to vector<6x3xf32>
        %cst_53 = arith.constant dense<0.000000e+00> : vector<6x448xf32>
        %72 = tpu.matmul %71, %45, %cst_53 {dimension_numbers = #tpu.dot_dimension_numbers<[1], [0], [0], [1], [0, 0, 1, 1], [], []>} : vector<6x3xf32>, vector<3x448xf32>, vector<6x448xf32> -> vector<6x448xf32>
        %73 = arith.addf %arg8, %72 : vector<6x448xf32>
        %cst_54 = arith.constant dense<0.000000e+00> : vector<6x448xf32>
        %74 = tpu.matmul %71, %48, %cst_54 {dimension_numbers = #tpu.dot_dimension_numbers<[1], [0], [0], [1], [0, 0, 1, 1], [], []>} : vector<6x3xf32>, vector<3x448xf32>, vector<6x448xf32> -> vector<6x448xf32>
        %75 = arith.addf %arg9, %74 : vector<6x448xf32>
        %c7_i32_55 = arith.constant 7 : i32
        %76 = arith.muli %arg7, %c7_i32_55 : i32
        %c1_i32_56 = arith.constant 1 : i32
        %77 = arith.addi %76, %c1_i32_56 : i32
        %78 = arith.index_cast %77 : i32 to index
        %c0_57 = arith.constant 0 : index
        %c0_58 = arith.constant 0 : index
        %79 = vector.load %arg2[%78, %c0_57, %c0_58] : memref<49x6x3xf32, #tpu.memory_space<vmem>>, vector<1x6x3xf32>
        %80 = vector.shape_cast %79 : vector<1x6x3xf32> to vector<6x3xf32>
        %cst_59 = arith.constant dense<0.000000e+00> : vector<6x448xf32>
        %81 = tpu.matmul %80, %48, %cst_59 {dimension_numbers = #tpu.dot_dimension_numbers<[1], [0], [0], [1], [0, 0, 1, 1], [], []>} : vector<6x3xf32>, vector<3x448xf32>, vector<6x448xf32> -> vector<6x448xf32>
        %82 = arith.addf %73, %81 : vector<6x448xf32>
        %cst_60 = arith.constant dense<0.000000e+00> : vector<6x448xf32>
        %83 = tpu.matmul %80, %51, %cst_60 {dimension_numbers = #tpu.dot_dimension_numbers<[1], [0], [0], [1], [0, 0, 1, 1], [], []>} : vector<6x3xf32>, vector<3x448xf32>, vector<6x448xf32> -> vector<6x448xf32>
        %84 = arith.addf %75, %83 : vector<6x448xf32>
        %c7_i32_61 = arith.constant 7 : i32
        %85 = arith.muli %arg7, %c7_i32_61 : i32
        %c2_i32_62 = arith.constant 2 : i32
        %86 = arith.addi %85, %c2_i32_62 : i32
        %87 = arith.index_cast %86 : i32 to index
        %c0_63 = arith.constant 0 : index
        %c0_64 = arith.constant 0 : index
        %88 = vector.load %arg2[%87, %c0_63, %c0_64] : memref<49x6x3xf32, #tpu.memory_space<vmem>>, vector<1x6x3xf32>
        %89 = vector.shape_cast %88 : vector<1x6x3xf32> to vector<6x3xf32>
        %cst_65 = arith.constant dense<0.000000e+00> : vector<6x448xf32>
        %90 = tpu.matmul %89, %51, %cst_65 {dimension_numbers = #tpu.dot_dimension_numbers<[1], [0], [0], [1], [0, 0, 1, 1], [], []>} : vector<6x3xf32>, vector<3x448xf32>, vector<6x448xf32> -> vector<6x448xf32>
        %91 = arith.addf %82, %90 : vector<6x448xf32>
        %cst_66 = arith.constant dense<0.000000e+00> : vector<6x448xf32>
        %92 = tpu.matmul %89, %54, %cst_66 {dimension_numbers = #tpu.dot_dimension_numbers<[1], [0], [0], [1], [0, 0, 1, 1], [], []>} : vector<6x3xf32>, vector<3x448xf32>, vector<6x448xf32> -> vector<6x448xf32>
        %93 = arith.addf %84, %92 : vector<6x448xf32>
        %c7_i32_67 = arith.constant 7 : i32
        %94 = arith.muli %arg7, %c7_i32_67 : i32
        %c3_i32 = arith.constant 3 : i32
        %95 = arith.addi %94, %c3_i32 : i32
        %96 = arith.index_cast %95 : i32 to index
        %c0_68 = arith.constant 0 : index
        %c0_69 = arith.constant 0 : index
        %97 = vector.load %arg2[%96, %c0_68, %c0_69] : memref<49x6x3xf32, #tpu.memory_space<vmem>>, vector<1x6x3xf32>
        %98 = vector.shape_cast %97 : vector<1x6x3xf32> to vector<6x3xf32>
        %cst_70 = arith.constant dense<0.000000e+00> : vector<6x448xf32>
        %99 = tpu.matmul %98, %54, %cst_70 {dimension_numbers = #tpu.dot_dimension_numbers<[1], [0], [0], [1], [0, 0, 1, 1], [], []>} : vector<6x3xf32>, vector<3x448xf32>, vector<6x448xf32> -> vector<6x448xf32>
        %100 = arith.addf %91, %99 : vector<6x448xf32>
        %cst_71 = arith.constant dense<0.000000e+00> : vector<6x448xf32>
        %101 = tpu.matmul %98, %57, %cst_71 {dimension_numbers = #tpu.dot_dimension_numbers<[1], [0], [0], [1], [0, 0, 1, 1], [], []>} : vector<6x3xf32>, vector<3x448xf32>, vector<6x448xf32> -> vector<6x448xf32>
        %102 = arith.addf %93, %101 : vector<6x448xf32>
        %c7_i32_72 = arith.constant 7 : i32
        %103 = arith.muli %arg7, %c7_i32_72 : i32
        %c4_i32 = arith.constant 4 : i32
        %104 = arith.addi %103, %c4_i32 : i32
        %105 = arith.index_cast %104 : i32 to index
        %c0_73 = arith.constant 0 : index
        %c0_74 = arith.constant 0 : index
        %106 = vector.load %arg2[%105, %c0_73, %c0_74] : memref<49x6x3xf32, #tpu.memory_space<vmem>>, vector<1x6x3xf32>
        %107 = vector.shape_cast %106 : vector<1x6x3xf32> to vector<6x3xf32>
        %cst_75 = arith.constant dense<0.000000e+00> : vector<6x448xf32>
        %108 = tpu.matmul %107, %57, %cst_75 {dimension_numbers = #tpu.dot_dimension_numbers<[1], [0], [0], [1], [0, 0, 1, 1], [], []>} : vector<6x3xf32>, vector<3x448xf32>, vector<6x448xf32> -> vector<6x448xf32>
        %109 = arith.addf %100, %108 : vector<6x448xf32>
        %cst_76 = arith.constant dense<0.000000e+00> : vector<6x448xf32>
        %110 = tpu.matmul %107, %60, %cst_76 {dimension_numbers = #tpu.dot_dimension_numbers<[1], [0], [0], [1], [0, 0, 1, 1], [], []>} : vector<6x3xf32>, vector<3x448xf32>, vector<6x448xf32> -> vector<6x448xf32>
        %111 = arith.addf %102, %110 : vector<6x448xf32>
        %c7_i32_77 = arith.constant 7 : i32
        %112 = arith.muli %arg7, %c7_i32_77 : i32
        %c5_i32 = arith.constant 5 : i32
        %113 = arith.addi %112, %c5_i32 : i32
        %114 = arith.index_cast %113 : i32 to index
        %c0_78 = arith.constant 0 : index
        %c0_79 = arith.constant 0 : index
        %115 = vector.load %arg2[%114, %c0_78, %c0_79] : memref<49x6x3xf32, #tpu.memory_space<vmem>>, vector<1x6x3xf32>
        %116 = vector.shape_cast %115 : vector<1x6x3xf32> to vector<6x3xf32>
        %cst_80 = arith.constant dense<0.000000e+00> : vector<6x448xf32>
        %117 = tpu.matmul %116, %60, %cst_80 {dimension_numbers = #tpu.dot_dimension_numbers<[1], [0], [0], [1], [0, 0, 1, 1], [], []>} : vector<6x3xf32>, vector<3x448xf32>, vector<6x448xf32> -> vector<6x448xf32>
        %118 = arith.addf %109, %117 : vector<6x448xf32>
        %cst_81 = arith.constant dense<0.000000e+00> : vector<6x448xf32>
        %119 = tpu.matmul %116, %63, %cst_81 {dimension_numbers = #tpu.dot_dimension_numbers<[1], [0], [0], [1], [0, 0, 1, 1], [], []>} : vector<6x3xf32>, vector<3x448xf32>, vector<6x448xf32> -> vector<6x448xf32>
        %120 = arith.addf %111, %119 : vector<6x448xf32>
        %c7_i32_82 = arith.constant 7 : i32
        %121 = arith.muli %arg7, %c7_i32_82 : i32
        %c6_i32 = arith.constant 6 : i32
        %122 = arith.addi %121, %c6_i32 : i32
        %123 = arith.index_cast %122 : i32 to index
        %c0_83 = arith.constant 0 : index
        %c0_84 = arith.constant 0 : index
        %124 = vector.load %arg2[%123, %c0_83, %c0_84] : memref<49x6x3xf32, #tpu.memory_space<vmem>>, vector<1x6x3xf32>
        %125 = vector.shape_cast %124 : vector<1x6x3xf32> to vector<6x3xf32>
        %cst_85 = arith.constant dense<0.000000e+00> : vector<6x448xf32>
        %126 = tpu.matmul %125, %63, %cst_85 {dimension_numbers = #tpu.dot_dimension_numbers<[1], [0], [0], [1], [0, 0, 1, 1], [], []>} : vector<6x3xf32>, vector<3x448xf32>, vector<6x448xf32> -> vector<6x448xf32>
        %127 = arith.addf %118, %126 : vector<6x448xf32>
        %cst_86 = arith.constant dense<0.000000e+00> : vector<6x448xf32>
        %128 = tpu.matmul %125, %66, %cst_86 {dimension_numbers = #tpu.dot_dimension_numbers<[1], [0], [0], [1], [0, 0, 1, 1], [], []>} : vector<6x3xf32>, vector<3x448xf32>, vector<6x448xf32> -> vector<6x448xf32>
        %129 = arith.addf %120, %128 : vector<6x448xf32>
        scf.yield %127, %129 : vector<6x448xf32>, vector<6x448xf32>
      }
      %c7_i32_13 = arith.constant 7 : i32
      %21 = vector.broadcast %0 : vector<6x1xf32> to vector<6x448xf32>
      %22 = arith.mulf %20#0, %21 : vector<6x448xf32>
      %23 = vector.broadcast %1 : vector<6x1xf32> to vector<6x448xf32>
      %24 = arith.addf %22, %23 : vector<6x448xf32>
      %cst_14 = arith.constant 0.000000e+00 : f32
      %25 = vector.broadcast %cst_14 : f32 to vector<6x448xf32>
      %26 = arith.maximumf %24, %25 : vector<6x448xf32>
      %27 = vector.broadcast %0 : vector<6x1xf32> to vector<6x448xf32>
      %28 = arith.mulf %20#1, %27 : vector<6x448xf32>
      %29 = vector.broadcast %1 : vector<6x1xf32> to vector<6x448xf32>
      %30 = arith.addf %28, %29 : vector<6x448xf32>
      %cst_15 = arith.constant 0.000000e+00 : f32
      %31 = vector.broadcast %cst_15 : f32 to vector<6x448xf32>
      %32 = arith.maximumf %30, %31 : vector<6x448xf32>
      %33 = arith.maximumf %11, %17 : vector<6x448xf32>
      %34 = arith.maximumf %26, %32 : vector<6x448xf32>
      %35 = arith.maximumf %33, %34 : vector<6x448xf32>
      %c0_16 = arith.constant 0 : index
      %c0_17 = arith.constant 0 : index
      %36 = arith.index_cast %arg6 : i32 to index
      %c0_18 = arith.constant 0 : index
      %37 = vector.load %arg5[%c0_16, %c0_17, %36, %c0_18] : memref<1x6x448x448xf32, #tpu.memory_space<vmem>>, vector<1x6x1x448xf32>
      %38 = vector.shape_cast %37 : vector<1x6x1x448xf32> to vector<6x448xf32>
      %39 = vector.shape_cast %35 : vector<6x448xf32> to vector<1x6x1x448xf32>
      tpu.vector_store %arg5[%c0_16, %c0_17, %36, %c0_18], %39 {strides = array<i32>} : memref<1x6x448x448xf32, #tpu.memory_space<vmem>>, vector<1x6x1x448xf32>,
    }
    %c448_i32_3 = arith.constant 448 : i32
    return
  }
  func.func @transform_0(%arg0: i32) -> (i32, i32, i32, i32, i32) {
    %c0_i32 = arith.constant 0 : i32
    %c0_i32_0 = arith.constant 0 : i32
    %c0_i32_1 = arith.constant 0 : i32
    %c0_i32_2 = arith.constant 0 : i32
    %c0_i32_3 = arith.constant 0 : i32
    return %arg0, %c0_i32, %c0_i32_0, %c0_i32_1, %c0_i32_2 : i32, i32, i32, i32, i32
  }
  func.func @transform_1(%arg0: i32) -> (i32, i32, i32) {
    %c0_i32 = arith.constant 0 : i32
    %c0_i32_0 = arith.constant 0 : i32
    %c0_i32_1 = arith.constant 0 : i32
    %c0_i32_2 = arith.constant 0 : i32
    return %c0_i32, %c0_i32_0, %c0_i32_1 : i32, i32, i32
  }
  func.func @transform_2(%arg0: i32) -> (i32, i32) {
    %c0_i32 = arith.constant 0 : i32
    %c0_i32_0 = arith.constant 0 : i32
    %c0_i32_1 = arith.constant 0 : i32
    return %c0_i32, %c0_i32_0 : i32, i32
  }
  func.func @transform_3(%arg0: i32) -> (i32, i32) {
    %c0_i32 = arith.constant 0 : i32
    %c0_i32_0 = arith.constant 0 : i32
    %c0_i32_1 = arith.constant 0 : i32
    return %c0_i32, %c0_i32_0 : i32, i32
  }
  func.func @transform_4(%arg0: i32) -> (i32, i32, i32, i32) {
    %c0_i32 = arith.constant 0 : i32
    %c0_i32_0 = arith.constant 0 : i32
    %c0_i32_1 = arith.constant 0 : i32
    %c0_i32_2 = arith.constant 0 : i32
    return %arg0, %c0_i32, %c0_i32_0, %c0_i32_1 : i32, i32, i32, i32
  }
}

module attributes {stable_mosaic.version = 11 : i64} {
  func.func @_conv_bn_relu_pool_kernel(%arg0: i32, %arg1: memref<1x2x6x454x227xf32, #tpu.memory_space<vmem>>, %arg2: memref<49x12x6xf32, #tpu.memory_space<vmem>>, %arg3: memref<12x1xf32, #tpu.memory_space<vmem>>, %arg4: memref<12x1xf32, #tpu.memory_space<vmem>>, %arg5: memref<1x12x224x224xf32, #tpu.memory_space<vmem>>) attributes {dimension_semantics = [#tpu.dimension_semantics<parallel>], iteration_bounds = array<i64: 2>, scalar_prefetch = 0 : i64, scratch_operands = 0 : i64, tpu.core_type = #tpu.core_type<tc>, window_params = [{transform_indices = @transform_0, window_bounds = array<i64: 1, 2, 6, 454, 227>}, {pipeline_mode = #tpu.pipeline_mode<synchronous>, transform_indices = @transform_1, window_bounds = array<i64: 49, 12, 6>}, {pipeline_mode = #tpu.pipeline_mode<synchronous>, transform_indices = @transform_2, window_bounds = array<i64: 12, 1>}, {pipeline_mode = #tpu.pipeline_mode<synchronous>, transform_indices = @transform_3, window_bounds = array<i64: 12, 1>}, {transform_indices = @transform_4, window_bounds = array<i64: 1, 12, 224, 224>}]} {
    %c0 = arith.constant 0 : index
    %c0_0 = arith.constant 0 : index
    %0 = vector.load %arg3[%c0, %c0_0] : memref<12x1xf32, #tpu.memory_space<vmem>>, vector<12x1xf32>
    %c0_1 = arith.constant 0 : index
    %c0_2 = arith.constant 0 : index
    %1 = vector.load %arg4[%c0_1, %c0_2] : memref<12x1xf32, #tpu.memory_space<vmem>>, vector<12x1xf32>
    %c0_i32 = arith.constant 0 : i32
    %c224_i32 = arith.constant 224 : i32
    %2 = arith.addi %c0_i32, %c224_i32 : i32
    %c1_i32 = arith.constant 1 : i32
    scf.for %arg6 = %c0_i32 to %2 step %c1_i32  : i32 {
      %cst = arith.constant 0.000000e+00 : f32
      %3 = vector.broadcast %cst : f32 to vector<12x224xf32>
      %c0_i32_4 = arith.constant 0 : i32
      %c7_i32 = arith.constant 7 : i32
      %4 = arith.addi %c0_i32_4, %c7_i32 : i32
      %c1_i32_5 = arith.constant 1 : i32
      %5:2 = scf.for %arg7 = %c0_i32_4 to %4 step %c1_i32_5 iter_args(%arg8 = %3, %arg9 = %3) -> (vector<12x224xf32>, vector<12x224xf32>)  : i32 {
        %c2_i32 = arith.constant 2 : i32
        %40 = arith.muli %c2_i32, %arg6 : i32
        %c0_i32_19 = arith.constant 0 : i32
        %41 = arith.addi %c0_i32_19, %arg7 : i32
        %42 = arith.addi %40, %41 : i32
        %c0_20 = arith.constant 0 : index
        %c0_21 = arith.constant 0 : index
        %c0_22 = arith.constant 0 : index
        %43 = arith.index_cast %42 : i32 to index
        %c0_23 = arith.constant 0 : index
        %44 = vector.load %arg1[%c0_20, %c0_21, %c0_22, %43, %c0_23] : memref<1x2x6x454x227xf32, #tpu.memory_space<vmem>>, vector<1x1x6x1x224xf32>
        %45 = vector.shape_cast %44 : vector<1x1x6x1x224xf32> to vector<6x224xf32>
        %c0_24 = arith.constant 0 : index
        %c1 = arith.constant 1 : index
        %c0_25 = arith.constant 0 : index
        %46 = arith.index_cast %42 : i32 to index
        %c0_26 = arith.constant 0 : index
        %47 = vector.load %arg1[%c0_24, %c1, %c0_25, %46, %c0_26] : memref<1x2x6x454x227xf32, #tpu.memory_space<vmem>>, vector<1x1x6x1x224xf32>
        %48 = vector.shape_cast %47 : vector<1x1x6x1x224xf32> to vector<6x224xf32>
        %c0_27 = arith.constant 0 : index
        %c0_28 = arith.constant 0 : index
        %c0_29 = arith.constant 0 : index
        %49 = arith.index_cast %42 : i32 to index
        %c1_30 = arith.constant 1 : index
        %50 = vector.load %arg1[%c0_27, %c0_28, %c0_29, %49, %c1_30] : memref<1x2x6x454x227xf32, #tpu.memory_space<vmem>>, vector<1x1x6x1x224xf32>
        %51 = vector.shape_cast %50 : vector<1x1x6x1x224xf32> to vector<6x224xf32>
        %c0_31 = arith.constant 0 : index
        %c1_32 = arith.constant 1 : index
        %c0_33 = arith.constant 0 : index
        %52 = arith.index_cast %42 : i32 to index
        %c1_34 = arith.constant 1 : index
        %53 = vector.load %arg1[%c0_31, %c1_32, %c0_33, %52, %c1_34] : memref<1x2x6x454x227xf32, #tpu.memory_space<vmem>>, vector<1x1x6x1x224xf32>
        %54 = vector.shape_cast %53 : vector<1x1x6x1x224xf32> to vector<6x224xf32>
        %c0_35 = arith.constant 0 : index
        %c0_36 = arith.constant 0 : index
        %c0_37 = arith.constant 0 : index
        %55 = arith.index_cast %42 : i32 to index
        %c2 = arith.constant 2 : index
        %56 = vector.load %arg1[%c0_35, %c0_36, %c0_37, %55, %c2] : memref<1x2x6x454x227xf32, #tpu.memory_space<vmem>>, vector<1x1x6x1x224xf32>
        %57 = vector.shape_cast %56 : vector<1x1x6x1x224xf32> to vector<6x224xf32>
        %c0_38 = arith.constant 0 : index
        %c1_39 = arith.constant 1 : index
        %c0_40 = arith.constant 0 : index
        %58 = arith.index_cast %42 : i32 to index
        %c2_41 = arith.constant 2 : index
        %59 = vector.load %arg1[%c0_38, %c1_39, %c0_40, %58, %c2_41] : memref<1x2x6x454x227xf32, #tpu.memory_space<vmem>>, vector<1x1x6x1x224xf32>
        %60 = vector.shape_cast %59 : vector<1x1x6x1x224xf32> to vector<6x224xf32>
        %c0_42 = arith.constant 0 : index
        %c0_43 = arith.constant 0 : index
        %c0_44 = arith.constant 0 : index
        %61 = arith.index_cast %42 : i32 to index
        %c3 = arith.constant 3 : index
        %62 = vector.load %arg1[%c0_42, %c0_43, %c0_44, %61, %c3] : memref<1x2x6x454x227xf32, #tpu.memory_space<vmem>>, vector<1x1x6x1x224xf32>
        %63 = vector.shape_cast %62 : vector<1x1x6x1x224xf32> to vector<6x224xf32>
        %c0_45 = arith.constant 0 : index
        %c1_46 = arith.constant 1 : index
        %c0_47 = arith.constant 0 : index
        %64 = arith.index_cast %42 : i32 to index
        %c3_48 = arith.constant 3 : index
        %65 = vector.load %arg1[%c0_45, %c1_46, %c0_47, %64, %c3_48] : memref<1x2x6x454x227xf32, #tpu.memory_space<vmem>>, vector<1x1x6x1x224xf32>
        %66 = vector.shape_cast %65 : vector<1x1x6x1x224xf32> to vector<6x224xf32>
        %c7_i32_49 = arith.constant 7 : i32
        %67 = arith.muli %arg7, %c7_i32_49 : i32
        %c0_i32_50 = arith.constant 0 : i32
        %68 = arith.addi %67, %c0_i32_50 : i32
        %69 = arith.index_cast %68 : i32 to index
        %c0_51 = arith.constant 0 : index
        %c0_52 = arith.constant 0 : index
        %70 = vector.load %arg2[%69, %c0_51, %c0_52] : memref<49x12x6xf32, #tpu.memory_space<vmem>>, vector<1x12x6xf32>
        %71 = vector.shape_cast %70 : vector<1x12x6xf32> to vector<12x6xf32>
        %cst_53 = arith.constant dense<0.000000e+00> : vector<12x224xf32>
        %72 = tpu.matmul %71, %45, %cst_53 {dimension_numbers = #tpu.dot_dimension_numbers<[1], [0], [0], [1], [0, 0, 1, 1], [], []>} : vector<12x6xf32>, vector<6x224xf32>, vector<12x224xf32> -> vector<12x224xf32>
        %73 = arith.addf %arg8, %72 : vector<12x224xf32>
        %cst_54 = arith.constant dense<0.000000e+00> : vector<12x224xf32>
        %74 = tpu.matmul %71, %48, %cst_54 {dimension_numbers = #tpu.dot_dimension_numbers<[1], [0], [0], [1], [0, 0, 1, 1], [], []>} : vector<12x6xf32>, vector<6x224xf32>, vector<12x224xf32> -> vector<12x224xf32>
        %75 = arith.addf %arg9, %74 : vector<12x224xf32>
        %c7_i32_55 = arith.constant 7 : i32
        %76 = arith.muli %arg7, %c7_i32_55 : i32
        %c1_i32_56 = arith.constant 1 : i32
        %77 = arith.addi %76, %c1_i32_56 : i32
        %78 = arith.index_cast %77 : i32 to index
        %c0_57 = arith.constant 0 : index
        %c0_58 = arith.constant 0 : index
        %79 = vector.load %arg2[%78, %c0_57, %c0_58] : memref<49x12x6xf32, #tpu.memory_space<vmem>>, vector<1x12x6xf32>
        %80 = vector.shape_cast %79 : vector<1x12x6xf32> to vector<12x6xf32>
        %cst_59 = arith.constant dense<0.000000e+00> : vector<12x224xf32>
        %81 = tpu.matmul %80, %48, %cst_59 {dimension_numbers = #tpu.dot_dimension_numbers<[1], [0], [0], [1], [0, 0, 1, 1], [], []>} : vector<12x6xf32>, vector<6x224xf32>, vector<12x224xf32> -> vector<12x224xf32>
        %82 = arith.addf %73, %81 : vector<12x224xf32>
        %cst_60 = arith.constant dense<0.000000e+00> : vector<12x224xf32>
        %83 = tpu.matmul %80, %51, %cst_60 {dimension_numbers = #tpu.dot_dimension_numbers<[1], [0], [0], [1], [0, 0, 1, 1], [], []>} : vector<12x6xf32>, vector<6x224xf32>, vector<12x224xf32> -> vector<12x224xf32>
        %84 = arith.addf %75, %83 : vector<12x224xf32>
        %c7_i32_61 = arith.constant 7 : i32
        %85 = arith.muli %arg7, %c7_i32_61 : i32
        %c2_i32_62 = arith.constant 2 : i32
        %86 = arith.addi %85, %c2_i32_62 : i32
        %87 = arith.index_cast %86 : i32 to index
        %c0_63 = arith.constant 0 : index
        %c0_64 = arith.constant 0 : index
        %88 = vector.load %arg2[%87, %c0_63, %c0_64] : memref<49x12x6xf32, #tpu.memory_space<vmem>>, vector<1x12x6xf32>
        %89 = vector.shape_cast %88 : vector<1x12x6xf32> to vector<12x6xf32>
        %cst_65 = arith.constant dense<0.000000e+00> : vector<12x224xf32>
        %90 = tpu.matmul %89, %51, %cst_65 {dimension_numbers = #tpu.dot_dimension_numbers<[1], [0], [0], [1], [0, 0, 1, 1], [], []>} : vector<12x6xf32>, vector<6x224xf32>, vector<12x224xf32> -> vector<12x224xf32>
        %91 = arith.addf %82, %90 : vector<12x224xf32>
        %cst_66 = arith.constant dense<0.000000e+00> : vector<12x224xf32>
        %92 = tpu.matmul %89, %54, %cst_66 {dimension_numbers = #tpu.dot_dimension_numbers<[1], [0], [0], [1], [0, 0, 1, 1], [], []>} : vector<12x6xf32>, vector<6x224xf32>, vector<12x224xf32> -> vector<12x224xf32>
        %93 = arith.addf %84, %92 : vector<12x224xf32>
        %c7_i32_67 = arith.constant 7 : i32
        %94 = arith.muli %arg7, %c7_i32_67 : i32
        %c3_i32 = arith.constant 3 : i32
        %95 = arith.addi %94, %c3_i32 : i32
        %96 = arith.index_cast %95 : i32 to index
        %c0_68 = arith.constant 0 : index
        %c0_69 = arith.constant 0 : index
        %97 = vector.load %arg2[%96, %c0_68, %c0_69] : memref<49x12x6xf32, #tpu.memory_space<vmem>>, vector<1x12x6xf32>
        %98 = vector.shape_cast %97 : vector<1x12x6xf32> to vector<12x6xf32>
        %cst_70 = arith.constant dense<0.000000e+00> : vector<12x224xf32>
        %99 = tpu.matmul %98, %54, %cst_70 {dimension_numbers = #tpu.dot_dimension_numbers<[1], [0], [0], [1], [0, 0, 1, 1], [], []>} : vector<12x6xf32>, vector<6x224xf32>, vector<12x224xf32> -> vector<12x224xf32>
        %100 = arith.addf %91, %99 : vector<12x224xf32>
        %cst_71 = arith.constant dense<0.000000e+00> : vector<12x224xf32>
        %101 = tpu.matmul %98, %57, %cst_71 {dimension_numbers = #tpu.dot_dimension_numbers<[1], [0], [0], [1], [0, 0, 1, 1], [], []>} : vector<12x6xf32>, vector<6x224xf32>, vector<12x224xf32> -> vector<12x224xf32>
        %102 = arith.addf %93, %101 : vector<12x224xf32>
        %c7_i32_72 = arith.constant 7 : i32
        %103 = arith.muli %arg7, %c7_i32_72 : i32
        %c4_i32 = arith.constant 4 : i32
        %104 = arith.addi %103, %c4_i32 : i32
        %105 = arith.index_cast %104 : i32 to index
        %c0_73 = arith.constant 0 : index
        %c0_74 = arith.constant 0 : index
        %106 = vector.load %arg2[%105, %c0_73, %c0_74] : memref<49x12x6xf32, #tpu.memory_space<vmem>>, vector<1x12x6xf32>
        %107 = vector.shape_cast %106 : vector<1x12x6xf32> to vector<12x6xf32>
        %cst_75 = arith.constant dense<0.000000e+00> : vector<12x224xf32>
        %108 = tpu.matmul %107, %57, %cst_75 {dimension_numbers = #tpu.dot_dimension_numbers<[1], [0], [0], [1], [0, 0, 1, 1], [], []>} : vector<12x6xf32>, vector<6x224xf32>, vector<12x224xf32> -> vector<12x224xf32>
        %109 = arith.addf %100, %108 : vector<12x224xf32>
        %cst_76 = arith.constant dense<0.000000e+00> : vector<12x224xf32>
        %110 = tpu.matmul %107, %60, %cst_76 {dimension_numbers = #tpu.dot_dimension_numbers<[1], [0], [0], [1], [0, 0, 1, 1], [], []>} : vector<12x6xf32>, vector<6x224xf32>, vector<12x224xf32> -> vector<12x224xf32>
        %111 = arith.addf %102, %110 : vector<12x224xf32>
        %c7_i32_77 = arith.constant 7 : i32
        %112 = arith.muli %arg7, %c7_i32_77 : i32
        %c5_i32 = arith.constant 5 : i32
        %113 = arith.addi %112, %c5_i32 : i32
        %114 = arith.index_cast %113 : i32 to index
        %c0_78 = arith.constant 0 : index
        %c0_79 = arith.constant 0 : index
        %115 = vector.load %arg2[%114, %c0_78, %c0_79] : memref<49x12x6xf32, #tpu.memory_space<vmem>>, vector<1x12x6xf32>
        %116 = vector.shape_cast %115 : vector<1x12x6xf32> to vector<12x6xf32>
        %cst_80 = arith.constant dense<0.000000e+00> : vector<12x224xf32>
        %117 = tpu.matmul %116, %60, %cst_80 {dimension_numbers = #tpu.dot_dimension_numbers<[1], [0], [0], [1], [0, 0, 1, 1], [], []>} : vector<12x6xf32>, vector<6x224xf32>, vector<12x224xf32> -> vector<12x224xf32>
        %118 = arith.addf %109, %117 : vector<12x224xf32>
        %cst_81 = arith.constant dense<0.000000e+00> : vector<12x224xf32>
        %119 = tpu.matmul %116, %63, %cst_81 {dimension_numbers = #tpu.dot_dimension_numbers<[1], [0], [0], [1], [0, 0, 1, 1], [], []>} : vector<12x6xf32>, vector<6x224xf32>, vector<12x224xf32> -> vector<12x224xf32>
        %120 = arith.addf %111, %119 : vector<12x224xf32>
        %c7_i32_82 = arith.constant 7 : i32
        %121 = arith.muli %arg7, %c7_i32_82 : i32
        %c6_i32 = arith.constant 6 : i32
        %122 = arith.addi %121, %c6_i32 : i32
        %123 = arith.index_cast %122 : i32 to index
        %c0_83 = arith.constant 0 : index
        %c0_84 = arith.constant 0 : index
        %124 = vector.load %arg2[%123, %c0_83, %c0_84] : memref<49x12x6xf32, #tpu.memory_space<vmem>>, vector<1x12x6xf32>
        %125 = vector.shape_cast %124 : vector<1x12x6xf32> to vector<12x6xf32>
        %cst_85 = arith.constant dense<0.000000e+00> : vector<12x224xf32>
        %126 = tpu.matmul %125, %63, %cst_85 {dimension_numbers = #tpu.dot_dimension_numbers<[1], [0], [0], [1], [0, 0, 1, 1], [], []>} : vector<12x6xf32>, vector<6x224xf32>, vector<12x224xf32> -> vector<12x224xf32>
        %127 = arith.addf %118, %126 : vector<12x224xf32>
        %cst_86 = arith.constant dense<0.000000e+00> : vector<12x224xf32>
        %128 = tpu.matmul %125, %66, %cst_86 {dimension_numbers = #tpu.dot_dimension_numbers<[1], [0], [0], [1], [0, 0, 1, 1], [], []>} : vector<12x6xf32>, vector<6x224xf32>, vector<12x224xf32> -> vector<12x224xf32>
        %129 = arith.addf %120, %128 : vector<12x224xf32>
        scf.yield %127, %129 : vector<12x224xf32>, vector<12x224xf32>
      }
      %c7_i32_6 = arith.constant 7 : i32
      %6 = vector.broadcast %0 : vector<12x1xf32> to vector<12x224xf32>
      %7 = arith.mulf %5#0, %6 : vector<12x224xf32>
      %8 = vector.broadcast %1 : vector<12x1xf32> to vector<12x224xf32>
      %9 = arith.addf %7, %8 : vector<12x224xf32>
      %cst_7 = arith.constant 0.000000e+00 : f32
      %10 = vector.broadcast %cst_7 : f32 to vector<12x224xf32>
      %11 = arith.maximumf %9, %10 : vector<12x224xf32>
      %12 = vector.broadcast %0 : vector<12x1xf32> to vector<12x224xf32>
      %13 = arith.mulf %5#1, %12 : vector<12x224xf32>
      %14 = vector.broadcast %1 : vector<12x1xf32> to vector<12x224xf32>
      %15 = arith.addf %13, %14 : vector<12x224xf32>
      %cst_8 = arith.constant 0.000000e+00 : f32
      %16 = vector.broadcast %cst_8 : f32 to vector<12x224xf32>
      %17 = arith.maximumf %15, %16 : vector<12x224xf32>
      %cst_9 = arith.constant 0.000000e+00 : f32
      %18 = vector.broadcast %cst_9 : f32 to vector<12x224xf32>
      %c0_i32_10 = arith.constant 0 : i32
      %c7_i32_11 = arith.constant 7 : i32
      %19 = arith.addi %c0_i32_10, %c7_i32_11 : i32
      %c1_i32_12 = arith.constant 1 : i32
      %20:2 = scf.for %arg7 = %c0_i32_10 to %19 step %c1_i32_12 iter_args(%arg8 = %18, %arg9 = %18) -> (vector<12x224xf32>, vector<12x224xf32>)  : i32 {
        %c2_i32 = arith.constant 2 : i32
        %40 = arith.muli %c2_i32, %arg6 : i32
        %c1_i32_19 = arith.constant 1 : i32
        %41 = arith.addi %c1_i32_19, %arg7 : i32
        %42 = arith.addi %40, %41 : i32
        %c0_20 = arith.constant 0 : index
        %c0_21 = arith.constant 0 : index
        %c0_22 = arith.constant 0 : index
        %43 = arith.index_cast %42 : i32 to index
        %c0_23 = arith.constant 0 : index
        %44 = vector.load %arg1[%c0_20, %c0_21, %c0_22, %43, %c0_23] : memref<1x2x6x454x227xf32, #tpu.memory_space<vmem>>, vector<1x1x6x1x224xf32>
        %45 = vector.shape_cast %44 : vector<1x1x6x1x224xf32> to vector<6x224xf32>
        %c0_24 = arith.constant 0 : index
        %c1 = arith.constant 1 : index
        %c0_25 = arith.constant 0 : index
        %46 = arith.index_cast %42 : i32 to index
        %c0_26 = arith.constant 0 : index
        %47 = vector.load %arg1[%c0_24, %c1, %c0_25, %46, %c0_26] : memref<1x2x6x454x227xf32, #tpu.memory_space<vmem>>, vector<1x1x6x1x224xf32>
        %48 = vector.shape_cast %47 : vector<1x1x6x1x224xf32> to vector<6x224xf32>
        %c0_27 = arith.constant 0 : index
        %c0_28 = arith.constant 0 : index
        %c0_29 = arith.constant 0 : index
        %49 = arith.index_cast %42 : i32 to index
        %c1_30 = arith.constant 1 : index
        %50 = vector.load %arg1[%c0_27, %c0_28, %c0_29, %49, %c1_30] : memref<1x2x6x454x227xf32, #tpu.memory_space<vmem>>, vector<1x1x6x1x224xf32>
        %51 = vector.shape_cast %50 : vector<1x1x6x1x224xf32> to vector<6x224xf32>
        %c0_31 = arith.constant 0 : index
        %c1_32 = arith.constant 1 : index
        %c0_33 = arith.constant 0 : index
        %52 = arith.index_cast %42 : i32 to index
        %c1_34 = arith.constant 1 : index
        %53 = vector.load %arg1[%c0_31, %c1_32, %c0_33, %52, %c1_34] : memref<1x2x6x454x227xf32, #tpu.memory_space<vmem>>, vector<1x1x6x1x224xf32>
        %54 = vector.shape_cast %53 : vector<1x1x6x1x224xf32> to vector<6x224xf32>
        %c0_35 = arith.constant 0 : index
        %c0_36 = arith.constant 0 : index
        %c0_37 = arith.constant 0 : index
        %55 = arith.index_cast %42 : i32 to index
        %c2 = arith.constant 2 : index
        %56 = vector.load %arg1[%c0_35, %c0_36, %c0_37, %55, %c2] : memref<1x2x6x454x227xf32, #tpu.memory_space<vmem>>, vector<1x1x6x1x224xf32>
        %57 = vector.shape_cast %56 : vector<1x1x6x1x224xf32> to vector<6x224xf32>
        %c0_38 = arith.constant 0 : index
        %c1_39 = arith.constant 1 : index
        %c0_40 = arith.constant 0 : index
        %58 = arith.index_cast %42 : i32 to index
        %c2_41 = arith.constant 2 : index
        %59 = vector.load %arg1[%c0_38, %c1_39, %c0_40, %58, %c2_41] : memref<1x2x6x454x227xf32, #tpu.memory_space<vmem>>, vector<1x1x6x1x224xf32>
        %60 = vector.shape_cast %59 : vector<1x1x6x1x224xf32> to vector<6x224xf32>
        %c0_42 = arith.constant 0 : index
        %c0_43 = arith.constant 0 : index
        %c0_44 = arith.constant 0 : index
        %61 = arith.index_cast %42 : i32 to index
        %c3 = arith.constant 3 : index
        %62 = vector.load %arg1[%c0_42, %c0_43, %c0_44, %61, %c3] : memref<1x2x6x454x227xf32, #tpu.memory_space<vmem>>, vector<1x1x6x1x224xf32>
        %63 = vector.shape_cast %62 : vector<1x1x6x1x224xf32> to vector<6x224xf32>
        %c0_45 = arith.constant 0 : index
        %c1_46 = arith.constant 1 : index
        %c0_47 = arith.constant 0 : index
        %64 = arith.index_cast %42 : i32 to index
        %c3_48 = arith.constant 3 : index
        %65 = vector.load %arg1[%c0_45, %c1_46, %c0_47, %64, %c3_48] : memref<1x2x6x454x227xf32, #tpu.memory_space<vmem>>, vector<1x1x6x1x224xf32>
        %66 = vector.shape_cast %65 : vector<1x1x6x1x224xf32> to vector<6x224xf32>
        %c7_i32_49 = arith.constant 7 : i32
        %67 = arith.muli %arg7, %c7_i32_49 : i32
        %c0_i32_50 = arith.constant 0 : i32
        %68 = arith.addi %67, %c0_i32_50 : i32
        %69 = arith.index_cast %68 : i32 to index
        %c0_51 = arith.constant 0 : index
        %c0_52 = arith.constant 0 : index
        %70 = vector.load %arg2[%69, %c0_51, %c0_52] : memref<49x12x6xf32, #tpu.memory_space<vmem>>, vector<1x12x6xf32>
        %71 = vector.shape_cast %70 : vector<1x12x6xf32> to vector<12x6xf32>
        %cst_53 = arith.constant dense<0.000000e+00> : vector<12x224xf32>
        %72 = tpu.matmul %71, %45, %cst_53 {dimension_numbers = #tpu.dot_dimension_numbers<[1], [0], [0], [1], [0, 0, 1, 1], [], []>} : vector<12x6xf32>, vector<6x224xf32>, vector<12x224xf32> -> vector<12x224xf32>
        %73 = arith.addf %arg8, %72 : vector<12x224xf32>
        %cst_54 = arith.constant dense<0.000000e+00> : vector<12x224xf32>
        %74 = tpu.matmul %71, %48, %cst_54 {dimension_numbers = #tpu.dot_dimension_numbers<[1], [0], [0], [1], [0, 0, 1, 1], [], []>} : vector<12x6xf32>, vector<6x224xf32>, vector<12x224xf32> -> vector<12x224xf32>
        %75 = arith.addf %arg9, %74 : vector<12x224xf32>
        %c7_i32_55 = arith.constant 7 : i32
        %76 = arith.muli %arg7, %c7_i32_55 : i32
        %c1_i32_56 = arith.constant 1 : i32
        %77 = arith.addi %76, %c1_i32_56 : i32
        %78 = arith.index_cast %77 : i32 to index
        %c0_57 = arith.constant 0 : index
        %c0_58 = arith.constant 0 : index
        %79 = vector.load %arg2[%78, %c0_57, %c0_58] : memref<49x12x6xf32, #tpu.memory_space<vmem>>, vector<1x12x6xf32>
        %80 = vector.shape_cast %79 : vector<1x12x6xf32> to vector<12x6xf32>
        %cst_59 = arith.constant dense<0.000000e+00> : vector<12x224xf32>
        %81 = tpu.matmul %80, %48, %cst_59 {dimension_numbers = #tpu.dot_dimension_numbers<[1], [0], [0], [1], [0, 0, 1, 1], [], []>} : vector<12x6xf32>, vector<6x224xf32>, vector<12x224xf32> -> vector<12x224xf32>
        %82 = arith.addf %73, %81 : vector<12x224xf32>
        %cst_60 = arith.constant dense<0.000000e+00> : vector<12x224xf32>
        %83 = tpu.matmul %80, %51, %cst_60 {dimension_numbers = #tpu.dot_dimension_numbers<[1], [0], [0], [1], [0, 0, 1, 1], [], []>} : vector<12x6xf32>, vector<6x224xf32>, vector<12x224xf32> -> vector<12x224xf32>
        %84 = arith.addf %75, %83 : vector<12x224xf32>
        %c7_i32_61 = arith.constant 7 : i32
        %85 = arith.muli %arg7, %c7_i32_61 : i32
        %c2_i32_62 = arith.constant 2 : i32
        %86 = arith.addi %85, %c2_i32_62 : i32
        %87 = arith.index_cast %86 : i32 to index
        %c0_63 = arith.constant 0 : index
        %c0_64 = arith.constant 0 : index
        %88 = vector.load %arg2[%87, %c0_63, %c0_64] : memref<49x12x6xf32, #tpu.memory_space<vmem>>, vector<1x12x6xf32>
        %89 = vector.shape_cast %88 : vector<1x12x6xf32> to vector<12x6xf32>
        %cst_65 = arith.constant dense<0.000000e+00> : vector<12x224xf32>
        %90 = tpu.matmul %89, %51, %cst_65 {dimension_numbers = #tpu.dot_dimension_numbers<[1], [0], [0], [1], [0, 0, 1, 1], [], []>} : vector<12x6xf32>, vector<6x224xf32>, vector<12x224xf32> -> vector<12x224xf32>
        %91 = arith.addf %82, %90 : vector<12x224xf32>
        %cst_66 = arith.constant dense<0.000000e+00> : vector<12x224xf32>
        %92 = tpu.matmul %89, %54, %cst_66 {dimension_numbers = #tpu.dot_dimension_numbers<[1], [0], [0], [1], [0, 0, 1, 1], [], []>} : vector<12x6xf32>, vector<6x224xf32>, vector<12x224xf32> -> vector<12x224xf32>
        %93 = arith.addf %84, %92 : vector<12x224xf32>
        %c7_i32_67 = arith.constant 7 : i32
        %94 = arith.muli %arg7, %c7_i32_67 : i32
        %c3_i32 = arith.constant 3 : i32
        %95 = arith.addi %94, %c3_i32 : i32
        %96 = arith.index_cast %95 : i32 to index
        %c0_68 = arith.constant 0 : index
        %c0_69 = arith.constant 0 : index
        %97 = vector.load %arg2[%96, %c0_68, %c0_69] : memref<49x12x6xf32, #tpu.memory_space<vmem>>, vector<1x12x6xf32>
        %98 = vector.shape_cast %97 : vector<1x12x6xf32> to vector<12x6xf32>
        %cst_70 = arith.constant dense<0.000000e+00> : vector<12x224xf32>
        %99 = tpu.matmul %98, %54, %cst_70 {dimension_numbers = #tpu.dot_dimension_numbers<[1], [0], [0], [1], [0, 0, 1, 1], [], []>} : vector<12x6xf32>, vector<6x224xf32>, vector<12x224xf32> -> vector<12x224xf32>
        %100 = arith.addf %91, %99 : vector<12x224xf32>
        %cst_71 = arith.constant dense<0.000000e+00> : vector<12x224xf32>
        %101 = tpu.matmul %98, %57, %cst_71 {dimension_numbers = #tpu.dot_dimension_numbers<[1], [0], [0], [1], [0, 0, 1, 1], [], []>} : vector<12x6xf32>, vector<6x224xf32>, vector<12x224xf32> -> vector<12x224xf32>
        %102 = arith.addf %93, %101 : vector<12x224xf32>
        %c7_i32_72 = arith.constant 7 : i32
        %103 = arith.muli %arg7, %c7_i32_72 : i32
        %c4_i32 = arith.constant 4 : i32
        %104 = arith.addi %103, %c4_i32 : i32
        %105 = arith.index_cast %104 : i32 to index
        %c0_73 = arith.constant 0 : index
        %c0_74 = arith.constant 0 : index
        %106 = vector.load %arg2[%105, %c0_73, %c0_74] : memref<49x12x6xf32, #tpu.memory_space<vmem>>, vector<1x12x6xf32>
        %107 = vector.shape_cast %106 : vector<1x12x6xf32> to vector<12x6xf32>
        %cst_75 = arith.constant dense<0.000000e+00> : vector<12x224xf32>
        %108 = tpu.matmul %107, %57, %cst_75 {dimension_numbers = #tpu.dot_dimension_numbers<[1], [0], [0], [1], [0, 0, 1, 1], [], []>} : vector<12x6xf32>, vector<6x224xf32>, vector<12x224xf32> -> vector<12x224xf32>
        %109 = arith.addf %100, %108 : vector<12x224xf32>
        %cst_76 = arith.constant dense<0.000000e+00> : vector<12x224xf32>
        %110 = tpu.matmul %107, %60, %cst_76 {dimension_numbers = #tpu.dot_dimension_numbers<[1], [0], [0], [1], [0, 0, 1, 1], [], []>} : vector<12x6xf32>, vector<6x224xf32>, vector<12x224xf32> -> vector<12x224xf32>
        %111 = arith.addf %102, %110 : vector<12x224xf32>
        %c7_i32_77 = arith.constant 7 : i32
        %112 = arith.muli %arg7, %c7_i32_77 : i32
        %c5_i32 = arith.constant 5 : i32
        %113 = arith.addi %112, %c5_i32 : i32
        %114 = arith.index_cast %113 : i32 to index
        %c0_78 = arith.constant 0 : index
        %c0_79 = arith.constant 0 : index
        %115 = vector.load %arg2[%114, %c0_78, %c0_79] : memref<49x12x6xf32, #tpu.memory_space<vmem>>, vector<1x12x6xf32>
        %116 = vector.shape_cast %115 : vector<1x12x6xf32> to vector<12x6xf32>
        %cst_80 = arith.constant dense<0.000000e+00> : vector<12x224xf32>
        %117 = tpu.matmul %116, %60, %cst_80 {dimension_numbers = #tpu.dot_dimension_numbers<[1], [0], [0], [1], [0, 0, 1, 1], [], []>} : vector<12x6xf32>, vector<6x224xf32>, vector<12x224xf32> -> vector<12x224xf32>
        %118 = arith.addf %109, %117 : vector<12x224xf32>
        %cst_81 = arith.constant dense<0.000000e+00> : vector<12x224xf32>
        %119 = tpu.matmul %116, %63, %cst_81 {dimension_numbers = #tpu.dot_dimension_numbers<[1], [0], [0], [1], [0, 0, 1, 1], [], []>} : vector<12x6xf32>, vector<6x224xf32>, vector<12x224xf32> -> vector<12x224xf32>
        %120 = arith.addf %111, %119 : vector<12x224xf32>
        %c7_i32_82 = arith.constant 7 : i32
        %121 = arith.muli %arg7, %c7_i32_82 : i32
        %c6_i32 = arith.constant 6 : i32
        %122 = arith.addi %121, %c6_i32 : i32
        %123 = arith.index_cast %122 : i32 to index
        %c0_83 = arith.constant 0 : index
        %c0_84 = arith.constant 0 : index
        %124 = vector.load %arg2[%123, %c0_83, %c0_84] : memref<49x12x6xf32, #tpu.memory_space<vmem>>, vector<1x12x6xf32>
        %125 = vector.shape_cast %124 : vector<1x12x6xf32> to vector<12x6xf32>
        %cst_85 = arith.constant dense<0.000000e+00> : vector<12x224xf32>
        %126 = tpu.matmul %125, %63, %cst_85 {dimension_numbers = #tpu.dot_dimension_numbers<[1], [0], [0], [1], [0, 0, 1, 1], [], []>} : vector<12x6xf32>, vector<6x224xf32>, vector<12x224xf32> -> vector<12x224xf32>
        %127 = arith.addf %118, %126 : vector<12x224xf32>
        %cst_86 = arith.constant dense<0.000000e+00> : vector<12x224xf32>
        %128 = tpu.matmul %125, %66, %cst_86 {dimension_numbers = #tpu.dot_dimension_numbers<[1], [0], [0], [1], [0, 0, 1, 1], [], []>} : vector<12x6xf32>, vector<6x224xf32>, vector<12x224xf32> -> vector<12x224xf32>
        %129 = arith.addf %120, %128 : vector<12x224xf32>
        scf.yield %127, %129 : vector<12x224xf32>, vector<12x224xf32>
      }
      %c7_i32_13 = arith.constant 7 : i32
      %21 = vector.broadcast %0 : vector<12x1xf32> to vector<12x224xf32>
      %22 = arith.mulf %20#0, %21 : vector<12x224xf32>
      %23 = vector.broadcast %1 : vector<12x1xf32> to vector<12x224xf32>
      %24 = arith.addf %22, %23 : vector<12x224xf32>
      %cst_14 = arith.constant 0.000000e+00 : f32
      %25 = vector.broadcast %cst_14 : f32 to vector<12x224xf32>
      %26 = arith.maximumf %24, %25 : vector<12x224xf32>
      %27 = vector.broadcast %0 : vector<12x1xf32> to vector<12x224xf32>
      %28 = arith.mulf %20#1, %27 : vector<12x224xf32>
      %29 = vector.broadcast %1 : vector<12x1xf32> to vector<12x224xf32>
      %30 = arith.addf %28, %29 : vector<12x224xf32>
      %cst_15 = arith.constant 0.000000e+00 : f32
      %31 = vector.broadcast %cst_15 : f32 to vector<12x224xf32>
      %32 = arith.maximumf %30, %31 : vector<12x224xf32>
      %33 = arith.maximumf %11, %17 : vector<12x224xf32>
      %34 = arith.maximumf %26, %32 : vector<12x224xf32>
      %35 = arith.maximumf %33, %34 : vector<12x224xf32>
      %c0_16 = arith.constant 0 : index
      %c0_17 = arith.constant 0 : index
      %36 = arith.index_cast %arg6 : i32 to index
      %c0_18 = arith.constant 0 : index
      %37 = vector.load %arg5[%c0_16, %c0_17, %36, %c0_18] : memref<1x12x224x224xf32, #tpu.memory_space<vmem>>, vector<1x12x1x224xf32>
      %38 = vector.shape_cast %37 : vector<1x12x1x224xf32> to vector<12x224xf32>
      %39 = vector.shape_cast %35 : vector<12x224xf32> to vector<1x12x1x224xf32>
      tpu.vector_store %arg5[%c0_16, %c0_17, %36, %c0_18], %39 {strides = array<i32>} : memref<1x12x224x224xf32, #tpu.memory_space<vmem>>, vector<1x12x1x224xf32>,
    }
    %c224_i32_3 = arith.constant 224 : i32
    return
  }
  func.func @transform_0(%arg0: i32) -> (i32, i32, i32, i32, i32) {
    %c0_i32 = arith.constant 0 : i32
    %c0_i32_0 = arith.constant 0 : i32
    %c0_i32_1 = arith.constant 0 : i32
    %c0_i32_2 = arith.constant 0 : i32
    %c0_i32_3 = arith.constant 0 : i32
    return %arg0, %c0_i32, %c0_i32_0, %c0_i32_1, %c0_i32_2 : i32, i32, i32, i32, i32
  }
  func.func @transform_1(%arg0: i32) -> (i32, i32, i32) {
    %c0_i32 = arith.constant 0 : i32
    %c0_i32_0 = arith.constant 0 : i32
    %c0_i32_1 = arith.constant 0 : i32
    %c0_i32_2 = arith.constant 0 : i32
    return %c0_i32, %c0_i32_0, %c0_i32_1 : i32, i32, i32
  }
  func.func @transform_2(%arg0: i32) -> (i32, i32) {
    %c0_i32 = arith.constant 0 : i32
    %c0_i32_0 = arith.constant 0 : i32
    %c0_i32_1 = arith.constant 0 : i32
    return %c0_i32, %c0_i32_0 : i32, i32
  }
  func.func @transform_3(%arg0: i32) -> (i32, i32) {
    %c0_i32 = arith.constant 0 : i32
    %c0_i32_0 = arith.constant 0 : i32
    %c0_i32_1 = arith.constant 0 : i32
    return %c0_i32, %c0_i32_0 : i32, i32
  }
  func.func @transform_4(%arg0: i32) -> (i32, i32, i32, i32) {
    %c0_i32 = arith.constant 0 : i32
    %c0_i32_0 = arith.constant 0 : i32
    %c0_i32_1 = arith.constant 0 : i32
    %c0_i32_2 = arith.constant 0 : i32
    return %arg0, %c0_i32, %c0_i32_0, %c0_i32_1 : i32, i32, i32, i32
  }
}

module attributes {stable_mosaic.version = 11 : i64} {
  func.func @_conv_bn_relu_pool_kernel(%arg0: i32, %arg1: memref<1x4x12x226x57xf32, #tpu.memory_space<vmem>>, %arg2: memref<9x18x12xf32, #tpu.memory_space<vmem>>, %arg3: memref<18x1xf32, #tpu.memory_space<vmem>>, %arg4: memref<18x1xf32, #tpu.memory_space<vmem>>, %arg5: memref<1x18x56x56xf32, #tpu.memory_space<vmem>>) attributes {dimension_semantics = [#tpu.dimension_semantics<parallel>], iteration_bounds = array<i64: 2>, scalar_prefetch = 0 : i64, scratch_operands = 0 : i64, tpu.core_type = #tpu.core_type<tc>, window_params = [{transform_indices = @transform_0, window_bounds = array<i64: 1, 4, 12, 226, 57>}, {pipeline_mode = #tpu.pipeline_mode<synchronous>, transform_indices = @transform_1, window_bounds = array<i64: 9, 18, 12>}, {pipeline_mode = #tpu.pipeline_mode<synchronous>, transform_indices = @transform_2, window_bounds = array<i64: 18, 1>}, {pipeline_mode = #tpu.pipeline_mode<synchronous>, transform_indices = @transform_3, window_bounds = array<i64: 18, 1>}, {transform_indices = @transform_4, window_bounds = array<i64: 1, 18, 56, 56>}]} {
    %c0 = arith.constant 0 : index
    %c0_0 = arith.constant 0 : index
    %0 = vector.load %arg3[%c0, %c0_0] : memref<18x1xf32, #tpu.memory_space<vmem>>, vector<18x1xf32>
    %c0_1 = arith.constant 0 : index
    %c0_2 = arith.constant 0 : index
    %1 = vector.load %arg4[%c0_1, %c0_2] : memref<18x1xf32, #tpu.memory_space<vmem>>, vector<18x1xf32>
    %c0_i32 = arith.constant 0 : i32
    %c56_i32 = arith.constant 56 : i32
    %2 = arith.addi %c0_i32, %c56_i32 : i32
    %c1_i32 = arith.constant 1 : i32
    scf.for %arg6 = %c0_i32 to %2 step %c1_i32  : i32 {
      %cst = arith.constant 0.000000e+00 : f32
      %3 = vector.broadcast %cst : f32 to vector<18x56xf32>
      %c0_i32_4 = arith.constant 0 : i32
      %c3_i32 = arith.constant 3 : i32
      %4 = arith.addi %c0_i32_4, %c3_i32 : i32
      %c1_i32_5 = arith.constant 1 : i32
      %5:2 = scf.for %arg7 = %c0_i32_4 to %4 step %c1_i32_5 iter_args(%arg8 = %3, %arg9 = %3) -> (vector<18x56xf32>, vector<18x56xf32>)  : i32 {
        %c4_i32 = arith.constant 4 : i32
        %40 = arith.muli %c4_i32, %arg6 : i32
        %c0_i32_19 = arith.constant 0 : i32
        %41 = arith.addi %c0_i32_19, %arg7 : i32
        %42 = arith.addi %40, %41 : i32
        %c0_20 = arith.constant 0 : index
        %c0_21 = arith.constant 0 : index
        %c0_22 = arith.constant 0 : index
        %43 = arith.index_cast %42 : i32 to index
        %c0_23 = arith.constant 0 : index
        %44 = vector.load %arg1[%c0_20, %c0_21, %c0_22, %43, %c0_23] : memref<1x4x12x226x57xf32, #tpu.memory_space<vmem>>, vector<1x1x12x1x56xf32>
        %45 = vector.shape_cast %44 : vector<1x1x12x1x56xf32> to vector<12x56xf32>
        %c0_24 = arith.constant 0 : index
        %c1 = arith.constant 1 : index
        %c0_25 = arith.constant 0 : index
        %46 = arith.index_cast %42 : i32 to index
        %c0_26 = arith.constant 0 : index
        %47 = vector.load %arg1[%c0_24, %c1, %c0_25, %46, %c0_26] : memref<1x4x12x226x57xf32, #tpu.memory_space<vmem>>, vector<1x1x12x1x56xf32>
        %48 = vector.shape_cast %47 : vector<1x1x12x1x56xf32> to vector<12x56xf32>
        %c0_27 = arith.constant 0 : index
        %c2 = arith.constant 2 : index
        %c0_28 = arith.constant 0 : index
        %49 = arith.index_cast %42 : i32 to index
        %c0_29 = arith.constant 0 : index
        %50 = vector.load %arg1[%c0_27, %c2, %c0_28, %49, %c0_29] : memref<1x4x12x226x57xf32, #tpu.memory_space<vmem>>, vector<1x1x12x1x56xf32>
        %51 = vector.shape_cast %50 : vector<1x1x12x1x56xf32> to vector<12x56xf32>
        %c0_30 = arith.constant 0 : index
        %c3 = arith.constant 3 : index
        %c0_31 = arith.constant 0 : index
        %52 = arith.index_cast %42 : i32 to index
        %c0_32 = arith.constant 0 : index
        %53 = vector.load %arg1[%c0_30, %c3, %c0_31, %52, %c0_32] : memref<1x4x12x226x57xf32, #tpu.memory_space<vmem>>, vector<1x1x12x1x56xf32>
        %54 = vector.shape_cast %53 : vector<1x1x12x1x56xf32> to vector<12x56xf32>
        %c0_33 = arith.constant 0 : index
        %c0_34 = arith.constant 0 : index
        %c0_35 = arith.constant 0 : index
        %55 = arith.index_cast %42 : i32 to index
        %c1_36 = arith.constant 1 : index
        %56 = vector.load %arg1[%c0_33, %c0_34, %c0_35, %55, %c1_36] : memref<1x4x12x226x57xf32, #tpu.memory_space<vmem>>, vector<1x1x12x1x56xf32>
        %57 = vector.shape_cast %56 : vector<1x1x12x1x56xf32> to vector<12x56xf32>
        %c3_i32_37 = arith.constant 3 : i32
        %58 = arith.muli %arg7, %c3_i32_37 : i32
        %c0_i32_38 = arith.constant 0 : i32
        %59 = arith.addi %58, %c0_i32_38 : i32
        %60 = arith.index_cast %59 : i32 to index
        %c0_39 = arith.constant 0 : index
        %c0_40 = arith.constant 0 : index
        %61 = vector.load %arg2[%60, %c0_39, %c0_40] : memref<9x18x12xf32, #tpu.memory_space<vmem>>, vector<1x18x12xf32>
        %62 = vector.shape_cast %61 : vector<1x18x12xf32> to vector<18x12xf32>
        %cst_41 = arith.constant dense<0.000000e+00> : vector<18x56xf32>
        %63 = tpu.matmul %62, %45, %cst_41 {dimension_numbers = #tpu.dot_dimension_numbers<[1], [0], [0], [1], [0, 0, 1, 1], [], []>} : vector<18x12xf32>, vector<12x56xf32>, vector<18x56xf32> -> vector<18x56xf32>
        %64 = arith.addf %arg8, %63 : vector<18x56xf32>
        %cst_42 = arith.constant dense<0.000000e+00> : vector<18x56xf32>
        %65 = tpu.matmul %62, %51, %cst_42 {dimension_numbers = #tpu.dot_dimension_numbers<[1], [0], [0], [1], [0, 0, 1, 1], [], []>} : vector<18x12xf32>, vector<12x56xf32>, vector<18x56xf32> -> vector<18x56xf32>
        %66 = arith.addf %arg9, %65 : vector<18x56xf32>
        %c3_i32_43 = arith.constant 3 : i32
        %67 = arith.muli %arg7, %c3_i32_43 : i32
        %c1_i32_44 = arith.constant 1 : i32
        %68 = arith.addi %67, %c1_i32_44 : i32
        %69 = arith.index_cast %68 : i32 to index
        %c0_45 = arith.constant 0 : index
        %c0_46 = arith.constant 0 : index
        %70 = vector.load %arg2[%69, %c0_45, %c0_46] : memref<9x18x12xf32, #tpu.memory_space<vmem>>, vector<1x18x12xf32>
        %71 = vector.shape_cast %70 : vector<1x18x12xf32> to vector<18x12xf32>
        %cst_47 = arith.constant dense<0.000000e+00> : vector<18x56xf32>
        %72 = tpu.matmul %71, %48, %cst_47 {dimension_numbers = #tpu.dot_dimension_numbers<[1], [0], [0], [1], [0, 0, 1, 1], [], []>} : vector<18x12xf32>, vector<12x56xf32>, vector<18x56xf32> -> vector<18x56xf32>
        %73 = arith.addf %64, %72 : vector<18x56xf32>
        %cst_48 = arith.constant dense<0.000000e+00> : vector<18x56xf32>
        %74 = tpu.matmul %71, %54, %cst_48 {dimension_numbers = #tpu.dot_dimension_numbers<[1], [0], [0], [1], [0, 0, 1, 1], [], []>} : vector<18x12xf32>, vector<12x56xf32>, vector<18x56xf32> -> vector<18x56xf32>
        %75 = arith.addf %66, %74 : vector<18x56xf32>
        %c3_i32_49 = arith.constant 3 : i32
        %76 = arith.muli %arg7, %c3_i32_49 : i32
        %c2_i32 = arith.constant 2 : i32
        %77 = arith.addi %76, %c2_i32 : i32
        %78 = arith.index_cast %77 : i32 to index
        %c0_50 = arith.constant 0 : index
        %c0_51 = arith.constant 0 : index
        %79 = vector.load %arg2[%78, %c0_50, %c0_51] : memref<9x18x12xf32, #tpu.memory_space<vmem>>, vector<1x18x12xf32>
        %80 = vector.shape_cast %79 : vector<1x18x12xf32> to vector<18x12xf32>
        %cst_52 = arith.constant dense<0.000000e+00> : vector<18x56xf32>
        %81 = tpu.matmul %80, %51, %cst_52 {dimension_numbers = #tpu.dot_dimension_numbers<[1], [0], [0], [1], [0, 0, 1, 1], [], []>} : vector<18x12xf32>, vector<12x56xf32>, vector<18x56xf32> -> vector<18x56xf32>
        %82 = arith.addf %73, %81 : vector<18x56xf32>
        %cst_53 = arith.constant dense<0.000000e+00> : vector<18x56xf32>
        %83 = tpu.matmul %80, %57, %cst_53 {dimension_numbers = #tpu.dot_dimension_numbers<[1], [0], [0], [1], [0, 0, 1, 1], [], []>} : vector<18x12xf32>, vector<12x56xf32>, vector<18x56xf32> -> vector<18x56xf32>
        %84 = arith.addf %75, %83 : vector<18x56xf32>
        scf.yield %82, %84 : vector<18x56xf32>, vector<18x56xf32>
      }
      %c3_i32_6 = arith.constant 3 : i32
      %6 = vector.broadcast %0 : vector<18x1xf32> to vector<18x56xf32>
      %7 = arith.mulf %5#0, %6 : vector<18x56xf32>
      %8 = vector.broadcast %1 : vector<18x1xf32> to vector<18x56xf32>
      %9 = arith.addf %7, %8 : vector<18x56xf32>
      %cst_7 = arith.constant 0.000000e+00 : f32
      %10 = vector.broadcast %cst_7 : f32 to vector<18x56xf32>
      %11 = arith.maximumf %9, %10 : vector<18x56xf32>
      %12 = vector.broadcast %0 : vector<18x1xf32> to vector<18x56xf32>
      %13 = arith.mulf %5#1, %12 : vector<18x56xf32>
      %14 = vector.broadcast %1 : vector<18x1xf32> to vector<18x56xf32>
      %15 = arith.addf %13, %14 : vector<18x56xf32>
      %cst_8 = arith.constant 0.000000e+00 : f32
      %16 = vector.broadcast %cst_8 : f32 to vector<18x56xf32>
      %17 = arith.maximumf %15, %16 : vector<18x56xf32>
      %cst_9 = arith.constant 0.000000e+00 : f32
      %18 = vector.broadcast %cst_9 : f32 to vector<18x56xf32>
      %c0_i32_10 = arith.constant 0 : i32
      %c3_i32_11 = arith.constant 3 : i32
      %19 = arith.addi %c0_i32_10, %c3_i32_11 : i32
      %c1_i32_12 = arith.constant 1 : i32
      %20:2 = scf.for %arg7 = %c0_i32_10 to %19 step %c1_i32_12 iter_args(%arg8 = %18, %arg9 = %18) -> (vector<18x56xf32>, vector<18x56xf32>)  : i32 {
        %c4_i32 = arith.constant 4 : i32
        %40 = arith.muli %c4_i32, %arg6 : i32
        %c2_i32 = arith.constant 2 : i32
        %41 = arith.addi %c2_i32, %arg7 : i32
        %42 = arith.addi %40, %41 : i32
        %c0_19 = arith.constant 0 : index
        %c0_20 = arith.constant 0 : index
        %c0_21 = arith.constant 0 : index
        %43 = arith.index_cast %42 : i32 to index
        %c0_22 = arith.constant 0 : index
        %44 = vector.load %arg1[%c0_19, %c0_20, %c0_21, %43, %c0_22] : memref<1x4x12x226x57xf32, #tpu.memory_space<vmem>>, vector<1x1x12x1x56xf32>
        %45 = vector.shape_cast %44 : vector<1x1x12x1x56xf32> to vector<12x56xf32>
        %c0_23 = arith.constant 0 : index
        %c1 = arith.constant 1 : index
        %c0_24 = arith.constant 0 : index
        %46 = arith.index_cast %42 : i32 to index
        %c0_25 = arith.constant 0 : index
        %47 = vector.load %arg1[%c0_23, %c1, %c0_24, %46, %c0_25] : memref<1x4x12x226x57xf32, #tpu.memory_space<vmem>>, vector<1x1x12x1x56xf32>
        %48 = vector.shape_cast %47 : vector<1x1x12x1x56xf32> to vector<12x56xf32>
        %c0_26 = arith.constant 0 : index
        %c2 = arith.constant 2 : index
        %c0_27 = arith.constant 0 : index
        %49 = arith.index_cast %42 : i32 to index
        %c0_28 = arith.constant 0 : index
        %50 = vector.load %arg1[%c0_26, %c2, %c0_27, %49, %c0_28] : memref<1x4x12x226x57xf32, #tpu.memory_space<vmem>>, vector<1x1x12x1x56xf32>
        %51 = vector.shape_cast %50 : vector<1x1x12x1x56xf32> to vector<12x56xf32>
        %c0_29 = arith.constant 0 : index
        %c3 = arith.constant 3 : index
        %c0_30 = arith.constant 0 : index
        %52 = arith.index_cast %42 : i32 to index
        %c0_31 = arith.constant 0 : index
        %53 = vector.load %arg1[%c0_29, %c3, %c0_30, %52, %c0_31] : memref<1x4x12x226x57xf32, #tpu.memory_space<vmem>>, vector<1x1x12x1x56xf32>
        %54 = vector.shape_cast %53 : vector<1x1x12x1x56xf32> to vector<12x56xf32>
        %c0_32 = arith.constant 0 : index
        %c0_33 = arith.constant 0 : index
        %c0_34 = arith.constant 0 : index
        %55 = arith.index_cast %42 : i32 to index
        %c1_35 = arith.constant 1 : index
        %56 = vector.load %arg1[%c0_32, %c0_33, %c0_34, %55, %c1_35] : memref<1x4x12x226x57xf32, #tpu.memory_space<vmem>>, vector<1x1x12x1x56xf32>
        %57 = vector.shape_cast %56 : vector<1x1x12x1x56xf32> to vector<12x56xf32>
        %c3_i32_36 = arith.constant 3 : i32
        %58 = arith.muli %arg7, %c3_i32_36 : i32
        %c0_i32_37 = arith.constant 0 : i32
        %59 = arith.addi %58, %c0_i32_37 : i32
        %60 = arith.index_cast %59 : i32 to index
        %c0_38 = arith.constant 0 : index
        %c0_39 = arith.constant 0 : index
        %61 = vector.load %arg2[%60, %c0_38, %c0_39] : memref<9x18x12xf32, #tpu.memory_space<vmem>>, vector<1x18x12xf32>
        %62 = vector.shape_cast %61 : vector<1x18x12xf32> to vector<18x12xf32>
        %cst_40 = arith.constant dense<0.000000e+00> : vector<18x56xf32>
        %63 = tpu.matmul %62, %45, %cst_40 {dimension_numbers = #tpu.dot_dimension_numbers<[1], [0], [0], [1], [0, 0, 1, 1], [], []>} : vector<18x12xf32>, vector<12x56xf32>, vector<18x56xf32> -> vector<18x56xf32>
        %64 = arith.addf %arg8, %63 : vector<18x56xf32>
        %cst_41 = arith.constant dense<0.000000e+00> : vector<18x56xf32>
        %65 = tpu.matmul %62, %51, %cst_41 {dimension_numbers = #tpu.dot_dimension_numbers<[1], [0], [0], [1], [0, 0, 1, 1], [], []>} : vector<18x12xf32>, vector<12x56xf32>, vector<18x56xf32> -> vector<18x56xf32>
        %66 = arith.addf %arg9, %65 : vector<18x56xf32>
        %c3_i32_42 = arith.constant 3 : i32
        %67 = arith.muli %arg7, %c3_i32_42 : i32
        %c1_i32_43 = arith.constant 1 : i32
        %68 = arith.addi %67, %c1_i32_43 : i32
        %69 = arith.index_cast %68 : i32 to index
        %c0_44 = arith.constant 0 : index
        %c0_45 = arith.constant 0 : index
        %70 = vector.load %arg2[%69, %c0_44, %c0_45] : memref<9x18x12xf32, #tpu.memory_space<vmem>>, vector<1x18x12xf32>
        %71 = vector.shape_cast %70 : vector<1x18x12xf32> to vector<18x12xf32>
        %cst_46 = arith.constant dense<0.000000e+00> : vector<18x56xf32>
        %72 = tpu.matmul %71, %48, %cst_46 {dimension_numbers = #tpu.dot_dimension_numbers<[1], [0], [0], [1], [0, 0, 1, 1], [], []>} : vector<18x12xf32>, vector<12x56xf32>, vector<18x56xf32> -> vector<18x56xf32>
        %73 = arith.addf %64, %72 : vector<18x56xf32>
        %cst_47 = arith.constant dense<0.000000e+00> : vector<18x56xf32>
        %74 = tpu.matmul %71, %54, %cst_47 {dimension_numbers = #tpu.dot_dimension_numbers<[1], [0], [0], [1], [0, 0, 1, 1], [], []>} : vector<18x12xf32>, vector<12x56xf32>, vector<18x56xf32> -> vector<18x56xf32>
        %75 = arith.addf %66, %74 : vector<18x56xf32>
        %c3_i32_48 = arith.constant 3 : i32
        %76 = arith.muli %arg7, %c3_i32_48 : i32
        %c2_i32_49 = arith.constant 2 : i32
        %77 = arith.addi %76, %c2_i32_49 : i32
        %78 = arith.index_cast %77 : i32 to index
        %c0_50 = arith.constant 0 : index
        %c0_51 = arith.constant 0 : index
        %79 = vector.load %arg2[%78, %c0_50, %c0_51] : memref<9x18x12xf32, #tpu.memory_space<vmem>>, vector<1x18x12xf32>
        %80 = vector.shape_cast %79 : vector<1x18x12xf32> to vector<18x12xf32>
        %cst_52 = arith.constant dense<0.000000e+00> : vector<18x56xf32>
        %81 = tpu.matmul %80, %51, %cst_52 {dimension_numbers = #tpu.dot_dimension_numbers<[1], [0], [0], [1], [0, 0, 1, 1], [], []>} : vector<18x12xf32>, vector<12x56xf32>, vector<18x56xf32> -> vector<18x56xf32>
        %82 = arith.addf %73, %81 : vector<18x56xf32>
        %cst_53 = arith.constant dense<0.000000e+00> : vector<18x56xf32>
        %83 = tpu.matmul %80, %57, %cst_53 {dimension_numbers = #tpu.dot_dimension_numbers<[1], [0], [0], [1], [0, 0, 1, 1], [], []>} : vector<18x12xf32>, vector<12x56xf32>, vector<18x56xf32> -> vector<18x56xf32>
        %84 = arith.addf %75, %83 : vector<18x56xf32>
        scf.yield %82, %84 : vector<18x56xf32>, vector<18x56xf32>
      }
      %c3_i32_13 = arith.constant 3 : i32
      %21 = vector.broadcast %0 : vector<18x1xf32> to vector<18x56xf32>
      %22 = arith.mulf %20#0, %21 : vector<18x56xf32>
      %23 = vector.broadcast %1 : vector<18x1xf32> to vector<18x56xf32>
      %24 = arith.addf %22, %23 : vector<18x56xf32>
      %cst_14 = arith.constant 0.000000e+00 : f32
      %25 = vector.broadcast %cst_14 : f32 to vector<18x56xf32>
      %26 = arith.maximumf %24, %25 : vector<18x56xf32>
      %27 = vector.broadcast %0 : vector<18x1xf32> to vector<18x56xf32>
      %28 = arith.mulf %20#1, %27 : vector<18x56xf32>
      %29 = vector.broadcast %1 : vector<18x1xf32> to vector<18x56xf32>
      %30 = arith.addf %28, %29 : vector<18x56xf32>
      %cst_15 = arith.constant 0.000000e+00 : f32
      %31 = vector.broadcast %cst_15 : f32 to vector<18x56xf32>
      %32 = arith.maximumf %30, %31 : vector<18x56xf32>
      %33 = arith.maximumf %11, %17 : vector<18x56xf32>
      %34 = arith.maximumf %26, %32 : vector<18x56xf32>
      %35 = arith.maximumf %33, %34 : vector<18x56xf32>
      %c0_16 = arith.constant 0 : index
      %c0_17 = arith.constant 0 : index
      %36 = arith.index_cast %arg6 : i32 to index
      %c0_18 = arith.constant 0 : index
      %37 = vector.load %arg5[%c0_16, %c0_17, %36, %c0_18] : memref<1x18x56x56xf32, #tpu.memory_space<vmem>>, vector<1x18x1x56xf32>
      %38 = vector.shape_cast %37 : vector<1x18x1x56xf32> to vector<18x56xf32>
      %39 = vector.shape_cast %35 : vector<18x56xf32> to vector<1x18x1x56xf32>
      tpu.vector_store %arg5[%c0_16, %c0_17, %36, %c0_18], %39 {strides = array<i32>} : memref<1x18x56x56xf32, #tpu.memory_space<vmem>>, vector<1x18x1x56xf32>,
    }
    %c56_i32_3 = arith.constant 56 : i32
    return
  }
  func.func @transform_0(%arg0: i32) -> (i32, i32, i32, i32, i32) {
    %c0_i32 = arith.constant 0 : i32
    %c0_i32_0 = arith.constant 0 : i32
    %c0_i32_1 = arith.constant 0 : i32
    %c0_i32_2 = arith.constant 0 : i32
    %c0_i32_3 = arith.constant 0 : i32
    return %arg0, %c0_i32, %c0_i32_0, %c0_i32_1, %c0_i32_2 : i32, i32, i32, i32, i32
  }
  func.func @transform_1(%arg0: i32) -> (i32, i32, i32) {
    %c0_i32 = arith.constant 0 : i32
    %c0_i32_0 = arith.constant 0 : i32
    %c0_i32_1 = arith.constant 0 : i32
    %c0_i32_2 = arith.constant 0 : i32
    return %c0_i32, %c0_i32_0, %c0_i32_1 : i32, i32, i32
  }
  func.func @transform_2(%arg0: i32) -> (i32, i32) {
    %c0_i32 = arith.constant 0 : i32
    %c0_i32_0 = arith.constant 0 : i32
    %c0_i32_1 = arith.constant 0 : i32
    return %c0_i32, %c0_i32_0 : i32, i32
  }
  func.func @transform_3(%arg0: i32) -> (i32, i32) {
    %c0_i32 = arith.constant 0 : i32
    %c0_i32_0 = arith.constant 0 : i32
    %c0_i32_1 = arith.constant 0 : i32
    return %c0_i32, %c0_i32_0 : i32, i32
  }
  func.func @transform_4(%arg0: i32) -> (i32, i32, i32, i32) {
    %c0_i32 = arith.constant 0 : i32
    %c0_i32_0 = arith.constant 0 : i32
    %c0_i32_1 = arith.constant 0 : i32
    %c0_i32_2 = arith.constant 0 : i32
    return %arg0, %c0_i32, %c0_i32_0, %c0_i32_1 : i32, i32, i32, i32
  }
}

module attributes {stable_mosaic.version = 11 : i64} {
  func.func @_conv_bn_relu_pool_kernel(%arg0: i32, %arg1: memref<1x2x18x58x29xf32, #tpu.memory_space<vmem>>, %arg2: memref<9x12x18xf32, #tpu.memory_space<vmem>>, %arg3: memref<12x1xf32, #tpu.memory_space<vmem>>, %arg4: memref<12x1xf32, #tpu.memory_space<vmem>>, %arg5: memref<1x12x28x28xf32, #tpu.memory_space<vmem>>) attributes {dimension_semantics = [#tpu.dimension_semantics<parallel>], iteration_bounds = array<i64: 2>, scalar_prefetch = 0 : i64, scratch_operands = 0 : i64, tpu.core_type = #tpu.core_type<tc>, window_params = [{transform_indices = @transform_0, window_bounds = array<i64: 1, 2, 18, 58, 29>}, {pipeline_mode = #tpu.pipeline_mode<synchronous>, transform_indices = @transform_1, window_bounds = array<i64: 9, 12, 18>}, {pipeline_mode = #tpu.pipeline_mode<synchronous>, transform_indices = @transform_2, window_bounds = array<i64: 12, 1>}, {pipeline_mode = #tpu.pipeline_mode<synchronous>, transform_indices = @transform_3, window_bounds = array<i64: 12, 1>}, {transform_indices = @transform_4, window_bounds = array<i64: 1, 12, 28, 28>}]} {
    %c0 = arith.constant 0 : index
    %c0_0 = arith.constant 0 : index
    %0 = vector.load %arg3[%c0, %c0_0] : memref<12x1xf32, #tpu.memory_space<vmem>>, vector<12x1xf32>
    %c0_1 = arith.constant 0 : index
    %c0_2 = arith.constant 0 : index
    %1 = vector.load %arg4[%c0_1, %c0_2] : memref<12x1xf32, #tpu.memory_space<vmem>>, vector<12x1xf32>
    %c0_i32 = arith.constant 0 : i32
    %c28_i32 = arith.constant 28 : i32
    %2 = arith.addi %c0_i32, %c28_i32 : i32
    %c1_i32 = arith.constant 1 : i32
    scf.for %arg6 = %c0_i32 to %2 step %c1_i32  : i32 {
      %cst = arith.constant 0.000000e+00 : f32
      %3 = vector.broadcast %cst : f32 to vector<12x28xf32>
      %c0_i32_4 = arith.constant 0 : i32
      %c3_i32 = arith.constant 3 : i32
      %4 = arith.addi %c0_i32_4, %c3_i32 : i32
      %c1_i32_5 = arith.constant 1 : i32
      %5:2 = scf.for %arg7 = %c0_i32_4 to %4 step %c1_i32_5 iter_args(%arg8 = %3, %arg9 = %3) -> (vector<12x28xf32>, vector<12x28xf32>)  : i32 {
        %c2_i32 = arith.constant 2 : i32
        %40 = arith.muli %c2_i32, %arg6 : i32
        %c0_i32_19 = arith.constant 0 : i32
        %41 = arith.addi %c0_i32_19, %arg7 : i32
        %42 = arith.addi %40, %41 : i32
        %c0_20 = arith.constant 0 : index
        %c0_21 = arith.constant 0 : index
        %c0_22 = arith.constant 0 : index
        %43 = arith.index_cast %42 : i32 to index
        %c0_23 = arith.constant 0 : index
        %44 = vector.load %arg1[%c0_20, %c0_21, %c0_22, %43, %c0_23] : memref<1x2x18x58x29xf32, #tpu.memory_space<vmem>>, vector<1x1x18x1x28xf32>
        %45 = vector.shape_cast %44 : vector<1x1x18x1x28xf32> to vector<18x28xf32>
        %c0_24 = arith.constant 0 : index
        %c1 = arith.constant 1 : index
        %c0_25 = arith.constant 0 : index
        %46 = arith.index_cast %42 : i32 to index
        %c0_26 = arith.constant 0 : index
        %47 = vector.load %arg1[%c0_24, %c1, %c0_25, %46, %c0_26] : memref<1x2x18x58x29xf32, #tpu.memory_space<vmem>>, vector<1x1x18x1x28xf32>
        %48 = vector.shape_cast %47 : vector<1x1x18x1x28xf32> to vector<18x28xf32>
        %c0_27 = arith.constant 0 : index
        %c0_28 = arith.constant 0 : index
        %c0_29 = arith.constant 0 : index
        %49 = arith.index_cast %42 : i32 to index
        %c1_30 = arith.constant 1 : index
        %50 = vector.load %arg1[%c0_27, %c0_28, %c0_29, %49, %c1_30] : memref<1x2x18x58x29xf32, #tpu.memory_space<vmem>>, vector<1x1x18x1x28xf32>
        %51 = vector.shape_cast %50 : vector<1x1x18x1x28xf32> to vector<18x28xf32>
        %c0_31 = arith.constant 0 : index
        %c1_32 = arith.constant 1 : index
        %c0_33 = arith.constant 0 : index
        %52 = arith.index_cast %42 : i32 to index
        %c1_34 = arith.constant 1 : index
        %53 = vector.load %arg1[%c0_31, %c1_32, %c0_33, %52, %c1_34] : memref<1x2x18x58x29xf32, #tpu.memory_space<vmem>>, vector<1x1x18x1x28xf32>
        %54 = vector.shape_cast %53 : vector<1x1x18x1x28xf32> to vector<18x28xf32>
        %c3_i32_35 = arith.constant 3 : i32
        %55 = arith.muli %arg7, %c3_i32_35 : i32
        %c0_i32_36 = arith.constant 0 : i32
        %56 = arith.addi %55, %c0_i32_36 : i32
        %57 = arith.index_cast %56 : i32 to index
        %c0_37 = arith.constant 0 : index
        %c0_38 = arith.constant 0 : index
        %58 = vector.load %arg2[%57, %c0_37, %c0_38] : memref<9x12x18xf32, #tpu.memory_space<vmem>>, vector<1x12x18xf32>
        %59 = vector.shape_cast %58 : vector<1x12x18xf32> to vector<12x18xf32>
        %cst_39 = arith.constant dense<0.000000e+00> : vector<12x28xf32>
        %60 = tpu.matmul %59, %45, %cst_39 {dimension_numbers = #tpu.dot_dimension_numbers<[1], [0], [0], [1], [0, 0, 1, 1], [], []>} : vector<12x18xf32>, vector<18x28xf32>, vector<12x28xf32> -> vector<12x28xf32>
        %61 = arith.addf %arg8, %60 : vector<12x28xf32>
        %cst_40 = arith.constant dense<0.000000e+00> : vector<12x28xf32>
        %62 = tpu.matmul %59, %48, %cst_40 {dimension_numbers = #tpu.dot_dimension_numbers<[1], [0], [0], [1], [0, 0, 1, 1], [], []>} : vector<12x18xf32>, vector<18x28xf32>, vector<12x28xf32> -> vector<12x28xf32>
        %63 = arith.addf %arg9, %62 : vector<12x28xf32>
        %c3_i32_41 = arith.constant 3 : i32
        %64 = arith.muli %arg7, %c3_i32_41 : i32
        %c1_i32_42 = arith.constant 1 : i32
        %65 = arith.addi %64, %c1_i32_42 : i32
        %66 = arith.index_cast %65 : i32 to index
        %c0_43 = arith.constant 0 : index
        %c0_44 = arith.constant 0 : index
        %67 = vector.load %arg2[%66, %c0_43, %c0_44] : memref<9x12x18xf32, #tpu.memory_space<vmem>>, vector<1x12x18xf32>
        %68 = vector.shape_cast %67 : vector<1x12x18xf32> to vector<12x18xf32>
        %cst_45 = arith.constant dense<0.000000e+00> : vector<12x28xf32>
        %69 = tpu.matmul %68, %48, %cst_45 {dimension_numbers = #tpu.dot_dimension_numbers<[1], [0], [0], [1], [0, 0, 1, 1], [], []>} : vector<12x18xf32>, vector<18x28xf32>, vector<12x28xf32> -> vector<12x28xf32>
        %70 = arith.addf %61, %69 : vector<12x28xf32>
        %cst_46 = arith.constant dense<0.000000e+00> : vector<12x28xf32>
        %71 = tpu.matmul %68, %51, %cst_46 {dimension_numbers = #tpu.dot_dimension_numbers<[1], [0], [0], [1], [0, 0, 1, 1], [], []>} : vector<12x18xf32>, vector<18x28xf32>, vector<12x28xf32> -> vector<12x28xf32>
        %72 = arith.addf %63, %71 : vector<12x28xf32>
        %c3_i32_47 = arith.constant 3 : i32
        %73 = arith.muli %arg7, %c3_i32_47 : i32
        %c2_i32_48 = arith.constant 2 : i32
        %74 = arith.addi %73, %c2_i32_48 : i32
        %75 = arith.index_cast %74 : i32 to index
        %c0_49 = arith.constant 0 : index
        %c0_50 = arith.constant 0 : index
        %76 = vector.load %arg2[%75, %c0_49, %c0_50] : memref<9x12x18xf32, #tpu.memory_space<vmem>>, vector<1x12x18xf32>
        %77 = vector.shape_cast %76 : vector<1x12x18xf32> to vector<12x18xf32>
        %cst_51 = arith.constant dense<0.000000e+00> : vector<12x28xf32>
        %78 = tpu.matmul %77, %51, %cst_51 {dimension_numbers = #tpu.dot_dimension_numbers<[1], [0], [0], [1], [0, 0, 1, 1], [], []>} : vector<12x18xf32>, vector<18x28xf32>, vector<12x28xf32> -> vector<12x28xf32>
        %79 = arith.addf %70, %78 : vector<12x28xf32>
        %cst_52 = arith.constant dense<0.000000e+00> : vector<12x28xf32>
        %80 = tpu.matmul %77, %54, %cst_52 {dimension_numbers = #tpu.dot_dimension_numbers<[1], [0], [0], [1], [0, 0, 1, 1], [], []>} : vector<12x18xf32>, vector<18x28xf32>, vector<12x28xf32> -> vector<12x28xf32>
        %81 = arith.addf %72, %80 : vector<12x28xf32>
        scf.yield %79, %81 : vector<12x28xf32>, vector<12x28xf32>
      }
      %c3_i32_6 = arith.constant 3 : i32
      %6 = vector.broadcast %0 : vector<12x1xf32> to vector<12x28xf32>
      %7 = arith.mulf %5#0, %6 : vector<12x28xf32>
      %8 = vector.broadcast %1 : vector<12x1xf32> to vector<12x28xf32>
      %9 = arith.addf %7, %8 : vector<12x28xf32>
      %cst_7 = arith.constant 0.000000e+00 : f32
      %10 = vector.broadcast %cst_7 : f32 to vector<12x28xf32>
      %11 = arith.maximumf %9, %10 : vector<12x28xf32>
      %12 = vector.broadcast %0 : vector<12x1xf32> to vector<12x28xf32>
      %13 = arith.mulf %5#1, %12 : vector<12x28xf32>
      %14 = vector.broadcast %1 : vector<12x1xf32> to vector<12x28xf32>
      %15 = arith.addf %13, %14 : vector<12x28xf32>
      %cst_8 = arith.constant 0.000000e+00 : f32
      %16 = vector.broadcast %cst_8 : f32 to vector<12x28xf32>
      %17 = arith.maximumf %15, %16 : vector<12x28xf32>
      %cst_9 = arith.constant 0.000000e+00 : f32
      %18 = vector.broadcast %cst_9 : f32 to vector<12x28xf32>
      %c0_i32_10 = arith.constant 0 : i32
      %c3_i32_11 = arith.constant 3 : i32
      %19 = arith.addi %c0_i32_10, %c3_i32_11 : i32
      %c1_i32_12 = arith.constant 1 : i32
      %20:2 = scf.for %arg7 = %c0_i32_10 to %19 step %c1_i32_12 iter_args(%arg8 = %18, %arg9 = %18) -> (vector<12x28xf32>, vector<12x28xf32>)  : i32 {
        %c2_i32 = arith.constant 2 : i32
        %40 = arith.muli %c2_i32, %arg6 : i32
        %c1_i32_19 = arith.constant 1 : i32
        %41 = arith.addi %c1_i32_19, %arg7 : i32
        %42 = arith.addi %40, %41 : i32
        %c0_20 = arith.constant 0 : index
        %c0_21 = arith.constant 0 : index
        %c0_22 = arith.constant 0 : index
        %43 = arith.index_cast %42 : i32 to index
        %c0_23 = arith.constant 0 : index
        %44 = vector.load %arg1[%c0_20, %c0_21, %c0_22, %43, %c0_23] : memref<1x2x18x58x29xf32, #tpu.memory_space<vmem>>, vector<1x1x18x1x28xf32>
        %45 = vector.shape_cast %44 : vector<1x1x18x1x28xf32> to vector<18x28xf32>
        %c0_24 = arith.constant 0 : index
        %c1 = arith.constant 1 : index
        %c0_25 = arith.constant 0 : index
        %46 = arith.index_cast %42 : i32 to index
        %c0_26 = arith.constant 0 : index
        %47 = vector.load %arg1[%c0_24, %c1, %c0_25, %46, %c0_26] : memref<1x2x18x58x29xf32, #tpu.memory_space<vmem>>, vector<1x1x18x1x28xf32>
        %48 = vector.shape_cast %47 : vector<1x1x18x1x28xf32> to vector<18x28xf32>
        %c0_27 = arith.constant 0 : index
        %c0_28 = arith.constant 0 : index
        %c0_29 = arith.constant 0 : index
        %49 = arith.index_cast %42 : i32 to index
        %c1_30 = arith.constant 1 : index
        %50 = vector.load %arg1[%c0_27, %c0_28, %c0_29, %49, %c1_30] : memref<1x2x18x58x29xf32, #tpu.memory_space<vmem>>, vector<1x1x18x1x28xf32>
        %51 = vector.shape_cast %50 : vector<1x1x18x1x28xf32> to vector<18x28xf32>
        %c0_31 = arith.constant 0 : index
        %c1_32 = arith.constant 1 : index
        %c0_33 = arith.constant 0 : index
        %52 = arith.index_cast %42 : i32 to index
        %c1_34 = arith.constant 1 : index
        %53 = vector.load %arg1[%c0_31, %c1_32, %c0_33, %52, %c1_34] : memref<1x2x18x58x29xf32, #tpu.memory_space<vmem>>, vector<1x1x18x1x28xf32>
        %54 = vector.shape_cast %53 : vector<1x1x18x1x28xf32> to vector<18x28xf32>
        %c3_i32_35 = arith.constant 3 : i32
        %55 = arith.muli %arg7, %c3_i32_35 : i32
        %c0_i32_36 = arith.constant 0 : i32
        %56 = arith.addi %55, %c0_i32_36 : i32
        %57 = arith.index_cast %56 : i32 to index
        %c0_37 = arith.constant 0 : index
        %c0_38 = arith.constant 0 : index
        %58 = vector.load %arg2[%57, %c0_37, %c0_38] : memref<9x12x18xf32, #tpu.memory_space<vmem>>, vector<1x12x18xf32>
        %59 = vector.shape_cast %58 : vector<1x12x18xf32> to vector<12x18xf32>
        %cst_39 = arith.constant dense<0.000000e+00> : vector<12x28xf32>
        %60 = tpu.matmul %59, %45, %cst_39 {dimension_numbers = #tpu.dot_dimension_numbers<[1], [0], [0], [1], [0, 0, 1, 1], [], []>} : vector<12x18xf32>, vector<18x28xf32>, vector<12x28xf32> -> vector<12x28xf32>
        %61 = arith.addf %arg8, %60 : vector<12x28xf32>
        %cst_40 = arith.constant dense<0.000000e+00> : vector<12x28xf32>
        %62 = tpu.matmul %59, %48, %cst_40 {dimension_numbers = #tpu.dot_dimension_numbers<[1], [0], [0], [1], [0, 0, 1, 1], [], []>} : vector<12x18xf32>, vector<18x28xf32>, vector<12x28xf32> -> vector<12x28xf32>
        %63 = arith.addf %arg9, %62 : vector<12x28xf32>
        %c3_i32_41 = arith.constant 3 : i32
        %64 = arith.muli %arg7, %c3_i32_41 : i32
        %c1_i32_42 = arith.constant 1 : i32
        %65 = arith.addi %64, %c1_i32_42 : i32
        %66 = arith.index_cast %65 : i32 to index
        %c0_43 = arith.constant 0 : index
        %c0_44 = arith.constant 0 : index
        %67 = vector.load %arg2[%66, %c0_43, %c0_44] : memref<9x12x18xf32, #tpu.memory_space<vmem>>, vector<1x12x18xf32>
        %68 = vector.shape_cast %67 : vector<1x12x18xf32> to vector<12x18xf32>
        %cst_45 = arith.constant dense<0.000000e+00> : vector<12x28xf32>
        %69 = tpu.matmul %68, %48, %cst_45 {dimension_numbers = #tpu.dot_dimension_numbers<[1], [0], [0], [1], [0, 0, 1, 1], [], []>} : vector<12x18xf32>, vector<18x28xf32>, vector<12x28xf32> -> vector<12x28xf32>
        %70 = arith.addf %61, %69 : vector<12x28xf32>
        %cst_46 = arith.constant dense<0.000000e+00> : vector<12x28xf32>
        %71 = tpu.matmul %68, %51, %cst_46 {dimension_numbers = #tpu.dot_dimension_numbers<[1], [0], [0], [1], [0, 0, 1, 1], [], []>} : vector<12x18xf32>, vector<18x28xf32>, vector<12x28xf32> -> vector<12x28xf32>
        %72 = arith.addf %63, %71 : vector<12x28xf32>
        %c3_i32_47 = arith.constant 3 : i32
        %73 = arith.muli %arg7, %c3_i32_47 : i32
        %c2_i32_48 = arith.constant 2 : i32
        %74 = arith.addi %73, %c2_i32_48 : i32
        %75 = arith.index_cast %74 : i32 to index
        %c0_49 = arith.constant 0 : index
        %c0_50 = arith.constant 0 : index
        %76 = vector.load %arg2[%75, %c0_49, %c0_50] : memref<9x12x18xf32, #tpu.memory_space<vmem>>, vector<1x12x18xf32>
        %77 = vector.shape_cast %76 : vector<1x12x18xf32> to vector<12x18xf32>
        %cst_51 = arith.constant dense<0.000000e+00> : vector<12x28xf32>
        %78 = tpu.matmul %77, %51, %cst_51 {dimension_numbers = #tpu.dot_dimension_numbers<[1], [0], [0], [1], [0, 0, 1, 1], [], []>} : vector<12x18xf32>, vector<18x28xf32>, vector<12x28xf32> -> vector<12x28xf32>
        %79 = arith.addf %70, %78 : vector<12x28xf32>
        %cst_52 = arith.constant dense<0.000000e+00> : vector<12x28xf32>
        %80 = tpu.matmul %77, %54, %cst_52 {dimension_numbers = #tpu.dot_dimension_numbers<[1], [0], [0], [1], [0, 0, 1, 1], [], []>} : vector<12x18xf32>, vector<18x28xf32>, vector<12x28xf32> -> vector<12x28xf32>
        %81 = arith.addf %72, %80 : vector<12x28xf32>
        scf.yield %79, %81 : vector<12x28xf32>, vector<12x28xf32>
      }
      %c3_i32_13 = arith.constant 3 : i32
      %21 = vector.broadcast %0 : vector<12x1xf32> to vector<12x28xf32>
      %22 = arith.mulf %20#0, %21 : vector<12x28xf32>
      %23 = vector.broadcast %1 : vector<12x1xf32> to vector<12x28xf32>
      %24 = arith.addf %22, %23 : vector<12x28xf32>
      %cst_14 = arith.constant 0.000000e+00 : f32
      %25 = vector.broadcast %cst_14 : f32 to vector<12x28xf32>
      %26 = arith.maximumf %24, %25 : vector<12x28xf32>
      %27 = vector.broadcast %0 : vector<12x1xf32> to vector<12x28xf32>
      %28 = arith.mulf %20#1, %27 : vector<12x28xf32>
      %29 = vector.broadcast %1 : vector<12x1xf32> to vector<12x28xf32>
      %30 = arith.addf %28, %29 : vector<12x28xf32>
      %cst_15 = arith.constant 0.000000e+00 : f32
      %31 = vector.broadcast %cst_15 : f32 to vector<12x28xf32>
      %32 = arith.maximumf %30, %31 : vector<12x28xf32>
      %33 = arith.maximumf %11, %17 : vector<12x28xf32>
      %34 = arith.maximumf %26, %32 : vector<12x28xf32>
      %35 = arith.maximumf %33, %34 : vector<12x28xf32>
      %c0_16 = arith.constant 0 : index
      %c0_17 = arith.constant 0 : index
      %36 = arith.index_cast %arg6 : i32 to index
      %c0_18 = arith.constant 0 : index
      %37 = vector.load %arg5[%c0_16, %c0_17, %36, %c0_18] : memref<1x12x28x28xf32, #tpu.memory_space<vmem>>, vector<1x12x1x28xf32>
      %38 = vector.shape_cast %37 : vector<1x12x1x28xf32> to vector<12x28xf32>
      %39 = vector.shape_cast %35 : vector<12x28xf32> to vector<1x12x1x28xf32>
      tpu.vector_store %arg5[%c0_16, %c0_17, %36, %c0_18], %39 {strides = array<i32>} : memref<1x12x28x28xf32, #tpu.memory_space<vmem>>, vector<1x12x1x28xf32>,
    }
    %c28_i32_3 = arith.constant 28 : i32
    return
  }
  func.func @transform_0(%arg0: i32) -> (i32, i32, i32, i32, i32) {
    %c0_i32 = arith.constant 0 : i32
    %c0_i32_0 = arith.constant 0 : i32
    %c0_i32_1 = arith.constant 0 : i32
    %c0_i32_2 = arith.constant 0 : i32
    %c0_i32_3 = arith.constant 0 : i32
    return %arg0, %c0_i32, %c0_i32_0, %c0_i32_1, %c0_i32_2 : i32, i32, i32, i32, i32
  }
  func.func @transform_1(%arg0: i32) -> (i32, i32, i32) {
    %c0_i32 = arith.constant 0 : i32
    %c0_i32_0 = arith.constant 0 : i32
    %c0_i32_1 = arith.constant 0 : i32
    %c0_i32_2 = arith.constant 0 : i32
    return %c0_i32, %c0_i32_0, %c0_i32_1 : i32, i32, i32
  }
  func.func @transform_2(%arg0: i32) -> (i32, i32) {
    %c0_i32 = arith.constant 0 : i32
    %c0_i32_0 = arith.constant 0 : i32
    %c0_i32_1 = arith.constant 0 : i32
    return %c0_i32, %c0_i32_0 : i32, i32
  }
  func.func @transform_3(%arg0: i32) -> (i32, i32) {
    %c0_i32 = arith.constant 0 : i32
    %c0_i32_0 = arith.constant 0 : i32
    %c0_i32_1 = arith.constant 0 : i32
    return %c0_i32, %c0_i32_0 : i32, i32
  }
  func.func @transform_4(%arg0: i32) -> (i32, i32, i32, i32) {
    %c0_i32 = arith.constant 0 : i32
    %c0_i32_0 = arith.constant 0 : i32
    %c0_i32_1 = arith.constant 0 : i32
    %c0_i32_2 = arith.constant 0 : i32
    return %arg0, %c0_i32, %c0_i32_0, %c0_i32_1 : i32, i32, i32, i32
  }
}

module attributes {stable_mosaic.version = 11 : i64} {
  func.func @_conv_bn_relu_pool_kernel(%arg0: i32, %arg1: memref<1x2x12x30x15xf32, #tpu.memory_space<vmem>>, %arg2: memref<9x6x12xf32, #tpu.memory_space<vmem>>, %arg3: memref<6x1xf32, #tpu.memory_space<vmem>>, %arg4: memref<6x1xf32, #tpu.memory_space<vmem>>, %arg5: memref<1x6x14x14xf32, #tpu.memory_space<vmem>>) attributes {dimension_semantics = [#tpu.dimension_semantics<parallel>], iteration_bounds = array<i64: 2>, scalar_prefetch = 0 : i64, scratch_operands = 0 : i64, tpu.core_type = #tpu.core_type<tc>, window_params = [{transform_indices = @transform_0, window_bounds = array<i64: 1, 2, 12, 30, 15>}, {pipeline_mode = #tpu.pipeline_mode<synchronous>, transform_indices = @transform_1, window_bounds = array<i64: 9, 6, 12>}, {pipeline_mode = #tpu.pipeline_mode<synchronous>, transform_indices = @transform_2, window_bounds = array<i64: 6, 1>}, {pipeline_mode = #tpu.pipeline_mode<synchronous>, transform_indices = @transform_3, window_bounds = array<i64: 6, 1>}, {transform_indices = @transform_4, window_bounds = array<i64: 1, 6, 14, 14>}]} {
    %c0 = arith.constant 0 : index
    %c0_0 = arith.constant 0 : index
    %0 = vector.load %arg3[%c0, %c0_0] : memref<6x1xf32, #tpu.memory_space<vmem>>, vector<6x1xf32>
    %c0_1 = arith.constant 0 : index
    %c0_2 = arith.constant 0 : index
    %1 = vector.load %arg4[%c0_1, %c0_2] : memref<6x1xf32, #tpu.memory_space<vmem>>, vector<6x1xf32>
    %c0_i32 = arith.constant 0 : i32
    %c14_i32 = arith.constant 14 : i32
    %2 = arith.addi %c0_i32, %c14_i32 : i32
    %c1_i32 = arith.constant 1 : i32
    scf.for %arg6 = %c0_i32 to %2 step %c1_i32  : i32 {
      %cst = arith.constant 0.000000e+00 : f32
      %3 = vector.broadcast %cst : f32 to vector<6x14xf32>
      %c0_i32_4 = arith.constant 0 : i32
      %c3_i32 = arith.constant 3 : i32
      %4 = arith.addi %c0_i32_4, %c3_i32 : i32
      %c1_i32_5 = arith.constant 1 : i32
      %5:2 = scf.for %arg7 = %c0_i32_4 to %4 step %c1_i32_5 iter_args(%arg8 = %3, %arg9 = %3) -> (vector<6x14xf32>, vector<6x14xf32>)  : i32 {
        %c2_i32 = arith.constant 2 : i32
        %40 = arith.muli %c2_i32, %arg6 : i32
        %c0_i32_19 = arith.constant 0 : i32
        %41 = arith.addi %c0_i32_19, %arg7 : i32
        %42 = arith.addi %40, %41 : i32
        %c0_20 = arith.constant 0 : index
        %c0_21 = arith.constant 0 : index
        %c0_22 = arith.constant 0 : index
        %43 = arith.index_cast %42 : i32 to index
        %c0_23 = arith.constant 0 : index
        %44 = vector.load %arg1[%c0_20, %c0_21, %c0_22, %43, %c0_23] : memref<1x2x12x30x15xf32, #tpu.memory_space<vmem>>, vector<1x1x12x1x14xf32>
        %45 = vector.shape_cast %44 : vector<1x1x12x1x14xf32> to vector<12x14xf32>
        %c0_24 = arith.constant 0 : index
        %c1 = arith.constant 1 : index
        %c0_25 = arith.constant 0 : index
        %46 = arith.index_cast %42 : i32 to index
        %c0_26 = arith.constant 0 : index
        %47 = vector.load %arg1[%c0_24, %c1, %c0_25, %46, %c0_26] : memref<1x2x12x30x15xf32, #tpu.memory_space<vmem>>, vector<1x1x12x1x14xf32>
        %48 = vector.shape_cast %47 : vector<1x1x12x1x14xf32> to vector<12x14xf32>
        %c0_27 = arith.constant 0 : index
        %c0_28 = arith.constant 0 : index
        %c0_29 = arith.constant 0 : index
        %49 = arith.index_cast %42 : i32 to index
        %c1_30 = arith.constant 1 : index
        %50 = vector.load %arg1[%c0_27, %c0_28, %c0_29, %49, %c1_30] : memref<1x2x12x30x15xf32, #tpu.memory_space<vmem>>, vector<1x1x12x1x14xf32>
        %51 = vector.shape_cast %50 : vector<1x1x12x1x14xf32> to vector<12x14xf32>
        %c0_31 = arith.constant 0 : index
        %c1_32 = arith.constant 1 : index
        %c0_33 = arith.constant 0 : index
        %52 = arith.index_cast %42 : i32 to index
        %c1_34 = arith.constant 1 : index
        %53 = vector.load %arg1[%c0_31, %c1_32, %c0_33, %52, %c1_34] : memref<1x2x12x30x15xf32, #tpu.memory_space<vmem>>, vector<1x1x12x1x14xf32>
        %54 = vector.shape_cast %53 : vector<1x1x12x1x14xf32> to vector<12x14xf32>
        %c3_i32_35 = arith.constant 3 : i32
        %55 = arith.muli %arg7, %c3_i32_35 : i32
        %c0_i32_36 = arith.constant 0 : i32
        %56 = arith.addi %55, %c0_i32_36 : i32
        %57 = arith.index_cast %56 : i32 to index
        %c0_37 = arith.constant 0 : index
        %c0_38 = arith.constant 0 : index
        %58 = vector.load %arg2[%57, %c0_37, %c0_38] : memref<9x6x12xf32, #tpu.memory_space<vmem>>, vector<1x6x12xf32>
        %59 = vector.shape_cast %58 : vector<1x6x12xf32> to vector<6x12xf32>
        %cst_39 = arith.constant dense<0.000000e+00> : vector<6x14xf32>
        %60 = tpu.matmul %59, %45, %cst_39 {dimension_numbers = #tpu.dot_dimension_numbers<[1], [0], [0], [1], [0, 0, 1, 1], [], []>} : vector<6x12xf32>, vector<12x14xf32>, vector<6x14xf32> -> vector<6x14xf32>
        %61 = arith.addf %arg8, %60 : vector<6x14xf32>
        %cst_40 = arith.constant dense<0.000000e+00> : vector<6x14xf32>
        %62 = tpu.matmul %59, %48, %cst_40 {dimension_numbers = #tpu.dot_dimension_numbers<[1], [0], [0], [1], [0, 0, 1, 1], [], []>} : vector<6x12xf32>, vector<12x14xf32>, vector<6x14xf32> -> vector<6x14xf32>
        %63 = arith.addf %arg9, %62 : vector<6x14xf32>
        %c3_i32_41 = arith.constant 3 : i32
        %64 = arith.muli %arg7, %c3_i32_41 : i32
        %c1_i32_42 = arith.constant 1 : i32
        %65 = arith.addi %64, %c1_i32_42 : i32
        %66 = arith.index_cast %65 : i32 to index
        %c0_43 = arith.constant 0 : index
        %c0_44 = arith.constant 0 : index
        %67 = vector.load %arg2[%66, %c0_43, %c0_44] : memref<9x6x12xf32, #tpu.memory_space<vmem>>, vector<1x6x12xf32>
        %68 = vector.shape_cast %67 : vector<1x6x12xf32> to vector<6x12xf32>
        %cst_45 = arith.constant dense<0.000000e+00> : vector<6x14xf32>
        %69 = tpu.matmul %68, %48, %cst_45 {dimension_numbers = #tpu.dot_dimension_numbers<[1], [0], [0], [1], [0, 0, 1, 1], [], []>} : vector<6x12xf32>, vector<12x14xf32>, vector<6x14xf32> -> vector<6x14xf32>
        %70 = arith.addf %61, %69 : vector<6x14xf32>
        %cst_46 = arith.constant dense<0.000000e+00> : vector<6x14xf32>
        %71 = tpu.matmul %68, %51, %cst_46 {dimension_numbers = #tpu.dot_dimension_numbers<[1], [0], [0], [1], [0, 0, 1, 1], [], []>} : vector<6x12xf32>, vector<12x14xf32>, vector<6x14xf32> -> vector<6x14xf32>
        %72 = arith.addf %63, %71 : vector<6x14xf32>
        %c3_i32_47 = arith.constant 3 : i32
        %73 = arith.muli %arg7, %c3_i32_47 : i32
        %c2_i32_48 = arith.constant 2 : i32
        %74 = arith.addi %73, %c2_i32_48 : i32
        %75 = arith.index_cast %74 : i32 to index
        %c0_49 = arith.constant 0 : index
        %c0_50 = arith.constant 0 : index
        %76 = vector.load %arg2[%75, %c0_49, %c0_50] : memref<9x6x12xf32, #tpu.memory_space<vmem>>, vector<1x6x12xf32>
        %77 = vector.shape_cast %76 : vector<1x6x12xf32> to vector<6x12xf32>
        %cst_51 = arith.constant dense<0.000000e+00> : vector<6x14xf32>
        %78 = tpu.matmul %77, %51, %cst_51 {dimension_numbers = #tpu.dot_dimension_numbers<[1], [0], [0], [1], [0, 0, 1, 1], [], []>} : vector<6x12xf32>, vector<12x14xf32>, vector<6x14xf32> -> vector<6x14xf32>
        %79 = arith.addf %70, %78 : vector<6x14xf32>
        %cst_52 = arith.constant dense<0.000000e+00> : vector<6x14xf32>
        %80 = tpu.matmul %77, %54, %cst_52 {dimension_numbers = #tpu.dot_dimension_numbers<[1], [0], [0], [1], [0, 0, 1, 1], [], []>} : vector<6x12xf32>, vector<12x14xf32>, vector<6x14xf32> -> vector<6x14xf32>
        %81 = arith.addf %72, %80 : vector<6x14xf32>
        scf.yield %79, %81 : vector<6x14xf32>, vector<6x14xf32>
      }
      %c3_i32_6 = arith.constant 3 : i32
      %6 = vector.broadcast %0 : vector<6x1xf32> to vector<6x14xf32>
      %7 = arith.mulf %5#0, %6 : vector<6x14xf32>
      %8 = vector.broadcast %1 : vector<6x1xf32> to vector<6x14xf32>
      %9 = arith.addf %7, %8 : vector<6x14xf32>
      %cst_7 = arith.constant 0.000000e+00 : f32
      %10 = vector.broadcast %cst_7 : f32 to vector<6x14xf32>
      %11 = arith.maximumf %9, %10 : vector<6x14xf32>
      %12 = vector.broadcast %0 : vector<6x1xf32> to vector<6x14xf32>
      %13 = arith.mulf %5#1, %12 : vector<6x14xf32>
      %14 = vector.broadcast %1 : vector<6x1xf32> to vector<6x14xf32>
      %15 = arith.addf %13, %14 : vector<6x14xf32>
      %cst_8 = arith.constant 0.000000e+00 : f32
      %16 = vector.broadcast %cst_8 : f32 to vector<6x14xf32>
      %17 = arith.maximumf %15, %16 : vector<6x14xf32>
      %cst_9 = arith.constant 0.000000e+00 : f32
      %18 = vector.broadcast %cst_9 : f32 to vector<6x14xf32>
      %c0_i32_10 = arith.constant 0 : i32
      %c3_i32_11 = arith.constant 3 : i32
      %19 = arith.addi %c0_i32_10, %c3_i32_11 : i32
      %c1_i32_12 = arith.constant 1 : i32
      %20:2 = scf.for %arg7 = %c0_i32_10 to %19 step %c1_i32_12 iter_args(%arg8 = %18, %arg9 = %18) -> (vector<6x14xf32>, vector<6x14xf32>)  : i32 {
        %c2_i32 = arith.constant 2 : i32
        %40 = arith.muli %c2_i32, %arg6 : i32
        %c1_i32_19 = arith.constant 1 : i32
        %41 = arith.addi %c1_i32_19, %arg7 : i32
        %42 = arith.addi %40, %41 : i32
        %c0_20 = arith.constant 0 : index
        %c0_21 = arith.constant 0 : index
        %c0_22 = arith.constant 0 : index
        %43 = arith.index_cast %42 : i32 to index
        %c0_23 = arith.constant 0 : index
        %44 = vector.load %arg1[%c0_20, %c0_21, %c0_22, %43, %c0_23] : memref<1x2x12x30x15xf32, #tpu.memory_space<vmem>>, vector<1x1x12x1x14xf32>
        %45 = vector.shape_cast %44 : vector<1x1x12x1x14xf32> to vector<12x14xf32>
        %c0_24 = arith.constant 0 : index
        %c1 = arith.constant 1 : index
        %c0_25 = arith.constant 0 : index
        %46 = arith.index_cast %42 : i32 to index
        %c0_26 = arith.constant 0 : index
        %47 = vector.load %arg1[%c0_24, %c1, %c0_25, %46, %c0_26] : memref<1x2x12x30x15xf32, #tpu.memory_space<vmem>>, vector<1x1x12x1x14xf32>
        %48 = vector.shape_cast %47 : vector<1x1x12x1x14xf32> to vector<12x14xf32>
        %c0_27 = arith.constant 0 : index
        %c0_28 = arith.constant 0 : index
        %c0_29 = arith.constant 0 : index
        %49 = arith.index_cast %42 : i32 to index
        %c1_30 = arith.constant 1 : index
        %50 = vector.load %arg1[%c0_27, %c0_28, %c0_29, %49, %c1_30] : memref<1x2x12x30x15xf32, #tpu.memory_space<vmem>>, vector<1x1x12x1x14xf32>
        %51 = vector.shape_cast %50 : vector<1x1x12x1x14xf32> to vector<12x14xf32>
        %c0_31 = arith.constant 0 : index
        %c1_32 = arith.constant 1 : index
        %c0_33 = arith.constant 0 : index
        %52 = arith.index_cast %42 : i32 to index
        %c1_34 = arith.constant 1 : index
        %53 = vector.load %arg1[%c0_31, %c1_32, %c0_33, %52, %c1_34] : memref<1x2x12x30x15xf32, #tpu.memory_space<vmem>>, vector<1x1x12x1x14xf32>
        %54 = vector.shape_cast %53 : vector<1x1x12x1x14xf32> to vector<12x14xf32>
        %c3_i32_35 = arith.constant 3 : i32
        %55 = arith.muli %arg7, %c3_i32_35 : i32
        %c0_i32_36 = arith.constant 0 : i32
        %56 = arith.addi %55, %c0_i32_36 : i32
        %57 = arith.index_cast %56 : i32 to index
        %c0_37 = arith.constant 0 : index
        %c0_38 = arith.constant 0 : index
        %58 = vector.load %arg2[%57, %c0_37, %c0_38] : memref<9x6x12xf32, #tpu.memory_space<vmem>>, vector<1x6x12xf32>
        %59 = vector.shape_cast %58 : vector<1x6x12xf32> to vector<6x12xf32>
        %cst_39 = arith.constant dense<0.000000e+00> : vector<6x14xf32>
        %60 = tpu.matmul %59, %45, %cst_39 {dimension_numbers = #tpu.dot_dimension_numbers<[1], [0], [0], [1], [0, 0, 1, 1], [], []>} : vector<6x12xf32>, vector<12x14xf32>, vector<6x14xf32> -> vector<6x14xf32>
        %61 = arith.addf %arg8, %60 : vector<6x14xf32>
        %cst_40 = arith.constant dense<0.000000e+00> : vector<6x14xf32>
        %62 = tpu.matmul %59, %48, %cst_40 {dimension_numbers = #tpu.dot_dimension_numbers<[1], [0], [0], [1], [0, 0, 1, 1], [], []>} : vector<6x12xf32>, vector<12x14xf32>, vector<6x14xf32> -> vector<6x14xf32>
        %63 = arith.addf %arg9, %62 : vector<6x14xf32>
        %c3_i32_41 = arith.constant 3 : i32
        %64 = arith.muli %arg7, %c3_i32_41 : i32
        %c1_i32_42 = arith.constant 1 : i32
        %65 = arith.addi %64, %c1_i32_42 : i32
        %66 = arith.index_cast %65 : i32 to index
        %c0_43 = arith.constant 0 : index
        %c0_44 = arith.constant 0 : index
        %67 = vector.load %arg2[%66, %c0_43, %c0_44] : memref<9x6x12xf32, #tpu.memory_space<vmem>>, vector<1x6x12xf32>
        %68 = vector.shape_cast %67 : vector<1x6x12xf32> to vector<6x12xf32>
        %cst_45 = arith.constant dense<0.000000e+00> : vector<6x14xf32>
        %69 = tpu.matmul %68, %48, %cst_45 {dimension_numbers = #tpu.dot_dimension_numbers<[1], [0], [0], [1], [0, 0, 1, 1], [], []>} : vector<6x12xf32>, vector<12x14xf32>, vector<6x14xf32> -> vector<6x14xf32>
        %70 = arith.addf %61, %69 : vector<6x14xf32>
        %cst_46 = arith.constant dense<0.000000e+00> : vector<6x14xf32>
        %71 = tpu.matmul %68, %51, %cst_46 {dimension_numbers = #tpu.dot_dimension_numbers<[1], [0], [0], [1], [0, 0, 1, 1], [], []>} : vector<6x12xf32>, vector<12x14xf32>, vector<6x14xf32> -> vector<6x14xf32>
        %72 = arith.addf %63, %71 : vector<6x14xf32>
        %c3_i32_47 = arith.constant 3 : i32
        %73 = arith.muli %arg7, %c3_i32_47 : i32
        %c2_i32_48 = arith.constant 2 : i32
        %74 = arith.addi %73, %c2_i32_48 : i32
        %75 = arith.index_cast %74 : i32 to index
        %c0_49 = arith.constant 0 : index
        %c0_50 = arith.constant 0 : index
        %76 = vector.load %arg2[%75, %c0_49, %c0_50] : memref<9x6x12xf32, #tpu.memory_space<vmem>>, vector<1x6x12xf32>
        %77 = vector.shape_cast %76 : vector<1x6x12xf32> to vector<6x12xf32>
        %cst_51 = arith.constant dense<0.000000e+00> : vector<6x14xf32>
        %78 = tpu.matmul %77, %51, %cst_51 {dimension_numbers = #tpu.dot_dimension_numbers<[1], [0], [0], [1], [0, 0, 1, 1], [], []>} : vector<6x12xf32>, vector<12x14xf32>, vector<6x14xf32> -> vector<6x14xf32>
        %79 = arith.addf %70, %78 : vector<6x14xf32>
        %cst_52 = arith.constant dense<0.000000e+00> : vector<6x14xf32>
        %80 = tpu.matmul %77, %54, %cst_52 {dimension_numbers = #tpu.dot_dimension_numbers<[1], [0], [0], [1], [0, 0, 1, 1], [], []>} : vector<6x12xf32>, vector<12x14xf32>, vector<6x14xf32> -> vector<6x14xf32>
        %81 = arith.addf %72, %80 : vector<6x14xf32>
        scf.yield %79, %81 : vector<6x14xf32>, vector<6x14xf32>
      }
      %c3_i32_13 = arith.constant 3 : i32
      %21 = vector.broadcast %0 : vector<6x1xf32> to vector<6x14xf32>
      %22 = arith.mulf %20#0, %21 : vector<6x14xf32>
      %23 = vector.broadcast %1 : vector<6x1xf32> to vector<6x14xf32>
      %24 = arith.addf %22, %23 : vector<6x14xf32>
      %cst_14 = arith.constant 0.000000e+00 : f32
      %25 = vector.broadcast %cst_14 : f32 to vector<6x14xf32>
      %26 = arith.maximumf %24, %25 : vector<6x14xf32>
      %27 = vector.broadcast %0 : vector<6x1xf32> to vector<6x14xf32>
      %28 = arith.mulf %20#1, %27 : vector<6x14xf32>
      %29 = vector.broadcast %1 : vector<6x1xf32> to vector<6x14xf32>
      %30 = arith.addf %28, %29 : vector<6x14xf32>
      %cst_15 = arith.constant 0.000000e+00 : f32
      %31 = vector.broadcast %cst_15 : f32 to vector<6x14xf32>
      %32 = arith.maximumf %30, %31 : vector<6x14xf32>
      %33 = arith.maximumf %11, %17 : vector<6x14xf32>
      %34 = arith.maximumf %26, %32 : vector<6x14xf32>
      %35 = arith.maximumf %33, %34 : vector<6x14xf32>
      %c0_16 = arith.constant 0 : index
      %c0_17 = arith.constant 0 : index
      %36 = arith.index_cast %arg6 : i32 to index
      %c0_18 = arith.constant 0 : index
      %37 = vector.load %arg5[%c0_16, %c0_17, %36, %c0_18] : memref<1x6x14x14xf32, #tpu.memory_space<vmem>>, vector<1x6x1x14xf32>
      %38 = vector.shape_cast %37 : vector<1x6x1x14xf32> to vector<6x14xf32>
      %39 = vector.shape_cast %35 : vector<6x14xf32> to vector<1x6x1x14xf32>
      tpu.vector_store %arg5[%c0_16, %c0_17, %36, %c0_18], %39 {strides = array<i32>} : memref<1x6x14x14xf32, #tpu.memory_space<vmem>>, vector<1x6x1x14xf32>,
    }
    %c14_i32_3 = arith.constant 14 : i32
    return
  }
  func.func @transform_0(%arg0: i32) -> (i32, i32, i32, i32, i32) {
    %c0_i32 = arith.constant 0 : i32
    %c0_i32_0 = arith.constant 0 : i32
    %c0_i32_1 = arith.constant 0 : i32
    %c0_i32_2 = arith.constant 0 : i32
    %c0_i32_3 = arith.constant 0 : i32
    return %arg0, %c0_i32, %c0_i32_0, %c0_i32_1, %c0_i32_2 : i32, i32, i32, i32, i32
  }
  func.func @transform_1(%arg0: i32) -> (i32, i32, i32) {
    %c0_i32 = arith.constant 0 : i32
    %c0_i32_0 = arith.constant 0 : i32
    %c0_i32_1 = arith.constant 0 : i32
    %c0_i32_2 = arith.constant 0 : i32
    return %c0_i32, %c0_i32_0, %c0_i32_1 : i32, i32, i32
  }
  func.func @transform_2(%arg0: i32) -> (i32, i32) {
    %c0_i32 = arith.constant 0 : i32
    %c0_i32_0 = arith.constant 0 : i32
    %c0_i32_1 = arith.constant 0 : i32
    return %c0_i32, %c0_i32_0 : i32, i32
  }
  func.func @transform_3(%arg0: i32) -> (i32, i32) {
    %c0_i32 = arith.constant 0 : i32
    %c0_i32_0 = arith.constant 0 : i32
    %c0_i32_1 = arith.constant 0 : i32
    return %c0_i32, %c0_i32_0 : i32, i32
  }
  func.func @transform_4(%arg0: i32) -> (i32, i32, i32, i32) {
    %c0_i32 = arith.constant 0 : i32
    %c0_i32_0 = arith.constant 0 : i32
    %c0_i32_1 = arith.constant 0 : i32
    %c0_i32_2 = arith.constant 0 : i32
    return %arg0, %c0_i32, %c0_i32_0, %c0_i32_1 : i32, i32, i32, i32
  }
}

module attributes {stable_mosaic.version = 11 : i64} {
  func.func @_conv_bn_relu_pool_kernel(%arg0: i32, %arg1: memref<1x2x6x16x8xf32, #tpu.memory_space<vmem>>, %arg2: memref<9x3x6xf32, #tpu.memory_space<vmem>>, %arg3: memref<3x1xf32, #tpu.memory_space<vmem>>, %arg4: memref<3x1xf32, #tpu.memory_space<vmem>>, %arg5: memref<1x3x7x7xf32, #tpu.memory_space<vmem>>) attributes {dimension_semantics = [#tpu.dimension_semantics<parallel>], iteration_bounds = array<i64: 2>, scalar_prefetch = 0 : i64, scratch_operands = 0 : i64, tpu.core_type = #tpu.core_type<tc>, window_params = [{transform_indices = @transform_0, window_bounds = array<i64: 1, 2, 6, 16, 8>}, {pipeline_mode = #tpu.pipeline_mode<synchronous>, transform_indices = @transform_1, window_bounds = array<i64: 9, 3, 6>}, {pipeline_mode = #tpu.pipeline_mode<synchronous>, transform_indices = @transform_2, window_bounds = array<i64: 3, 1>}, {pipeline_mode = #tpu.pipeline_mode<synchronous>, transform_indices = @transform_3, window_bounds = array<i64: 3, 1>}, {transform_indices = @transform_4, window_bounds = array<i64: 1, 3, 7, 7>}]} {
    %c0 = arith.constant 0 : index
    %c0_0 = arith.constant 0 : index
    %0 = vector.load %arg3[%c0, %c0_0] : memref<3x1xf32, #tpu.memory_space<vmem>>, vector<3x1xf32>
    %c0_1 = arith.constant 0 : index
    %c0_2 = arith.constant 0 : index
    %1 = vector.load %arg4[%c0_1, %c0_2] : memref<3x1xf32, #tpu.memory_space<vmem>>, vector<3x1xf32>
    %c0_i32 = arith.constant 0 : i32
    %c7_i32 = arith.constant 7 : i32
    %2 = arith.addi %c0_i32, %c7_i32 : i32
    %c1_i32 = arith.constant 1 : i32
    scf.for %arg6 = %c0_i32 to %2 step %c1_i32  : i32 {
      %cst = arith.constant 0.000000e+00 : f32
      %3 = vector.broadcast %cst : f32 to vector<3x7xf32>
      %c0_i32_4 = arith.constant 0 : i32
      %c3_i32 = arith.constant 3 : i32
      %4 = arith.addi %c0_i32_4, %c3_i32 : i32
      %c1_i32_5 = arith.constant 1 : i32
      %5:2 = scf.for %arg7 = %c0_i32_4 to %4 step %c1_i32_5 iter_args(%arg8 = %3, %arg9 = %3) -> (vector<3x7xf32>, vector<3x7xf32>)  : i32 {
        %c2_i32 = arith.constant 2 : i32
        %40 = arith.muli %c2_i32, %arg6 : i32
        %c0_i32_19 = arith.constant 0 : i32
        %41 = arith.addi %c0_i32_19, %arg7 : i32
        %42 = arith.addi %40, %41 : i32
        %c0_20 = arith.constant 0 : index
        %c0_21 = arith.constant 0 : index
        %c0_22 = arith.constant 0 : index
        %43 = arith.index_cast %42 : i32 to index
        %c0_23 = arith.constant 0 : index
        %44 = vector.load %arg1[%c0_20, %c0_21, %c0_22, %43, %c0_23] : memref<1x2x6x16x8xf32, #tpu.memory_space<vmem>>, vector<1x1x6x1x7xf32>
        %45 = vector.shape_cast %44 : vector<1x1x6x1x7xf32> to vector<6x7xf32>
        %c0_24 = arith.constant 0 : index
        %c1 = arith.constant 1 : index
        %c0_25 = arith.constant 0 : index
        %46 = arith.index_cast %42 : i32 to index
        %c0_26 = arith.constant 0 : index
        %47 = vector.load %arg1[%c0_24, %c1, %c0_25, %46, %c0_26] : memref<1x2x6x16x8xf32, #tpu.memory_space<vmem>>, vector<1x1x6x1x7xf32>
        %48 = vector.shape_cast %47 : vector<1x1x6x1x7xf32> to vector<6x7xf32>
        %c0_27 = arith.constant 0 : index
        %c0_28 = arith.constant 0 : index
        %c0_29 = arith.constant 0 : index
        %49 = arith.index_cast %42 : i32 to index
        %c1_30 = arith.constant 1 : index
        %50 = vector.load %arg1[%c0_27, %c0_28, %c0_29, %49, %c1_30] : memref<1x2x6x16x8xf32, #tpu.memory_space<vmem>>, vector<1x1x6x1x7xf32>
        %51 = vector.shape_cast %50 : vector<1x1x6x1x7xf32> to vector<6x7xf32>
        %c0_31 = arith.constant 0 : index
        %c1_32 = arith.constant 1 : index
        %c0_33 = arith.constant 0 : index
        %52 = arith.index_cast %42 : i32 to index
        %c1_34 = arith.constant 1 : index
        %53 = vector.load %arg1[%c0_31, %c1_32, %c0_33, %52, %c1_34] : memref<1x2x6x16x8xf32, #tpu.memory_space<vmem>>, vector<1x1x6x1x7xf32>
        %54 = vector.shape_cast %53 : vector<1x1x6x1x7xf32> to vector<6x7xf32>
        %c3_i32_35 = arith.constant 3 : i32
        %55 = arith.muli %arg7, %c3_i32_35 : i32
        %c0_i32_36 = arith.constant 0 : i32
        %56 = arith.addi %55, %c0_i32_36 : i32
        %57 = arith.index_cast %56 : i32 to index
        %c0_37 = arith.constant 0 : index
        %c0_38 = arith.constant 0 : index
        %58 = vector.load %arg2[%57, %c0_37, %c0_38] : memref<9x3x6xf32, #tpu.memory_space<vmem>>, vector<1x3x6xf32>
        %59 = vector.shape_cast %58 : vector<1x3x6xf32> to vector<3x6xf32>
        %cst_39 = arith.constant dense<0.000000e+00> : vector<3x7xf32>
        %60 = tpu.matmul %59, %45, %cst_39 {dimension_numbers = #tpu.dot_dimension_numbers<[1], [0], [0], [1], [0, 0, 1, 1], [], []>} : vector<3x6xf32>, vector<6x7xf32>, vector<3x7xf32> -> vector<3x7xf32>
        %61 = arith.addf %arg8, %60 : vector<3x7xf32>
        %cst_40 = arith.constant dense<0.000000e+00> : vector<3x7xf32>
        %62 = tpu.matmul %59, %48, %cst_40 {dimension_numbers = #tpu.dot_dimension_numbers<[1], [0], [0], [1], [0, 0, 1, 1], [], []>} : vector<3x6xf32>, vector<6x7xf32>, vector<3x7xf32> -> vector<3x7xf32>
        %63 = arith.addf %arg9, %62 : vector<3x7xf32>
        %c3_i32_41 = arith.constant 3 : i32
        %64 = arith.muli %arg7, %c3_i32_41 : i32
        %c1_i32_42 = arith.constant 1 : i32
        %65 = arith.addi %64, %c1_i32_42 : i32
        %66 = arith.index_cast %65 : i32 to index
        %c0_43 = arith.constant 0 : index
        %c0_44 = arith.constant 0 : index
        %67 = vector.load %arg2[%66, %c0_43, %c0_44] : memref<9x3x6xf32, #tpu.memory_space<vmem>>, vector<1x3x6xf32>
        %68 = vector.shape_cast %67 : vector<1x3x6xf32> to vector<3x6xf32>
        %cst_45 = arith.constant dense<0.000000e+00> : vector<3x7xf32>
        %69 = tpu.matmul %68, %48, %cst_45 {dimension_numbers = #tpu.dot_dimension_numbers<[1], [0], [0], [1], [0, 0, 1, 1], [], []>} : vector<3x6xf32>, vector<6x7xf32>, vector<3x7xf32> -> vector<3x7xf32>
        %70 = arith.addf %61, %69 : vector<3x7xf32>
        %cst_46 = arith.constant dense<0.000000e+00> : vector<3x7xf32>
        %71 = tpu.matmul %68, %51, %cst_46 {dimension_numbers = #tpu.dot_dimension_numbers<[1], [0], [0], [1], [0, 0, 1, 1], [], []>} : vector<3x6xf32>, vector<6x7xf32>, vector<3x7xf32> -> vector<3x7xf32>
        %72 = arith.addf %63, %71 : vector<3x7xf32>
        %c3_i32_47 = arith.constant 3 : i32
        %73 = arith.muli %arg7, %c3_i32_47 : i32
        %c2_i32_48 = arith.constant 2 : i32
        %74 = arith.addi %73, %c2_i32_48 : i32
        %75 = arith.index_cast %74 : i32 to index
        %c0_49 = arith.constant 0 : index
        %c0_50 = arith.constant 0 : index
        %76 = vector.load %arg2[%75, %c0_49, %c0_50] : memref<9x3x6xf32, #tpu.memory_space<vmem>>, vector<1x3x6xf32>
        %77 = vector.shape_cast %76 : vector<1x3x6xf32> to vector<3x6xf32>
        %cst_51 = arith.constant dense<0.000000e+00> : vector<3x7xf32>
        %78 = tpu.matmul %77, %51, %cst_51 {dimension_numbers = #tpu.dot_dimension_numbers<[1], [0], [0], [1], [0, 0, 1, 1], [], []>} : vector<3x6xf32>, vector<6x7xf32>, vector<3x7xf32> -> vector<3x7xf32>
        %79 = arith.addf %70, %78 : vector<3x7xf32>
        %cst_52 = arith.constant dense<0.000000e+00> : vector<3x7xf32>
        %80 = tpu.matmul %77, %54, %cst_52 {dimension_numbers = #tpu.dot_dimension_numbers<[1], [0], [0], [1], [0, 0, 1, 1], [], []>} : vector<3x6xf32>, vector<6x7xf32>, vector<3x7xf32> -> vector<3x7xf32>
        %81 = arith.addf %72, %80 : vector<3x7xf32>
        scf.yield %79, %81 : vector<3x7xf32>, vector<3x7xf32>
      }
      %c3_i32_6 = arith.constant 3 : i32
      %6 = vector.broadcast %0 : vector<3x1xf32> to vector<3x7xf32>
      %7 = arith.mulf %5#0, %6 : vector<3x7xf32>
      %8 = vector.broadcast %1 : vector<3x1xf32> to vector<3x7xf32>
      %9 = arith.addf %7, %8 : vector<3x7xf32>
      %cst_7 = arith.constant 0.000000e+00 : f32
      %10 = vector.broadcast %cst_7 : f32 to vector<3x7xf32>
      %11 = arith.maximumf %9, %10 : vector<3x7xf32>
      %12 = vector.broadcast %0 : vector<3x1xf32> to vector<3x7xf32>
      %13 = arith.mulf %5#1, %12 : vector<3x7xf32>
      %14 = vector.broadcast %1 : vector<3x1xf32> to vector<3x7xf32>
      %15 = arith.addf %13, %14 : vector<3x7xf32>
      %cst_8 = arith.constant 0.000000e+00 : f32
      %16 = vector.broadcast %cst_8 : f32 to vector<3x7xf32>
      %17 = arith.maximumf %15, %16 : vector<3x7xf32>
      %cst_9 = arith.constant 0.000000e+00 : f32
      %18 = vector.broadcast %cst_9 : f32 to vector<3x7xf32>
      %c0_i32_10 = arith.constant 0 : i32
      %c3_i32_11 = arith.constant 3 : i32
      %19 = arith.addi %c0_i32_10, %c3_i32_11 : i32
      %c1_i32_12 = arith.constant 1 : i32
      %20:2 = scf.for %arg7 = %c0_i32_10 to %19 step %c1_i32_12 iter_args(%arg8 = %18, %arg9 = %18) -> (vector<3x7xf32>, vector<3x7xf32>)  : i32 {
        %c2_i32 = arith.constant 2 : i32
        %40 = arith.muli %c2_i32, %arg6 : i32
        %c1_i32_19 = arith.constant 1 : i32
        %41 = arith.addi %c1_i32_19, %arg7 : i32
        %42 = arith.addi %40, %41 : i32
        %c0_20 = arith.constant 0 : index
        %c0_21 = arith.constant 0 : index
        %c0_22 = arith.constant 0 : index
        %43 = arith.index_cast %42 : i32 to index
        %c0_23 = arith.constant 0 : index
        %44 = vector.load %arg1[%c0_20, %c0_21, %c0_22, %43, %c0_23] : memref<1x2x6x16x8xf32, #tpu.memory_space<vmem>>, vector<1x1x6x1x7xf32>
        %45 = vector.shape_cast %44 : vector<1x1x6x1x7xf32> to vector<6x7xf32>
        %c0_24 = arith.constant 0 : index
        %c1 = arith.constant 1 : index
        %c0_25 = arith.constant 0 : index
        %46 = arith.index_cast %42 : i32 to index
        %c0_26 = arith.constant 0 : index
        %47 = vector.load %arg1[%c0_24, %c1, %c0_25, %46, %c0_26] : memref<1x2x6x16x8xf32, #tpu.memory_space<vmem>>, vector<1x1x6x1x7xf32>
        %48 = vector.shape_cast %47 : vector<1x1x6x1x7xf32> to vector<6x7xf32>
        %c0_27 = arith.constant 0 : index
        %c0_28 = arith.constant 0 : index
        %c0_29 = arith.constant 0 : index
        %49 = arith.index_cast %42 : i32 to index
        %c1_30 = arith.constant 1 : index
        %50 = vector.load %arg1[%c0_27, %c0_28, %c0_29, %49, %c1_30] : memref<1x2x6x16x8xf32, #tpu.memory_space<vmem>>, vector<1x1x6x1x7xf32>
        %51 = vector.shape_cast %50 : vector<1x1x6x1x7xf32> to vector<6x7xf32>
        %c0_31 = arith.constant 0 : index
        %c1_32 = arith.constant 1 : index
        %c0_33 = arith.constant 0 : index
        %52 = arith.index_cast %42 : i32 to index
        %c1_34 = arith.constant 1 : index
        %53 = vector.load %arg1[%c0_31, %c1_32, %c0_33, %52, %c1_34] : memref<1x2x6x16x8xf32, #tpu.memory_space<vmem>>, vector<1x1x6x1x7xf32>
        %54 = vector.shape_cast %53 : vector<1x1x6x1x7xf32> to vector<6x7xf32>
        %c3_i32_35 = arith.constant 3 : i32
        %55 = arith.muli %arg7, %c3_i32_35 : i32
        %c0_i32_36 = arith.constant 0 : i32
        %56 = arith.addi %55, %c0_i32_36 : i32
        %57 = arith.index_cast %56 : i32 to index
        %c0_37 = arith.constant 0 : index
        %c0_38 = arith.constant 0 : index
        %58 = vector.load %arg2[%57, %c0_37, %c0_38] : memref<9x3x6xf32, #tpu.memory_space<vmem>>, vector<1x3x6xf32>
        %59 = vector.shape_cast %58 : vector<1x3x6xf32> to vector<3x6xf32>
        %cst_39 = arith.constant dense<0.000000e+00> : vector<3x7xf32>
        %60 = tpu.matmul %59, %45, %cst_39 {dimension_numbers = #tpu.dot_dimension_numbers<[1], [0], [0], [1], [0, 0, 1, 1], [], []>} : vector<3x6xf32>, vector<6x7xf32>, vector<3x7xf32> -> vector<3x7xf32>
        %61 = arith.addf %arg8, %60 : vector<3x7xf32>
        %cst_40 = arith.constant dense<0.000000e+00> : vector<3x7xf32>
        %62 = tpu.matmul %59, %48, %cst_40 {dimension_numbers = #tpu.dot_dimension_numbers<[1], [0], [0], [1], [0, 0, 1, 1], [], []>} : vector<3x6xf32>, vector<6x7xf32>, vector<3x7xf32> -> vector<3x7xf32>
        %63 = arith.addf %arg9, %62 : vector<3x7xf32>
        %c3_i32_41 = arith.constant 3 : i32
        %64 = arith.muli %arg7, %c3_i32_41 : i32
        %c1_i32_42 = arith.constant 1 : i32
        %65 = arith.addi %64, %c1_i32_42 : i32
        %66 = arith.index_cast %65 : i32 to index
        %c0_43 = arith.constant 0 : index
        %c0_44 = arith.constant 0 : index
        %67 = vector.load %arg2[%66, %c0_43, %c0_44] : memref<9x3x6xf32, #tpu.memory_space<vmem>>, vector<1x3x6xf32>
        %68 = vector.shape_cast %67 : vector<1x3x6xf32> to vector<3x6xf32>
        %cst_45 = arith.constant dense<0.000000e+00> : vector<3x7xf32>
        %69 = tpu.matmul %68, %48, %cst_45 {dimension_numbers = #tpu.dot_dimension_numbers<[1], [0], [0], [1], [0, 0, 1, 1], [], []>} : vector<3x6xf32>, vector<6x7xf32>, vector<3x7xf32> -> vector<3x7xf32>
        %70 = arith.addf %61, %69 : vector<3x7xf32>
        %cst_46 = arith.constant dense<0.000000e+00> : vector<3x7xf32>
        %71 = tpu.matmul %68, %51, %cst_46 {dimension_numbers = #tpu.dot_dimension_numbers<[1], [0], [0], [1], [0, 0, 1, 1], [], []>} : vector<3x6xf32>, vector<6x7xf32>, vector<3x7xf32> -> vector<3x7xf32>
        %72 = arith.addf %63, %71 : vector<3x7xf32>
        %c3_i32_47 = arith.constant 3 : i32
        %73 = arith.muli %arg7, %c3_i32_47 : i32
        %c2_i32_48 = arith.constant 2 : i32
        %74 = arith.addi %73, %c2_i32_48 : i32
        %75 = arith.index_cast %74 : i32 to index
        %c0_49 = arith.constant 0 : index
        %c0_50 = arith.constant 0 : index
        %76 = vector.load %arg2[%75, %c0_49, %c0_50] : memref<9x3x6xf32, #tpu.memory_space<vmem>>, vector<1x3x6xf32>
        %77 = vector.shape_cast %76 : vector<1x3x6xf32> to vector<3x6xf32>
        %cst_51 = arith.constant dense<0.000000e+00> : vector<3x7xf32>
        %78 = tpu.matmul %77, %51, %cst_51 {dimension_numbers = #tpu.dot_dimension_numbers<[1], [0], [0], [1], [0, 0, 1, 1], [], []>} : vector<3x6xf32>, vector<6x7xf32>, vector<3x7xf32> -> vector<3x7xf32>
        %79 = arith.addf %70, %78 : vector<3x7xf32>
        %cst_52 = arith.constant dense<0.000000e+00> : vector<3x7xf32>
        %80 = tpu.matmul %77, %54, %cst_52 {dimension_numbers = #tpu.dot_dimension_numbers<[1], [0], [0], [1], [0, 0, 1, 1], [], []>} : vector<3x6xf32>, vector<6x7xf32>, vector<3x7xf32> -> vector<3x7xf32>
        %81 = arith.addf %72, %80 : vector<3x7xf32>
        scf.yield %79, %81 : vector<3x7xf32>, vector<3x7xf32>
      }
      %c3_i32_13 = arith.constant 3 : i32
      %21 = vector.broadcast %0 : vector<3x1xf32> to vector<3x7xf32>
      %22 = arith.mulf %20#0, %21 : vector<3x7xf32>
      %23 = vector.broadcast %1 : vector<3x1xf32> to vector<3x7xf32>
      %24 = arith.addf %22, %23 : vector<3x7xf32>
      %cst_14 = arith.constant 0.000000e+00 : f32
      %25 = vector.broadcast %cst_14 : f32 to vector<3x7xf32>
      %26 = arith.maximumf %24, %25 : vector<3x7xf32>
      %27 = vector.broadcast %0 : vector<3x1xf32> to vector<3x7xf32>
      %28 = arith.mulf %20#1, %27 : vector<3x7xf32>
      %29 = vector.broadcast %1 : vector<3x1xf32> to vector<3x7xf32>
      %30 = arith.addf %28, %29 : vector<3x7xf32>
      %cst_15 = arith.constant 0.000000e+00 : f32
      %31 = vector.broadcast %cst_15 : f32 to vector<3x7xf32>
      %32 = arith.maximumf %30, %31 : vector<3x7xf32>
      %33 = arith.maximumf %11, %17 : vector<3x7xf32>
      %34 = arith.maximumf %26, %32 : vector<3x7xf32>
      %35 = arith.maximumf %33, %34 : vector<3x7xf32>
      %c0_16 = arith.constant 0 : index
      %c0_17 = arith.constant 0 : index
      %36 = arith.index_cast %arg6 : i32 to index
      %c0_18 = arith.constant 0 : index
      %37 = vector.load %arg5[%c0_16, %c0_17, %36, %c0_18] : memref<1x3x7x7xf32, #tpu.memory_space<vmem>>, vector<1x3x1x7xf32>
      %38 = vector.shape_cast %37 : vector<1x3x1x7xf32> to vector<3x7xf32>
      %39 = vector.shape_cast %35 : vector<3x7xf32> to vector<1x3x1x7xf32>
      tpu.vector_store %arg5[%c0_16, %c0_17, %36, %c0_18], %39 {strides = array<i32>} : memref<1x3x7x7xf32, #tpu.memory_space<vmem>>, vector<1x3x1x7xf32>,
    }
    %c7_i32_3 = arith.constant 7 : i32
    return
  }
  func.func @transform_0(%arg0: i32) -> (i32, i32, i32, i32, i32) {
    %c0_i32 = arith.constant 0 : i32
    %c0_i32_0 = arith.constant 0 : i32
    %c0_i32_1 = arith.constant 0 : i32
    %c0_i32_2 = arith.constant 0 : i32
    %c0_i32_3 = arith.constant 0 : i32
    return %arg0, %c0_i32, %c0_i32_0, %c0_i32_1, %c0_i32_2 : i32, i32, i32, i32, i32
  }
  func.func @transform_1(%arg0: i32) -> (i32, i32, i32) {
    %c0_i32 = arith.constant 0 : i32
    %c0_i32_0 = arith.constant 0 : i32
    %c0_i32_1 = arith.constant 0 : i32
    %c0_i32_2 = arith.constant 0 : i32
    return %c0_i32, %c0_i32_0, %c0_i32_1 : i32, i32, i32
  }
  func.func @transform_2(%arg0: i32) -> (i32, i32) {
    %c0_i32 = arith.constant 0 : i32
    %c0_i32_0 = arith.constant 0 : i32
    %c0_i32_1 = arith.constant 0 : i32
    return %c0_i32, %c0_i32_0 : i32, i32
  }
  func.func @transform_3(%arg0: i32) -> (i32, i32) {
    %c0_i32 = arith.constant 0 : i32
    %c0_i32_0 = arith.constant 0 : i32
    %c0_i32_1 = arith.constant 0 : i32
    return %c0_i32, %c0_i32_0 : i32, i32
  }
  func.func @transform_4(%arg0: i32) -> (i32, i32, i32, i32) {
    %c0_i32 = arith.constant 0 : i32
    %c0_i32_0 = arith.constant 0 : i32
    %c0_i32_1 = arith.constant 0 : i32
    %c0_i32_2 = arith.constant 0 : i32
    return %arg0, %c0_i32, %c0_i32_0, %c0_i32_1 : i32, i32, i32, i32
  }
}

module attributes {stable_mosaic.version = 11 : i64} {
  func.func @_fc_stack_kernel(%arg0: i32, %arg1: memref<2x147xf32, #tpu.memory_space<vmem>>, %arg2: memref<147x128xf32, #tpu.memory_space<vmem>>, %arg3: memref<1x128xf32, #tpu.memory_space<vmem>>, %arg4: memref<128x64xf32, #tpu.memory_space<vmem>>, %arg5: memref<1x64xf32, #tpu.memory_space<vmem>>, %arg6: memref<64x32xf32, #tpu.memory_space<vmem>>, %arg7: memref<1x32xf32, #tpu.memory_space<vmem>>, %arg8: memref<32x16xf32, #tpu.memory_space<vmem>>, %arg9: memref<1x16xf32, #tpu.memory_space<vmem>>, %arg10: memref<16x8xf32, #tpu.memory_space<vmem>>, %arg11: memref<1x8xf32, #tpu.memory_space<vmem>>, %arg12: memref<2x8xf32, #tpu.memory_space<vmem>>) attributes {dimension_semantics = [#tpu.dimension_semantics<arbitrary>], iteration_bounds = array<i64: 1>, scalar_prefetch = 0 : i64, scratch_operands = 0 : i64, tpu.core_type = #tpu.core_type<tc>, window_params = [{pipeline_mode = #tpu.pipeline_mode<synchronous>, transform_indices = @transform_0, window_bounds = array<i64: 2, 147>}, {pipeline_mode = #tpu.pipeline_mode<synchronous>, transform_indices = @transform_1, window_bounds = array<i64: 147, 128>}, {pipeline_mode = #tpu.pipeline_mode<synchronous>, transform_indices = @transform_2, window_bounds = array<i64: 1, 128>}, {pipeline_mode = #tpu.pipeline_mode<synchronous>, transform_indices = @transform_3, window_bounds = array<i64: 128, 64>}, {pipeline_mode = #tpu.pipeline_mode<synchronous>, transform_indices = @transform_4, window_bounds = array<i64: 1, 64>}, {pipeline_mode = #tpu.pipeline_mode<synchronous>, transform_indices = @transform_5, window_bounds = array<i64: 64, 32>}, {pipeline_mode = #tpu.pipeline_mode<synchronous>, transform_indices = @transform_6, window_bounds = array<i64: 1, 32>}, {pipeline_mode = #tpu.pipeline_mode<synchronous>, transform_indices = @transform_7, window_bounds = array<i64: 32, 16>}, {pipeline_mode = #tpu.pipeline_mode<synchronous>, transform_indices = @transform_8, window_bounds = array<i64: 1, 16>}, {pipeline_mode = #tpu.pipeline_mode<synchronous>, transform_indices = @transform_9, window_bounds = array<i64: 16, 8>}, {pipeline_mode = #tpu.pipeline_mode<synchronous>, transform_indices = @transform_10, window_bounds = array<i64: 1, 8>}, {pipeline_mode = #tpu.pipeline_mode<synchronous>, transform_indices = @transform_11, window_bounds = array<i64: 2, 8>}]} {
    %c0 = arith.constant 0 : index
    %c0_0 = arith.constant 0 : index
    %0 = vector.load %arg1[%c0, %c0_0] : memref<2x147xf32, #tpu.memory_space<vmem>>, vector<2x147xf32>
    %c0_1 = arith.constant 0 : index
    %c0_2 = arith.constant 0 : index
    %1 = vector.load %arg2[%c0_1, %c0_2] : memref<147x128xf32, #tpu.memory_space<vmem>>, vector<147x128xf32>
    %c0_3 = arith.constant 0 : index
    %c0_4 = arith.constant 0 : index
    %2 = vector.load %arg3[%c0_3, %c0_4] : memref<1x128xf32, #tpu.memory_space<vmem>>, vector<1x128xf32>
    %cst = arith.constant dense<0.000000e+00> : vector<2x128xf32>
    %3 = tpu.matmul %0, %1, %cst {dimension_numbers = #tpu.dot_dimension_numbers<[1], [0], [0], [1], [0, 0, 1, 1], [], []>} : vector<2x147xf32>, vector<147x128xf32>, vector<2x128xf32> -> vector<2x128xf32>
    %4 = vector.broadcast %2 : vector<1x128xf32> to vector<2x128xf32>
    %5 = arith.addf %3, %4 : vector<2x128xf32>
    %cst_5 = arith.constant 0.000000e+00 : f32
    %6 = vector.broadcast %cst_5 : f32 to vector<2x128xf32>
    %7 = arith.maximumf %5, %6 : vector<2x128xf32>
    %c0_6 = arith.constant 0 : index
    %c0_7 = arith.constant 0 : index
    %8 = vector.load %arg4[%c0_6, %c0_7] : memref<128x64xf32, #tpu.memory_space<vmem>>, vector<128x64xf32>
    %c0_8 = arith.constant 0 : index
    %c0_9 = arith.constant 0 : index
    %9 = vector.load %arg5[%c0_8, %c0_9] : memref<1x64xf32, #tpu.memory_space<vmem>>, vector<1x64xf32>
    %cst_10 = arith.constant dense<0.000000e+00> : vector<2x64xf32>
    %10 = tpu.matmul %7, %8, %cst_10 {dimension_numbers = #tpu.dot_dimension_numbers<[1], [0], [0], [1], [0, 0, 1, 1], [], []>} : vector<2x128xf32>, vector<128x64xf32>, vector<2x64xf32> -> vector<2x64xf32>
    %11 = vector.broadcast %9 : vector<1x64xf32> to vector<2x64xf32>
    %12 = arith.addf %10, %11 : vector<2x64xf32>
    %cst_11 = arith.constant 0.000000e+00 : f32
    %13 = vector.broadcast %cst_11 : f32 to vector<2x64xf32>
    %14 = arith.maximumf %12, %13 : vector<2x64xf32>
    %c0_12 = arith.constant 0 : index
    %c0_13 = arith.constant 0 : index
    %15 = vector.load %arg6[%c0_12, %c0_13] : memref<64x32xf32, #tpu.memory_space<vmem>>, vector<64x32xf32>
    %c0_14 = arith.constant 0 : index
    %c0_15 = arith.constant 0 : index
    %16 = vector.load %arg7[%c0_14, %c0_15] : memref<1x32xf32, #tpu.memory_space<vmem>>, vector<1x32xf32>
    %cst_16 = arith.constant dense<0.000000e+00> : vector<2x32xf32>
    %17 = tpu.matmul %14, %15, %cst_16 {dimension_numbers = #tpu.dot_dimension_numbers<[1], [0], [0], [1], [0, 0, 1, 1], [], []>} : vector<2x64xf32>, vector<64x32xf32>, vector<2x32xf32> -> vector<2x32xf32>
    %18 = vector.broadcast %16 : vector<1x32xf32> to vector<2x32xf32>
    %19 = arith.addf %17, %18 : vector<2x32xf32>
    %cst_17 = arith.constant 0.000000e+00 : f32
    %20 = vector.broadcast %cst_17 : f32 to vector<2x32xf32>
    %21 = arith.maximumf %19, %20 : vector<2x32xf32>
    %c0_18 = arith.constant 0 : index
    %c0_19 = arith.constant 0 : index
    %22 = vector.load %arg8[%c0_18, %c0_19] : memref<32x16xf32, #tpu.memory_space<vmem>>, vector<32x16xf32>
    %c0_20 = arith.constant 0 : index
    %c0_21 = arith.constant 0 : index
    %23 = vector.load %arg9[%c0_20, %c0_21] : memref<1x16xf32, #tpu.memory_space<vmem>>, vector<1x16xf32>
    %cst_22 = arith.constant dense<0.000000e+00> : vector<2x16xf32>
    %24 = tpu.matmul %21, %22, %cst_22 {dimension_numbers = #tpu.dot_dimension_numbers<[1], [0], [0], [1], [0, 0, 1, 1], [], []>} : vector<2x32xf32>, vector<32x16xf32>, vector<2x16xf32> -> vector<2x16xf32>
    %25 = vector.broadcast %23 : vector<1x16xf32> to vector<2x16xf32>
    %26 = arith.addf %24, %25 : vector<2x16xf32>
    %cst_23 = arith.constant 0.000000e+00 : f32
    %27 = vector.broadcast %cst_23 : f32 to vector<2x16xf32>
    %28 = arith.maximumf %26, %27 : vector<2x16xf32>
    %c0_24 = arith.constant 0 : index
    %c0_25 = arith.constant 0 : index
    %29 = vector.load %arg10[%c0_24, %c0_25] : memref<16x8xf32, #tpu.memory_space<vmem>>, vector<16x8xf32>
    %c0_26 = arith.constant 0 : index
    %c0_27 = arith.constant 0 : index
    %30 = vector.load %arg11[%c0_26, %c0_27] : memref<1x8xf32, #tpu.memory_space<vmem>>, vector<1x8xf32>
    %cst_28 = arith.constant dense<0.000000e+00> : vector<2x8xf32>
    %31 = tpu.matmul %28, %29, %cst_28 {dimension_numbers = #tpu.dot_dimension_numbers<[1], [0], [0], [1], [0, 0, 1, 1], [], []>} : vector<2x16xf32>, vector<16x8xf32>, vector<2x8xf32> -> vector<2x8xf32>
    %32 = vector.broadcast %30 : vector<1x8xf32> to vector<2x8xf32>
    %33 = arith.addf %31, %32 : vector<2x8xf32>
    %c0_29 = arith.constant 0 : index
    %c0_30 = arith.constant 0 : index
    %34 = vector.load %arg12[%c0_29, %c0_30] : memref<2x8xf32, #tpu.memory_space<vmem>>, vector<2x8xf32>
    tpu.vector_store %arg12[%c0_29, %c0_30], %33 {strides = array<i32>} : memref<2x8xf32, #tpu.memory_space<vmem>>, vector<2x8xf32>,
    return
  }
  func.func @transform_0(%arg0: i32) -> (i32, i32) {
    %c0_i32 = arith.constant 0 : i32
    %c0_i32_0 = arith.constant 0 : i32
    %c0_i32_1 = arith.constant 0 : i32
    return %c0_i32, %c0_i32_0 : i32, i32
  }
  func.func @transform_1(%arg0: i32) -> (i32, i32) {
    %c0_i32 = arith.constant 0 : i32
    %c0_i32_0 = arith.constant 0 : i32
    %c0_i32_1 = arith.constant 0 : i32
    return %c0_i32, %c0_i32_0 : i32, i32
  }
  func.func @transform_2(%arg0: i32) -> (i32, i32) {
    %c0_i32 = arith.constant 0 : i32
    %c0_i32_0 = arith.constant 0 : i32
    %c0_i32_1 = arith.constant 0 : i32
    return %c0_i32, %c0_i32_0 : i32, i32
  }
  func.func @transform_3(%arg0: i32) -> (i32, i32) {
    %c0_i32 = arith.constant 0 : i32
    %c0_i32_0 = arith.constant 0 : i32
    %c0_i32_1 = arith.constant 0 : i32
    return %c0_i32, %c0_i32_0 : i32, i32
  }
  func.func @transform_4(%arg0: i32) -> (i32, i32) {
    %c0_i32 = arith.constant 0 : i32
    %c0_i32_0 = arith.constant 0 : i32
    %c0_i32_1 = arith.constant 0 : i32
    return %c0_i32, %c0_i32_0 : i32, i32
  }
  func.func @transform_5(%arg0: i32) -> (i32, i32) {
    %c0_i32 = arith.constant 0 : i32
    %c0_i32_0 = arith.constant 0 : i32
    %c0_i32_1 = arith.constant 0 : i32
    return %c0_i32, %c0_i32_0 : i32, i32
  }
  func.func @transform_6(%arg0: i32) -> (i32, i32) {
    %c0_i32 = arith.constant 0 : i32
    %c0_i32_0 = arith.constant 0 : i32
    %c0_i32_1 = arith.constant 0 : i32
    return %c0_i32, %c0_i32_0 : i32, i32
  }
  func.func @transform_7(%arg0: i32) -> (i32, i32) {
    %c0_i32 = arith.constant 0 : i32
    %c0_i32_0 = arith.constant 0 : i32
    %c0_i32_1 = arith.constant 0 : i32
    return %c0_i32, %c0_i32_0 : i32, i32
  }
  func.func @transform_8(%arg0: i32) -> (i32, i32) {
    %c0_i32 = arith.constant 0 : i32
    %c0_i32_0 = arith.constant 0 : i32
    %c0_i32_1 = arith.constant 0 : i32
    return %c0_i32, %c0_i32_0 : i32, i32
  }
  func.func @transform_9(%arg0: i32) -> (i32, i32) {
    %c0_i32 = arith.constant 0 : i32
    %c0_i32_0 = arith.constant 0 : i32
    %c0_i32_1 = arith.constant 0 : i32
    return %c0_i32, %c0_i32_0 : i32, i32
  }
  func.func @transform_10(%arg0: i32) -> (i32, i32) {
    %c0_i32 = arith.constant 0 : i32
    %c0_i32_0 = arith.constant 0 : i32
    %c0_i32_1 = arith.constant 0 : i32
    return %c0_i32, %c0_i32_0 : i32, i32
  }
  func.func @transform_11(%arg0: i32) -> (i32, i32) {
    %c0_i32 = arith.constant 0 : i32
    %c0_i32_0 = arith.constant 0 : i32
    %c0_i32_1 = arith.constant 0 : i32
    return %c0_i32, %c0_i32_0 : i32, i32
  }
}

</mosaic_0001>

<bundles_post_ra>
// kernel: forward.7
= control target key start
LH: loop header
LB: loop body
LE: loop exit
PB: predicated region body
PF: predicated region fallthrough
CT: control target
= control target key end

     0   :  { %s5918_s15 = smov 0   ;;  %s6521_s0 = inlined_call_operand.vmem [shape: f32[2,2,3,902,451], index: 0, kind: input, shape index: {}]   ;;  %s6522_s1 = inlined_call_operand.vmem [shape: f32[49,6,3], index: 1, kind: input, shape index: {}]   ;;  %s6523_s2 = inlined_call_operand.vmem [shape: f32[6,1], index: 2, kind: input, shape index: {}]   ;;  %s6524_s3 = inlined_call_operand.vmem [shape: f32[6,1], index: 3, kind: input, shape index: {}]   ;;  %s6525_s4 = inlined_call_operand.vmem [shape: f32[2,6,448,448], index: 4, kind: output, shape index: {}]  }
   0x1 LB: > { %s5306_s16 = sadd.s32 4294967295, %s5805_s15   ;;  %p5310_p0 = scmp.ge.s32.totalorder %s5805_s15, 1  ;;  %s5805_s15 = sphi %s5918_s15, %s14_s15  }
   0x2   : > { %p162_p1 = scmp.lt.s32.totalorder %s5805_s15, 3 }
   0x4   : > { %p163_p2 = pnand %p5310_p0, %p162_p1 }
   0x5   : > { %p188_p3 = scmp.lt.s32.totalorder (!%p163_p2), %s5306_s16, 1  ;;  %s5946_s29 = smov (!%p163_p2), 0  }
   0x6   : > { %166 = sbr.rel (%p163_p2) target bundleno = 909 (0x38d), region = 36 }
   0xb   : > { %v5929_v0 = vld [vmem:[%s6523_s2] sm:$0x3f]  ;;  %s6585_s16 = smov (!%p188_p3, %s5306_s16), 1 }
   0xc   : > { %6537 = vst [vmem:[#allocation2_spill] sm:$0xff] %v5929_v0  ;;  %v5934_v1 = vld [vmem:[%s6524_s3] sm:$0x3f]  ;;  %s5550_s21 = smul.u32 21696, %s6585_s16 }
   0xd   : > { %6538 = vst [vmem:[#allocation3_spill] sm:$0xff] %v5934_v1  ;;  %s5551_s22 = smul.u32 10752, %s6585_s16 }
   0xe   : > { %s5939_s25 = scalar_lea.vmem %s6521_s0, %s5550_s21 }
   0xf   : > { %s5944_s28 = scalar_lea.vmem %s6525_s4, %s5551_s22 }
  0x10 LB: >> { %v5951_v2 = vmov 0.0   ;;  %v5953_v3 = vmov 0.0   ;;  %v5955_v4 = vmov 0.0   ;;  %v5957_v5 = vmov 0.0   ;;  %s5967_s30 = smov 0   ;;  %s5809_s29 = sphi %s5946_s29, %s205_s29  }
  0x11   : >> { %v5959_v6 = vmov 0.0   ;;  %v5961_v7 = vmov 0.0   ;;  %v5963_v8 = vmov 0.0   ;;  %v5965_v9 = vmov 0.0  }
  0x12 LB: >>> { %s5313_s5 = sshll.u32 %s5809_s29, 1  ;;  %v6526_v10 = vlaneseq  ;;  %v5883_v11 = vmov 1966171168   ;;  %v5884_v13 = vmov 0.0   ;;  %s5326_s12 = smul.u32 56, %s5845_s30  ;;  %vm290_vm0 = vcmask 1042432   ;;  %s5845_s30 = sphi %s5967_s30, %s211_s30   ;;  %v5841_v9 = vphi %v5965_v9, %v6547_v9   ;;  %v5837_v8 = vphi %v5963_v8, %v6546_v8   ;;  %v5833_v7 = vphi %v5961_v7, %v6545_v7   ;;  %v5829_v6 = vphi %v5959_v6, %v6544_v6   ;;  %v5825_v5 = vphi %v5957_v5, %v6543_v5   ;;  %v5821_v4 = vphi %v5955_v4, %v6542_v4   ;;  %v5817_v3 = vphi %v5953_v3, %v6541_v3   ;;  %v5813_v2 = vphi %v5951_v2, %v6540_v2  }
  0x13   : >>> { %v255_v12 = vunpack.c.l.s4 %v5883_v11  ;;  %363 = vmatprep.mubr.f32.mxu0 %v5884_v13  ;;  %434 = vmatprep.mubr.f32.mxu1 %v5884_v13  ;;  %s221_s6 = sadd.s32 %s5845_s30, %s5313_s5  ;;  %s5885_s17 = smov 127   ;;  %vm286_vm1 = vcmask 23552   ;;  %vm796_vm2 = vcmask 1039360   ;;  %vm1433_vm3 = vcmask 1031168  }
  0x14   : >>> { %v258_v14 = vshrl.u32 %v6526_v10, 7  ;;  %s222_s7 = sshra.s32 %s221_s6, 3  ;;  %s225_s8 = sand.u32 7, %s221_s6  ;;  %vm2070_vm4 = vcmask 1022976  }
  0x15   : >>> { %v256_v15 = vunpack.c.0.s8 %v255_v12  ;;  %s5547_s9 = sshll.u32 %s222_s7, 5  ;;  %s6014_s16 = scalar_lea.vmem %s6522_s1, %s5326_s12 }
  0x16   : >>> { %s228_s10 = sadd.s32 %s5547_s9, %s225_s8  ;;  %v249_v38 = vld [vmem:[%s6014_s16] sm:$0x3f]  ;;  %v5340_v42 = vld [vmem:[%s6014_s16 + $0x8] sm:$0x3f]  ;;  %s5886_s18 = smov 126  }
  0x17   : >>> { %v6003_v16 = vsub.s32 %v256_v15, %v258_v14  ;;  %s229_s11 = scalar_lea.vmem %s5939_s25, %s228_s10  ;;  %s5887_s19 = smov 125   ;;  %v5354_v52 = vld [vmem:[%s6014_s16 + $0x10] sm:$0x3f]  ;;  %v5368_v60 = vld [vmem:[%s6014_s16 + $0x18] sm:$0x3f] }
  0x18   : >>> { %v230_v17 = vld [vmem:[%s229_s11] ss:$8 sm:$0xf]  ;;  %s211_s30 = sadd.s32 1, %s5845_s30  }
  0x19   : >>> { %6539 = vst [vmem:[#allocation4_spill] sm:$0xff] %v6003_v16  ;;  %v5317_v18 = vld [vmem:[%s229_s11 + $0xe20] ss:$8 sm:$0xf]  ;;  %p208_p4 = scmp.ge.s32.totalorder %s211_s30, 7  }
  0x1a   : >>> { %v5319_v19 = vld [vmem:[%s229_s11 + $0x1c40] ss:$8 sm:$0xf]  ;;  %v253_v21 = vcombine.low %v230_v17, %v5317_v18  ;;  %s6252_s20 = smov (%p208_p4), 0  }
  0x1b   : >>> { %v5321_v20 = vld [vmem:[%s229_s11 + $0x2a60] ss:$8 sm:$0xf]  ;;  %v267_v23 = vrot.slane %v5319_v19, %v6003_v16 }
  0x1c   : >>> { %v5323_v22 = vld [vmem:[%s229_s11 + $0x3880] ss:$8 sm:$0xf]  ;;  %v260_v25 = vrot.slane %v253_v21, %v6003_v16 }
  0x1d   : >>> { %v5325_v24 = vld [vmem:[%s229_s11 + $0x46a0] ss:$8 sm:$0xf]  ;;  %v448_v26 = vcombine.low %v5321_v20, %v5323_v22 }
  0x1e   : >>> { %v462_v27 = vrot.slane %v5325_v24, %v6003_v16  ;;  %v269_v28 = vcombine.high %v260_v25, %v267_v23  ;;  %v268_v29 = vcombine.low %v260_v25, %v267_v23  ;;  %v5382_v17 = vld [vmem:[%s6014_s16 + $0x20] sm:$0x3f]  ;;  %v5396_v25 = vld [vmem:[%s6014_s16 + $0x28] sm:$0x3f] }
  0x1f   : >>> { %v455_v30 = vrot.slane %v448_v26, %v6003_v16  ;;  %v6548_v0 = vld [vmem:[#allocation2_spill] sm:$0xff] (%p208_p4)  ;;  %v6549_v1 = vld [vmem:[#allocation3_spill] sm:$0xff] (%p208_p4) }
  0x20   : >>> { %v283_v31 = vrot.slane %v269_v28, %v6003_v16  ;;  %v276_v32 = vrot.slane %v268_v29, %v6003_v16 }
  0x21   : >>> { %v463_v33 = vcombine.low %v455_v30, %v462_v27  ;;  %v464_v34 = vcombine.high %v455_v30, %v462_v27 }
  0x22   : >>> { %790 = vrot.lane.b32.xlu0 %v283_v31, %s5885_s17  ;;  %788 = vrot.lane.b32.xlu1 %v276_v32, %s5885_s17  ;;  %v285_v35 = vcombine.high %v283_v31, %v283_v31  ;;  %v284_v36 = vcombine.high %v276_v32, %v276_v32 }
  0x23   : >>> { %v471_v37 = vrot.slane %v463_v33, %v6003_v16  ;;  %5327 = vmatprep.subr.msk.mxu0 %vm290_vm0, %v283_v31  ;;  %v478_v39 = vrot.slane %v464_v34, %v6003_v16  ;;  %v5410_v33 = vld [vmem:[%s6014_s16 + $0x30] sm:$0x3f] }
  0x24   : >>> { %5330 = vmatprep.subr.msk.mxu1 %vm290_vm0, %v285_v35  ;;  %5328 = vmatpush1.msk.msra.mxu0 %vm290_vm0, %v276_v32 }
  0x25   : >>> { %5331 = vmatpush1.msk.msra.mxu1 %vm290_vm0, %v284_v36  ;;  %5329 = vmatmul.mubr.msk.f32.vlgmr.msra.gmra.mxu0 %vm286_vm1, %v249_v38  ;;  %v479_v40 = vcombine.high %v471_v37, %v471_v37  ;;  %v480_v41 = vcombine.high %v478_v39, %v478_v39 }
  0x26   : >>> { %794 = vrot.lane.b32.xlu1 %v285_v35, %s5885_s17  ;;  %792 = vrot.lane.b32.xlu0 %v284_v36, %s5885_s17 }
  0x27   : >>> { %5332 = vmatmul.mubr.msk.f32.vlgmr.msra.gmra.mxu1 %vm286_vm1, %v249_v38  ;;  %5333 = vmatprep.subr.msk.mxu0 %vm290_vm0, %v478_v39 }
  0x28   : >>> { %5336 = vmatprep.subr.msk.mxu1 %vm290_vm0, %v480_v41  ;;  %5334 = vmatpush1.msk.msra.mxu0 %vm290_vm0, %v471_v37 }
  0x29   : >>> { %553 = vmatprep.mubr.f32.mxu0 %v5884_v13  ;;  %5337 = vmatpush1.msk.msra.mxu1 %vm290_vm0, %v479_v40 }
  0x2a   : >>> { %1111 = vrot.lane.b32.xlu1 %v479_v40, %s5885_s17  ;;  %1109 = vrot.lane.b32.xlu0 %v478_v39, %s5885_s17 }
  0x2b   : >>> { %624 = vmatprep.mubr.f32.mxu1 %v5884_v13  ;;  %5335 = vmatmul.mubr.msk.f32.vlgmr.msra.gmra.mxu0 %vm286_vm1, %v249_v38 }
  0x2c   : >>> { %5338 = vmatmul.mubr.msk.f32.vlgmr.msra.gmra.mxu1 %vm286_vm1, %v249_v38  ;;  %5341 = vmatprep.subr.msk.mxu0 %vm290_vm0, %v478_v39 }
  0x2d   : >>> { %5344 = vmatprep.subr.msk.mxu1 %vm290_vm0, %v480_v41  ;;  %5342 = vmatpush1.msk.msra.mxu0 %vm290_vm0, %v471_v37 }
  0x2e   : >>> { %1113 = vrot.lane.b32.xlu1 %v480_v41, %s5885_s17  ;;  %1107 = vrot.lane.b32.xlu0 %v471_v37, %s5885_s17 }
  0x2f   : >>> { %706 = vmatprep.mubr.f32.mxu0 %v5884_v13  ;;  %5345 = vmatpush1.msk.msra.mxu1 %vm290_vm0, %v479_v40 }
  0x30   : >>> { %777 = vmatprep.mubr.f32.mxu1 %v5884_v13  ;;  %5343 = vmatmul.mubr.msk.f32.vlgmr.msra.gmra.mxu0 %vm286_vm1, %v5340_v42 }
  0x31   : >>> { %5346 = vmatmul.mubr.msk.f32.vlgmr.msra.gmra.mxu1 %vm286_vm1, %v5340_v42  ;;  %872 = vmatprep.mubr.f32.mxu0 %v5884_v13 }
  0x32   : >>> { %1429 = vrot.lane.b32.xlu1 %v284_v36, %s5886_s18  ;;  %1427 = vrot.lane.b32.xlu0 %v283_v31, %s5886_s18 }
  0x33   : >>> { %943 = vmatprep.mubr.f32.mxu1 %v5884_v13 }
  0x36   : >>> { %1431 = vrot.lane.b32.xlu1 %v285_v35, %s5886_s18  ;;  %1425 = vrot.lane.b32.xlu0 %v276_v32, %s5886_s18 }
  0x3a   : >>> { %1748 = vrot.lane.b32.xlu1 %v479_v40, %s5886_s18  ;;  %1746 = vrot.lane.b32.xlu0 %v478_v39, %s5886_s18 }
  0x3e   : >>> { %1750 = vrot.lane.b32.xlu1 %v480_v41, %s5886_s18  ;;  %1744 = vrot.lane.b32.xlu0 %v471_v37, %s5886_s18 }
  0x42   : >>> { %2066 = vrot.lane.b32.xlu1 %v284_v36, %s5887_s19  ;;  %2064 = vrot.lane.b32.xlu0 %v283_v31, %s5887_s19 }
  0x46   : >>> { %2068 = vrot.lane.b32.xlu1 %v285_v35, %s5887_s19  ;;  %2062 = vrot.lane.b32.xlu0 %v276_v32, %s5887_s19 }
  0x4a   : >>> { %2385 = vrot.lane.b32.xlu1 %v479_v40, %s5887_s19  ;;  %2383 = vrot.lane.b32.xlu0 %v478_v39, %s5887_s19 }
  0x4e   : >>> { %2387 = vrot.lane.b32.xlu1 %v480_v41, %s5887_s19  ;;  %2381 = vrot.lane.b32.xlu0 %v471_v37, %s5887_s19 }
  0x94   : >>> { %v791_v43 = vpop.permute.xlu0 %790  ;;  %v789_v44 = vpop.permute.xlu1 %788 }
  0x95   : >>> { %v797_v49 = vsel %vm796_vm2, %v789_v44, %v791_v43 }
  0x98   : >>> { %v795_v45 = vpop.permute.xlu1 %794  ;;  %v793_v46 = vpop.permute.xlu0 %792 }
  0x99   : >>> { %v798_v47 = vsel %vm796_vm2, %v791_v43, %v793_v46  ;;  %v799_v48 = vsel %vm796_vm2, %v793_v46, %v795_v45  ;;  %5350 = vmatprep.subr.msk.mxu1 %vm290_vm0, %v795_v45 }
  0x9a   : >>> { %5347 = vmatprep.subr.msk.mxu0 %vm290_vm0, %v798_v47  ;;  %5351 = vmatpush1.msk.msra.mxu1 %vm290_vm0, %v799_v48 }
  0x9b   : >>> { %5348 = vmatpush1.msk.msra.mxu0 %vm290_vm0, %v797_v49  ;;  %5352 = vmatmul.mubr.msk.f32.vlgmr.msra.gmra.mxu1 %vm286_vm1, %v5340_v42 }
  0x9c   : >>> { %5358 = vmatprep.subr.msk.mxu1 %vm290_vm0, %v795_v45  ;;  %v1112_v50 = vpop.permute.xlu1 %1111  ;;  %5349 = vmatmul.mubr.msk.f32.vlgmr.msra.gmra.mxu0 %vm286_vm1, %v5340_v42  ;;  %v1110_v51 = vpop.permute.xlu0 %1109 }
  0x9d   : >>> { %5355 = vmatprep.subr.msk.mxu0 %vm290_vm0, %v798_v47  ;;  %v1116_v53 = vsel %vm796_vm2, %v1110_v51, %v1112_v50  ;;  %5359 = vmatpush1.msk.msra.mxu1 %vm290_vm0, %v799_v48 }
  0x9e   : >>> { %5356 = vmatpush1.msk.msra.mxu0 %vm290_vm0, %v797_v49  ;;  %1096 = vmatprep.mubr.f32.mxu1 %v5884_v13 }
  0x9f   : >>> { %1025 = vmatprep.mubr.f32.mxu0 %v5884_v13  ;;  %5360 = vmatmul.mubr.msk.f32.vlgmr.msra.gmra.mxu1 %vm286_vm1, %v5354_v52 }
  0xa0   : >>> { %5361 = vmatprep.subr.msk.mxu0 %vm290_vm0, %v1116_v53  ;;  %v1114_v54 = vpop.permute.xlu1 %1113  ;;  %5357 = vmatmul.mubr.msk.f32.vlgmr.msra.gmra.mxu0 %vm286_vm1, %v5354_v52  ;;  %v1108_v55 = vpop.permute.xlu0 %1107 }
  0xa1   : >>> { %v1117_v56 = vsel %vm796_vm2, %v1112_v50, %v1114_v54  ;;  %v1115_v57 = vsel %vm796_vm2, %v1108_v55, %v1110_v51  ;;  %5364 = vmatprep.subr.msk.mxu1 %vm290_vm0, %v1114_v54  ;;  %1261 = vmatprep.mubr.f32.mxu1 %v5884_v13 }
  0xa2   : >>> { %5362 = vmatpush1.msk.msra.mxu0 %vm290_vm0, %v1115_v57  ;;  %5365 = vmatpush1.msk.msra.mxu1 %vm290_vm0, %v1117_v56 }
  0xa3   : >>> { %1190 = vmatprep.mubr.f32.mxu0 %v5884_v13  ;;  %5366 = vmatmul.mubr.msk.f32.vlgmr.msra.gmra.mxu1 %vm286_vm1, %v5354_v52 }
  0xa4   : >>> { %5369 = vmatprep.subr.msk.mxu0 %vm290_vm0, %v1116_v53  ;;  %5372 = vmatprep.subr.msk.mxu1 %vm290_vm0, %v1114_v54  ;;  %v1430_v58 = vpop.permute.xlu1 %1429  ;;  %v1428_v59 = vpop.permute.xlu0 %1427 }
  0xa5   : >>> { %5363 = vmatmul.mubr.msk.f32.vlgmr.msra.gmra.mxu0 %vm286_vm1, %v5354_v52  ;;  %v1435_v61 = vsel %vm1433_vm3, %v1428_v59, %v1430_v58  ;;  %5373 = vmatpush1.msk.msra.mxu1 %vm290_vm0, %v1117_v56 }
  0xa6   : >>> { %5370 = vmatpush1.msk.msra.mxu0 %vm290_vm0, %v1115_v57  ;;  %1414 = vmatprep.mubr.f32.mxu1 %v5884_v13 }
  0xa7   : >>> { %1343 = vmatprep.mubr.f32.mxu0 %v5884_v13  ;;  %5374 = vmatmul.mubr.msk.f32.vlgmr.msra.gmra.mxu1 %vm286_vm1, %v5368_v60 }
  0xa8   : >>> { %5375 = vmatprep.subr.msk.mxu0 %vm290_vm0, %v1435_v61  ;;  %v1432_v62 = vpop.permute.xlu1 %1431  ;;  %v1426_v63 = vpop.permute.xlu0 %1425  ;;  %1580 = vmatprep.mubr.f32.mxu1 %v5884_v13 }
  0xa9   : >>> { %v1436_v11 = vsel %vm1433_vm3, %v1430_v58, %v1432_v62  ;;  %5371 = vmatmul.mubr.msk.f32.vlgmr.msra.gmra.mxu0 %vm286_vm1, %v5368_v60  ;;  %v1434_v12 = vsel %vm1433_vm3, %v1426_v63, %v1428_v59  ;;  %5378 = vmatprep.subr.msk.mxu1 %vm290_vm0, %v1432_v62 }
  0xaa   : >>> { %5376 = vmatpush1.msk.msra.mxu0 %vm290_vm0, %v1434_v12  ;;  %5379 = vmatpush1.msk.msra.mxu1 %vm290_vm0, %v1436_v11 }
  0xab   : >>> { %1509 = vmatprep.mubr.f32.mxu0 %v5884_v13  ;;  %5380 = vmatmul.mubr.msk.f32.vlgmr.msra.gmra.mxu1 %vm286_vm1, %v5368_v60 }
  0xac   : >>> { %5383 = vmatprep.subr.msk.mxu0 %vm290_vm0, %v1435_v61  ;;  %5386 = vmatprep.subr.msk.mxu1 %vm290_vm0, %v1432_v62  ;;  %v1749_v14 = vpop.permute.xlu1 %1748  ;;  %v1747_v15 = vpop.permute.xlu0 %1746 }
  0xad   : >>> { %5377 = vmatmul.mubr.msk.f32.vlgmr.msra.gmra.mxu0 %vm286_vm1, %v5368_v60  ;;  %v1753_v18 = vsel %vm1433_vm3, %v1747_v15, %v1749_v14  ;;  %5387 = vmatpush1.msk.msra.mxu1 %vm290_vm0, %v1436_v11 }
  0xae   : >>> { %5384 = vmatpush1.msk.msra.mxu0 %vm290_vm0, %v1434_v12  ;;  %1733 = vmatprep.mubr.f32.mxu1 %v5884_v13 }
  0xaf   : >>> { %1662 = vmatprep.mubr.f32.mxu0 %v5884_v13  ;;  %5388 = vmatmul.mubr.msk.f32.vlgmr.msra.gmra.mxu1 %vm286_vm1, %v5382_v17 }
  0xb0   : >>> { %5389 = vmatprep.subr.msk.mxu0 %vm290_vm0, %v1753_v18  ;;  %v1751_v19 = vpop.permute.xlu1 %1750  ;;  %v1745_v20 = vpop.permute.xlu0 %1744  ;;  %1898 = vmatprep.mubr.f32.mxu1 %v5884_v13 }
  0xb1   : >>> { %v1754_v21 = vsel %vm1433_vm3, %v1749_v14, %v1751_v19  ;;  %5385 = vmatmul.mubr.msk.f32.vlgmr.msra.gmra.mxu0 %vm286_vm1, %v5382_v17  ;;  %v1752_v22 = vsel %vm1433_vm3, %v1745_v20, %v1747_v15  ;;  %5392 = vmatprep.subr.msk.mxu1 %vm290_vm0, %v1751_v19 }
  0xb2   : >>> { %5390 = vmatpush1.msk.msra.mxu0 %vm290_vm0, %v1752_v22  ;;  %5393 = vmatpush1.msk.msra.mxu1 %vm290_vm0, %v1754_v21 }
  0xb3   : >>> { %1827 = vmatprep.mubr.f32.mxu0 %v5884_v13  ;;  %5394 = vmatmul.mubr.msk.f32.vlgmr.msra.gmra.mxu1 %vm286_vm1, %v5382_v17 }
  0xb4   : >>> { %5397 = vmatprep.subr.msk.mxu0 %vm290_vm0, %v1753_v18  ;;  %5400 = vmatprep.subr.msk.mxu1 %vm290_vm0, %v1751_v19  ;;  %v2067_v23 = vpop.permute.xlu1 %2066  ;;  %v2065_v24 = vpop.permute.xlu0 %2064 }
  0xb5   : >>> { %5391 = vmatmul.mubr.msk.f32.vlgmr.msra.gmra.mxu0 %vm286_vm1, %v5382_v17  ;;  %v2072_v26 = vsel %vm2070_vm4, %v2065_v24, %v2067_v23  ;;  %5401 = vmatpush1.msk.msra.mxu1 %vm290_vm0, %v1754_v21 }
  0xb6   : >>> { %5398 = vmatpush1.msk.msra.mxu0 %vm290_vm0, %v1752_v22  ;;  %2051 = vmatprep.mubr.f32.mxu1 %v5884_v13 }
  0xb7   : >>> { %1980 = vmatprep.mubr.f32.mxu0 %v5884_v13  ;;  %5402 = vmatmul.mubr.msk.f32.vlgmr.msra.gmra.mxu1 %vm286_vm1, %v5396_v25 }
  0xb8   : >>> { %5403 = vmatprep.subr.msk.mxu0 %vm290_vm0, %v2072_v26  ;;  %v2069_v27 = vpop.permute.xlu1 %2068  ;;  %v2063_v28 = vpop.permute.xlu0 %2062  ;;  %2217 = vmatprep.mubr.f32.mxu1 %v5884_v13 }
  0xb9   : >>> { %v2073_v29 = vsel %vm2070_vm4, %v2067_v23, %v2069_v27  ;;  %5399 = vmatmul.mubr.msk.f32.vlgmr.msra.gmra.mxu0 %vm286_vm1, %v5396_v25  ;;  %v2071_v30 = vsel %vm2070_vm4, %v2063_v28, %v2065_v24  ;;  %5406 = vmatprep.subr.msk.mxu1 %vm290_vm0, %v2069_v27 }
  0xba   : >>> { %5404 = vmatpush1.msk.msra.mxu0 %vm290_vm0, %v2071_v30  ;;  %5407 = vmatpush1.msk.msra.mxu1 %vm290_vm0, %v2073_v29 }
  0xbb   : >>> { %2146 = vmatprep.mubr.f32.mxu0 %v5884_v13  ;;  %5408 = vmatmul.mubr.msk.f32.vlgmr.msra.gmra.mxu1 %vm286_vm1, %v5396_v25 }
  0xbc   : >>> { %5411 = vmatprep.subr.msk.mxu0 %vm290_vm0, %v2072_v26  ;;  %5414 = vmatprep.subr.msk.mxu1 %vm290_vm0, %v2069_v27  ;;  %v2386_v31 = vpop.permute.xlu1 %2385  ;;  %v2384_v32 = vpop.permute.xlu0 %2383 }
  0xbd   : >>> { %5405 = vmatmul.mubr.msk.f32.vlgmr.msra.gmra.mxu0 %vm286_vm1, %v5396_v25  ;;  %v2390_v34 = vsel %vm2070_vm4, %v2384_v32, %v2386_v31  ;;  %5415 = vmatpush1.msk.msra.mxu1 %vm290_vm0, %v2073_v29 }
  0xbe   : >>> { %5412 = vmatpush1.msk.msra.mxu0 %vm290_vm0, %v2071_v30  ;;  %2370 = vmatprep.mubr.f32.mxu1 %v5884_v13 }
  0xbf   : >>> { %2299 = vmatprep.mubr.f32.mxu0 %v5884_v13  ;;  %5416 = vmatmul.mubr.msk.f32.vlgmr.msra.gmra.mxu1 %vm286_vm1, %v5410_v33 }
  0xc0   : >>> { %5417 = vmatprep.subr.msk.mxu0 %vm290_vm0, %v2390_v34  ;;  %v2388_v35 = vpop.permute.xlu1 %2387  ;;  %v2382_v36 = vpop.permute.xlu0 %2381  ;;  %2535 = vmatprep.mubr.f32.mxu1 %v5884_v13 }
  0xc1   : >>> { %v2391_v37 = vsel %vm2070_vm4, %v2386_v31, %v2388_v35  ;;  %5413 = vmatmul.mubr.msk.f32.vlgmr.msra.gmra.mxu0 %vm286_vm1, %v5410_v33  ;;  %v2389_v38 = vsel %vm2070_vm4, %v2382_v36, %v2384_v32  ;;  %5420 = vmatprep.subr.msk.mxu1 %vm290_vm0, %v2388_v35 }
  0xc2   : >>> { %5418 = vmatpush1.msk.msra.mxu0 %vm290_vm0, %v2389_v38  ;;  %5421 = vmatpush1.msk.msra.mxu1 %vm290_vm0, %v2391_v37 }
  0xc3   : >>> { %2464 = vmatprep.mubr.f32.mxu0 %v5884_v13  ;;  %5422 = vmatmul.mubr.msk.f32.vlgmr.msra.gmra.mxu1 %vm286_vm1, %v5410_v33 }
  0xc5   : >>> { %5419 = vmatmul.mubr.msk.f32.vlgmr.msra.gmra.mxu0 %vm286_vm1, %v5410_v33 }
  0xe5   : >>> { %v365_v40 = vpop.f32.mrf.mxu0 }
  0xe6   : >>> { %v441_v25 = vadd.f32 %v5841_v9, %v365_v40 }
  0xe7   : >>> { %v436_v39 = vpop.f32.mrf.mxu1  ;;  %v367_v42 = vpop.f32.mrf.mxu0 }
  0xe8   : >>> { %v443_v22 = vadd.f32 %v5833_v7, %v436_v39  ;;  %v442_v27 = vadd.f32 %v5837_v8, %v367_v42 }
  0xe9   : >>> { %v438_v41 = vpop.f32.mrf.mxu1 }
  0xea   : >>> { %v444_v26 = vadd.f32 %v5829_v6, %v438_v41 }
  0xeb   : >>> { %v555_v44 = vpop.f32.mrf.mxu0 }
  0xec   : >>> { %v626_v43 = vpop.f32.mrf.mxu1  ;;  %v631_v7 = vadd.f32 %v5825_v5, %v555_v44 }
  0xed   : >>> { %v557_v46 = vpop.f32.mrf.mxu0  ;;  %v633_v33 = vadd.f32 %v5817_v3, %v626_v43 }
  0xee   : >>> { %v628_v45 = vpop.f32.mrf.mxu1  ;;  %v632_v42 = vadd.f32 %v5821_v4, %v557_v46 }
  0xef   : >>> { %v634_v37 = vadd.f32 %v5813_v2, %v628_v45 }
  0xf0   : >>> { %v708_v48 = vpop.f32.mrf.mxu0 }
  0xf1   : >>> { %v779_v47 = vpop.f32.mrf.mxu1  ;;  %v784_v34 = vadd.f32 %v708_v48, %v441_v25 }
  0xf2   : >>> { %v710_v50 = vpop.f32.mrf.mxu0  ;;  %v786_v30 = vadd.f32 %v779_v47, %v443_v22 }
  0xf3   : >>> { %v781_v49 = vpop.f32.mrf.mxu1  ;;  %v785_v38 = vadd.f32 %v710_v50, %v442_v27 }
  0xf4   : >>> { %v787_v35 = vadd.f32 %v781_v49, %v444_v26 }
 0x15b   : >>> { %v945_v51 = vpop.f32.mrf.mxu1 }
 0x15c   : >>> { %v874_v52 = vpop.f32.mrf.mxu0  ;;  %v952_v6 = vadd.f32 %v945_v51, %v633_v33 }
 0x15d   : >>> { %v947_v53 = vpop.f32.mrf.mxu1  ;;  %v950_v47 = vadd.f32 %v874_v52, %v631_v7 }
 0x15e   : >>> { %v876_v13 = vpop.f32.mrf.mxu0  ;;  %v953_v22 = vadd.f32 %v947_v53, %v634_v37 }
 0x15f   : >>> { %v1098_v54 = vpop.f32.mrf.mxu1  ;;  %v951_v44 = vadd.f32 %v876_v13, %v632_v42 }
 0x160   : >>> { %v1027_v55 = vpop.f32.mrf.mxu0  ;;  %v1105_v36 = vadd.f32 %v1098_v54, %v786_v30 }
 0x161   : >>> { %v1100_v56 = vpop.f32.mrf.mxu1  ;;  %v1103_v40 = vadd.f32 %v1027_v55, %v784_v34 }
 0x162   : >>> { %v1029_v57 = vpop.f32.mrf.mxu0  ;;  %v1106_v8 = vadd.f32 %v1100_v56, %v787_v35 }
 0x163   : >>> { %v1263_v58 = vpop.f32.mrf.mxu1  ;;  %v1104_v10 = vadd.f32 %v1029_v57, %v785_v38 }
 0x164   : >>> { %v1270_v48 = vadd.f32 %v1263_v58, %v952_v6 }
 0x165   : >>> { %v1192_v59 = vpop.f32.mrf.mxu0  ;;  %v1265_v60 = vpop.f32.mrf.mxu1 }
 0x166   : >>> { %v1268_v2 = vadd.f32 %v1192_v59, %v950_v47  ;;  %v1271_v45 = vadd.f32 %v1265_v60, %v953_v22 }
 0x167   : >>> { %v1194_v61 = vpop.f32.mrf.mxu0  ;;  %v1416_v62 = vpop.f32.mrf.mxu1 }
 0x168   : >>> { %v1423_v41 = vadd.f32 %v1416_v62, %v1105_v36  ;;  %v1269_v4 = vadd.f32 %v1194_v61, %v951_v44 }
 0x169   : >>> { %v1345_v63 = vpop.f32.mrf.mxu0  ;;  %v1418_v11 = vpop.f32.mrf.mxu1 }
 0x16a   : >>> { %v1421_v49 = vadd.f32 %v1345_v63, %v1103_v40  ;;  %v1424_v54 = vadd.f32 %v1418_v11, %v1106_v8 }
 0x16b   : >>> { %v1347_v12 = vpop.f32.mrf.mxu0  ;;  %v1582_v14 = vpop.f32.mrf.mxu1 }
 0x16c   : >>> { %v1422_v50 = vadd.f32 %v1347_v12, %v1104_v10  ;;  %v1589_v55 = vadd.f32 %v1582_v14, %v1270_v48 }
 0x16d   : >>> { %v1511_v15 = vpop.f32.mrf.mxu0  ;;  %v1584_v17 = vpop.f32.mrf.mxu1 }
 0x16e   : >>> { %v1587_v46 = vadd.f32 %v1511_v15, %v1268_v2  ;;  %v1590_v52 = vadd.f32 %v1584_v17, %v1271_v45 }
 0x16f   : >>> { %v1513_v18 = vpop.f32.mrf.mxu0  ;;  %v1735_v19 = vpop.f32.mrf.mxu1 }
 0x170   : >>> { %v1742_v5 = vadd.f32 %v1735_v19, %v1423_v41  ;;  %v1588_v13 = vadd.f32 %v1513_v18, %v1269_v4 }
 0x171   : >>> { %v1664_v20 = vpop.f32.mrf.mxu0  ;;  %v1737_v21 = vpop.f32.mrf.mxu1 }
 0x172   : >>> { %v1740_v56 = vadd.f32 %v1664_v20, %v1421_v49  ;;  %v1743_v62 = vadd.f32 %v1737_v21, %v1424_v54 }
 0x173   : >>> { %v1666_v23 = vpop.f32.mrf.mxu0  ;;  %v1900_v24 = vpop.f32.mrf.mxu1 }
 0x174   : >>> { %v1741_v53 = vadd.f32 %v1666_v23, %v1422_v50  ;;  %v1907_v58 = vadd.f32 %v1900_v24, %v1589_v55 }
 0x175   : >>> { %v1829_v28 = vpop.f32.mrf.mxu0  ;;  %v1902_v29 = vpop.f32.mrf.mxu1 }
 0x176   : >>> { %v1905_v59 = vadd.f32 %v1829_v28, %v1587_v46  ;;  %v1908_v60 = vadd.f32 %v1902_v29, %v1590_v52  ;;  %v6240_v46 = vmov (%p208_p4), 0.0   ;;  %v6242_v52 = vmov (%p208_p4), 0.0  }
 0x177   : >>> { %v1831_v31 = vpop.f32.mrf.mxu0  ;;  %v2053_v32 = vpop.f32.mrf.mxu1 }
 0x178   : >>> { %v2060_v26 = vadd.f32 %v2053_v32, %v1742_v5  ;;  %v1906_v32 = vadd.f32 %v1831_v31, %v1588_v13  ;;  %v5888_v31 = vmov (%p208_p4), 0  }
 0x179   : >>> { %v1982_v9 = vpop.f32.mrf.mxu0  ;;  %v2055_v39 = vpop.f32.mrf.mxu1  ;;  %5722 = vset.pattern.permute.xlu0 (%p208_p4), %v5888_v31 }
 0x17a   : >>> { %v2058_v63 = vadd.f32 %v1982_v9, %v1740_v56  ;;  %v2061_v11 = vadd.f32 %v2055_v39, %v1743_v62  ;;  %2548 = vperm.xlu0 (%p208_p4), %5722, %v6548_v0  }
 0x17b   : >>> { %v1984_v3 = vpop.f32.mrf.mxu0  ;;  %v2219_v43 = vpop.f32.mrf.mxu1 }
 0x17c   : >>> { %v2059_v30 = vadd.f32 %v1984_v3, %v1741_v53  ;;  %v2226_v14 = vadd.f32 %v2219_v43, %v1907_v58  ;;  %v6244_v53 = vmov (%p208_p4), 0.0   ;;  %v6250_v58 = vmov (%p208_p4), 0.0  }
 0x17d   : >>> { %v2148_v25 = vpop.f32.mrf.mxu0  ;;  %v2221_v51 = vpop.f32.mrf.mxu1 }
 0x17e   : >>> { %v2224_v17 = vadd.f32 %v2148_v25, %v1905_v59  ;;  %v2227_v23 = vadd.f32 %v2221_v51, %v1908_v60  ;;  %2557 = vperm.xlu0 (%p208_p4), %5722, %v6549_v1  }
 0x17f   : >>> { %v2150_v57 = vpop.f32.mrf.mxu0  ;;  %v2372_v27 = vpop.f32.mrf.mxu1 }
 0x180   : >>> { %v2379_v19 = vadd.f32 %v2372_v27, %v2060_v26   ;;  %v2225_v36 = vadd.f32 %v2150_v57, %v1906_v32  ;;  %v6236_v26 = vmov (%p208_p4), 0.0   ;;  %v6246_v57 = vmov (%p208_p4), 0.0  }
 0x181   : >>> { %v2301_v10 = vpop.f32.mrf.mxu0  ;;  %v2374_v12 = vpop.f32.mrf.mxu1  ;;  %v6248_v27 = vmov (%p208_p4), 0.0  }
 0x182   : >>> { %v2377_v20 = vadd.f32 %v2301_v10, %v2058_v63   ;;  %v2380_v21 = vadd.f32 %v2374_v12, %v2061_v11   ;;  %v6545_v7 = vmov %v2379_v19 }
 0x183   : >>> { %v2303_v61 = vpop.f32.mrf.mxu0  ;;  %v2537_v15 = vpop.f32.mrf.mxu1 }
 0x184   : >>> { %v2378_v33 = vadd.f32 %v2303_v61, %v2059_v30   ;;  %v2544_v34 = vadd.f32 %v2537_v15, %v2226_v14   ;;  %v6544_v6 = vmov %v2380_v21  ;;  %v6547_v9 = vmov %v2377_v20 }
 0x185   : >>> { %v2466_v24 = vpop.f32.mrf.mxu0  ;;  %v2539_v35 = vpop.f32.mrf.mxu1 }
 0x186   : >>> { %v2542_v37 = vadd.f32 %v2466_v24, %v2224_v17   ;;  %v2545_v18 = vadd.f32 %v2539_v35, %v2227_v23   ;;  %v6541_v3 = vmov %v2544_v34  ;;  %v6546_v8 = vmov %v2378_v33  ;;  %210 = sbr.rel (!%p208_p4) target bundleno = 18 (0x12), region = 119 }
 0x187   : >>> { %v2468_v28 = vpop.f32.mrf.mxu0 }
 0x188   : >>> { %v2543_v29 = vadd.f32 %v2468_v28, %v2225_v36   ;;  %v6540_v2 = vmov %v2545_v18  ;;  %v6543_v5 = vmov %v2542_v37 }
 0x18a   : >>> { %v6542_v4 = vmov %v2543_v29 }
 0x18b   : >> { %v6238_v4 = vmov 0.0  }
 0x1f5   : >> { %v6192_v38 = vpop.permute.xlu0 %2548 }
 0x1f6   : >> { %v2551_v9 = vmul.f32 %v6192_v38, %v2377_v20  ;;  %v2552_v39 = vmul.f32 %v6192_v38, %v2378_v33  ;;  %v2553_v40 = vmul.f32 %v6192_v38, %v2379_v19  ;;  %v2554_v41 = vmul.f32 %v6192_v38, %v2380_v21 }
 0x1f7   : >> { %v2568_v42 = vmul.f32 %v6192_v38, %v2542_v37  ;;  %v2569_v47 = vmul.f32 %v6192_v38, %v2543_v29  ;;  %v2570_v7 = vmul.f32 %v6192_v38, %v2544_v34  ;;  %v2571_v6 = vmul.f32 %v6192_v38, %v2545_v18 }
 0x1f9   : >> { %v6202_v8 = vpop.permute.xlu0 %2557 }
 0x1fa   : >> { %v6205_v22 = vadd.f32 %v6202_v8, %v2551_v9  ;;  %v6208_v3 = vadd.f32 %v6202_v8, %v2552_v39  ;;  %v6211_v43 = vadd.f32 %v6202_v8, %v2553_v40  ;;  %v6214_v48 = vadd.f32 %v6202_v8, %v2554_v41 }
 0x1fb   : >> { %v6217_v49 = vadd.f32 %v2568_v42, %v6202_v8  ;;  %v6220_v54 = vadd.f32 %v2569_v47, %v6202_v8  ;;  %v6223_v5 = vadd.f32 %v2570_v7, %v6202_v8  ;;  %v6226_v44 = vadd.f32 %v2571_v6, %v6202_v8 }
 0x1fc   : >> { %6550 = vst [vmem:[#allocation5_spill] sm:$0xff] %v6205_v22  ;;  %6551 = vst [vmem:[#allocation6_spill] sm:$0xff] %v6208_v3 }
 0x1fd   : >> { %6552 = vst [vmem:[#allocation7_spill] sm:$0xff] %v6211_v43  ;;  %6553 = vst [vmem:[#allocation8_spill] sm:$0xff] %v6214_v48 }
 0x1fe   : >> { %6554 = vst [vmem:[#allocation9_spill] sm:$0xff] %v6220_v54  ;;  %6555 = vst [vmem:[#allocation10_spill] sm:$0xff] %v6223_v5 }
 0x1ff   : >> { %6556 = vst [vmem:[#allocation11_spill] sm:$0xff] %v6226_v44 }
 0x200 LB: >>> { %v6557_v16 = vld [vmem:[#allocation4_spill] sm:$0xff]  ;;  %v5889_v63 = vmov 0.0   ;;  %s6281_s21 = sadd.s32 1, %s5881_s20   ;;  %s5436_s6 = smul.u32 56, %s5881_s20  ;;  %v5849_v26 = vphi %v6236_v26, %v6558_v26   ;;  %s5881_s20 = sphi %s6252_s20, %s6566_s20   ;;  %v5877_v58 = vphi %v6250_v58, %v6565_v58   ;;  %v5873_v27 = vphi %v6248_v27, %v6564_v27   ;;  %v5869_v57 = vphi %v6246_v57, %v6563_v57   ;;  %v5865_v53 = vphi %v6244_v53, %v6562_v53   ;;  %v5861_v52 = vphi %v6242_v52, %v6561_v52   ;;  %v5857_v46 = vphi %v6240_v46, %v6560_v46   ;;  %v5853_v4 = vphi %v6238_v4, %v6559_v4  }
 0x201   : >>> { %2738 = vmatprep.mubr.f32.mxu0 %v5889_v63  ;;  %2809 = vmatprep.mubr.f32.mxu1 %v5889_v63  ;;  %s2596_s22 = sadd.s32 %s5313_s5, %s6281_s21  ;;  %s5890_s10 = smov 127  }
 0x202   : >>> { %s2597_s23 = sshra.s32 %s2596_s22, 3  ;;  %s2600_s24 = sand.u32 7, %s2596_s22 }
 0x203   : >>> { %s5548_s26 = sshll.u32 %s2597_s23, 5  ;;  %s6294_s9 = scalar_lea.vmem %s6522_s1, %s5436_s6 }
 0x204   : >>> { %s2603_s27 = sadd.s32 %s5548_s26, %s2600_s24  ;;  %v2624_v37 = vld [vmem:[%s6294_s9] sm:$0x3f]  ;;  %v5450_v31 = vld [vmem:[%s6294_s9 + $0x8] sm:$0x3f]  ;;  %s5891_s11 = smov 126  }
 0x205   : >>> { %s2604_s30 = scalar_lea.vmem %s5939_s25, %s2603_s27  ;;  %s5892_s12 = smov 125  }
 0x206   : >>> { %v2605_v11 = vld [vmem:[%s2604_s30] ss:$8 sm:$0xf]  ;;  %p2582_p5 = scmp.ge.s32.totalorder %s6281_s21, 7   ;;  %s6566_s20 = smov %s6281_s21 }
 0x207   : >>> { %v5427_v19 = vld [vmem:[%s2604_s30 + $0xe20] ss:$8 sm:$0xf]  ;;  %s5037_s5 = sshra.s32 (%p2582_p5), %s5809_s29, 3  ;;  %s5040_s13 = sand.u32 (%p2582_p5), 7, %s5809_s29 }
 0x208   : >>> { %v5429_v13 = vld [vmem:[%s2604_s30 + $0x1c40] ss:$8 sm:$0xf]  ;;  %v2628_v60 = vcombine.low %v2605_v11, %v5427_v19  ;;  %s5549_s14 = sshll.u32 (%p2582_p5), %s5037_s5, 5  ;;  %s205_s29 = sadd.s32 (%p2582_p5), 1, %s5809_s29  }
 0x209   : >>> { %v5431_v59 = vld [vmem:[%s2604_s30 + $0x2a60] ss:$8 sm:$0xf]  ;;  %v2642_v12 = vrot.slane %v5429_v13, %v6557_v16  ;;  %s5043_s16 = sadd.s32 (%p2582_p5), %s5549_s14, %s5040_s13  ;;  %p202_p6 = scmp.ge.s32.totalorder (%p2582_p5), %s205_s29, 448  }
 0x20a   : >>> { %v5433_v10 = vld [vmem:[%s2604_s30 + $0x3880] ss:$8 sm:$0xf]  ;;  %v2635_v14 = vrot.slane %v2628_v60, %v6557_v16  ;;  %s5044_s17 = scalar_lea.vmem (%p2582_p5), %s5944_s28, %s5043_s16 }
 0x20b   : >>> { %v5435_v30 = vld [vmem:[%s2604_s30 + $0x46a0] ss:$8 sm:$0xf]  ;;  %v2823_v20 = vcombine.low %v5431_v59, %v5433_v10 }
 0x20c   : >>> { %v2837_v21 = vrot.slane %v5435_v30, %v6557_v16  ;;  %v2644_v32 = vcombine.high %v2635_v14, %v2642_v12  ;;  %v2643_v61 = vcombine.low %v2635_v14, %v2642_v12  ;;  %v5464_v19 = vld [vmem:[%s6294_s9 + $0x10] sm:$0x3f] }
 0x20d   : >>> { %v2830_v15 = vrot.slane %v2823_v20, %v6557_v16  ;;  %v5478_v20 = vld [vmem:[%s6294_s9 + $0x18] sm:$0x3f] }
 0x20e   : >>> { %v2658_v17 = vrot.slane %v2644_v32, %v6557_v16  ;;  %v2651_v23 = vrot.slane %v2643_v61, %v6557_v16 }
 0x20f   : >>> { %v2838_v33 = vcombine.low %v2830_v15, %v2837_v21  ;;  %v2839_v34 = vcombine.high %v2830_v15, %v2837_v21 }
 0x210   : >>> { %3165 = vrot.lane.b32.xlu0 %v2658_v17, %s5890_s10  ;;  %3163 = vrot.lane.b32.xlu1 %v2651_v23, %s5890_s10  ;;  %v2660_v24 = vcombine.high %v2658_v17, %v2658_v17  ;;  %v2659_v35 = vcombine.high %v2651_v23, %v2651_v23 }
 0x211   : >>> { %v2846_v36 = vrot.slane %v2838_v33, %v6557_v16  ;;  %5437 = vmatprep.subr.msk.mxu0 %vm290_vm0, %v2658_v17  ;;  %v2853_v18 = vrot.slane %v2839_v34, %v6557_v16  ;;  %v5492_v34 = vld [vmem:[%s6294_s9 + $0x20] sm:$0x3f] }
 0x212   : >>> { %5440 = vmatprep.subr.msk.mxu1 %vm290_vm0, %v2660_v24  ;;  %5438 = vmatpush1.msk.msra.mxu0 %vm290_vm0, %v2651_v23 }
 0x213   : >>> { %5441 = vmatpush1.msk.msra.mxu1 %vm290_vm0, %v2659_v35  ;;  %5439 = vmatmul.mubr.msk.f32.vlgmr.msra.gmra.mxu0 %vm286_vm1, %v2624_v37  ;;  %v2854_v28 = vcombine.high %v2846_v36, %v2846_v36  ;;  %v2855_v29 = vcombine.high %v2853_v18, %v2853_v18 }
 0x214   : >>> { %3169 = vrot.lane.b32.xlu1 %v2660_v24, %s5890_s10  ;;  %3167 = vrot.lane.b32.xlu0 %v2659_v35, %s5890_s10 }
 0x215   : >>> { %5442 = vmatmul.mubr.msk.f32.vlgmr.msra.gmra.mxu1 %vm286_vm1, %v2624_v37  ;;  %5443 = vmatprep.subr.msk.mxu0 %vm290_vm0, %v2853_v18 }
 0x216   : >>> { %5446 = vmatprep.subr.msk.mxu1 %vm290_vm0, %v2855_v29  ;;  %5444 = vmatpush1.msk.msra.mxu0 %vm290_vm0, %v2846_v36 }
 0x217   : >>> { %2928 = vmatprep.mubr.f32.mxu0 %v5889_v63  ;;  %5447 = vmatpush1.msk.msra.mxu1 %vm290_vm0, %v2854_v28 }
 0x218   : >>> { %3486 = vrot.lane.b32.xlu1 %v2854_v28, %s5890_s10  ;;  %3484 = vrot.lane.b32.xlu0 %v2853_v18, %s5890_s10 }
 0x219   : >>> { %2999 = vmatprep.mubr.f32.mxu1 %v5889_v63  ;;  %5445 = vmatmul.mubr.msk.f32.vlgmr.msra.gmra.mxu0 %vm286_vm1, %v2624_v37 }
 0x21a   : >>> { %5448 = vmatmul.mubr.msk.f32.vlgmr.msra.gmra.mxu1 %vm286_vm1, %v2624_v37  ;;  %5451 = vmatprep.subr.msk.mxu0 %vm290_vm0, %v2853_v18 }
 0x21b   : >>> { %5454 = vmatprep.subr.msk.mxu1 %vm290_vm0, %v2855_v29  ;;  %5452 = vmatpush1.msk.msra.mxu0 %vm290_vm0, %v2846_v36 }
 0x21c   : >>> { %3488 = vrot.lane.b32.xlu1 %v2855_v29, %s5890_s10  ;;  %3482 = vrot.lane.b32.xlu0 %v2846_v36, %s5890_s10 }
 0x21d   : >>> { %3081 = vmatprep.mubr.f32.mxu0 %v5889_v63  ;;  %5455 = vmatpush1.msk.msra.mxu1 %vm290_vm0, %v2854_v28 }
 0x21e   : >>> { %3152 = vmatprep.mubr.f32.mxu1 %v5889_v63  ;;  %5453 = vmatmul.mubr.msk.f32.vlgmr.msra.gmra.mxu0 %vm286_vm1, %v5450_v31 }
 0x21f   : >>> { %5456 = vmatmul.mubr.msk.f32.vlgmr.msra.gmra.mxu1 %vm286_vm1, %v5450_v31  ;;  %3247 = vmatprep.mubr.f32.mxu0 %v5889_v63 }
 0x220   : >>> { %3804 = vrot.lane.b32.xlu1 %v2659_v35, %s5891_s11  ;;  %3802 = vrot.lane.b32.xlu0 %v2658_v17, %s5891_s11 }
 0x221   : >>> { %3318 = vmatprep.mubr.f32.mxu1 %v5889_v63 }
 0x224   : >>> { %3806 = vrot.lane.b32.xlu1 %v2660_v24, %s5891_s11  ;;  %3800 = vrot.lane.b32.xlu0 %v2651_v23, %s5891_s11 }
 0x228   : >>> { %4123 = vrot.lane.b32.xlu1 %v2854_v28, %s5891_s11  ;;  %4121 = vrot.lane.b32.xlu0 %v2853_v18, %s5891_s11 }
 0x22c   : >>> { %4125 = vrot.lane.b32.xlu1 %v2855_v29, %s5891_s11  ;;  %4119 = vrot.lane.b32.xlu0 %v2846_v36, %s5891_s11 }
 0x230   : >>> { %4441 = vrot.lane.b32.xlu1 %v2659_v35, %s5892_s12  ;;  %4439 = vrot.lane.b32.xlu0 %v2658_v17, %s5892_s12 }
 0x234   : >>> { %4443 = vrot.lane.b32.xlu1 %v2660_v24, %s5892_s12  ;;  %4437 = vrot.lane.b32.xlu0 %v2651_v23, %s5892_s12 }
 0x238   : >>> { %4760 = vrot.lane.b32.xlu1 %v2854_v28, %s5892_s12  ;;  %4758 = vrot.lane.b32.xlu0 %v2853_v18, %s5892_s12 }
 0x23c   : >>> { %4762 = vrot.lane.b32.xlu1 %v2855_v29, %s5892_s12  ;;  %4756 = vrot.lane.b32.xlu0 %v2846_v36, %s5892_s12 }
 0x282   : >>> { %v3166_v9 = vpop.permute.xlu0 %3165  ;;  %v3164_v39 = vpop.permute.xlu1 %3163 }
 0x283   : >>> { %v3172_v7 = vsel %vm796_vm2, %v3164_v39, %v3166_v9 }
 0x286   : >>> { %v3170_v40 = vpop.permute.xlu1 %3169  ;;  %v3168_v41 = vpop.permute.xlu0 %3167 }
 0x287   : >>> { %v3174_v42 = vsel %vm796_vm2, %v3168_v41, %v3170_v40  ;;  %5460 = vmatprep.subr.msk.mxu1 %vm290_vm0, %v3170_v40  ;;  %v3173_v47 = vsel %vm796_vm2, %v3166_v9, %v3168_v41 }
 0x288   : >>> { %5457 = vmatprep.subr.msk.mxu0 %vm290_vm0, %v3173_v47  ;;  %5461 = vmatpush1.msk.msra.mxu1 %vm290_vm0, %v3174_v42 }
 0x289   : >>> { %5458 = vmatpush1.msk.msra.mxu0 %vm290_vm0, %v3172_v7  ;;  %5462 = vmatmul.mubr.msk.f32.vlgmr.msra.gmra.mxu1 %vm286_vm1, %v5450_v31 }
 0x28a   : >>> { %5468 = vmatprep.subr.msk.mxu1 %vm290_vm0, %v3170_v40  ;;  %v3487_v6 = vpop.permute.xlu1 %3486  ;;  %5459 = vmatmul.mubr.msk.f32.vlgmr.msra.gmra.mxu0 %vm286_vm1, %v5450_v31  ;;  %v3485_v11 = vpop.permute.xlu0 %3484  ;;  %v5506_v31 = vld [vmem:[%s6294_s9 + $0x28] sm:$0x3f] }
 0x28b   : >>> { %5465 = vmatprep.subr.msk.mxu0 %vm290_vm0, %v3173_v47  ;;  %5469 = vmatpush1.msk.msra.mxu1 %vm290_vm0, %v3174_v42  ;;  %v3491_v13 = vsel %vm796_vm2, %v3485_v11, %v3487_v6 }
 0x28c   : >>> { %5466 = vmatpush1.msk.msra.mxu0 %vm290_vm0, %v3172_v7  ;;  %3471 = vmatprep.mubr.f32.mxu1 %v5889_v63 }
 0x28d   : >>> { %3400 = vmatprep.mubr.f32.mxu0 %v5889_v63  ;;  %5470 = vmatmul.mubr.msk.f32.vlgmr.msra.gmra.mxu1 %vm286_vm1, %v5464_v19 }
 0x28e   : >>> { %5471 = vmatprep.subr.msk.mxu0 %vm290_vm0, %v3491_v13  ;;  %v3489_v59 = vpop.permute.xlu1 %3488  ;;  %5467 = vmatmul.mubr.msk.f32.vlgmr.msra.gmra.mxu0 %vm286_vm1, %v5464_v19  ;;  %v3483_v60 = vpop.permute.xlu0 %3482 }
 0x28f   : >>> { %v3490_v10 = vsel %vm796_vm2, %v3483_v60, %v3485_v11  ;;  %5474 = vmatprep.subr.msk.mxu1 %vm290_vm0, %v3489_v59  ;;  %v3492_v12 = vsel %vm796_vm2, %v3487_v6, %v3489_v59  ;;  %3636 = vmatprep.mubr.f32.mxu1 %v5889_v63  ;;  %v5520_v6 = vld [vmem:[%s6294_s9 + $0x30] sm:$0x3f] }
 0x290   : >>> { %5472 = vmatpush1.msk.msra.mxu0 %vm290_vm0, %v3490_v10  ;;  %5475 = vmatpush1.msk.msra.mxu1 %vm290_vm0, %v3492_v12 }
 0x291   : >>> { %3565 = vmatprep.mubr.f32.mxu0 %v5889_v63  ;;  %5476 = vmatmul.mubr.msk.f32.vlgmr.msra.gmra.mxu1 %vm286_vm1, %v5464_v19 }
 0x292   : >>> { %5479 = vmatprep.subr.msk.mxu0 %vm290_vm0, %v3491_v13  ;;  %5482 = vmatprep.subr.msk.mxu1 %vm290_vm0, %v3489_v59  ;;  %v3805_v30 = vpop.permute.xlu1 %3804  ;;  %v3803_v14 = vpop.permute.xlu0 %3802 }
 0x293   : >>> { %5473 = vmatmul.mubr.msk.f32.vlgmr.msra.gmra.mxu0 %vm286_vm1, %v5464_v19  ;;  %5483 = vmatpush1.msk.msra.mxu1 %vm290_vm0, %v3492_v12  ;;  %v3810_v21 = vsel %vm1433_vm3, %v3803_v14, %v3805_v30 }
 0x294   : >>> { %5480 = vmatpush1.msk.msra.mxu0 %vm290_vm0, %v3490_v10  ;;  %3789 = vmatprep.mubr.f32.mxu1 %v5889_v63 }
 0x295   : >>> { %3718 = vmatprep.mubr.f32.mxu0 %v5889_v63  ;;  %5484 = vmatmul.mubr.msk.f32.vlgmr.msra.gmra.mxu1 %vm286_vm1, %v5478_v20 }
 0x296   : >>> { %5485 = vmatprep.subr.msk.mxu0 %vm290_vm0, %v3810_v21  ;;  %v3807_v32 = vpop.permute.xlu1 %3806  ;;  %v3801_v61 = vpop.permute.xlu0 %3800  ;;  %3955 = vmatprep.mubr.f32.mxu1 %v5889_v63 }
 0x297   : >>> { %5481 = vmatmul.mubr.msk.f32.vlgmr.msra.gmra.mxu0 %vm286_vm1, %v5478_v20  ;;  %v3809_v15 = vsel %vm1433_vm3, %v3801_v61, %v3803_v14  ;;  %5488 = vmatprep.subr.msk.mxu1 %vm290_vm0, %v3807_v32  ;;  %v3811_v17 = vsel %vm1433_vm3, %v3805_v30, %v3807_v32 }
 0x298   : >>> { %5486 = vmatpush1.msk.msra.mxu0 %vm290_vm0, %v3809_v15  ;;  %5489 = vmatpush1.msk.msra.mxu1 %vm290_vm0, %v3811_v17 }
 0x299   : >>> { %3884 = vmatprep.mubr.f32.mxu0 %v5889_v63  ;;  %5490 = vmatmul.mubr.msk.f32.vlgmr.msra.gmra.mxu1 %vm286_vm1, %v5478_v20 }
 0x29a   : >>> { %5493 = vmatprep.subr.msk.mxu0 %vm290_vm0, %v3810_v21  ;;  %5496 = vmatprep.subr.msk.mxu1 %vm290_vm0, %v3807_v32  ;;  %v4124_v23 = vpop.permute.xlu1 %4123  ;;  %v4122_v33 = vpop.permute.xlu0 %4121 }
 0x29b   : >>> { %5487 = vmatmul.mubr.msk.f32.vlgmr.msra.gmra.mxu0 %vm286_vm1, %v5478_v20  ;;  %5497 = vmatpush1.msk.msra.mxu1 %vm290_vm0, %v3811_v17  ;;  %v4128_v24 = vsel %vm1433_vm3, %v4122_v33, %v4124_v23 }
 0x29c   : >>> { %5494 = vmatpush1.msk.msra.mxu0 %vm290_vm0, %v3809_v15  ;;  %4108 = vmatprep.mubr.f32.mxu1 %v5889_v63 }
 0x29d   : >>> { %4037 = vmatprep.mubr.f32.mxu0 %v5889_v63  ;;  %5498 = vmatmul.mubr.msk.f32.vlgmr.msra.gmra.mxu1 %vm286_vm1, %v5492_v34 }
 0x29e   : >>> { %5499 = vmatprep.subr.msk.mxu0 %vm290_vm0, %v4128_v24  ;;  %v4126_v35 = vpop.permute.xlu1 %4125  ;;  %v4120_v36 = vpop.permute.xlu0 %4119  ;;  %4273 = vmatprep.mubr.f32.mxu1 %v5889_v63 }
 0x29f   : >>> { %5495 = vmatmul.mubr.msk.f32.vlgmr.msra.gmra.mxu0 %vm286_vm1, %v5492_v34  ;;  %v4127_v37 = vsel %vm1433_vm3, %v4120_v36, %v4122_v33  ;;  %5502 = vmatprep.subr.msk.mxu1 %vm290_vm0, %v4126_v35  ;;  %v4129_v18 = vsel %vm1433_vm3, %v4124_v23, %v4126_v35 }
 0x2a0   : >>> { %5500 = vmatpush1.msk.msra.mxu0 %vm290_vm0, %v4127_v37  ;;  %5503 = vmatpush1.msk.msra.mxu1 %vm290_vm0, %v4129_v18 }
 0x2a1   : >>> { %4202 = vmatprep.mubr.f32.mxu0 %v5889_v63  ;;  %5504 = vmatmul.mubr.msk.f32.vlgmr.msra.gmra.mxu1 %vm286_vm1, %v5492_v34 }
 0x2a2   : >>> { %5507 = vmatprep.subr.msk.mxu0 %vm290_vm0, %v4128_v24  ;;  %5510 = vmatprep.subr.msk.mxu1 %vm290_vm0, %v4126_v35  ;;  %v4442_v28 = vpop.permute.xlu1 %4441  ;;  %v4440_v29 = vpop.permute.xlu0 %4439 }
 0x2a3   : >>> { %5501 = vmatmul.mubr.msk.f32.vlgmr.msra.gmra.mxu0 %vm286_vm1, %v5492_v34  ;;  %5511 = vmatpush1.msk.msra.mxu1 %vm290_vm0, %v4129_v18  ;;  %v4447_v9 = vsel %vm2070_vm4, %v4440_v29, %v4442_v28 }
 0x2a4   : >>> { %5508 = vmatpush1.msk.msra.mxu0 %vm290_vm0, %v4127_v37  ;;  %4426 = vmatprep.mubr.f32.mxu1 %v5889_v63 }
 0x2a5   : >>> { %4355 = vmatprep.mubr.f32.mxu0 %v5889_v63  ;;  %5512 = vmatmul.mubr.msk.f32.vlgmr.msra.gmra.mxu1 %vm286_vm1, %v5506_v31 }
 0x2a6   : >>> { %5513 = vmatprep.subr.msk.mxu0 %vm290_vm0, %v4447_v9  ;;  %v4444_v39 = vpop.permute.xlu1 %4443  ;;  %v4438_v40 = vpop.permute.xlu0 %4437  ;;  %4592 = vmatprep.mubr.f32.mxu1 %v5889_v63 }
 0x2a7   : >>> { %5509 = vmatmul.mubr.msk.f32.vlgmr.msra.gmra.mxu0 %vm286_vm1, %v5506_v31  ;;  %v4446_v41 = vsel %vm2070_vm4, %v4438_v40, %v4440_v29  ;;  %5516 = vmatprep.subr.msk.mxu1 %vm290_vm0, %v4444_v39  ;;  %v4448_v42 = vsel %vm2070_vm4, %v4442_v28, %v4444_v39 }
 0x2a8   : >>> { %5514 = vmatpush1.msk.msra.mxu0 %vm290_vm0, %v4446_v41  ;;  %5517 = vmatpush1.msk.msra.mxu1 %vm290_vm0, %v4448_v42 }
 0x2a9   : >>> { %4521 = vmatprep.mubr.f32.mxu0 %v5889_v63  ;;  %5518 = vmatmul.mubr.msk.f32.vlgmr.msra.gmra.mxu1 %vm286_vm1, %v5506_v31 }
 0x2aa   : >>> { %5521 = vmatprep.subr.msk.mxu0 %vm290_vm0, %v4447_v9  ;;  %5524 = vmatprep.subr.msk.mxu1 %vm290_vm0, %v4444_v39  ;;  %v4761_v47 = vpop.permute.xlu1 %4760  ;;  %v4759_v7 = vpop.permute.xlu0 %4758 }
 0x2ab   : >>> { %5515 = vmatmul.mubr.msk.f32.vlgmr.msra.gmra.mxu0 %vm286_vm1, %v5506_v31  ;;  %5525 = vmatpush1.msk.msra.mxu1 %vm290_vm0, %v4448_v42  ;;  %v4765_v11 = vsel %vm2070_vm4, %v4759_v7, %v4761_v47 }
 0x2ac   : >>> { %5522 = vmatpush1.msk.msra.mxu0 %vm290_vm0, %v4446_v41  ;;  %4745 = vmatprep.mubr.f32.mxu1 %v5889_v63 }
 0x2ad   : >>> { %4674 = vmatprep.mubr.f32.mxu0 %v5889_v63  ;;  %5526 = vmatmul.mubr.msk.f32.vlgmr.msra.gmra.mxu1 %vm286_vm1, %v5520_v6 }
 0x2ae   : >>> { %5527 = vmatprep.subr.msk.mxu0 %vm290_vm0, %v4765_v11  ;;  %v4763_v19 = vpop.permute.xlu1 %4762  ;;  %v4757_v13 = vpop.permute.xlu0 %4756  ;;  %4910 = vmatprep.mubr.f32.mxu1 %v5889_v63 }
 0x2af   : >>> { %v4766_v59 = vsel %vm2070_vm4, %v4761_v47, %v4763_v19  ;;  %5523 = vmatmul.mubr.msk.f32.vlgmr.msra.gmra.mxu0 %vm286_vm1, %v5520_v6  ;;  %v4764_v60 = vsel %vm2070_vm4, %v4757_v13, %v4759_v7  ;;  %5530 = vmatprep.subr.msk.mxu1 %vm290_vm0, %v4763_v19 }
 0x2b0   : >>> { %5528 = vmatpush1.msk.msra.mxu0 %vm290_vm0, %v4764_v60  ;;  %5531 = vmatpush1.msk.msra.mxu1 %vm290_vm0, %v4766_v59 }
 0x2b1   : >>> { %4839 = vmatprep.mubr.f32.mxu0 %v5889_v63  ;;  %5532 = vmatmul.mubr.msk.f32.vlgmr.msra.gmra.mxu1 %vm286_vm1, %v5520_v6 }
 0x2b3   : >>> { %5529 = vmatmul.mubr.msk.f32.vlgmr.msra.gmra.mxu0 %vm286_vm1, %v5520_v6 }
 0x2d3   : >>> { %v2740_v12 = vpop.f32.mrf.mxu0 }
 0x2d4   : >>> { %v2816_v56 = vadd.f32 %v5877_v58, %v2740_v12 }
 0x2d5   : >>> { %v2811_v10 = vpop.f32.mrf.mxu1  ;;  %v2742_v14 = vpop.f32.mrf.mxu0 }
 0x2d6   : >>> { %v2818_v25 = vadd.f32 %v5869_v57, %v2811_v10  ;;  %v2817_v55 = vadd.f32 %v5873_v27, %v2742_v14 }
 0x2d7   : >>> { %v2813_v30 = vpop.f32.mrf.mxu1 }
 0x2d8   : >>> { %v2819_v45 = vadd.f32 %v5865_v53, %v2813_v30 }
 0x2d9   : >>> { %v2930_v21 = vpop.f32.mrf.mxu0 }
 0x2da   : >>> { %v3001_v20 = vpop.f32.mrf.mxu1  ;;  %v3006_v57 = vadd.f32 %v5861_v52, %v2930_v21 }
 0x2db   : >>> { %v2932_v61 = vpop.f32.mrf.mxu0  ;;  %v3008_v48 = vadd.f32 %v5853_v4, %v3001_v20 }
 0x2dc   : >>> { %v3003_v32 = vpop.f32.mrf.mxu1 }
 0x2dd   : >>> { %v3009_v10 = vadd.f32 %v5849_v26, %v3003_v32 }
 0x2de   : >>> { %v3083_v17 = vpop.f32.mrf.mxu0 }
 0x2df   : >>> { %v3154_v15 = vpop.f32.mrf.mxu1  ;;  %v3159_v44 = vadd.f32 %v3083_v17, %v2816_v56 }
 0x2e0   : >>> { %v3085_v33 = vpop.f32.mrf.mxu0  ;;  %v3161_v0 = vadd.f32 %v3154_v15, %v2818_v25  ;;  %v3007_v25 = vadd.f32 %v5857_v46, %v2932_v61 }
 0x2e1   : >>> { %v3156_v23 = vpop.f32.mrf.mxu1  ;;  %v3160_v3 = vadd.f32 %v3085_v33, %v2817_v55 }
 0x2e2   : >>> { %v3162_v43 = vadd.f32 %v3156_v23, %v2819_v45 }
 0x349   : >>> { %v3320_v34 = vpop.f32.mrf.mxu1 }
 0x34a   : >>> { %v3249_v24 = vpop.f32.mrf.mxu0  ;;  %v3327_v53 = vadd.f32 %v3320_v34, %v3008_v48 }
 0x34b   : >>> { %v3322_v35 = vpop.f32.mrf.mxu1  ;;  %v3325_v15 = vadd.f32 %v3249_v24, %v3006_v57 }
 0x34c   : >>> { %v3251_v63 = vpop.f32.mrf.mxu0  ;;  %v3328_v54 = vadd.f32 %v3322_v35, %v3009_v10 }
 0x34d   : >>> { %v3473_v36 = vpop.f32.mrf.mxu1  ;;  %v3326_v21 = vadd.f32 %v3251_v63, %v3007_v25 }
 0x34e   : >>> { %v3402_v37 = vpop.f32.mrf.mxu0  ;;  %v3480_v5 = vadd.f32 %v3473_v36, %v3161_v0 }
 0x34f   : >>> { %v3475_v18 = vpop.f32.mrf.mxu1  ;;  %v3478_v30 = vadd.f32 %v3402_v37, %v3159_v44 }
 0x350   : >>> { %v3404_v28 = vpop.f32.mrf.mxu0  ;;  %v3481_v27 = vadd.f32 %v3475_v18, %v3162_v43 }
 0x351   : >>> { %v3638_v29 = vpop.f32.mrf.mxu1  ;;  %v3479_v22 = vadd.f32 %v3404_v28, %v3160_v3 }
 0x352   : >>> { %v3645_v45 = vadd.f32 %v3638_v29, %v3327_v53 }
 0x353   : >>> { %v3567_v31 = vpop.f32.mrf.mxu0  ;;  %v3640_v9 = vpop.f32.mrf.mxu1 }
 0x354   : >>> { %v3643_v26 = vadd.f32 %v3567_v31, %v3325_v15  ;;  %v3646_v55 = vadd.f32 %v3640_v9, %v3328_v54 }
 0x355   : >>> { %v3569_v39 = vpop.f32.mrf.mxu0  ;;  %v3791_v40 = vpop.f32.mrf.mxu1 }
 0x356   : >>> { %v3798_v14 = vadd.f32 %v3791_v40, %v3480_v5  ;;  %v3644_v46 = vadd.f32 %v3569_v39, %v3326_v21 }
 0x357   : >>> { %v3720_v41 = vpop.f32.mrf.mxu0  ;;  %v3793_v42 = vpop.f32.mrf.mxu1 }
 0x358   : >>> { %v3796_v0 = vadd.f32 %v3720_v41, %v3478_v30  ;;  %v3799_v20 = vadd.f32 %v3793_v42, %v3481_v27 }
 0x359   : >>> { %v3722_v47 = vpop.f32.mrf.mxu0  ;;  %v3957_v7 = vpop.f32.mrf.mxu1 }
 0x35a   : >>> { %v3797_v32 = vadd.f32 %v3722_v47, %v3479_v22  ;;  %v3964_v44 = vadd.f32 %v3957_v7, %v3645_v45 }
 0x35b   : >>> { %v3886_v6 = vpop.f32.mrf.mxu0  ;;  %v3959_v11 = vpop.f32.mrf.mxu1 }
 0x35c   : >>> { %v3962_v61 = vadd.f32 %v3886_v6, %v3643_v26  ;;  %v3965_v33 = vadd.f32 %v3959_v11, %v3646_v55 }
 0x35d   : >>> { %v3888_v19 = vpop.f32.mrf.mxu0  ;;  %v4110_v13 = vpop.f32.mrf.mxu1 }
 0x35e   : >>> { %v4117_v52 = vadd.f32 %v4110_v13, %v3798_v14  ;;  %v3963_v63 = vadd.f32 %v3888_v19, %v3644_v46 }
 0x35f   : >>> { %v4039_v59 = vpop.f32.mrf.mxu0  ;;  %v4112_v60 = vpop.f32.mrf.mxu1 }
 0x360   : >>> { %v4115_v43 = vadd.f32 %v4039_v59, %v3796_v0  ;;  %v4118_v5 = vadd.f32 %v4112_v60, %v3799_v20 }
 0x361   : >>> { %v4041_v62 = vpop.f32.mrf.mxu0  ;;  %v4275_v50 = vpop.f32.mrf.mxu1 }
 0x362   : >>> { %v4116_v3 = vadd.f32 %v4041_v62, %v3797_v32  ;;  %v4282_v35 = vadd.f32 %v4275_v50, %v3964_v44  ;;  %v6568_v44 = vld [vmem:[#allocation5_spill] sm:$0xff] (%p2582_p5) }
 0x363   : >>> { %v4204_v2 = vpop.f32.mrf.mxu0  ;;  %v4277_v51 = vpop.f32.mrf.mxu1 }
 0x364   : >>> { %v4280_v28 = vadd.f32 %v4204_v2, %v3962_v61  ;;  %v4283_v54 = vadd.f32 %v4277_v51, %v3965_v33  ;;  %v6572_v61 = vld [vmem:[#allocation6_spill] sm:$0xff] (%p2582_p5) }
 0x365   : >>> { %v4206_v1 = vpop.f32.mrf.mxu0  ;;  %v4428_v16 = vpop.f32.mrf.mxu1  ;;  %v6573_v33 = vmax.f32 (%p2582_p5), %v6572_v61, 0.0 }
 0x366   : >>> { %v4435_v23 = vadd.f32 %v4428_v16, %v4117_v52  ;;  %v4281_v16 = vadd.f32 %v4206_v1, %v3963_v63  ;;  %v6580_v63 = vld [vmem:[#allocation8_spill] sm:$0xff] (%p2582_p5) }
 0x367   : >>> { %v4357_v58 = vpop.f32.mrf.mxu0  ;;  %v4430_v12 = vpop.f32.mrf.mxu1 }
 0x368   : >>> { %v4433_v36 = vadd.f32 %v4357_v58, %v4115_v43  ;;  %v4436_v37 = vadd.f32 %v4430_v12, %v4118_v5  ;;  %v6569_v43 = vmax.f32 (%p2582_p5), %v6568_v44, 0.0 }
 0x369   : >>> { %v4359_v4 = vpop.f32.mrf.mxu0  ;;  %v4594_v56 = vpop.f32.mrf.mxu1 }
 0x36a   : >>> { %v4434_v31 = vadd.f32 %v4359_v4, %v4116_v3  ;;  %v4601_v9 = vadd.f32 %v4594_v56, %v4282_v35  ;;  %v6574_v3 = vld [vmem:[#allocation10_spill] sm:$0xff] (%p2582_p5) }
 0x36b   : >>> { %v4523_v17 = vpop.f32.mrf.mxu0  ;;  %v4596_v48 = vpop.f32.mrf.mxu1 }
 0x36c   : >>> { %v4599_v47 = vadd.f32 %v4523_v17, %v4280_v28  ;;  %v4602_v62 = vadd.f32 %v4596_v48, %v4283_v54  ;;  %v6567_v48 = vmax.f32 (%p2582_p5), %v6217_v49, 0.0  ;;  %v6581_v28 = vmax.f32 (%p2582_p5), %v6580_v63, 0.0 }
 0x36d   : >>> { %v4525_v34 = vpop.f32.mrf.mxu0  ;;  %v4747_v24 = vpop.f32.mrf.mxu1 }
 0x36e   : >>> { %v4754_v18 = vadd.f32 %v4747_v24, %v4435_v23   ;;  %v4600_v13 = vadd.f32 %v4525_v34, %v4281_v16  ;;  %v4945_v5 = vmax.f32 (%p2582_p5), %v6569_v43, %v6567_v48  ;;  %v6570_v23 = vld [vmem:[#allocation9_spill] sm:$0xff] (%p2582_p5)  ;;  %v6575_v34 = vmax.f32 (%p2582_p5), %v6574_v3, 0.0  ;;  %v6576_v24 = vld [vmem:[#allocation7_spill] sm:$0xff] (%p2582_p5) }
 0x36f   : >>> { %v4676_v22 = vpop.f32.mrf.mxu0  ;;  %v4749_v29 = vpop.f32.mrf.mxu1  ;;  %v6577_v35 = vmax.f32 (%p2582_p5), %v6576_v24, 0.0 }
 0x370   : >>> { %v4752_v40 = vadd.f32 %v4676_v22, %v4433_v36   ;;  %v4755_v41 = vadd.f32 %v4749_v29, %v4436_v37   ;;  %v6563_v57 = vmov %v4754_v18  ;;  %v4923_v10 = vmul.f32 (%p2582_p5), %v4754_v18, %v6192_v38  ;;  %v6578_v37 = vld [vmem:[#allocation11_spill] sm:$0xff] (%p2582_p5) }
 0x371   : >>> { %v4678_v39 = vpop.f32.mrf.mxu0  ;;  %v4912_v42 = vpop.f32.mrf.mxu1  ;;  %v4947_v36 = vmax.f32 (%p2582_p5), %v6577_v35, %v6575_v34  ;;  %v6579_v18 = vmax.f32 (%p2582_p5), %v6578_v37, 0.0 }
 0x372   : >>> { %v4753_v7 = vadd.f32 %v4678_v39, %v4434_v31   ;;  %v4919_v6 = vadd.f32 %v4912_v42, %v4601_v9   ;;  %v6562_v53 = vmov %v4755_v41  ;;  %v6565_v58 = vmov %v4752_v40 }
 0x373   : >>> { %v4841_v50 = vpop.f32.mrf.mxu0  ;;  %v4914_v11 = vpop.f32.mrf.mxu1  ;;  %v4921_v1 = vmul.f32 (%p2582_p5), %v4752_v40, %v6192_v38  ;;  %v4924_v58 = vmul.f32 (%p2582_p5), %v4755_v41, %v6192_v38  ;;  %v4927_v57 = vadd.f32 (%p2582_p5), %v4923_v10, %v6202_v8  ;;  %v4948_v54 = vmax.f32 (%p2582_p5), %v6581_v28, %v6579_v18 }
 0x374   : >>> { %v4917_v59 = vadd.f32 %v4841_v50, %v4599_v47   ;;  %v4920_v19 = vadd.f32 %v4914_v11, %v4602_v62   ;;  %v6559_v4 = vmov %v4919_v6  ;;  %v6564_v27 = vmov %v4753_v7  ;;  %2584 = sbr.rel (!%p2582_p5) target bundleno = 512 (0x200), region = 130 }
 0x375   : >>> { %v4843_v2 = vpop.f32.mrf.mxu0  ;;  %v4922_v60 = vmul.f32 (%p2582_p5), %v4753_v7, %v6192_v38  ;;  %v4935_v14 = vmul.f32 (%p2582_p5), %v4919_v6, %v6192_v38  ;;  %v4925_v15 = vadd.f32 (%p2582_p5), %v4921_v1, %v6202_v8  ;;  %v4928_v53 = vadd.f32 (%p2582_p5), %v4924_v58, %v6202_v8  ;;  %v6582_v7 = vld [vmem:[#allocation4_spill] sm:$0xff] (%p2582_p5) }
 0x376   : >>> { %v4918_v51 = vadd.f32 %v4843_v2, %v4600_v13   ;;  %v6558_v26 = vmov %v4920_v19  ;;  %v6561_v52 = vmov %v4917_v59  ;;  %v4933_v12 = vmul.f32 (%p2582_p5), %v4917_v59, %v6192_v38 }
 0x377   : >> { %v4936_v25 = vmul.f32 (%p2582_p5), %v4920_v19, %v6192_v38  ;;  %v4926_v56 = vadd.f32 (%p2582_p5), %v4922_v60, %v6202_v8  ;;  %v4939_v45 = vadd.f32 (%p2582_p5), %v4935_v14, %v6202_v8  ;;  %v4929_v20 = vmax.f32 (%p2582_p5), %v4925_v15, 0.0 }
 0x378   : >>> { %v6560_v46 = vmov %v4918_v51  ;;  %v4934_v30 = vmul.f32 (%p2582_p5), %v4918_v51, %v6192_v38  ;;  %v4937_v27 = vadd.f32 (%p2582_p5), %v4933_v12, %v6202_v8  ;;  %v4931_v38 = vmax.f32 (%p2582_p5), %v4927_v57, 0.0 }
 0x379   : >> { %v4940_v0 = vadd.f32 %v4936_v25, %v6202_v8  ;;  %v4930_v52 = vmax.f32 %v4926_v56, 0.0  ;;  %v4932_v21 = vmax.f32 %v4928_v53, 0.0  ;;  %v4943_v32 = vmax.f32 %v4939_v45, 0.0 }
 0x37a   : >> { %v4938_v4 = vadd.f32 %v4934_v30, %v6202_v8  ;;  %v4941_v26 = vmax.f32 %v4937_v27, 0.0  ;;  %v6571_v46 = vmax.f32 %v6570_v23, 0.0  ;;  %v6583_v1 = vlaneseq }
 0x37b   : >> { %v4944_v17 = vmax.f32 %v4940_v0, 0.0  ;;  %v4951_v29 = vmax.f32 %v4931_v38, %v4943_v32 }
 0x37c   : >> { %v4942_v55 = vmax.f32 %v4938_v4, 0.0  ;;  %v4946_v8 = vmax.f32 %v6573_v33, %v6571_v46  ;;  %v4949_v22 = vmax.f32 %v4929_v20, %v4941_v26  ;;  %vm5035_vm5 = vcmp.lt.s32.totalorder %v6583_v1, 448 }
 0x37d   : >> { %v4952_v31 = vmax.f32 %v4932_v21, %v4944_v17  ;;  %v4955_v41 = vmax.f32 %v4947_v36, %v4951_v29 }
 0x37e   : >> { %v4950_v49 = vmax.f32 %v4930_v52, %v4942_v55  ;;  %v4953_v9 = vmax.f32 %v4945_v5, %v4949_v22 }
 0x37f   : >> { %v4956_v16 = vmax.f32 %v4948_v54, %v4952_v31 }
 0x380   : >> { %v4954_v40 = vmax.f32 %v4946_v8, %v4950_v49 }
 0x381   : >> { %v4963_v42 = vcombine.low %v4955_v41, %v4956_v16  ;;  %v4964_v62 = vcombine.high %v4955_v41, %v4956_v16 }
 0x382   : >> { %v4961_v39 = vcombine.low %v4953_v9, %v4954_v40  ;;  %v4962_v47 = vcombine.high %v4953_v9, %v4954_v40 }
 0x383   : >> { %v4985_v50 = vrot.slane %v4963_v42, %v6582_v7  ;;  %v4992_v13 = vrot.slane %v4964_v62, %v6582_v7 }
 0x384   : >> { %v4971_v6 = vrot.slane %v4961_v39, %v6582_v7  ;;  %v4978_v11 = vrot.slane %v4962_v47, %v6582_v7 }
 0x386   : >> { %v4993_v59 = vcombine.low %v4971_v6, %v4985_v50  ;;  %v4994_v19 = vcombine.high %v4971_v6, %v4985_v50  ;;  %v4995_v2 = vcombine.low %v4978_v11, %v4992_v13  ;;  %v4996_v51 = vcombine.high %v4978_v11, %v4992_v13 }
 0x388   : >> { %v5003_v60 = vrot.slane %v4993_v59, %v6582_v7  ;;  %v5017_v10 = vrot.slane %v4994_v19, %v6582_v7  ;;  %v5010_v58 = vrot.slane %v4995_v2, %v6582_v7  ;;  %v5024_v12 = vrot.slane %v4996_v51, %v6582_v7  ;;  %204 = sbr.rel (!%p202_p6) target bundleno = 16 (0x10), region = 141 }
 0x38a   : >> { %5045 = vst.msk [vmem:[%s5044_s17] ss:$8 sm:$0xf] %vm5035_vm5, %v5003_v60  ;;  %5536 = vst.msk [vmem:[%s5044_s17 + $0x700] ss:$8 sm:$0xf] %vm5035_vm5, %v5017_v10  ;;  %v5025_v30 = vcombine.high %v5003_v60, %v5003_v60  ;;  %v5026_v14 = vcombine.high %v5017_v10, %v5017_v10 }
 0x38b   : >> { %5542 = vst.msk [vmem:[%s5044_s17 + $0x1c00] ss:$8 sm:$0xf] %vm5035_vm5, %v5010_v58  ;;  %5544 = vst.msk [vmem:[%s5044_s17 + $0x2300] ss:$8 sm:$0xf] %vm5035_vm5, %v5024_v12 }
 0x38c   : >> { %5538 = vst.msk [vmem:[%s5044_s17 + $0xe00] ss:$8 sm:$0xf] %vm5035_vm5, %v5025_v30  ;;  %5540 = vst.msk [vmem:[%s5044_s17 + $0x1500] ss:$8 sm:$0xf] %vm5035_vm5, %v5026_v14 }
 0x38d PF: > { %s14_s15 = sadd.s32 1, %s5805_s15  }
 0x38e   : > { %p11_p7 = scmp.ge.s32.totalorder %s14_s15, 4  }
 0x390   :  { %13 = sbr.rel (!%p11_p7) target bundleno = 1 (0x1), region = 152 }

// kernel: forward.8
= control target key start
LH: loop header
LB: loop body
LE: loop exit
PB: predicated region body
PF: predicated region fallthrough
CT: control target
= control target key end

     0   :  { %s4278_s15 = smov 0   ;;  %s4888_s0 = inlined_call_operand.vmem [shape: f32[2,2,6,454,227], index: 0, kind: input, shape index: {}]   ;;  %s4889_s1 = inlined_call_operand.vmem [shape: f32[49,12,6], index: 1, kind: input, shape index: {}]   ;;  %s4890_s2 = inlined_call_operand.vmem [shape: f32[12,1], index: 2, kind: input, shape index: {}]   ;;  %s4891_s3 = inlined_call_operand.vmem [shape: f32[12,1], index: 3, kind: input, shape index: {}]   ;;  %s4892_s4 = inlined_call_operand.vmem [shape: f32[2,12,224,224], index: 4, kind: output, shape index: {}]  }
   0x1 LB: > { %s3673_s16 = sadd.s32 4294967295, %s4165_s15   ;;  %p3677_p0 = scmp.ge.s32.totalorder %s4165_s15, 1  ;;  %s4165_s15 = sphi %s4278_s15, %s14_s15  }
   0x2   : > { %p162_p1 = scmp.lt.s32.totalorder %s4165_s15, 3 }
   0x4   : > { %p163_p2 = pnand %p3677_p0, %p162_p1 }
   0x5   : > { %p188_p3 = scmp.lt.s32.totalorder (!%p163_p2), %s3673_s16, 1  ;;  %s4316_s7 = smov (!%p163_p2), 0  }
   0x6   : > { %166 = sbr.rel (%p163_p2) target bundleno = 909 (0x38d), region = 36 }
   0xb   : > { %v4289_v0 = vld [vmem:[%s4890_s2] sm:$0xff]  ;;  %v4294_v1 = vld [vmem:[%s4890_s2 + $0x8] sm:$0xf]  ;;  %s4964_s16 = smov (!%p188_p3, %s3673_s16), 1 }
   0xc   : > { %4908 = vst [vmem:[#allocation2_spill] sm:$0xff] %v4289_v0  ;;  %4909 = vst [vmem:[#allocation3_spill] sm:$0xff] %v4294_v1  ;;  %v4299_v2 = vld [vmem:[%s4891_s3] sm:$0xff]  ;;  %v4304_v3 = vld [vmem:[%s4891_s3 + $0x8] sm:$0xf]  ;;  %s3909_s25 = smul.u32 10944, %s4964_s16 }
   0xd   : > { %4910 = vst [vmem:[#allocation4_spill] sm:$0xff] %v4299_v2  ;;  %4911 = vst [vmem:[#allocation5_spill] sm:$0xff] %v4304_v3  ;;  %s3910_s26 = smul.u32 5376, %s4964_s16 }
   0xe   : > { %s4309_s29 = scalar_lea.vmem %s4888_s0, %s3909_s25 }
   0xf   : > { %s4314_s6 = scalar_lea.vmem %s4892_s4, %s3910_s26 }
  0x10 LB: >> { %v4321_v4 = vmov 0.0   ;;  %v4323_v5 = vmov 0.0   ;;  %v4325_v6 = vmov 0.0   ;;  %v4327_v7 = vmov 0.0   ;;  %s4337_s8 = smov 0   ;;  %s4169_s7 = sphi %s4316_s7, %s207_s7  }
  0x11   : >> { %v4329_v8 = vmov 0.0   ;;  %v4331_v9 = vmov 0.0   ;;  %v4333_v10 = vmov 0.0   ;;  %v4335_v11 = vmov 0.0  }
  0x12 LB: >>> { %s3680_s9 = sshll.u32 %s4169_s7, 1  ;;  %v4893_v12 = vlaneseq  ;;  %v4243_v13 = vmov 1966171168   ;;  %v4244_v15 = vmov 0.0   ;;  %s3705_s17 = smul.u32 112, %s4205_s8  ;;  %vm341_vm0 = vcmask 1045504   ;;  %s4205_s8 = sphi %s4337_s8, %s213_s8   ;;  %v4201_v11 = vphi %v4335_v11, %v4920_v11   ;;  %v4197_v10 = vphi %v4333_v10, %v4919_v10   ;;  %v4193_v9 = vphi %v4331_v9, %v4918_v9   ;;  %v4189_v8 = vphi %v4329_v8, %v4917_v8   ;;  %v4185_v7 = vphi %v4327_v7, %v4916_v7   ;;  %v4181_v6 = vphi %v4325_v6, %v4915_v6   ;;  %v4177_v5 = vphi %v4323_v5, %v4914_v5   ;;  %v4173_v4 = vphi %v4321_v4, %v4913_v4  }
  0x13   : >>> { %v281_v14 = vunpack.c.l.s4 %v4243_v13  ;;  %410 = vmatprep.mubr.f32.mxu0 %v4244_v15  ;;  %558 = vmatprep.mubr.f32.mxu1 %v4244_v15  ;;  %s223_s10 = sadd.s32 %s4205_s8, %s3680_s9  ;;  %s4245_s21 = smov 127   ;;  %vm334_vm1 = vcmask 48128   ;;  %vm671_vm2 = vcmask 1039360   ;;  %vm1036_vm3 = vcmask 1031168  }
  0x14   : >>> { %v284_v16 = vshrl.u32 %v4893_v12, 7  ;;  %s224_s11 = sshra.s32 %s223_s10, 3  ;;  %s227_s12 = sand.u32 7, %s223_s10  ;;  %vm1401_vm4 = vcmask 1022976  }
  0x15   : >>> { %v282_v17 = vunpack.c.0.s8 %v281_v14  ;;  %s3906_s13 = sshll.u32 %s224_s11, 4  ;;  %s4392_s20 = scalar_lea.vmem %s4889_s1, %s3705_s17 }
  0x16   : >>> { %s230_s14 = sadd.s32 %s3906_s13, %s227_s12  ;;  %v269_v59 = vld [vmem:[%s4392_s20] sm:$0xff]  ;;  %v270_v62 = vld [vmem:[%s4392_s20 + $0x8] sm:$0xf]  ;;  %s4246_s22 = smov 126   ;;  %v3715_v63 = vld [vmem:[%s4392_s20 + $0x10] sm:$0xff] }
  0x17   : >>> { %s231_s16 = scalar_lea.vmem %s4309_s29, %s230_s14  ;;  %v4374_v18 = vsub.s32 %v282_v17, %v284_v16  ;;  %v3716_v13 = vld [vmem:[%s4392_s20 + $0x18] sm:$0xf]  ;;  %s4247_s23 = smov 125  }
  0x18   : >>> { %v232_v19 = vld [vmem:[%s231_s16] ss:$8 sm:$0x3]  ;;  %v3684_v20 = vld [vmem:[%s231_s16 + $0x390] ss:$8 sm:$0x3] }
  0x19   : >>> { %4912 = vst [vmem:[#allocation6_spill] sm:$0xff] %v4374_v18  ;;  %v3686_v21 = vld [vmem:[%s231_s16 + $0x720] ss:$8 sm:$0x3]  ;;  %v277_v23 = vcombine.low %v232_v19, %v3684_v20  ;;  %s213_s8 = sadd.s32 1, %s4205_s8  }
  0x1a   : >>> { %v3688_v22 = vld [vmem:[%s231_s16 + $0xab0] ss:$8 sm:$0x3]  ;;  %v3690_v24 = vld [vmem:[%s231_s16 + $0xe40] ss:$8 sm:$0x3] }
  0x1b   : >>> { %v3692_v25 = vld [vmem:[%s231_s16 + $0x11d0] ss:$8 sm:$0x3]  ;;  %v278_v26 = vcombine.low %v3686_v21, %v3688_v22  ;;  %v286_v28 = vrot.slane %v277_v23, %v4374_v18  ;;  %v3694_v29 = vld [vmem:[%s231_s16 + $0x1560] ss:$8 sm:$0x3] }
  0x1c   : >>> { %v279_v27 = vcombine.low %v3690_v24, %v3692_v25  ;;  %v3696_v30 = vld [vmem:[%s231_s16 + $0x18f0] ss:$8 sm:$0x3]  ;;  %v3698_v32 = vld [vmem:[%s231_s16 + $0x1c80] ss:$8 sm:$0x3] }
  0x1d   : >>> { %v293_v31 = vrot.slane %v278_v26, %v4374_v18  ;;  %v3700_v33 = vld [vmem:[%s231_s16 + $0x2010] ss:$8 sm:$0x3]  ;;  %v433_v34 = vcombine.low %v3694_v29, %v3696_v30  ;;  %v3702_v36 = vld [vmem:[%s231_s16 + $0x23a0] ss:$8 sm:$0x3] }
  0x1e   : >>> { %v300_v35 = vrot.slane %v279_v27, %v4374_v18  ;;  %v3704_v37 = vld [vmem:[%s231_s16 + $0x2730] ss:$8 sm:$0x3]  ;;  %v434_v38 = vcombine.low %v3698_v32, %v3700_v33  ;;  %v3726_v19 = vld [vmem:[%s4392_s20 + $0x20] sm:$0xff]  ;;  %v3727_v23 = vld [vmem:[%s4392_s20 + $0x28] sm:$0xf] }
  0x1f   : >>> { %v301_v39 = vcombine.low %v286_v28, %v293_v31  ;;  %v435_v40 = vcombine.low %v3702_v36, %v3704_v37  ;;  %v442_v41 = vrot.slane %v433_v34, %v4374_v18  ;;  %v302_v42 = vcombine.high %v286_v28, %v293_v31  ;;  %v3737_v26 = vld [vmem:[%s4392_s20 + $0x30] sm:$0xff]  ;;  %v3738_v29 = vld [vmem:[%s4392_s20 + $0x38] sm:$0xf]  ;;  %v3748_v31 = vld [vmem:[%s4392_s20 + $0x40] sm:$0xff]  ;;  %p210_p4 = scmp.ge.s32.totalorder %s213_s8, 7  }
  0x20   : >>> { %v324_v43 = vrot.slane %v300_v35, %v4374_v18  ;;  %v449_v44 = vrot.slane %v434_v38, %v4374_v18  ;;  %v303_v45 = vcombine.high %v300_v35, %v300_v35  ;;  %v3749_v34 = vld [vmem:[%s4392_s20 + $0x48] sm:$0xf]  ;;  %v3759_v36 = vld [vmem:[%s4392_s20 + $0x50] sm:$0xff]  ;;  %v4922_v0 = vld [vmem:[#allocation2_spill] sm:$0xff] (%p210_p4)  ;;  %s4607_s24 = smov (%p210_p4), 0  }
  0x21   : >>> { %v310_v46 = vrot.slane %v301_v39, %v4374_v18  ;;  %v456_v47 = vrot.slane %v435_v40, %v4374_v18  ;;  %v317_v48 = vrot.slane %v302_v42, %v4374_v18  ;;  %v3760_v39 = vld [vmem:[%s4392_s20 + $0x58] sm:$0xf]  ;;  %v4921_v2 = vld [vmem:[#allocation4_spill] sm:$0xff] (%p210_p4)  ;;  %v4924_v1 = vld [vmem:[#allocation3_spill] sm:$0xff] (%p210_p4) }
  0x22   : >>> { %v457_v49 = vcombine.low %v442_v41, %v449_v44  ;;  %v331_v50 = vrot.slane %v303_v45, %v4374_v18  ;;  %v458_v51 = vcombine.high %v442_v41, %v449_v44  ;;  %v3770_v41 = vld [vmem:[%s4392_s20 + $0x60] sm:$0xff]  ;;  %v4923_v3 = vld [vmem:[#allocation5_spill] sm:$0xff] (%p210_p4) }
  0x23   : >>> { %v332_v52 = vcombine.low %v310_v46, %v324_v43  ;;  %v480_v53 = vrot.slane %v456_v47, %v4374_v18  ;;  %v459_v54 = vcombine.high %v456_v47, %v456_v47  ;;  %v3771_v43 = vld [vmem:[%s4392_s20 + $0x68] sm:$0xf] }
  0x24   : >>> { %v466_v55 = vrot.slane %v457_v49, %v4374_v18  ;;  %v333_v56 = vcombine.low %v317_v48, %v331_v50  ;;  %v473_v57 = vrot.slane %v458_v51, %v4374_v18 }
  0x25   : >>> { %667 = vrot.lane.b32.xlu0 %v332_v52, %s4245_s21  ;;  %v487_v58 = vrot.slane %v459_v54, %v4374_v18 }
  0x26   : >>> { %v488_v60 = vcombine.low %v466_v55, %v480_v53  ;;  %3706 = vmatprep.subr.msk.mxu0 %vm341_vm0, %v333_v56 }
  0x27   : >>> { %3707 = vmatpush1.msk.msra.mxu0 %vm341_vm0, %v332_v52  ;;  %v489_v61 = vcombine.low %v473_v57, %v487_v58 }
  0x28   : >>> { %850 = vrot.lane.b32.xlu1 %v488_v60, %s4245_s21  ;;  %3708 = vmatmul.mubr.msk.f32.vlgmr.msra.gmra.mxu0 %vm334_vm1, %v269_v59 }
  0x29   : >>> { %669 = vrot.lane.b32.xlu0 %v333_v56, %s4245_s21  ;;  %416 = vmatprep.mubr.f32.mxu0 %v4244_v15 }
  0x2a   : >>> { %3710 = vmatprep.subr.msk.mxu1 %vm341_vm0, %v489_v61  ;;  %3717 = vmatprep.subr.msk.mxu0 %vm341_vm0, %v489_v61 }
  0x2b   : >>> { %3711 = vmatpush1.msk.msra.mxu1 %vm341_vm0, %v488_v60  ;;  %3718 = vmatpush1.msk.msra.mxu0 %vm341_vm0, %v488_v60 }
  0x2c   : >>> { %852 = vrot.lane.b32.xlu1 %v489_v61, %s4245_s21  ;;  %3709 = vmatmul.mubr.msk.f32.gmra.mxu0 %vm334_vm1, %v270_v62 }
  0x2d   : >>> { %1032 = vrot.lane.b32.xlu0 %v332_v52, %s4246_s22  ;;  %650 = vmatprep.mubr.f32.mxu0 %v4244_v15 }
  0x2e   : >>> { %3712 = vmatmul.mubr.msk.f32.vlgmr.msra.gmra.mxu1 %vm334_vm1, %v269_v59 }
  0x2f   : >>> { %564 = vmatprep.mubr.f32.mxu1 %v4244_v15 }
  0x30   : >>> { %1034 = vrot.lane.b32.xlu1 %v333_v56, %s4246_s22  ;;  %3719 = vmatmul.mubr.msk.f32.vlgmr.msra.gmra.mxu0 %vm334_vm1, %v3715_v63 }
  0x31   : >>> { %1215 = vrot.lane.b32.xlu0 %v488_v60, %s4246_s22  ;;  %656 = vmatprep.mubr.f32.mxu0 %v4244_v15 }
  0x32   : >>> { %3713 = vmatmul.mubr.msk.f32.gmra.mxu1 %vm334_vm1, %v270_v62 }
  0x33   : >>> { %741 = vmatprep.mubr.f32.mxu1 %v4244_v15 }
  0x34   : >>> { %1217 = vrot.lane.b32.xlu1 %v489_v61, %s4246_s22  ;;  %3720 = vmatmul.mubr.msk.f32.gmra.mxu0 %vm334_vm1, %v3716_v13 }
  0x35   : >>> { %1397 = vrot.lane.b32.xlu0 %v332_v52, %s4247_s23  ;;  %833 = vmatprep.mubr.f32.mxu0 %v4244_v15 }
  0x38   : >>> { %1399 = vrot.lane.b32.xlu1 %v333_v56, %s4247_s23 }
  0x39   : >>> { %1580 = vrot.lane.b32.xlu0 %v488_v60, %s4247_s23 }
  0x3c   : >>> { %1582 = vrot.lane.b32.xlu1 %v489_v61, %s4247_s23 }
  0x97   : >>> { %v668_v14 = vpop.permute.xlu0 %667 }
  0x9a   : >>> { %v851_v16 = vpop.permute.xlu1 %850 }
  0x9b   : >>> { %v670_v17 = vpop.permute.xlu0 %669 }
  0x9c   : >>> { %v672_v20 = vsel %vm671_vm2, %v668_v14, %v670_v17  ;;  %3721 = vmatprep.subr.msk.mxu1 %vm341_vm0, %v670_v17  ;;  %3728 = vmatprep.subr.msk.mxu0 %vm341_vm0, %v670_v17 }
  0x9d   : >>> { %3722 = vmatpush1.msk.msra.mxu1 %vm341_vm0, %v672_v20  ;;  %3729 = vmatpush1.msk.msra.mxu0 %vm341_vm0, %v672_v20 }
  0x9e   : >>> { %3723 = vmatmul.mubr.msk.f32.vlgmr.msra.gmra.mxu1 %vm334_vm1, %v3715_v63  ;;  %3730 = vmatmul.mubr.msk.f32.vlgmr.msra.gmra.mxu0 %vm334_vm1, %v3726_v19  ;;  %v853_v21 = vpop.permute.xlu1 %852 }
  0x9f   : >>> { %v854_v22 = vsel %vm671_vm2, %v851_v16, %v853_v21  ;;  %3732 = vmatprep.subr.msk.mxu1 %vm341_vm0, %v853_v21  ;;  %3739 = vmatprep.subr.msk.mxu0 %vm341_vm0, %v853_v21  ;;  %v1033_v25 = vpop.permute.xlu0 %1032 }
  0xa0   : >>> { %747 = vmatprep.mubr.f32.mxu1 %v4244_v15  ;;  %839 = vmatprep.mubr.f32.mxu0 %v4244_v15 }
  0xa1   : >>> { %3733 = vmatpush1.msk.msra.mxu1 %vm341_vm0, %v854_v22  ;;  %3740 = vmatpush1.msk.msra.mxu0 %vm341_vm0, %v854_v22 }
  0xa2   : >>> { %3724 = vmatmul.mubr.msk.f32.gmra.mxu1 %vm334_vm1, %v3716_v13  ;;  %3731 = vmatmul.mubr.msk.f32.gmra.mxu0 %vm334_vm1, %v3727_v23  ;;  %v1035_v24 = vpop.permute.xlu1 %1034 }
  0xa3   : >>> { %923 = vmatprep.mubr.f32.mxu1 %v4244_v15  ;;  %1015 = vmatprep.mubr.f32.mxu0 %v4244_v15  ;;  %v1037_v27 = vsel %vm1036_vm3, %v1033_v25, %v1035_v24  ;;  %v1216_v30 = vpop.permute.xlu0 %1215 }
  0xa4   : >>> { %3743 = vmatprep.subr.msk.mxu1 %vm341_vm0, %v1035_v24  ;;  %3750 = vmatprep.subr.msk.mxu0 %vm341_vm0, %v1035_v24 }
  0xa6   : >>> { %3734 = vmatmul.mubr.msk.f32.vlgmr.msra.gmra.mxu1 %vm334_vm1, %v3726_v19  ;;  %3741 = vmatmul.mubr.msk.f32.vlgmr.msra.gmra.mxu0 %vm334_vm1, %v3737_v26  ;;  %v1218_v28 = vpop.permute.xlu1 %1217 }
  0xa7   : >>> { %929 = vmatprep.mubr.f32.mxu1 %v4244_v15  ;;  %1021 = vmatprep.mubr.f32.mxu0 %v4244_v15  ;;  %v1219_v32 = vsel %vm1036_vm3, %v1216_v30, %v1218_v28  ;;  %v1398_v35 = vpop.permute.xlu0 %1397 }
  0xa8   : >>> { %3744 = vmatpush1.msk.msra.mxu1 %vm341_vm0, %v1037_v27  ;;  %3751 = vmatpush1.msk.msra.mxu0 %vm341_vm0, %v1037_v27 }
  0xa9   : >>> { %3754 = vmatprep.subr.msk.mxu1 %vm341_vm0, %v1218_v28  ;;  %3761 = vmatprep.subr.msk.mxu0 %vm341_vm0, %v1218_v28 }
  0xaa   : >>> { %3735 = vmatmul.mubr.msk.f32.gmra.mxu1 %vm334_vm1, %v3727_v23  ;;  %3742 = vmatmul.mubr.msk.f32.gmra.mxu0 %vm334_vm1, %v3738_v29  ;;  %v1400_v33 = vpop.permute.xlu1 %1399 }
  0xab   : >>> { %1106 = vmatprep.mubr.f32.mxu1 %v4244_v15  ;;  %1198 = vmatprep.mubr.f32.mxu0 %v4244_v15  ;;  %v1402_v37 = vsel %vm1401_vm4, %v1398_v35, %v1400_v33  ;;  %v1581_v40 = vpop.permute.xlu0 %1580 }
  0xae   : >>> { %3745 = vmatmul.mubr.msk.f32.vlgmr.msra.gmra.mxu1 %vm334_vm1, %v3737_v26  ;;  %3752 = vmatmul.mubr.msk.f32.vlgmr.msra.gmra.mxu0 %vm334_vm1, %v3748_v31  ;;  %v1583_v38 = vpop.permute.xlu1 %1582 }
  0xaf   : >>> { %1112 = vmatprep.mubr.f32.mxu1 %v4244_v15  ;;  %1204 = vmatprep.mubr.f32.mxu0 %v4244_v15  ;;  %v1584_v42 = vsel %vm1401_vm4, %v1581_v40, %v1583_v38 }
  0xb0   : >>> { %3755 = vmatpush1.msk.msra.mxu1 %vm341_vm0, %v1219_v32  ;;  %3762 = vmatpush1.msk.msra.mxu0 %vm341_vm0, %v1219_v32 }
  0xb1   : >>> { %3765 = vmatprep.subr.msk.mxu1 %vm341_vm0, %v1400_v33  ;;  %3772 = vmatprep.subr.msk.mxu0 %vm341_vm0, %v1400_v33 }
  0xb2   : >>> { %3746 = vmatmul.mubr.msk.f32.gmra.mxu1 %vm334_vm1, %v3738_v29  ;;  %3753 = vmatmul.mubr.msk.f32.gmra.mxu0 %vm334_vm1, %v3749_v34 }
  0xb3   : >>> { %1288 = vmatprep.mubr.f32.mxu1 %v4244_v15  ;;  %1380 = vmatprep.mubr.f32.mxu0 %v4244_v15 }
  0xb6   : >>> { %3756 = vmatmul.mubr.msk.f32.vlgmr.msra.gmra.mxu1 %vm334_vm1, %v3748_v31  ;;  %3763 = vmatmul.mubr.msk.f32.vlgmr.msra.gmra.mxu0 %vm334_vm1, %v3759_v36 }
  0xb7   : >>> { %1294 = vmatprep.mubr.f32.mxu1 %v4244_v15  ;;  %1386 = vmatprep.mubr.f32.mxu0 %v4244_v15 }
  0xb8   : >>> { %3766 = vmatpush1.msk.msra.mxu1 %vm341_vm0, %v1402_v37  ;;  %3773 = vmatpush1.msk.msra.mxu0 %vm341_vm0, %v1402_v37 }
  0xb9   : >>> { %3776 = vmatprep.subr.msk.mxu1 %vm341_vm0, %v1583_v38 }
  0xba   : >>> { %3757 = vmatmul.mubr.msk.f32.gmra.mxu1 %vm334_vm1, %v3749_v34  ;;  %3764 = vmatmul.mubr.msk.f32.gmra.mxu0 %vm334_vm1, %v3760_v39 }
  0xbb   : >>> { %1471 = vmatprep.mubr.f32.mxu1 %v4244_v15  ;;  %1563 = vmatprep.mubr.f32.mxu0 %v4244_v15 }
  0xbe   : >>> { %3767 = vmatmul.mubr.msk.f32.vlgmr.msra.gmra.mxu1 %vm334_vm1, %v3759_v36  ;;  %3774 = vmatmul.mubr.msk.f32.vlgmr.msra.gmra.mxu0 %vm334_vm1, %v3770_v41 }
  0xbf   : >>> { %1477 = vmatprep.mubr.f32.mxu1 %v4244_v15  ;;  %1569 = vmatprep.mubr.f32.mxu0 %v4244_v15 }
  0xc0   : >>> { %3777 = vmatpush1.msk.msra.mxu1 %vm341_vm0, %v1584_v42 }
  0xc2   : >>> { %3768 = vmatmul.mubr.msk.f32.gmra.mxu1 %vm334_vm1, %v3760_v39  ;;  %3775 = vmatmul.mubr.msk.f32.gmra.mxu0 %vm334_vm1, %v3771_v43 }
  0xc3   : >>> { %1653 = vmatprep.mubr.f32.mxu1 %v4244_v15 }
  0xc6   : >>> { %3778 = vmatmul.mubr.msk.f32.vlgmr.msra.gmra.mxu1 %vm334_vm1, %v3770_v41 }
  0xc7   : >>> { %1659 = vmatprep.mubr.f32.mxu1 %v4244_v15 }
  0xca   : >>> { %3779 = vmatmul.mubr.msk.f32.gmra.mxu1 %vm334_vm1, %v3771_v43 }
  0xe8   : >>> { %v412_v44 = vpop.f32.mrf.mxu0 }
  0xe9   : >>> { %v423_v26 = vadd.f32 %v4201_v11, %v412_v44 }
  0xea   : >>> { %v414_v45 = vpop.f32.mrf.mxu0 }
  0xeb   : >>> { %v424_v29 = vadd.f32 %v4197_v10, %v414_v45 }
  0xec   : >>> { %v418_v46 = vpop.f32.mrf.mxu0 }
  0xed   : >>> { %v425_v32 = vadd.f32 %v4193_v9, %v418_v46 }
  0xee   : >>> { %v420_v47 = vpop.f32.mrf.mxu0  ;;  %v560_v49 = vpop.f32.mrf.mxu1 }
  0xef   : >>> { %v426_v36 = vadd.f32 %v4189_v8, %v420_v47  ;;  %v571_v43 = vadd.f32 %v4185_v7, %v560_v49 }
  0xf0   : >>> { %v652_v48 = vpop.f32.mrf.mxu0  ;;  %v562_v51 = vpop.f32.mrf.mxu1 }
  0xf1   : >>> { %v663_v33 = vadd.f32 %v652_v48, %v423_v26  ;;  %v572_v46 = vadd.f32 %v4181_v6, %v562_v51 }
  0xf2   : >>> { %v654_v50 = vpop.f32.mrf.mxu0  ;;  %v566_v53 = vpop.f32.mrf.mxu1 }
  0xf3   : >>> { %v664_v37 = vadd.f32 %v654_v50, %v424_v29 }
  0xf4   : >>> { %v658_v52 = vpop.f32.mrf.mxu0  ;;  %v4500_v55 = vpop.f32.mrf.mxu1 }
  0xf5   : >>> { %v665_v41 = vadd.f32 %v658_v52, %v425_v32  ;;  %v573_v52 = vadd.f32 %v4177_v5, %v566_v53  ;;  %v574_v6 = vadd.f32 %v4173_v4, %v4500_v55 }
  0xf6   : >>> { %v660_v54 = vpop.f32.mrf.mxu0 }
  0xf7   : >>> { %v666_v45 = vadd.f32 %v660_v54, %v426_v36 }
 0x15e   : >>> { %v743_v56 = vpop.f32.mrf.mxu1  ;;  %v835_v57 = vpop.f32.mrf.mxu0 }
 0x15f   : >>> { %v846_v38 = vadd.f32 %v835_v57, %v663_v33  ;;  %v754_v48 = vadd.f32 %v743_v56, %v571_v43 }
 0x160   : >>> { %v745_v58 = vpop.f32.mrf.mxu1  ;;  %v837_v59 = vpop.f32.mrf.mxu0 }
 0x161   : >>> { %v847_v11 = vadd.f32 %v837_v59, %v664_v37  ;;  %v755_v59 = vadd.f32 %v745_v58, %v572_v46 }
 0x162   : >>> { %v749_v15 = vpop.f32.mrf.mxu1  ;;  %v841_v60 = vpop.f32.mrf.mxu0 }
 0x163   : >>> { %v848_v12 = vadd.f32 %v841_v60, %v665_v41  ;;  %v756_v51 = vadd.f32 %v749_v15, %v573_v52 }
 0x164   : >>> { %v4502_v61 = vpop.f32.mrf.mxu1  ;;  %v843_v62 = vpop.f32.mrf.mxu0 }
 0x165   : >>> { %v849_v47 = vadd.f32 %v843_v62, %v666_v45  ;;  %v757_v5 = vadd.f32 %v4502_v61, %v574_v6 }
 0x166   : >>> { %v925_v63 = vpop.f32.mrf.mxu1  ;;  %v1017_v13 = vpop.f32.mrf.mxu0 }
 0x167   : >>> { %v1028_v42 = vadd.f32 %v1017_v13, %v846_v38  ;;  %v936_v13 = vadd.f32 %v925_v63, %v754_v48 }
 0x168   : >>> { %v927_v14 = vpop.f32.mrf.mxu1  ;;  %v1019_v16 = vpop.f32.mrf.mxu0 }
 0x169   : >>> { %v1029_v18 = vadd.f32 %v1019_v16, %v847_v11  ;;  %v937_v56 = vadd.f32 %v927_v14, %v755_v59 }
 0x16a   : >>> { %v931_v17 = vpop.f32.mrf.mxu1  ;;  %v1023_v19 = vpop.f32.mrf.mxu0 }
 0x16b   : >>> { %v1030_v50 = vadd.f32 %v1023_v19, %v848_v12  ;;  %v938_v53 = vadd.f32 %v931_v17, %v756_v51 }
 0x16c   : >>> { %v4504_v20 = vpop.f32.mrf.mxu1  ;;  %v1025_v21 = vpop.f32.mrf.mxu0 }
 0x16d   : >>> { %v1031_v32 = vadd.f32 %v1025_v21, %v849_v47  ;;  %v939_v36 = vadd.f32 %v4504_v20, %v757_v5 }
 0x16e   : >>> { %v1108_v22 = vpop.f32.mrf.mxu1  ;;  %v1200_v23 = vpop.f32.mrf.mxu0 }
 0x16f   : >>> { %v1211_v9 = vadd.f32 %v1200_v23, %v1028_v42  ;;  %v1119_v12 = vadd.f32 %v1108_v22, %v936_v13 }
 0x170   : >>> { %v1110_v24 = vpop.f32.mrf.mxu1  ;;  %v1202_v25 = vpop.f32.mrf.mxu0 }
 0x171   : >>> { %v1212_v57 = vadd.f32 %v1202_v25, %v1029_v18  ;;  %v1120_v21 = vadd.f32 %v1110_v24, %v937_v56 }
 0x172   : >>> { %v1114_v27 = vpop.f32.mrf.mxu1  ;;  %v1206_v28 = vpop.f32.mrf.mxu0 }
 0x173   : >>> { %v1213_v54 = vadd.f32 %v1206_v28, %v1030_v50  ;;  %v1121_v15 = vadd.f32 %v1114_v27, %v938_v53  ;;  %v4248_v27 = vmov (%p210_p4), 0   ;;  %v4597_v53 = vmov (%p210_p4), 0.0  }
 0x174   : >>> { %v4508_v30 = vpop.f32.mrf.mxu1  ;;  %v1208_v31 = vpop.f32.mrf.mxu0  ;;  %4082 = vset.pattern.permute.xlu1 (%p210_p4), %v4248_v27  ;;  %4081 = vset.pattern.permute.xlu0 (%p210_p4), %v4248_v27 }
 0x175   : >>> { %v1214_v18 = vadd.f32 %v1208_v31, %v1031_v32  ;;  %v1122_v38 = vadd.f32 %v4508_v30, %v939_v36  ;;  %1686 = vperm.xlu1 (%p210_p4), %4082, %v4921_v2   ;;  %1672 = vperm.xlu0 (%p210_p4), %4081, %v4922_v0  }
 0x176   : >>> { %v1290_v34 = vpop.f32.mrf.mxu1  ;;  %v1382_v35 = vpop.f32.mrf.mxu0 }
 0x177   : >>> { %v1393_v29 = vadd.f32 %v1382_v35, %v1211_v9  ;;  %v1301_v28 = vadd.f32 %v1290_v34, %v1119_v12 }
 0x178   : >>> { %v1292_v39 = vpop.f32.mrf.mxu1  ;;  %v1384_v40 = vpop.f32.mrf.mxu0 }
 0x179   : >>> { %v1394_v60 = vadd.f32 %v1384_v40, %v1212_v57  ;;  %v1302_v14 = vadd.f32 %v1292_v39, %v1120_v21  ;;  %1691 = vperm.xlu1 (%p210_p4), %4082, %v4923_v3   ;;  %1677 = vperm.xlu0 (%p210_p4), %4081, %v4924_v1   ;;  %v4603_v21 = vmov (%p210_p4), 0.0  }
 0x17a   : >>> { %v1296_v10 = vpop.f32.mrf.mxu1  ;;  %v1388_v44 = vpop.f32.mrf.mxu0 }
 0x17b   : >>> { %v1395_v19 = vadd.f32 %v1388_v44, %v1213_v54  ;;  %v1303_v40 = vadd.f32 %v1296_v10, %v1121_v15 }
 0x17c   : >>> { %v1298_v26 = vpop.f32.mrf.mxu1  ;;  %v1390_v8 = vpop.f32.mrf.mxu0 }
 0x17d   : >>> { %v1396_v33 = vadd.f32 %v1390_v8, %v1214_v18  ;;  %v1304_v11 = vadd.f32 %v1298_v26, %v1122_v38 }
 0x17e   : >>> { %v1473_v7 = vpop.f32.mrf.mxu1  ;;  %v1565_v49 = vpop.f32.mrf.mxu0 }
 0x17f   : >>> { %v1576_v16 = vadd.f32 %v1565_v49, %v1393_v29   ;;  %v1484_v37 = vadd.f32 %v1473_v7, %v1301_v28  ;;  %v4605_v28 = vmov (%p210_p4), 0.0  }
 0x180   : >>> { %v1475_v23 = vpop.f32.mrf.mxu1  ;;  %v1567_v62 = vpop.f32.mrf.mxu0 }
 0x181   : >>> { %v1577_v25 = vadd.f32 %v1567_v62, %v1394_v60   ;;  %v1485_v61 = vadd.f32 %v1475_v23, %v1302_v14 }
 0x182   : >>> { %v1479_v58 = vpop.f32.mrf.mxu1  ;;  %v1571_v63 = vpop.f32.mrf.mxu0 }
 0x183   : >>> { %v1578_v35 = vadd.f32 %v1571_v63, %v1395_v19   ;;  %v1486_v24 = vadd.f32 %v1479_v58, %v1303_v40  ;;  %v4919_v10 = vmov %v1577_v25  ;;  %v4591_v19 = vmov (%p210_p4), 0.0  }
 0x184   : >>> { %v1481_v4 = vpop.f32.mrf.mxu1  ;;  %v1573_v55 = vpop.f32.mrf.mxu0  ;;  %v4599_v58 = vmov (%p210_p4), 0.0   ;;  %v4601_v63 = vmov (%p210_p4), 0.0  }
 0x185   : >>> { %v1579_v22 = vadd.f32 %v1573_v55, %v1396_v33   ;;  %v1487_v43 = vadd.f32 %v1481_v4, %v1304_v11  ;;  %v4918_v9 = vmov %v1578_v35  ;;  %v4920_v11 = vmov %v1576_v16 }
 0x186   : >>> { %v1655_v31 = vpop.f32.mrf.mxu1 }
 0x187   : >>> { %v1666_v17 = vadd.f32 %v1655_v31, %v1484_v37   ;;  %v4917_v8 = vmov %v1579_v22 }
 0x188   : >>> { %v1657_v41 = vpop.f32.mrf.mxu1 }
 0x189   : >>> { %v1667_v34 = vadd.f32 %v1657_v41, %v1485_v61   ;;  %v4916_v7 = vmov %v1666_v17 }
 0x18a   : >>> { %v1661_v42 = vpop.f32.mrf.mxu1 }
 0x18b   : >>> { %v1668_v44 = vadd.f32 %v1661_v42, %v1486_v24   ;;  %v4915_v6 = vmov %v1667_v34  ;;  %212 = sbr.rel (!%p210_p4) target bundleno = 18 (0x12), region = 137 }
 0x18c   : >>> { %v1663_v20 = vpop.f32.mrf.mxu1 }
 0x18d   : >>> { %v1669_v45 = vadd.f32 %v1663_v20, %v1487_v43   ;;  %v4914_v5 = vmov %v1668_v44 }
 0x18e   : >> { %v4595_v5 = vmov (%p210_p4), 0.0  }
 0x18f   : >>> { %v4913_v4 = vmov %v1669_v45 }
 0x1f0   : >> { %v4543_v30 = vpop.permute.xlu0 %1672  ;;  %v4545_v39 = vpop.permute.xlu1 %1686 }
 0x1f1   : >> { %4925 = vst [vmem:[#allocation7_spill] sm:$0xff] %v4545_v39  ;;  %v1680_v46 = vmul.f32 %v4543_v30, %v1576_v16  ;;  %v1681_v48 = vmul.f32 %v4543_v30, %v1577_v25  ;;  %v1702_v10 = vmul.f32 %v4543_v30, %v1666_v17  ;;  %v1703_v9 = vmul.f32 %v4543_v30, %v1667_v34 }
 0x1f2   : >> { %v4593_v25 = vmov 0.0  }
 0x1f3   : >> { %v4552_v26 = vadd.f32 %v4545_v39, %v1680_v46  ;;  %v4555_v8 = vadd.f32 %v4545_v39, %v1681_v48  ;;  %v4558_v47 = vadd.f32 %v1702_v10, %v4545_v39  ;;  %v4561_v50 = vadd.f32 %v1703_v9, %v4545_v39 }
 0x1f4   : >> { %v4563_v57 = vpop.permute.xlu0 %1677  ;;  %v4573_v60 = vpop.permute.xlu1 %1691 }
 0x1f5   : >> { %4926 = vst [vmem:[#allocation8_spill] sm:$0xff] %v4555_v8  ;;  %4927 = vst [vmem:[#allocation9_spill] sm:$0xff] %v4563_v57  ;;  %v1682_v7 = vmul.f32 %v4563_v57, %v1578_v35  ;;  %v1683_v49 = vmul.f32 %v4563_v57, %v1579_v22  ;;  %v1704_v32 = vmul.f32 %v4563_v57, %v1668_v44 }
 0x1f6   : >> { %v1705_v54 = vmul.f32 %v4563_v57, %v1669_v45  ;;  %4928 = vst [vmem:[#allocation10_spill] sm:$0xff] %v4573_v60 }
 0x1f7   : >> { %v4576_v16 = vadd.f32 %v4573_v60, %v1682_v7  ;;  %v4579_v6 = vadd.f32 %v4573_v60, %v1683_v49  ;;  %v4582_v51 = vadd.f32 %v1704_v32, %v4573_v60 }
 0x1f8   : >> { %v4585_v56 = vadd.f32 %v1705_v54, %v4573_v60 }
 0x1f9   : >> { %4929 = vst [vmem:[#allocation11_spill] sm:$0xff] %v4576_v16  ;;  %4930 = vst [vmem:[#allocation12_spill] sm:$0xff] %v4579_v6 }
 0x1fa   : >> { %4931 = vst [vmem:[#allocation13_spill] sm:$0xff] %v4582_v51  ;;  %4932 = vst [vmem:[#allocation14_spill] sm:$0xff] %v4585_v56 }
 0x1fb LB: >>> { %v4249_v33 = vmov 0.0   ;;  %s4639_s25 = sadd.s32 1, %s4241_s24   ;;  %s3805_s10 = smul.u32 112, %s4241_s24  ;;  %v4933_v38 = vld [vmem:[#allocation6_spill] sm:$0xff]  ;;  %s4241_s24 = sphi %s4607_s24, %s4942_s24   ;;  %v4237_v28 = vphi %v4605_v28, %v4941_v28   ;;  %v4233_v21 = vphi %v4603_v21, %v4940_v21   ;;  %v4229_v63 = vphi %v4601_v63, %v4939_v63   ;;  %v4225_v58 = vphi %v4599_v58, %v4938_v58   ;;  %v4221_v53 = vphi %v4597_v53, %v4937_v53   ;;  %v4217_v5 = vphi %v4595_v5, %v4936_v5   ;;  %v4213_v25 = vphi %v4593_v25, %v4935_v25   ;;  %v4209_v19 = vphi %v4591_v19, %v4934_v19  }
 0x1fc   : >>> { %1917 = vmatprep.mubr.f32.mxu0 %v4249_v33  ;;  %2065 = vmatprep.mubr.f32.mxu1 %v4249_v33  ;;  %s1730_s26 = sadd.s32 %s3680_s9, %s4639_s25  ;;  %s4250_s14 = smov 127  }
 0x1fd   : >>> { %s1731_s27 = sshra.s32 %s1730_s26, 3  ;;  %s1734_s28 = sand.u32 7, %s1730_s26 }
 0x1fe   : >>> { %s3907_s30 = sshll.u32 %s1731_s27, 4  ;;  %s4661_s13 = scalar_lea.vmem %s4889_s1, %s3805_s10 }
 0x1ff   : >>> { %s1737_s5 = sadd.s32 %s3907_s30, %s1734_s28  ;;  %s4251_s16 = smov 126  }
 0x200   : >>> { %s1738_s8 = scalar_lea.vmem %s4309_s29, %s1737_s5  ;;  %s4252_s17 = smov 125  }
 0x201   : >>> { %v1739_v35 = vld [vmem:[%s1738_s8] ss:$8 sm:$0x3]  ;;  %v3784_v36 = vld [vmem:[%s1738_s8 + $0x390] ss:$8 sm:$0x3]  ;;  %s4942_s24 = smov %s4639_s25 }
 0x202   : >>> { %v3786_v4 = vld [vmem:[%s1738_s8 + $0x720] ss:$8 sm:$0x3]  ;;  %v3788_v55 = vld [vmem:[%s1738_s8 + $0xab0] ss:$8 sm:$0x3]  ;;  %v1784_v15 = vcombine.low %v1739_v35, %v3784_v36 }
 0x203   : >>> { %v3790_v14 = vld [vmem:[%s1738_s8 + $0xe40] ss:$8 sm:$0x3]  ;;  %v3792_v37 = vld [vmem:[%s1738_s8 + $0x11d0] ss:$8 sm:$0x3]  ;;  %v1785_v22 = vcombine.low %v3786_v4, %v3788_v55 }
 0x204   : >>> { %v1786_v31 = vcombine.low %v3790_v14, %v3792_v37  ;;  %v1793_v40 = vrot.slane %v1784_v15, %v4933_v38  ;;  %v3794_v61 = vld [vmem:[%s1738_s8 + $0x1560] ss:$8 sm:$0x3]  ;;  %v3796_v17 = vld [vmem:[%s1738_s8 + $0x18f0] ss:$8 sm:$0x3] }
 0x205   : >>> { %v1800_v41 = vrot.slane %v1785_v22, %v4933_v38  ;;  %v3798_v11 = vld [vmem:[%s1738_s8 + $0x1c80] ss:$8 sm:$0x3]  ;;  %v3800_v24 = vld [vmem:[%s1738_s8 + $0x2010] ss:$8 sm:$0x3]  ;;  %v1940_v34 = vcombine.low %v3794_v61, %v3796_v17 }
 0x206   : >>> { %v1807_v42 = vrot.slane %v1786_v31, %v4933_v38  ;;  %v3802_v43 = vld [vmem:[%s1738_s8 + $0x23a0] ss:$8 sm:$0x3]  ;;  %v3804_v44 = vld [vmem:[%s1738_s8 + $0x2730] ss:$8 sm:$0x3]  ;;  %v1941_v20 = vcombine.low %v3798_v11, %v3800_v24 }
 0x207   : >>> { %v1808_v45 = vcombine.low %v1793_v40, %v1800_v41  ;;  %v1942_v27 = vcombine.low %v3802_v43, %v3804_v44  ;;  %v1949_v46 = vrot.slane %v1940_v34, %v4933_v38  ;;  %v1809_v48 = vcombine.high %v1793_v40, %v1800_v41  ;;  %v1776_v61 = vld [vmem:[%s4661_s13] sm:$0xff]  ;;  %v1777_v11 = vld [vmem:[%s4661_s13 + $0x8] sm:$0xf]  ;;  %v3816_v24 = vld [vmem:[%s4661_s13 + $0x18] sm:$0xf]  ;;  %p1716_p5 = scmp.ge.s32.totalorder %s4639_s25, 7  }
 0x208   : >>> { %v1831_v10 = vrot.slane %v1807_v42, %v4933_v38  ;;  %v1956_v9 = vrot.slane %v1941_v20, %v4933_v38  ;;  %v1810_v7 = vcombine.high %v1807_v42, %v1807_v42  ;;  %v3826_v44 = vld [vmem:[%s4661_s13 + $0x20] sm:$0xff]  ;;  %s3308_s9 = sshra.s32 (%p1716_p5), %s4169_s7, 3  ;;  %s3311_s18 = sand.u32 (%p1716_p5), 7, %s4169_s7 }
 0x209   : >>> { %v1817_v49 = vrot.slane %v1808_v45, %v4933_v38  ;;  %v1963_v32 = vrot.slane %v1942_v27, %v4933_v38  ;;  %v1824_v54 = vrot.slane %v1809_v48, %v4933_v38  ;;  %s3908_s19 = sshll.u32 (%p1716_p5), %s3308_s9, 4  ;;  %s207_s7 = sadd.s32 (%p1716_p5), 1, %s4169_s7  }
 0x20a   : >>> { %v1964_v35 = vcombine.low %v1949_v46, %v1956_v9  ;;  %v1838_v36 = vrot.slane %v1810_v7, %v4933_v38  ;;  %v1965_v4 = vcombine.high %v1949_v46, %v1956_v9  ;;  %v3827_v46 = vld [vmem:[%s4661_s13 + $0x28] sm:$0xf]  ;;  %v3837_v9 = vld [vmem:[%s4661_s13 + $0x30] sm:$0xff]  ;;  %s3314_s20 = sadd.s32 (%p1716_p5), %s3908_s19, %s3311_s18  ;;  %p204_p6 = scmp.ge.s32.totalorder (%p1716_p5), %s207_s7, 224  }
 0x20b   : >>> { %v1839_v55 = vcombine.low %v1817_v49, %v1831_v10  ;;  %v1987_v15 = vrot.slane %v1963_v32, %v4933_v38  ;;  %v1966_v14 = vcombine.high %v1963_v32, %v1963_v32  ;;  %v3838_v32 = vld [vmem:[%s4661_s13 + $0x38] sm:$0xf]  ;;  %s3315_s21 = scalar_lea.vmem (%p1716_p5), %s4314_s6, %s3314_s20 }
 0x20c   : >>> { %v1973_v37 = vrot.slane %v1964_v35, %v4933_v38  ;;  %v1840_v22 = vcombine.low %v1824_v54, %v1838_v36  ;;  %v1980_v31 = vrot.slane %v1965_v4, %v4933_v38  ;;  %v3848_v35 = vld [vmem:[%s4661_s13 + $0x40] sm:$0xff] }
 0x20d   : >>> { %2174 = vrot.lane.b32.xlu0 %v1839_v55, %s4250_s14  ;;  %v1994_v40 = vrot.slane %v1966_v14, %v4933_v38  ;;  %v3815_v38 = vld [vmem:[%s4661_s13 + $0x10] sm:$0xff] }
 0x20e   : >>> { %v1995_v17 = vcombine.low %v1973_v37, %v1987_v15  ;;  %3806 = vmatprep.subr.msk.mxu0 %vm341_vm0, %v1840_v22  ;;  %v3859_v14 = vld [vmem:[%s4661_s13 + $0x50] sm:$0xff] }
 0x20f   : >>> { %3807 = vmatpush1.msk.msra.mxu0 %vm341_vm0, %v1839_v55  ;;  %v1996_v41 = vcombine.low %v1980_v31, %v1994_v40  ;;  %v3860_v31 = vld [vmem:[%s4661_s13 + $0x58] sm:$0xf] }
 0x210   : >>> { %2357 = vrot.lane.b32.xlu1 %v1995_v17, %s4250_s14  ;;  %3808 = vmatmul.mubr.msk.f32.vlgmr.msra.gmra.mxu0 %vm334_vm1, %v1776_v61 }
 0x211   : >>> { %2176 = vrot.lane.b32.xlu0 %v1840_v22, %s4250_s14  ;;  %1923 = vmatprep.mubr.f32.mxu0 %v4249_v33 }
 0x212   : >>> { %3810 = vmatprep.subr.msk.mxu1 %vm341_vm0, %v1996_v41  ;;  %3817 = vmatprep.subr.msk.mxu0 %vm341_vm0, %v1996_v41 }
 0x213   : >>> { %3811 = vmatpush1.msk.msra.mxu1 %vm341_vm0, %v1995_v17  ;;  %3818 = vmatpush1.msk.msra.mxu0 %vm341_vm0, %v1995_v17 }
 0x214   : >>> { %2359 = vrot.lane.b32.xlu1 %v1996_v41, %s4250_s14  ;;  %3809 = vmatmul.mubr.msk.f32.gmra.mxu0 %vm334_vm1, %v1777_v11 }
 0x215   : >>> { %2539 = vrot.lane.b32.xlu0 %v1839_v55, %s4251_s16  ;;  %2157 = vmatprep.mubr.f32.mxu0 %v4249_v33 }
 0x216   : >>> { %3812 = vmatmul.mubr.msk.f32.vlgmr.msra.gmra.mxu1 %vm334_vm1, %v1776_v61  ;;  %v3870_v61 = vld [vmem:[%s4661_s13 + $0x60] sm:$0xff] }
 0x217   : >>> { %2071 = vmatprep.mubr.f32.mxu1 %v4249_v33 }
 0x218   : >>> { %2541 = vrot.lane.b32.xlu1 %v1840_v22, %s4251_s16  ;;  %3819 = vmatmul.mubr.msk.f32.vlgmr.msra.gmra.mxu0 %vm334_vm1, %v3815_v38 }
 0x219   : >>> { %2722 = vrot.lane.b32.xlu0 %v1995_v17, %s4251_s16  ;;  %2163 = vmatprep.mubr.f32.mxu0 %v4249_v33 }
 0x21a   : >>> { %3813 = vmatmul.mubr.msk.f32.gmra.mxu1 %vm334_vm1, %v1777_v11 }
 0x21b   : >>> { %2248 = vmatprep.mubr.f32.mxu1 %v4249_v33 }
 0x21c   : >>> { %2724 = vrot.lane.b32.xlu1 %v1996_v41, %s4251_s16  ;;  %3820 = vmatmul.mubr.msk.f32.gmra.mxu0 %vm334_vm1, %v3816_v24 }
 0x21d   : >>> { %2904 = vrot.lane.b32.xlu0 %v1839_v55, %s4252_s17  ;;  %2340 = vmatprep.mubr.f32.mxu0 %v4249_v33  ;;  %v3849_v55 = vld [vmem:[%s4661_s13 + $0x48] sm:$0xf] }
 0x220   : >>> { %2906 = vrot.lane.b32.xlu1 %v1840_v22, %s4252_s17 }
 0x221   : >>> { %3087 = vrot.lane.b32.xlu0 %v1995_v17, %s4252_s17 }
 0x224   : >>> { %3089 = vrot.lane.b32.xlu1 %v1996_v41, %s4252_s17  ;;  %v3871_v41 = vld [vmem:[%s4661_s13 + $0x68] sm:$0xf] }
 0x27f   : >>> { %v2175_v34 = vpop.permute.xlu0 %2174 }
 0x282   : >>> { %v2358_v42 = vpop.permute.xlu1 %2357 }
 0x283   : >>> { %v2177_v43 = vpop.permute.xlu0 %2176 }
 0x284   : >>> { %3821 = vmatprep.subr.msk.mxu1 %vm341_vm0, %v2177_v43  ;;  %3828 = vmatprep.subr.msk.mxu0 %vm341_vm0, %v2177_v43  ;;  %v2179_v20 = vsel %vm671_vm2, %v2175_v34, %v2177_v43 }
 0x285   : >>> { %3822 = vmatpush1.msk.msra.mxu1 %vm341_vm0, %v2179_v20  ;;  %3829 = vmatpush1.msk.msra.mxu0 %vm341_vm0, %v2179_v20 }
 0x286   : >>> { %3823 = vmatmul.mubr.msk.f32.vlgmr.msra.gmra.mxu1 %vm334_vm1, %v3815_v38  ;;  %3830 = vmatmul.mubr.msk.f32.vlgmr.msra.gmra.mxu0 %vm334_vm1, %v3826_v44  ;;  %v2360_v45 = vpop.permute.xlu1 %2359 }
 0x287   : >>> { %3832 = vmatprep.subr.msk.mxu1 %vm341_vm0, %v2360_v45  ;;  %3839 = vmatprep.subr.msk.mxu0 %vm341_vm0, %v2360_v45  ;;  %v2361_v27 = vsel %vm671_vm2, %v2358_v42, %v2360_v45  ;;  %v2540_v10 = vpop.permute.xlu0 %2539 }
 0x288   : >>> { %2254 = vmatprep.mubr.f32.mxu1 %v4249_v33  ;;  %2346 = vmatprep.mubr.f32.mxu0 %v4249_v33 }
 0x289   : >>> { %3833 = vmatpush1.msk.msra.mxu1 %vm341_vm0, %v2361_v27  ;;  %3840 = vmatpush1.msk.msra.mxu0 %vm341_vm0, %v2361_v27 }
 0x28a   : >>> { %3824 = vmatmul.mubr.msk.f32.gmra.mxu1 %vm334_vm1, %v3816_v24  ;;  %3831 = vmatmul.mubr.msk.f32.gmra.mxu0 %vm334_vm1, %v3827_v46  ;;  %v2542_v48 = vpop.permute.xlu1 %2541 }
 0x28b   : >>> { %2430 = vmatprep.mubr.f32.mxu1 %v4249_v33  ;;  %2522 = vmatprep.mubr.f32.mxu0 %v4249_v33  ;;  %v2544_v7 = vsel %vm1036_vm3, %v2540_v10, %v2542_v48  ;;  %v2723_v54 = vpop.permute.xlu0 %2722 }
 0x28c   : >>> { %3843 = vmatprep.subr.msk.mxu1 %vm341_vm0, %v2542_v48  ;;  %3850 = vmatprep.subr.msk.mxu0 %vm341_vm0, %v2542_v48 }
 0x28e   : >>> { %3834 = vmatmul.mubr.msk.f32.vlgmr.msra.gmra.mxu1 %vm334_vm1, %v3826_v44  ;;  %3841 = vmatmul.mubr.msk.f32.vlgmr.msra.gmra.mxu0 %vm334_vm1, %v3837_v9  ;;  %v2725_v49 = vpop.permute.xlu1 %2724 }
 0x28f   : >>> { %2436 = vmatprep.mubr.f32.mxu1 %v4249_v33  ;;  %2528 = vmatprep.mubr.f32.mxu0 %v4249_v33  ;;  %v2726_v36 = vsel %vm1036_vm3, %v2723_v54, %v2725_v49  ;;  %v2905_v15 = vpop.permute.xlu0 %2904 }
 0x290   : >>> { %3844 = vmatpush1.msk.msra.mxu1 %vm341_vm0, %v2544_v7  ;;  %3851 = vmatpush1.msk.msra.mxu0 %vm341_vm0, %v2544_v7 }
 0x291   : >>> { %3854 = vmatprep.subr.msk.mxu1 %vm341_vm0, %v2725_v49  ;;  %3861 = vmatprep.subr.msk.mxu0 %vm341_vm0, %v2725_v49 }
 0x292   : >>> { %3835 = vmatmul.mubr.msk.f32.gmra.mxu1 %vm334_vm1, %v3827_v46  ;;  %3842 = vmatmul.mubr.msk.f32.gmra.mxu0 %vm334_vm1, %v3838_v32  ;;  %v2907_v4 = vpop.permute.xlu1 %2906 }
 0x293   : >>> { %2613 = vmatprep.mubr.f32.mxu1 %v4249_v33  ;;  %2705 = vmatprep.mubr.f32.mxu0 %v4249_v33  ;;  %v2909_v37 = vsel %vm1401_vm4, %v2905_v15, %v2907_v4  ;;  %v3088_v40 = vpop.permute.xlu0 %3087 }
 0x296   : >>> { %3845 = vmatmul.mubr.msk.f32.vlgmr.msra.gmra.mxu1 %vm334_vm1, %v3837_v9  ;;  %3852 = vmatmul.mubr.msk.f32.vlgmr.msra.gmra.mxu0 %vm334_vm1, %v3848_v35  ;;  %v3090_v22 = vpop.permute.xlu1 %3089 }
 0x297   : >>> { %2619 = vmatprep.mubr.f32.mxu1 %v4249_v33  ;;  %2711 = vmatprep.mubr.f32.mxu0 %v4249_v33  ;;  %v3091_v17 = vsel %vm1401_vm4, %v3088_v40, %v3090_v22 }
 0x298   : >>> { %3855 = vmatpush1.msk.msra.mxu1 %vm341_vm0, %v2726_v36  ;;  %3862 = vmatpush1.msk.msra.mxu0 %vm341_vm0, %v2726_v36 }
 0x299   : >>> { %3865 = vmatprep.subr.msk.mxu1 %vm341_vm0, %v2907_v4  ;;  %3872 = vmatprep.subr.msk.mxu0 %vm341_vm0, %v2907_v4 }
 0x29a   : >>> { %3846 = vmatmul.mubr.msk.f32.gmra.mxu1 %vm334_vm1, %v3838_v32  ;;  %3853 = vmatmul.mubr.msk.f32.gmra.mxu0 %vm334_vm1, %v3849_v55 }
 0x29b   : >>> { %2795 = vmatprep.mubr.f32.mxu1 %v4249_v33  ;;  %2887 = vmatprep.mubr.f32.mxu0 %v4249_v33 }
 0x29e   : >>> { %3856 = vmatmul.mubr.msk.f32.vlgmr.msra.gmra.mxu1 %vm334_vm1, %v3848_v35  ;;  %3863 = vmatmul.mubr.msk.f32.vlgmr.msra.gmra.mxu0 %vm334_vm1, %v3859_v14 }
 0x29f   : >>> { %2801 = vmatprep.mubr.f32.mxu1 %v4249_v33  ;;  %2893 = vmatprep.mubr.f32.mxu0 %v4249_v33 }
 0x2a0   : >>> { %3866 = vmatpush1.msk.msra.mxu1 %vm341_vm0, %v2909_v37  ;;  %3873 = vmatpush1.msk.msra.mxu0 %vm341_vm0, %v2909_v37 }
 0x2a1   : >>> { %3876 = vmatprep.subr.msk.mxu1 %vm341_vm0, %v3090_v22 }
 0x2a2   : >>> { %3857 = vmatmul.mubr.msk.f32.gmra.mxu1 %vm334_vm1, %v3849_v55  ;;  %3864 = vmatmul.mubr.msk.f32.gmra.mxu0 %vm334_vm1, %v3860_v31 }
 0x2a3   : >>> { %2978 = vmatprep.mubr.f32.mxu1 %v4249_v33  ;;  %3070 = vmatprep.mubr.f32.mxu0 %v4249_v33 }
 0x2a6   : >>> { %3867 = vmatmul.mubr.msk.f32.vlgmr.msra.gmra.mxu1 %vm334_vm1, %v3859_v14  ;;  %3874 = vmatmul.mubr.msk.f32.vlgmr.msra.gmra.mxu0 %vm334_vm1, %v3870_v61 }
 0x2a7   : >>> { %2984 = vmatprep.mubr.f32.mxu1 %v4249_v33  ;;  %3076 = vmatprep.mubr.f32.mxu0 %v4249_v33 }
 0x2a8   : >>> { %3877 = vmatpush1.msk.msra.mxu1 %vm341_vm0, %v3091_v17 }
 0x2aa   : >>> { %3868 = vmatmul.mubr.msk.f32.gmra.mxu1 %vm334_vm1, %v3860_v31  ;;  %3875 = vmatmul.mubr.msk.f32.gmra.mxu0 %vm334_vm1, %v3871_v41 }
 0x2ab   : >>> { %3160 = vmatprep.mubr.f32.mxu1 %v4249_v33 }
 0x2ae   : >>> { %3878 = vmatmul.mubr.msk.f32.vlgmr.msra.gmra.mxu1 %vm334_vm1, %v3870_v61 }
 0x2af   : >>> { %3166 = vmatprep.mubr.f32.mxu1 %v4249_v33 }
 0x2b2   : >>> { %3879 = vmatmul.mubr.msk.f32.gmra.mxu1 %vm334_vm1, %v3871_v41 }
 0x2d0   : >>> { %v1919_v11 = vpop.f32.mrf.mxu0 }
 0x2d1   : >>> { %v1930_v62 = vadd.f32 %v4237_v28, %v1919_v11 }
 0x2d2   : >>> { %v1921_v38 = vpop.f32.mrf.mxu0 }
 0x2d3   : >>> { %v1931_v12 = vadd.f32 %v4233_v21, %v1921_v38 }
 0x2d4   : >>> { %v1925_v24 = vpop.f32.mrf.mxu0 }
 0x2d5   : >>> { %v1932_v29 = vadd.f32 %v4229_v63, %v1925_v24 }
 0x2d6   : >>> { %v1927_v34 = vpop.f32.mrf.mxu0  ;;  %v2067_v43 = vpop.f32.mrf.mxu1 }
 0x2d7   : >>> { %v1933_v2 = vadd.f32 %v4225_v58, %v1927_v34  ;;  %v2078_v60 = vadd.f32 %v4221_v53, %v2067_v43 }
 0x2d8   : >>> { %v2159_v42 = vpop.f32.mrf.mxu0  ;;  %v2069_v20 = vpop.f32.mrf.mxu1 }
 0x2d9   : >>> { %v2170_v59 = vadd.f32 %v2159_v42, %v1930_v62  ;;  %v2079_v62 = vadd.f32 %v4217_v5, %v2069_v20 }
 0x2da   : >>> { %v2161_v44 = vpop.f32.mrf.mxu0  ;;  %v2073_v27 = vpop.f32.mrf.mxu1 }
 0x2db   : >>> { %v2171_v3 = vadd.f32 %v2161_v44, %v1931_v12 }
 0x2dc   : >>> { %v2165_v45 = vpop.f32.mrf.mxu0  ;;  %v4769_v48 = vpop.f32.mrf.mxu1 }
 0x2dd   : >>> { %v2172_v51 = vadd.f32 %v2165_v45, %v1932_v29  ;;  %v2081_v5 = vadd.f32 %v4209_v19, %v4769_v48 }
 0x2de   : >>> { %v2167_v46 = vpop.f32.mrf.mxu0 }
 0x2df   : >>> { %v2173_v39 = vadd.f32 %v2167_v46, %v1933_v2 }
 0x346   : >>> { %v2250_v10 = vpop.f32.mrf.mxu1  ;;  %v2342_v9 = vpop.f32.mrf.mxu0 }
 0x347   : >>> { %v2353_v6 = vadd.f32 %v2342_v9, %v2170_v59  ;;  %v2261_v24 = vadd.f32 %v2250_v10, %v2078_v60 }
 0x348   : >>> { %v2252_v7 = vpop.f32.mrf.mxu1  ;;  %v2344_v49 = vpop.f32.mrf.mxu0 }
 0x349   : >>> { %v2354_v28 = vadd.f32 %v2344_v49, %v2171_v3  ;;  %v2080_v3 = vadd.f32 %v4213_v25, %v2073_v27  ;;  %v2262_v29 = vadd.f32 %v2252_v7, %v2079_v62 }
 0x34a   : >>> { %v2256_v33 = vpop.f32.mrf.mxu1  ;;  %v2348_v32 = vpop.f32.mrf.mxu0 }
 0x34b   : >>> { %v2355_v57 = vadd.f32 %v2348_v32, %v2172_v51  ;;  %v2263_v60 = vadd.f32 %v2256_v33, %v2080_v3 }
 0x34c   : >>> { %v4771_v54 = vpop.f32.mrf.mxu1  ;;  %v2350_v35 = vpop.f32.mrf.mxu0 }
 0x34d   : >>> { %v2356_v12 = vadd.f32 %v2350_v35, %v2173_v39  ;;  %v2264_v25 = vadd.f32 %v4771_v54, %v2081_v5 }
 0x34e   : >>> { %v2432_v36 = vpop.f32.mrf.mxu1  ;;  %v2524_v4 = vpop.f32.mrf.mxu0 }
 0x34f   : >>> { %v2535_v11 = vadd.f32 %v2524_v4, %v2353_v6  ;;  %v2443_v6 = vadd.f32 %v2432_v36, %v2261_v24  ;;  %v4943_v24 = vmax.f32 (%p1716_p5), %v4558_v47, 0.0 }
 0x350   : >>> { %v2434_v55 = vpop.f32.mrf.mxu1  ;;  %v2526_v15 = vpop.f32.mrf.mxu0 }
 0x351   : >>> { %v2536_v8 = vadd.f32 %v2526_v15, %v2354_v28  ;;  %v2444_v20 = vadd.f32 %v2434_v55, %v2262_v29  ;;  %v4948_v29 = vld [vmem:[#allocation9_spill] sm:$0xff] (%p1716_p5) }
 0x352   : >>> { %v2438_v14 = vpop.f32.mrf.mxu1  ;;  %v2530_v37 = vpop.f32.mrf.mxu0 }
 0x353   : >>> { %v2537_v59 = vadd.f32 %v2530_v37, %v2355_v57  ;;  %v2445_v27 = vadd.f32 %v2438_v14, %v2263_v60 }
 0x354   : >>> { %v4773_v22 = vpop.f32.mrf.mxu1  ;;  %v2532_v31 = vpop.f32.mrf.mxu0 }
 0x355   : >>> { %v2538_v45 = vadd.f32 %v2532_v31, %v2356_v12  ;;  %v2446_v36 = vadd.f32 %v4773_v22, %v2264_v25 }
 0x356   : >>> { %v2615_v40 = vpop.f32.mrf.mxu1  ;;  %v2707_v61 = vpop.f32.mrf.mxu0 }
 0x357   : >>> { %v2718_v63 = vadd.f32 %v2707_v61, %v2535_v11  ;;  %v2626_v57 = vadd.f32 %v2615_v40, %v2443_v6 }
 0x358   : >>> { %v2617_v17 = vpop.f32.mrf.mxu1  ;;  %v2709_v41 = vpop.f32.mrf.mxu0 }
 0x359   : >>> { %v2719_v34 = vadd.f32 %v2709_v41, %v2536_v8  ;;  %v2627_v32 = vadd.f32 %v2617_v17, %v2444_v20 }
 0x35a   : >>> { %v2621_v18 = vpop.f32.mrf.mxu1  ;;  %v2713_v23 = vpop.f32.mrf.mxu0 }
 0x35b   : >>> { %v2720_v2 = vadd.f32 %v2713_v23, %v2537_v59  ;;  %v2628_v33 = vadd.f32 %v2621_v18, %v2445_v27  ;;  %v4945_v59 = vmax.f32 (%p1716_p5), %v4561_v50, 0.0 }
 0x35c   : >>> { %v4777_v52 = vpop.f32.mrf.mxu1  ;;  %v2715_v13 = vpop.f32.mrf.mxu0 }
 0x35d   : >>> { %v2721_v8 = vadd.f32 %v2715_v13, %v2538_v45  ;;  %v2629_v37 = vadd.f32 %v4777_v52, %v2446_v36  ;;  %v4957_v36 = vld [vmem:[#allocation12_spill] sm:$0xff] (%p1716_p5) }
 0x35e   : >>> { %v2797_v0 = vpop.f32.mrf.mxu1  ;;  %v2889_v1 = vpop.f32.mrf.mxu0 }
 0x35f   : >>> { %v2900_v44 = vadd.f32 %v2889_v1, %v2718_v63  ;;  %v2808_v23 = vadd.f32 %v2797_v0, %v2626_v57 }
 0x360   : >>> { %v2799_v56 = vpop.f32.mrf.mxu1  ;;  %v2891_v16 = vpop.f32.mrf.mxu0 }
 0x361   : >>> { %v2901_v51 = vadd.f32 %v2891_v16, %v2719_v34  ;;  %v2809_v4 = vadd.f32 %v2799_v56, %v2627_v32  ;;  %v4946_v34 = vld [vmem:[#allocation8_spill] sm:$0xff] (%p1716_p5) }
 0x362   : >>> { %v2803_v21 = vpop.f32.mrf.mxu1  ;;  %v2895_v38 = vpop.f32.mrf.mxu0 }
 0x363   : >>> { %v2902_v1 = vadd.f32 %v2895_v38, %v2720_v2  ;;  %v2810_v31 = vadd.f32 %v2803_v21, %v2628_v33 }
 0x364   : >>> { %v2805_v42 = vpop.f32.mrf.mxu1  ;;  %v2897_v58 = vpop.f32.mrf.mxu0 }
 0x365   : >>> { %v2903_v16 = vadd.f32 %v2897_v58, %v2721_v8  ;;  %v2811_v61 = vadd.f32 %v2805_v42, %v2629_v37  ;;  %v4944_v42 = vmax.f32 (%p1716_p5), %v4552_v26, 0.0  ;;  %v4950_v26 = vld [vmem:[#allocation10_spill] sm:$0xff] (%p1716_p5) }
 0x366   : >>> { %v2980_v53 = vpop.f32.mrf.mxu1  ;;  %v3072_v43 = vpop.f32.mrf.mxu0 }
 0x367   : >>> { %v3083_v46 = vadd.f32 %v3072_v43, %v2900_v44   ;;  %v2991_v55 = vadd.f32 %v2980_v53, %v2808_v23  ;;  %v3201_v12 = vmax.f32 (%p1716_p5), %v4944_v42, %v4943_v24  ;;  %v4947_v44 = vmax.f32 (%p1716_p5), %v4946_v34, 0.0 }
 0x368   : >>> { %v2982_v10 = vpop.f32.mrf.mxu1  ;;  %v3074_v39 = vpop.f32.mrf.mxu0 }
 0x369   : >>> { %v3084_v9 = vadd.f32 %v3074_v39, %v2901_v51   ;;  %v2992_v54 = vadd.f32 %v2982_v10, %v2809_v4  ;;  %v3177_v52 = vmul.f32 (%p1716_p5), %v3083_v46, %v4543_v30  ;;  %v3202_v3 = vmax.f32 (%p1716_p5), %v4947_v44, %v4945_v59 }
 0x36a   : >>> { %v2986_v7 = vpop.f32.mrf.mxu1  ;;  %v3078_v49 = vpop.f32.mrf.mxu0 }
 0x36b   : >>> { %v3085_v35 = vadd.f32 %v3078_v49, %v2902_v1   ;;  %v2993_v17 = vadd.f32 %v2986_v7, %v2810_v31  ;;  %v4940_v21 = vmov %v3084_v9  ;;  %v3178_v56 = vmul.f32 (%p1716_p5), %v3084_v9, %v4543_v30  ;;  %v4951_v1 = vld [vmem:[#allocation13_spill] sm:$0xff] (%p1716_p5) }
 0x36c   : >>> { %v2988_v19 = vpop.f32.mrf.mxu1  ;;  %v3080_v48 = vpop.f32.mrf.mxu0  ;;  %v4952_v9 = vmax.f32 (%p1716_p5), %v4951_v1, 0.0 }
 0x36d   : >>> { %v3086_v15 = vadd.f32 %v3080_v48, %v2903_v16   ;;  %v2994_v28 = vadd.f32 %v2988_v19, %v2811_v61  ;;  %v4939_v63 = vmov %v3085_v35  ;;  %v3179_v21 = vmul.f32 (%p1716_p5), %v3085_v35, %v4948_v29  ;;  %v4955_v16 = vld [vmem:[#allocation14_spill] sm:$0xff] (%p1716_p5) }
 0x36e   : >>> { %v3162_v13 = vpop.f32.mrf.mxu1  ;;  %v4949_v63 = vld [vmem:[#allocation7_spill] sm:$0xff] (%p1716_p5)  ;;  %v4956_v35 = vmax.f32 (%p1716_p5), %v4955_v16, 0.0 }
 0x36f   : >>> { %v3173_v14 = vadd.f32 %v3162_v13, %v2991_v55   ;;  %v4938_v58 = vmov %v3086_v15  ;;  %v3182_v6 = vadd.f32 (%p1716_p5), %v3178_v56, %v4949_v63  ;;  %v3180_v47 = vmul.f32 (%p1716_p5), %v3086_v15, %v4948_v29 }
 0x370   : >>> { %v3164_v40 = vpop.f32.mrf.mxu1  ;;  %v3181_v58 = vadd.f32 (%p1716_p5), %v3177_v52, %v4949_v63  ;;  %v3183_v43 = vadd.f32 (%p1716_p5), %v3179_v21, %v4950_v26 }
 0x371   : >>> { %v3174_v0 = vadd.f32 %v3164_v40, %v2992_v54   ;;  %v4937_v53 = vmov %v3173_v14  ;;  %v3189_v18 = vmul.f32 (%p1716_p5), %v3173_v14, %v4543_v30  ;;  %v3186_v51 = vmax.f32 (%p1716_p5), %v3182_v6, 0.0  ;;  %v4959_v14 = vld [vmem:[#allocation6_spill] sm:$0xff] (%p1716_p5) }
 0x372   : >>> { %v3168_v41 = vpop.f32.mrf.mxu1  ;;  %v3185_v2 = vmax.f32 (%p1716_p5), %v3181_v58, 0.0  ;;  %v3184_v60 = vadd.f32 (%p1716_p5), %v3180_v47, %v4950_v26  ;;  %v3187_v20 = vmax.f32 (%p1716_p5), %v3183_v43, 0.0 }
 0x373   : >>> { %v3175_v11 = vadd.f32 %v3168_v41, %v2993_v17   ;;  %v4936_v5 = vmov %v3174_v0  ;;  %1718 = sbr.rel (!%p1716_p5) target bundleno = 507 (0x1fb), region = 148  ;;  %v3190_v62 = vmul.f32 (%p1716_p5), %v3174_v0, %v4543_v30  ;;  %v3193_v53 = vadd.f32 (%p1716_p5), %v3189_v18, %v4949_v63 }
 0x374   : >>> { %v3170_v22 = vpop.f32.mrf.mxu1  ;;  %v3188_v49 = vmax.f32 (%p1716_p5), %v3184_v60, 0.0  ;;  %v4960_v17 = vlaneseq (%p1716_p5) }
 0x375   : >>> { %v3176_v38 = vadd.f32 %v3170_v22, %v2994_v28   ;;  %v4935_v25 = vmov %v3175_v11  ;;  %v4941_v28 = vmov %v3083_v46  ;;  %v3194_v30 = vadd.f32 (%p1716_p5), %v3190_v62, %v4949_v63 }
 0x376   : >> { %v3191_v50 = vmul.f32 (%p1716_p5), %v3175_v11, %v4948_v29  ;;  %v3197_v46 = vmax.f32 (%p1716_p5), %v3193_v53, 0.0  ;;  %v4953_v25 = vld [vmem:[#allocation11_spill] sm:$0xff] (%p1716_p5)  ;;  %vm4846_vm5 = vcmp.lt.s32.totalorder (%p1716_p5), %v4960_v17, 224 }
 0x377   : >>> { %v4934_v19 = vmov %v3176_v38  ;;  %v3192_v45 = vmul.f32 (%p1716_p5), %v3176_v38, %v4948_v29  ;;  %v3198_v5 = vmax.f32 (%p1716_p5), %v3194_v30, 0.0  ;;  %v4954_v27 = vmax.f32 (%p1716_p5), %v4953_v25, 0.0 }
 0x378   : >> { %v3195_v10 = vadd.f32 %v3191_v50, %v4950_v26  ;;  %v3205_v57 = vmax.f32 %v3185_v2, %v3197_v46  ;;  %v4958_v19 = vmax.f32 %v4957_v36, 0.0 }
 0x379   : >> { %v3196_v39 = vadd.f32 %v3192_v45, %v4950_v26  ;;  %v3206_v8 = vmax.f32 %v3186_v51, %v3198_v5  ;;  %v3203_v7 = vmax.f32 %v4954_v27, %v4952_v9 }
 0x37a   : >> { %v3199_v32 = vmax.f32 %v3195_v10, 0.0  ;;  %v3204_v48 = vmax.f32 %v4958_v19, %v4956_v35  ;;  %v3209_v33 = vmax.f32 %v3201_v12, %v3205_v57 }
 0x37b   : >> { %v3200_v23 = vmax.f32 %v3196_v39, 0.0  ;;  %v3210_v4 = vmax.f32 %v3202_v3, %v3206_v8 }
 0x37c   : >> { %v3207_v55 = vmax.f32 %v3187_v20, %v3199_v32 }
 0x37d   : >> { %v3208_v15 = vmax.f32 %v3188_v49, %v3200_v23  ;;  %v3217_v13 = vcombine.low %v3209_v33, %v3210_v4  ;;  %v3218_v37 = vcombine.high %v3209_v33, %v3210_v4 }
 0x37e   : >> { %v3211_v31 = vmax.f32 %v3203_v7, %v3207_v55 }
 0x37f   : >> { %v3212_v54 = vmax.f32 %v3204_v48, %v3208_v15  ;;  %v3225_v40 = vrot.slane %v3217_v13, %v4959_v14  ;;  %v3232_v61 = vrot.slane %v3218_v37, %v4959_v14 }
 0x381   : >> { %v3267_v41 = vcombine.low %v3211_v31, %v3212_v54  ;;  %v3241_v28 = vrot.slane %v3225_v40, %v4959_v14  ;;  %v3233_v11 = vcombine.high %v3225_v40, %v3225_v40  ;;  %v3248_v22 = vrot.slane %v3232_v61, %v4959_v14 }
 0x382   : >> { %v3234_v38 = vcombine.high %v3232_v61, %v3232_v61 }
 0x383   : >> { %v3274_v52 = vrot.slane %v3267_v41, %v4959_v14  ;;  %3316 = vst.msk [vmem:[%s3315_s21] ss:$8 sm:$0x3] %vm4846_vm5, %v3241_v28  ;;  %v3255_v56 = vrot.slane %v3233_v11, %v4959_v14  ;;  %v3263_v18 = vcombine.high %v3241_v28, %v3241_v28  ;;  %3889 = vst.msk [vmem:[%s3315_s21 + $0x700] ss:$8 sm:$0x3] %vm4846_vm5, %v3248_v22 }
 0x384   : >> { %v3262_v62 = vrot.slane %v3234_v38, %v4959_v14  ;;  %v3264_v24 = vcombine.high %v3248_v22, %v3248_v22 }
 0x385   : >> { %v3282_v42 = vrot.slane %v3274_v52, %v4959_v14  ;;  %v3275_v12 = vcombine.high %v3274_v52, %v3274_v52  ;;  %3883 = vst.msk [vmem:[%s3315_s21 + $0x1c0] ss:$8 sm:$0x3] %vm4846_vm5, %v3255_v56  ;;  %3885 = vst.msk [vmem:[%s3315_s21 + $0x380] ss:$8 sm:$0x3] %vm4846_vm5, %v3263_v18  ;;  %v3265_v59 = vcombine.high %v3255_v56, %v3255_v56 }
 0x386   : >> { %3891 = vst.msk [vmem:[%s3315_s21 + $0x8c0] ss:$8 sm:$0x3] %vm4846_vm5, %v3262_v62  ;;  %3893 = vst.msk [vmem:[%s3315_s21 + $0xa80] ss:$8 sm:$0x3] %vm4846_vm5, %v3264_v24  ;;  %v3266_v34 = vcombine.high %v3262_v62, %v3262_v62 }
 0x387   : >> { %3897 = vst.msk [vmem:[%s3315_s21 + $0xe00] ss:$8 sm:$0x3] %vm4846_vm5, %v3282_v42  ;;  %v3289_v44 = vrot.slane %v3275_v12, %v4959_v14  ;;  %v3290_v3 = vcombine.high %v3282_v42, %v3282_v42  ;;  %3887 = vst.msk [vmem:[%s3315_s21 + $0x540] ss:$8 sm:$0x3] %vm4846_vm5, %v3265_v59 }
 0x388   : >> { %3895 = vst.msk [vmem:[%s3315_s21 + $0xc40] ss:$8 sm:$0x3] %vm4846_vm5, %v3266_v34  ;;  %206 = sbr.rel (!%p204_p6) target bundleno = 16 (0x10), region = 159 }
 0x389   : >> { %3899 = vst.msk [vmem:[%s3315_s21 + $0xfc0] ss:$8 sm:$0x3] %vm4846_vm5, %v3289_v44  ;;  %3901 = vst.msk [vmem:[%s3315_s21 + $0x1180] ss:$8 sm:$0x3] %vm4846_vm5, %v3290_v3  ;;  %v3291_v29 = vcombine.high %v3289_v44, %v3289_v44 }
 0x38b   : >> { %3903 = vst.msk [vmem:[%s3315_s21 + $0x1340] ss:$8 sm:$0x3] %vm4846_vm5, %v3291_v29 }
 0x38d PF: > { %s14_s15 = sadd.s32 1, %s4165_s15  }
 0x38e   : > { %p11_p7 = scmp.ge.s32.totalorder %s14_s15, 4  }
 0x390   :  { %13 = sbr.rel (!%p11_p7) target bundleno = 1 (0x1), region = 170 }

// kernel: forward.9
= control target key start
LH: loop header
LB: loop body
LE: loop exit
PB: predicated region body
PF: predicated region fallthrough
CT: control target
= control target key end

     0   :  { %s2825_s15 = smov 0   ;;  %s3515_s0 = inlined_call_operand.vmem [shape: f32[2,4,12,226,57], index: 0, kind: input, shape index: {}]   ;;  %s3516_s1 = inlined_call_operand.vmem [shape: f32[9,18,12], index: 1, kind: input, shape index: {}]   ;;  %s3517_s2 = inlined_call_operand.vmem [shape: f32[18,1], index: 2, kind: input, shape index: {}]   ;;  %s3518_s3 = inlined_call_operand.vmem [shape: f32[18,1], index: 3, kind: input, shape index: {}]   ;;  %s3519_s4 = inlined_call_operand.vmem [shape: f32[2,18,56,56], index: 4, kind: output, shape index: {}]  }
   0x1 LB: > { %s2141_s16 = sadd.s32 4294967295, %s2730_s15   ;;  %p2145_p0 = scmp.ge.s32.totalorder %s2730_s15, 1  ;;  %s2730_s15 = sphi %s2825_s15, %s14_s15  }
   0x2   : > { %p162_p1 = scmp.lt.s32.totalorder %s2730_s15, 3 }
   0x4   : > { %p163_p2 = pnand %p2145_p0, %p162_p1 }
   0x5   : > { %p188_p3 = scmp.lt.s32.totalorder (!%p163_p2), %s2141_s16, 1  ;;  %s2873_s11 = smov (!%p163_p2), 0  }
   0x6   : > { %166 = sbr.rel (%p163_p2) target bundleno = 710 (0x2c6), region = 36 }
   0xb   : > { %v2836_v0 = vld [vmem:[%s3517_s2] sm:$0xff]  ;;  %v2841_v1 = vld [vmem:[%s3517_s2 + $0x8] sm:$0xff]  ;;  %v2846_v2 = vld [vmem:[%s3517_s2 + $0x10] sm:$0x3]  ;;  %s3533_s16 = smov (!%p188_p3, %s2141_s16), 1 }
   0xc   : > { %v2851_v3 = vld [vmem:[%s3518_s3] sm:$0xff]  ;;  %v2856_v4 = vld [vmem:[%s3518_s3 + $0x8] sm:$0xff]  ;;  %v2861_v5 = vld [vmem:[%s3518_s3 + $0x10] sm:$0x3]  ;;  %s2524_s29 = smul.u32 11136, %s3533_s16 }
   0xd   : > { %s2525_s30 = smul.u32 1008, %s3533_s16 }
   0xe   : > { %s2866_s7 = scalar_lea.vmem %s3515_s0, %s2524_s29 }
   0xf   : > { %s2871_s10 = scalar_lea.vmem %s3519_s4, %s2525_s30 }
  0x10 LB: >> { %v2878_v6 = vmov 0.0   ;;  %v2880_v7 = vmov 0.0   ;;  %v2882_v8 = vmov 0.0   ;;  %v2884_v9 = vmov 0.0   ;;  %s2890_s12 = smov 0   ;;  %s2734_s11 = sphi %s2873_s11, %s209_s11  }
  0x11   : >> { %v2886_v10 = vmov 0.0   ;;  %v2888_v11 = vmov 0.0  }
  0x12 LB: >>> { %s2148_s13 = sshll.u32 %s2734_s11, 2  ;;  %vm298_vm0 = vcmask 1041409   ;;  %vm301_vm1 = vcmask 1042434   ;;  %v2792_v12 = vmov 0.0   ;;  %vm304_vm2 = vcmask 1043459   ;;  %s2188_s17 = smul.u32 72, %s2762_s12  ;;  %s2762_s12 = sphi %s2890_s12, %s215_s12   ;;  %v2758_v11 = vphi %v2888_v11, %v3525_v11   ;;  %v2754_v10 = vphi %v2886_v10, %v3524_v10   ;;  %v2750_v9 = vphi %v2884_v9, %v3523_v9   ;;  %v2746_v8 = vphi %v2882_v8, %v3522_v8   ;;  %v2742_v7 = vphi %v2880_v7, %v3521_v7   ;;  %v2738_v6 = vphi %v2878_v6, %v3520_v6  }
  0x13   : >>> { %s223_s14 = sadd.s32 %s2762_s12, %s2148_s13  ;;  %2368 = vmatprep.subr.mxu0 %v2792_v12  ;;  %2381 = vmatprep.subr.mxu1 %v2792_v12  ;;  %vm307_vm3 = vcmask 1044484   ;;  %vm310_vm4 = vcmask 1045509   ;;  %vm335_vm5 = vcmask 1043456   ;;  %vm2793_vm6 = vmmov 0   ;;  %s2794_s18 = smov 127  }
  0x14   : >>> { %s2920_s16 = scalar_lea.vmem %s2866_s7, %s223_s14  ;;  %2372 = vmatprep.mubr.msk.f32.mxu0 %vm2793_vm6, %v2792_v12  ;;  %2385 = vmatprep.mubr.msk.f32.mxu1 %vm2793_vm6, %v2792_v12  ;;  %vm313_vm7 = vcmask 1046534   ;;  %vm316_vm8 = vcmask 1047559   ;;  %vm325_vm9 = vcmask 97280   ;;  %s2948_s21 = scalar_lea.vmem %s3516_s1, %s2188_s17 }
  0x15   : >>> { %v233_v13 = vld [vmem:[%s2920_s16 + $0x740] sm:$0x1]  ;;  %v234_v14 = vld [vmem:[%s2920_s16 + $0x828] sm:$0x1]  ;;  %v235_v15 = vld [vmem:[%s2920_s16 + $0x910] sm:$0x1] }
  0x16   : >>> { %v236_v16 = vld [vmem:[%s2920_s16 + $0x9f8] sm:$0x1]  ;;  %v318_v17 = vrot.slane %v234_v14, 7  ;;  %v320_v18 = vrot.slane %v235_v15, 6  ;;  %v225_v19 = vld [vmem:[%s2920_s16] sm:$0x1] }
  0x17   : >>> { %v322_v20 = vrot.slane %v236_v16, 5  ;;  %v226_v21 = vld [vmem:[%s2920_s16 + $0xe8] sm:$0x1]  ;;  %v227_v22 = vld [vmem:[%s2920_s16 + $0x1d0] sm:$0x1]  ;;  %v2961_v51 = vld [vmem:[%s2948_s21] sm:$0xff] }
  0x18   : >>> { %v319_v23 = vsel %vm298_vm0, %v318_v17, %v233_v13  ;;  %v228_v24 = vld [vmem:[%s2920_s16 + $0x2b8] sm:$0x1]  ;;  %v229_v25 = vld [vmem:[%s2920_s16 + $0x3a0] sm:$0x1]  ;;  %v230_v26 = vld [vmem:[%s2920_s16 + $0x488] sm:$0x1] }
  0x19   : >>> { %v321_v27 = vsel %vm301_vm1, %v320_v18, %v319_v23  ;;  %v231_v28 = vld [vmem:[%s2920_s16 + $0x570] sm:$0x1]  ;;  %v297_v29 = vrot.slane %v226_v21, 7  ;;  %v300_v30 = vrot.slane %v227_v22, 6  ;;  %v232_v32 = vld [vmem:[%s2920_s16 + $0x658] sm:$0x1] }
  0x1a   : >>> { %v323_v31 = vsel %vm304_vm2, %v322_v20, %v321_v27  ;;  %v303_v33 = vrot.slane %v228_v24, 5  ;;  %v306_v34 = vrot.slane %v229_v25, 4  ;;  %v309_v35 = vrot.slane %v230_v26, 3  ;;  %v2171_v37 = vld [vmem:[%s2920_s16 + $0x1d00] sm:$0x1]  ;;  %v2984_v21 = vld [vmem:[%s2948_s21 + $0x8] sm:$0xff] }
  0x1b   : >>> { %890 = vrot.lane.b32.xlu0 %v323_v31, %s2794_s18  ;;  %v299_v36 = vsel %vm298_vm0, %v297_v29, %v225_v19  ;;  %2369 = vmatpush3.msk.msra.mxu0 %vm335_vm5, %v323_v31  ;;  %v2172_v38 = vld [vmem:[%s2920_s16 + $0x1de8] sm:$0x1]  ;;  %v2173_v39 = vld [vmem:[%s2920_s16 + $0x1ed0] sm:$0x1]  ;;  %v312_v41 = vrot.slane %v231_v28, 2  ;;  %v315_v46 = vrot.slane %v232_v32, 1 }
  0x1c   : >>> { %v302_v40 = vsel %vm301_vm1, %v300_v30, %v299_v36  ;;  %2370 = vmatprep.subr.mxu0 %v2792_v12  ;;  %v2174_v42 = vld [vmem:[%s2920_s16 + $0x1fb8] sm:$0x1]  ;;  %v447_v43 = vrot.slane %v2172_v38, 7  ;;  %v449_v44 = vrot.slane %v2173_v39, 6  ;;  %v2163_v48 = vld [vmem:[%s2920_s16 + $0x15c0] sm:$0x1] }
  0x1d   : >>> { %v305_v45 = vsel %vm304_vm2, %v303_v33, %v302_v40  ;;  %v451_v47 = vrot.slane %v2174_v42, 5  ;;  %v2164_v49 = vld [vmem:[%s2920_s16 + $0x16a8] sm:$0x1]  ;;  %v2165_v53 = vld [vmem:[%s2920_s16 + $0x1790] sm:$0x1]  ;;  %s215_s12 = sadd.s32 1, %s2762_s12  }
  0x1e   : >>> { %v308_v50 = vsel %vm307_vm3, %v306_v34, %v305_v45  ;;  %v448_v52 = vsel %vm298_vm0, %v447_v43, %v2171_v37  ;;  %v2166_v54 = vld [vmem:[%s2920_s16 + $0x1878] sm:$0x1]  ;;  %v2167_v55 = vld [vmem:[%s2920_s16 + $0x1960] sm:$0x1]  ;;  %v2168_v58 = vld [vmem:[%s2920_s16 + $0x1a48] sm:$0x1] }
  0x1f   : >>> { %v311_v56 = vsel %vm310_vm4, %v309_v35, %v308_v50  ;;  %v450_v57 = vsel %vm301_vm1, %v449_v44, %v448_v52  ;;  %v2169_v59 = vld [vmem:[%s2920_s16 + $0x1b30] sm:$0x1]  ;;  %v2170_v60 = vld [vmem:[%s2920_s16 + $0x1c18] sm:$0x1]  ;;  %v433_v63 = vrot.slane %v2164_v49, 7  ;;  %v435_v13 = vrot.slane %v2165_v53, 6 }
  0x20   : >>> { %v314_v61 = vsel %vm313_vm7, %v312_v41, %v311_v56  ;;  %v2974_v62 = vsel %vm304_vm2, %v451_v47, %v450_v57  ;;  %v2158_v14 = vld [vmem:[%s2920_s16 + $0x1220] sm:$0x1]  ;;  %v2159_v15 = vld [vmem:[%s2920_s16 + $0x1308] sm:$0x1]  ;;  %v437_v17 = vrot.slane %v2166_v54, 5  ;;  %v439_v18 = vrot.slane %v2167_v55, 4 }
  0x21   : >>> { %v317_v16 = vsel %vm316_vm8, %v315_v46, %v314_v61  ;;  %2382 = vmatpush3.msk.msra.mxu1 %vm335_vm5, %v2974_v62  ;;  %v441_v19 = vrot.slane %v2168_v58, 3  ;;  %v2160_v20 = vld [vmem:[%s2920_s16 + $0x13f0] sm:$0x1]  ;;  %v434_v22 = vsel %vm298_vm0, %v433_v63, %v2163_v48  ;;  %v443_v23 = vrot.slane %v2169_v59, 2  ;;  %v2161_v25 = vld [vmem:[%s2920_s16 + $0x14d8] sm:$0x1] }
  0x22   : >>> { %888 = vrot.lane.b32.xlu0 %v317_v16, %s2794_s18  ;;  %2371 = vmatpush3.msra.mxu0 %v317_v16  ;;  %v445_v24 = vrot.slane %v2170_v60, 1  ;;  %v571_v26 = vrot.slane %v2159_v15, 7  ;;  %v436_v27 = vsel %vm301_vm1, %v435_v13, %v434_v22  ;;  %v573_v28 = vrot.slane %v2160_v20, 6  ;;  %v2150_v30 = vld [vmem:[%s2920_s16 + $0xae0] sm:$0x1]  ;;  %p212_p4 = scmp.ge.s32.totalorder %s215_s12, 3  }
  0x23   : >>> { %2373 = vmatmul.mubr.msk.f32.vlgmr.msra.gmra.mxu0 %vm325_vm9, %v2961_v51  ;;  %2383 = vmatprep.subr.mxu1 %v2792_v12  ;;  %v575_v29 = vrot.slane %v2161_v25, 5  ;;  %v2151_v31 = vld [vmem:[%s2920_s16 + $0xbc8] sm:$0x1]  ;;  %v438_v32 = vsel %vm304_vm2, %v437_v17, %v436_v27  ;;  %v2152_v34 = vld [vmem:[%s2920_s16 + $0xcb0] sm:$0x1]  ;;  %s3198_s22 = smov (%p212_p4), 0  }
  0x24   : >>> { %2375 = vmatprep.mubr.msk.f32.mxu0 %vm2793_vm6, %v2792_v12  ;;  %2394 = vmatprep.subr.mxu0 %v2792_v12  ;;  %v572_v33 = vsel %vm298_vm0, %v571_v26, %v2158_v14  ;;  %v2153_v35 = vld [vmem:[%s2920_s16 + $0xd98] sm:$0x1]  ;;  %v2154_v36 = vld [vmem:[%s2920_s16 + $0xe80] sm:$0x1]  ;;  %v440_v37 = vsel %vm307_vm3, %v439_v18, %v438_v32  ;;  %v2155_v39 = vld [vmem:[%s2920_s16 + $0xf68] sm:$0x1] }
  0x25   : >>> { %v574_v38 = vsel %vm301_vm1, %v573_v28, %v572_v33  ;;  %v2156_v40 = vld [vmem:[%s2920_s16 + $0x1050] sm:$0x1]  ;;  %v2157_v41 = vld [vmem:[%s2920_s16 + $0x1138] sm:$0x1]  ;;  %v442_v43 = vsel %vm310_vm4, %v441_v19, %v440_v37  ;;  %v557_v45 = vrot.slane %v2151_v31, 7  ;;  %v559_v46 = vrot.slane %v2152_v34, 6 }
  0x26   : >>> { %v3008_v42 = vld [vmem:[%s2948_s21 + $0x10] sm:$0x3]  ;;  %v576_v44 = vsel %vm304_vm2, %v575_v29, %v574_v38  ;;  %v2185_v47 = vld [vmem:[%s2920_s16 + $0x28c8] sm:$0x1]  ;;  %v444_v48 = vsel %vm313_vm7, %v443_v23, %v442_v43  ;;  %v561_v49 = vrot.slane %v2153_v35, 5  ;;  %v563_v50 = vrot.slane %v2154_v36, 4 }
  0x27   : >>> { %2376 = vmatmul.mubr.msk.f32.gmra.mxu0 %vm325_vm9, %v2984_v21  ;;  %v565_v52 = vrot.slane %v2155_v39, 3  ;;  %v2186_v53 = vld [vmem:[%s2920_s16 + $0x29b0] sm:$0x1]  ;;  %v3020_v54 = vsel %vm316_vm8, %v445_v24, %v444_v48  ;;  %v558_v55 = vsel %vm298_vm0, %v557_v45, %v2150_v30  ;;  %v567_v56 = vrot.slane %v2156_v40, 2  ;;  %v2184_v58 = vld [vmem:[%s2920_s16 + $0x27e0] sm:$0x1] }
  0x28   : >>> { %2378 = vmatprep.mubr.msk.f32.mxu0 %vm2793_vm6, %v2792_v12  ;;  %2395 = vmatpush3.msk.msra.mxu0 %vm335_vm5, %v576_v44  ;;  %v569_v57 = vrot.slane %v2157_v41, 1  ;;  %v2187_v59 = vld [vmem:[%s2920_s16 + $0x2a98] sm:$0x1]  ;;  %v560_v60 = vsel %vm301_vm1, %v559_v46, %v558_v55  ;;  %v698_v61 = vrot.slane %v2185_v47, 7  ;;  %v700_v63 = vrot.slane %v2186_v53, 6 }
  0x29   : >>> { %2384 = vmatpush3.msra.mxu1 %v3020_v54  ;;  %2396 = vmatprep.subr.mxu0 %v2792_v12  ;;  %v702_v13 = vrot.slane %v2187_v59, 5  ;;  %v562_v14 = vsel %vm304_vm2, %v561_v49, %v560_v60  ;;  %v2177_v15 = vld [vmem:[%s2920_s16 + $0x2188] sm:$0x1]  ;;  %v2178_v16 = vld [vmem:[%s2920_s16 + $0x2270] sm:$0x1]  ;;  %v2198_v29 = vld [vmem:[%s2948_s21 + $0x18] sm:$0xff] }
  0x2a   : >>> { %2386 = vmatmul.mubr.msk.f32.vlgmr.msra.gmra.mxu1 %vm325_vm9, %v2961_v51  ;;  %2407 = vmatprep.subr.mxu1 %v2792_v12  ;;  %v2179_v17 = vld [vmem:[%s2920_s16 + $0x2358] sm:$0x1]  ;;  %v564_v18 = vsel %vm307_vm3, %v563_v50, %v562_v14  ;;  %v699_v51 = vsel %vm298_vm0, %v698_v61, %v2184_v58  ;;  %v2176_v19 = vld [vmem:[%s2920_s16 + $0x20a0] sm:$0x1]  ;;  %v2181_v22 = vld [vmem:[%s2920_s16 + $0x2528] sm:$0x1] }
  0x2b   : >>> { %2379 = vmatmul.mubr.msk.f32.gmra.mxu0 %vm325_vm9, %v3008_v42  ;;  %2388 = vmatprep.mubr.msk.f32.mxu1 %vm2793_vm6, %v2792_v12  ;;  %v2180_v20 = vld [vmem:[%s2920_s16 + $0x2440] sm:$0x1]  ;;  %v566_v23 = vsel %vm310_vm4, %v565_v52, %v564_v18  ;;  %v701_v24 = vsel %vm301_vm1, %v700_v63, %v699_v51  ;;  %v2182_v25 = vld [vmem:[%s2920_s16 + $0x2610] sm:$0x1]  ;;  %v684_v26 = vrot.slane %v2177_v15, 7  ;;  %v686_v27 = vrot.slane %v2178_v16, 6 }
  0x2c   : >>> { %2398 = vmatprep.mubr.msk.f32.mxu0 %vm2793_vm6, %v2792_v12  ;;  %v568_v28 = vsel %vm313_vm7, %v567_v56, %v566_v23  ;;  %v703_v30 = vsel %vm304_vm2, %v702_v13, %v701_v24  ;;  %v2183_v31 = vld [vmem:[%s2920_s16 + $0x26f8] sm:$0x1]  ;;  %v688_v32 = vrot.slane %v2179_v17, 5  ;;  %v690_v33 = vrot.slane %v2180_v20, 4  ;;  %v2212_v47 = vld [vmem:[%s2948_s21 + $0x40] sm:$0x3] }
  0x2d   : >>> { %v570_v34 = vsel %vm316_vm8, %v569_v57, %v568_v28  ;;  %v685_v35 = vsel %vm298_vm0, %v684_v26, %v2176_v19  ;;  %v692_v36 = vrot.slane %v2181_v22, 3  ;;  %v694_v38 = vrot.slane %v2182_v25, 2  ;;  %2408 = vmatpush3.msk.msra.mxu1 %vm335_vm5, %v703_v30  ;;  %v2211_v46 = vld [vmem:[%s2948_s21 + $0x38] sm:$0xff] }
  0x2e   : >>> { %2389 = vmatmul.mubr.msk.f32.gmra.mxu1 %vm325_vm9, %v2984_v21  ;;  %2397 = vmatpush3.msra.mxu0 %v570_v34  ;;  %v687_v37 = vsel %vm301_vm1, %v686_v27, %v685_v35  ;;  %v696_v40 = vrot.slane %v2183_v31, 1  ;;  %v2199_v21 = vld [vmem:[%s2948_s21 + $0x20] sm:$0xff] }
  0x2f   : >>> { %2391 = vmatprep.mubr.msk.f32.mxu1 %vm2793_vm6, %v2792_v12  ;;  %2399 = vmatmul.mubr.msk.f32.vlgmr.msra.gmra.mxu0 %vm325_vm9, %v2198_v29  ;;  %v689_v39 = vsel %vm304_vm2, %v688_v32, %v687_v37 }
  0x30   : >>> { %2401 = vmatprep.mubr.msk.f32.mxu0 %vm2793_vm6, %v2792_v12  ;;  %2409 = vmatprep.subr.mxu1 %v2792_v12  ;;  %v691_v41 = vsel %vm307_vm3, %v690_v33, %v689_v39 }
  0x31   : >>> { %2420 = vmatprep.subr.mxu0 %v2792_v12  ;;  %v693_v43 = vsel %vm310_vm4, %v692_v36, %v691_v41 }
  0x32   : >>> { %2392 = vmatmul.mubr.msk.f32.gmra.mxu1 %vm325_vm9, %v3008_v42  ;;  %v695_v44 = vsel %vm313_vm7, %v694_v38, %v693_v43  ;;  %2421 = vmatpush3.msk.msra.mxu0 %vm335_vm5, %v2974_v62  ;;  %v2200_v42 = vld [vmem:[%s2948_s21 + $0x28] sm:$0x3]  ;;  %v2210_v62 = vld [vmem:[%s2948_s21 + $0x30] sm:$0xff] }
  0x33   : >>> { %2411 = vmatprep.mubr.msk.f32.mxu1 %vm2793_vm6, %v2792_v12  ;;  %2402 = vmatmul.mubr.msk.f32.gmra.mxu0 %vm325_vm9, %v2199_v21  ;;  %v697_v45 = vsel %vm316_vm8, %v696_v40, %v695_v44 }
  0x34   : >>> { %2422 = vmatprep.subr.mxu0 %v2792_v12  ;;  %2404 = vmatprep.mubr.msk.f32.mxu0 %vm2793_vm6, %v2792_v12 }
  0x35   : >>> { %2410 = vmatpush3.msra.mxu1 %v697_v45  ;;  %2423 = vmatpush3.msra.mxu0 %v3020_v54 }
  0x36   : >>> { %2412 = vmatmul.mubr.msk.f32.vlgmr.msra.gmra.mxu1 %vm325_vm9, %v2198_v29  ;;  %2433 = vmatprep.subr.mxu1 %v2792_v12 }
  0x37   : >>> { %2414 = vmatprep.mubr.msk.f32.mxu1 %vm2793_vm6, %v2792_v12  ;;  %2405 = vmatmul.mubr.msk.f32.gmra.mxu0 %vm325_vm9, %v2200_v42 }
  0x38   : >>> { %2424 = vmatprep.mubr.msk.f32.mxu0 %vm2793_vm6, %v2792_v12 }
  0x3a   : >>> { %2415 = vmatmul.mubr.msk.f32.gmra.mxu1 %vm325_vm9, %v2199_v21 }
  0x3b   : >>> { %2417 = vmatprep.mubr.msk.f32.mxu1 %vm2793_vm6, %v2792_v12  ;;  %2425 = vmatmul.mubr.msk.f32.vlgmr.msra.gmra.mxu0 %vm325_vm9, %v2210_v62 }
  0x3c   : >>> { %2427 = vmatprep.mubr.msk.f32.mxu0 %vm2793_vm6, %v2792_v12 }
  0x3e   : >>> { %2418 = vmatmul.mubr.msk.f32.gmra.mxu1 %vm325_vm9, %v2200_v42 }
  0x3f   : >>> { %2437 = vmatprep.mubr.msk.f32.mxu1 %vm2793_vm6, %v2792_v12  ;;  %2428 = vmatmul.mubr.msk.f32.gmra.mxu0 %vm325_vm9, %v2211_v46 }
  0x40   : >>> { %2430 = vmatprep.mubr.msk.f32.mxu0 %vm2793_vm6, %v2792_v12 }
  0x43   : >>> { %2431 = vmatmul.mubr.msk.f32.gmra.mxu0 %vm325_vm9, %v2212_v47 }
  0x8d   : >>> { %v891_v48 = vpop.permute.xlu0 %890 }
  0x8e   : >>> { %2434 = vmatpush3.msk.msra.mxu1 %vm335_vm5, %v891_v48 }
  0x8f   : >>> { %2435 = vmatprep.subr.mxu1 %v2792_v12 }
  0x94   : >>> { %v889_v49 = vpop.permute.xlu0 %888 }
  0x95   : >>> { %2436 = vmatpush3.msra.mxu1 %v889_v49 }
  0x96   : >>> { %2438 = vmatmul.mubr.msk.f32.vlgmr.msra.gmra.mxu1 %vm325_vm9, %v2210_v62 }
  0x97   : >>> { %2440 = vmatprep.mubr.msk.f32.mxu1 %vm2793_vm6, %v2792_v12 }
  0x9a   : >>> { %2441 = vmatmul.mubr.msk.f32.gmra.mxu1 %vm325_vm9, %v2211_v46  ;;  %v2795_v46 = vmov (%p212_p4), 0  }
  0x9b   : >>> { %2443 = vmatprep.mubr.msk.f32.mxu1 %vm2793_vm6, %v2792_v12  ;;  %2663 = vset.pattern.permute.xlu1 (%p212_p4), %v2795_v46 }
  0x9c   : >> { %2662 = vset.pattern.permute.xlu0 (%p212_p4), %v2795_v46  ;;  %990 = vperm.xlu1 (%p212_p4), %2663, %v2846_v2  }
  0x9d   : >> { %980 = vperm.xlu0 (%p212_p4), %2662, %v2836_v0  }
  0x9e   : >>> { %2444 = vmatmul.mubr.msk.f32.gmra.mxu1 %vm325_vm9, %v2212_v47 }
  0xa0   : >> { %998 = vperm.xlu1 (%p212_p4), %2663, %v2851_v3  }
  0xa1   : >> { %985 = vperm.xlu0 (%p212_p4), %2662, %v2841_v1  }
  0xa4   : >> { %1008 = vperm.xlu1 (%p212_p4), %2663, %v2861_v5  }
  0xa5   : >> { %1003 = vperm.xlu0 (%p212_p4), %2662, %v2856_v4  }
  0xe3   : >>> { %v404_v50 = vpop.f32.mrf.mxu0 }
  0xe4   : >>> { %v418_v58 = vadd.f32 %v2758_v11, %v404_v50 }
  0xe5   : >>> { %v2374_v52 = vpop.f32.mrf.mxu0 }
  0xe7   : >>> { %v409_v53 = vpop.f32.mrf.mxu0 }
  0xe8   : >>> { %v419_v13 = vadd.f32 %v2754_v10, %v409_v53 }
  0xe9   : >>> { %v2377_v54 = vpop.f32.mrf.mxu0 }
  0xea   : >>> { %v522_v55 = vpop.f32.mrf.mxu1 }
  0xeb   : >>> { %v414_v56 = vpop.f32.mrf.mxu0  ;;  %v536_v16 = vadd.f32 %v2746_v8, %v522_v55 }
  0xec   : >>> { %v2387_v57 = vpop.f32.mrf.mxu1  ;;  %v420_v51 = vadd.f32 %v2750_v9, %v414_v56 }
  0xed   : >>> { %v2380_v59 = vpop.f32.mrf.mxu0 }
  0xee   : >>> { %v527_v60 = vpop.f32.mrf.mxu1 }
  0xef   : >>> { %v655_v61 = vpop.f32.mrf.mxu0  ;;  %v537_v11 = vadd.f32 %v2742_v7, %v527_v60 }
  0xf0   : >>> { %v2390_v63 = vpop.f32.mrf.mxu1  ;;  %v669_v14 = vadd.f32 %v655_v61, %v418_v58 }
  0xf1   : >>> { %v2400_v15 = vpop.f32.mrf.mxu0 }
  0xf2   : >>> { %v532_v12 = vpop.f32.mrf.mxu1 }
  0xf3   : >>> { %v660_v17 = vpop.f32.mrf.mxu0  ;;  %v538_v28 = vadd.f32 %v2738_v6, %v532_v12 }
  0xf4   : >>> { %v2393_v18 = vpop.f32.mrf.mxu1  ;;  %v670_v19 = vadd.f32 %v660_v17, %v419_v13 }
  0xf5   : >>> { %v2403_v20 = vpop.f32.mrf.mxu0 }
  0xf6   : >>> { %v773_v22 = vpop.f32.mrf.mxu1  ;;  %v3186_v20 = vmov (%p212_p4), 0.0  }
  0xf7   : >>> { %v787_v23 = vadd.f32 %v773_v22, %v536_v16  ;;  %v665_v24 = vpop.f32.mrf.mxu0  ;;  %v3188_v22 = vmov (%p212_p4), 0.0  }
  0xf8   : >>> { %v2413_v25 = vpop.f32.mrf.mxu1  ;;  %v671_v26 = vadd.f32 %v665_v24, %v420_v51  ;;  %v3194_v24 = vmov (%p212_p4), 0.0  }
  0xf9   : >>> { %v2406_v27 = vpop.f32.mrf.mxu0  ;;  %v3196_v25 = vmov (%p212_p4), 0.0  }
  0xfa   : >>> { %v778_v10 = vpop.f32.mrf.mxu1 }
  0xfb   : >>> { %v788_v29 = vadd.f32 %v778_v10, %v537_v11  ;;  %v871_v30 = vpop.f32.mrf.mxu0 }
  0xfc   : >>> { %v2416_v8 = vpop.f32.mrf.mxu1  ;;  %v885_v31 = vadd.f32 %v871_v30, %v669_v14  }
  0xfd   : >>> { %v2426_v32 = vpop.f32.mrf.mxu0 }
  0xfe   : >>> { %v783_v33 = vpop.f32.mrf.mxu1  ;;  %v3525_v11 = vmov %v885_v31 }
  0xff   : >>> { %v789_v9 = vadd.f32 %v783_v33, %v538_v28  ;;  %v876_v34 = vpop.f32.mrf.mxu0  ;;  %v3190_v11 = vmov (%p212_p4), 0.0  }
 0x100   : >>> { %v2419_v35 = vpop.f32.mrf.mxu1  ;;  %v886_v36 = vadd.f32 %v876_v34, %v670_v19  }
 0x101   : >>> { %v2429_v37 = vpop.f32.mrf.mxu0 }
 0x102   : >>> { %v3524_v10 = vmov %v886_v36 }
 0x103   : >>> { %v881_v7 = vpop.f32.mrf.mxu0 }
 0x104   : >>> { %v887_v38 = vadd.f32 %v881_v7, %v671_v26  }
 0x105   : >>> { %v2432_v39 = vpop.f32.mrf.mxu0 }
 0x117   : >> { %v3144_v47 = vpop.permute.xlu1 (%p212_p4), %990 }
 0x118   : >> { %v3146_v48 = vpop.permute.xlu0 (%p212_p4), %980  ;;  %v995_v56 = vmul.f32 (%p212_p4), %v3144_v47, %v887_v38 }
 0x119   : >> { %v993_v49 = vmul.f32 (%p212_p4), %v3146_v48, %v885_v31 }
 0x11b   : >> { %v3150_v52 = vpop.permute.xlu1 (%p212_p4), %998 }
 0x11c   : >> { %v3152_v53 = vpop.permute.xlu0 (%p212_p4), %985  ;;  %v3155_v54 = vadd.f32 (%p212_p4), %v3150_v52, %v993_v49 }
 0x11d   : >> { %v994_v60 = vmul.f32 (%p212_p4), %v3152_v53, %v886_v36 }
 0x11e   : >> { %v1014_v58 = vmax.f32 (%p212_p4), %v3155_v54, 0.0 }
 0x11f   : >> { %v3166_v63 = vpop.permute.xlu1 (%p212_p4), %1008 }
 0x120   : >> { %v3168_v13 = vpop.permute.xlu0 (%p212_p4), %1003  ;;  %v3171_v14 = vadd.f32 (%p212_p4), %v3166_v63, %v995_v56 }
 0x121   : >> { %v3177_v12 = vadd.f32 (%p212_p4), %v3168_v13, %v994_v60 }
 0x122   : >> { %v1016_v17 = vmax.f32 (%p212_p4), %v3171_v14, 0.0 }
 0x123   : >> { %v1015_v51 = vmax.f32 (%p212_p4), %v3177_v12, 0.0 }
 0x156   : >>> { %v961_v40 = vpop.f32.mrf.mxu1 }
 0x157   : >>> { %v975_v21 = vadd.f32 %v961_v40, %v787_v23   ;;  %v3192_v23 = vmov (%p212_p4), 0.0  }
 0x158   : >>> { %v2439_v41 = vpop.f32.mrf.mxu1 }
 0x159   : >>> { %v3522_v8 = vmov %v975_v21  ;;  %v1017_v50 = vmul.f32 (%p212_p4), %v3146_v48, %v975_v21 }
 0x15a   : >>> { %v966_v43 = vpop.f32.mrf.mxu1 }
 0x15b   : >>> { %v976_v44 = vadd.f32 %v966_v43, %v788_v29   ;;  %v3158_v55 = vadd.f32 (%p212_p4), %v1017_v50, %v3150_v52 }
 0x15c   : >>> { %v2442_v6 = vpop.f32.mrf.mxu1 }
 0x15d   : >>> { %v3521_v7 = vmov %v976_v44  ;;  %214 = sbr.rel (!%p212_p4) target bundleno = 18 (0x12), region = 102  ;;  %v1023_v59 = vmax.f32 (%p212_p4), %v3158_v55, 0.0  ;;  %v1018_v61 = vmul.f32 (%p212_p4), %v3152_v53, %v976_v44 }
 0x15e   : >>> { %v971_v45 = vpop.f32.mrf.mxu1 }
 0x15f   : >>> { %v977_v42 = vadd.f32 %v971_v45, %v789_v9   ;;  %v3523_v9 = vmov %v887_v38  ;;  %v3180_v16 = vadd.f32 (%p212_p4), %v1018_v61, %v3168_v13 }
 0x160   : >>> { %v2445_v62 = vpop.f32.mrf.mxu1 }
 0x161   : >>> { %v3520_v6 = vmov %v977_v42  ;;  %v1019_v57 = vmul.f32 (%p212_p4), %v3144_v47, %v977_v42  ;;  %v1024_v19 = vmax.f32 (%p212_p4), %v3180_v16, 0.0 }
 0x163   : >> { %v3174_v15 = vadd.f32 %v1019_v57, %v3166_v63 }
 0x165   : >> { %v1025_v18 = vmax.f32 %v3174_v15, 0.0 }
 0x166 LB: >>> { %v2796_v26 = vmov 0.0   ;;  %vm2797_vm10 = vmmov 0   ;;  %s2040_s23 = sadd.s32 %s2790_s22, %s2148_s13  ;;  %s2273_s25 = smul.u32 72, %s2790_s22  ;;  %s2790_s22 = sphi %s3198_s22, %s1031_s22   ;;  %v2786_v25 = vphi %v3196_v25, %v3531_v25   ;;  %v2782_v24 = vphi %v3194_v24, %v3530_v24   ;;  %v2778_v23 = vphi %v3192_v23, %v3529_v23   ;;  %v2774_v11 = vphi %v3190_v11, %v3528_v11   ;;  %v2770_v22 = vphi %v3188_v22, %v3527_v22   ;;  %v2766_v20 = vphi %v3186_v20, %v3526_v20  }
 0x167   : >>> { %2446 = vmatprep.subr.mxu0 %v2796_v26  ;;  %2450 = vmatprep.mubr.msk.f32.mxu0 %vm2797_vm10, %v2796_v26  ;;  %s3231_s24 = scalar_lea.vmem %s2866_s7, %s2040_s23  ;;  %s2798_s26 = smov 127  }
 0x168   : >>> { %2459 = vmatprep.subr.mxu1 %v2796_v26  ;;  %2463 = vmatprep.mubr.msk.f32.mxu1 %vm2797_vm10, %v2796_v26  ;;  %v2230_v27 = vld [vmem:[%s3231_s24 + $0x742] sm:$0x1]  ;;  %v2231_v10 = vld [vmem:[%s3231_s24 + $0x82a] sm:$0x1]  ;;  %v2232_v28 = vld [vmem:[%s3231_s24 + $0x912] sm:$0x1]  ;;  %s3255_s29 = scalar_lea.vmem %s3516_s1, %s2273_s25 }
 0x169   : >>> { %v2233_v29 = vld [vmem:[%s3231_s24 + $0x9fa] sm:$0x1]  ;;  %v1135_v30 = vrot.slane %v2231_v10, 7  ;;  %v1137_v8 = vrot.slane %v2232_v28, 6  ;;  %v2222_v31 = vld [vmem:[%s3231_s24 + $0x2] sm:$0x1] }
 0x16a   : >>> { %v1139_v32 = vrot.slane %v2233_v29, 5  ;;  %v2223_v33 = vld [vmem:[%s3231_s24 + $0xea] sm:$0x1]  ;;  %v2224_v9 = vld [vmem:[%s3231_s24 + $0x1d2] sm:$0x1]  ;;  %s1031_s22 = sadd.s32 1, %s2790_s22  }
 0x16b   : >>> { %v1136_v34 = vsel %vm298_vm0, %v1135_v30, %v2230_v27  ;;  %v2225_v35 = vld [vmem:[%s3231_s24 + $0x2ba] sm:$0x1]  ;;  %v2226_v36 = vld [vmem:[%s3231_s24 + $0x3a2] sm:$0x1]  ;;  %v2227_v37 = vld [vmem:[%s3231_s24 + $0x48a] sm:$0x1] }
 0x16c   : >>> { %v1138_v7 = vsel %vm301_vm1, %v1137_v8, %v1136_v34  ;;  %v2228_v38 = vld [vmem:[%s3231_s24 + $0x572] sm:$0x1]  ;;  %v1114_v39 = vrot.slane %v2223_v33, 7  ;;  %v1117_v40 = vrot.slane %v2224_v9, 6  ;;  %v2229_v41 = vld [vmem:[%s3231_s24 + $0x65a] sm:$0x1] }
 0x16d   : >>> { %v1140_v21 = vsel %vm304_vm2, %v1139_v32, %v1138_v7  ;;  %v1120_v43 = vrot.slane %v2225_v35, 5  ;;  %v1123_v44 = vrot.slane %v2226_v36, 4  ;;  %v1126_v6 = vrot.slane %v2227_v37, 3  ;;  %v2256_v42 = vld [vmem:[%s3231_s24 + $0x1d02] sm:$0x1]  ;;  %p1028_p5 = scmp.ge.s32.totalorder %s1031_s22, 3  }
 0x16e   : >>> { %1707 = vrot.lane.b32.xlu0 %v1140_v21, %s2798_s26  ;;  %v1116_v45 = vsel %vm298_vm0, %v1114_v39, %v2222_v31  ;;  %2447 = vmatpush3.msk.msra.mxu0 %vm335_vm5, %v1140_v21  ;;  %v2257_v62 = vld [vmem:[%s3231_s24 + $0x1dea] sm:$0x1]  ;;  %v2258_v46 = vld [vmem:[%s3231_s24 + $0x1ed2] sm:$0x1]  ;;  %v1129_v50 = vrot.slane %v2228_v38, 2  ;;  %v1132_v27 = vrot.slane %v2229_v41, 1  ;;  %s3471_s30 = scalar_lea.vmem (%p1028_p5), %s2871_s10, %s2734_s11 }
 0x16f   : >>> { %v1119_v49 = vsel %vm301_vm1, %v1117_v40, %v1116_v45  ;;  %2448 = vmatprep.subr.mxu0 %v2796_v26  ;;  %v2259_v56 = vld [vmem:[%s3231_s24 + $0x1fba] sm:$0x1]  ;;  %v1264_v57 = vrot.slane %v2257_v62, 7  ;;  %v1266_v60 = vrot.slane %v2258_v46, 6  ;;  %v2248_v28 = vld [vmem:[%s3231_s24 + $0x15c2] sm:$0x1] }
 0x170   : >>> { %v1122_v61 = vsel %vm304_vm2, %v1120_v43, %v1119_v49  ;;  %v1268_v10 = vrot.slane %v2259_v56, 5  ;;  %v2249_v29 = vld [vmem:[%s3231_s24 + $0x16aa] sm:$0x1]  ;;  %v3268_v8 = vld [vmem:[%s3255_s29] sm:$0xff]  ;;  %v2250_v32 = vld [vmem:[%s3231_s24 + $0x1792] sm:$0x1] }
 0x171   : >>> { %v1125_v30 = vsel %vm307_vm3, %v1123_v44, %v1122_v61  ;;  %v1265_v31 = vsel %vm298_vm0, %v1264_v57, %v2256_v42  ;;  %v2251_v33 = vld [vmem:[%s3231_s24 + $0x187a] sm:$0x1]  ;;  %v2252_v9 = vld [vmem:[%s3231_s24 + $0x1962] sm:$0x1]  ;;  %v2253_v36 = vld [vmem:[%s3231_s24 + $0x1a4a] sm:$0x1] }
 0x172   : >>> { %v1128_v34 = vsel %vm310_vm4, %v1126_v6, %v1125_v30  ;;  %v1267_v35 = vsel %vm301_vm1, %v1266_v60, %v1265_v31  ;;  %v2254_v37 = vld [vmem:[%s3231_s24 + $0x1b32] sm:$0x1]  ;;  %v2255_v7 = vld [vmem:[%s3231_s24 + $0x1c1a] sm:$0x1]  ;;  %v1250_v40 = vrot.slane %v2249_v29, 7  ;;  %v1252_v21 = vrot.slane %v2250_v32, 6 }
 0x173   : >>> { %v1131_v38 = vsel %vm313_vm7, %v1129_v50, %v1128_v34  ;;  %v3281_v39 = vsel %vm304_vm2, %v1268_v10, %v1267_v35  ;;  %v2243_v41 = vld [vmem:[%s3231_s24 + $0x1222] sm:$0x1]  ;;  %v2244_v43 = vld [vmem:[%s3231_s24 + $0x130a] sm:$0x1]  ;;  %v1254_v6 = vrot.slane %v2251_v33, 5  ;;  %v1256_v45 = vrot.slane %v2252_v9, 4 }
 0x174   : >>> { %v1134_v44 = vsel %vm316_vm8, %v1132_v27, %v1131_v38  ;;  %2460 = vmatpush3.msk.msra.mxu1 %vm335_vm5, %v3281_v39  ;;  %v1258_v42 = vrot.slane %v2253_v36, 3  ;;  %v2245_v62 = vld [vmem:[%s3231_s24 + $0x13f2] sm:$0x1]  ;;  %v3291_v46 = vld [vmem:[%s3255_s29 + $0x8] sm:$0xff]  ;;  %v1251_v49 = vsel %vm298_vm0, %v1250_v40, %v2248_v28  ;;  %v1260_v50 = vrot.slane %v2254_v37, 2  ;;  %s209_s11 = sadd.s32 (%p1028_p5), 1, %s2734_s11  }
 0x175   : >>> { %1705 = vrot.lane.b32.xlu0 %v1134_v44, %s2798_s26  ;;  %2449 = vmatpush3.msra.mxu0 %v1134_v44  ;;  %v1262_v56 = vrot.slane %v2255_v7, 1  ;;  %v2246_v57 = vld [vmem:[%s3231_s24 + $0x14da] sm:$0x1]  ;;  %v1388_v60 = vrot.slane %v2244_v43, 7  ;;  %v1253_v61 = vsel %vm301_vm1, %v1252_v21, %v1251_v49  ;;  %v1390_v27 = vrot.slane %v2245_v62, 6  ;;  %p206_p6 = scmp.ge.s32.totalorder (%p1028_p5), %s209_s11, 56  }
 0x176   : >>> { %2451 = vmatmul.mubr.msk.f32.vlgmr.msra.gmra.mxu0 %vm325_vm9, %v3268_v8  ;;  %2461 = vmatprep.subr.mxu1 %v2796_v26  ;;  %v1392_v10 = vrot.slane %v2246_v57, 5  ;;  %v2235_v28 = vld [vmem:[%s3231_s24 + $0xae2] sm:$0x1]  ;;  %v2236_v29 = vld [vmem:[%s3231_s24 + $0xbca] sm:$0x1]  ;;  %v1255_v30 = vsel %vm304_vm2, %v1254_v6, %v1253_v61  ;;  %vm1964_vm11 = vcmask (%p1028_p5), 450560  }
 0x177   : >>> { %2453 = vmatprep.mubr.msk.f32.mxu0 %vm2797_vm10, %v2796_v26  ;;  %2472 = vmatprep.subr.mxu0 %v2796_v26  ;;  %v1389_v31 = vsel %vm298_vm0, %v1388_v60, %v2243_v41  ;;  %v2237_v32 = vld [vmem:[%s3231_s24 + $0xcb2] sm:$0x1]  ;;  %v2238_v33 = vld [vmem:[%s3231_s24 + $0xd9a] sm:$0x1]  ;;  %v2239_v9 = vld [vmem:[%s3231_s24 + $0xe82] sm:$0x1]  ;;  %v1257_v34 = vsel %vm307_vm3, %v1256_v45, %v1255_v30 }
 0x178   : >>> { %v1391_v35 = vsel %vm301_vm1, %v1390_v27, %v1389_v31  ;;  %v2240_v36 = vld [vmem:[%s3231_s24 + $0xf6a] sm:$0x1]  ;;  %v2241_v37 = vld [vmem:[%s3231_s24 + $0x1052] sm:$0x1]  ;;  %v2242_v7 = vld [vmem:[%s3231_s24 + $0x113a] sm:$0x1]  ;;  %v1259_v40 = vsel %vm310_vm4, %v1258_v42, %v1257_v34 }
 0x179   : >>> { %v3315_v38 = vld [vmem:[%s3255_s29 + $0x10] sm:$0x3]  ;;  %v1393_v21 = vsel %vm304_vm2, %v1392_v10, %v1391_v35  ;;  %v1374_v43 = vrot.slane %v2236_v29, 7  ;;  %v1376_v41 = vrot.slane %v2237_v32, 6  ;;  %v2270_v44 = vld [vmem:[%s3231_s24 + $0x28ca] sm:$0x1]  ;;  %v1261_v6 = vsel %vm313_vm7, %v1260_v50, %v1259_v40 }
 0x17a   : >>> { %2454 = vmatmul.mubr.msk.f32.gmra.mxu0 %vm325_vm9, %v3291_v46  ;;  %v1378_v45 = vrot.slane %v2238_v33, 5  ;;  %v1380_v62 = vrot.slane %v2239_v9, 4  ;;  %v1382_v49 = vrot.slane %v2240_v36, 3  ;;  %v2271_v57 = vld [vmem:[%s3231_s24 + $0x29b2] sm:$0x1]  ;;  %v3327_v42 = vsel %vm316_vm8, %v1262_v56, %v1261_v6  ;;  %v2283_v6 = vld [vmem:[%s3255_s29 + $0x18] sm:$0xff] }
 0x17b   : >>> { %2456 = vmatprep.mubr.msk.f32.mxu0 %vm2797_vm10, %v2796_v26  ;;  %2473 = vmatpush3.msk.msra.mxu0 %vm335_vm5, %v1393_v21  ;;  %v1375_v60 = vsel %vm298_vm0, %v1374_v43, %v2235_v28  ;;  %v1384_v61 = vrot.slane %v2241_v37, 2  ;;  %v1386_v27 = vrot.slane %v2242_v7, 1  ;;  %v2269_v50 = vld [vmem:[%s3231_s24 + $0x27e2] sm:$0x1]  ;;  %v2272_v10 = vld [vmem:[%s3231_s24 + $0x2a9a] sm:$0x1] }
 0x17c   : >>> { %2462 = vmatpush3.msra.mxu1 %v3327_v42  ;;  %2474 = vmatprep.subr.mxu0 %v2796_v26  ;;  %v1377_v56 = vsel %vm301_vm1, %v1376_v41, %v1375_v60  ;;  %v1515_v29 = vrot.slane %v2270_v44, 7  ;;  %v1517_v30 = vrot.slane %v2271_v57, 6  ;;  %v1519_v31 = vrot.slane %v2272_v10, 5  ;;  %v2262_v32 = vld [vmem:[%s3231_s24 + $0x218a] sm:$0x1] }
 0x17d   : >>> { %2464 = vmatmul.mubr.msk.f32.vlgmr.msra.gmra.mxu1 %vm325_vm9, %v3268_v8  ;;  %v1379_v28 = vsel %vm304_vm2, %v1378_v45, %v1377_v56  ;;  %2485 = vmatprep.subr.mxu1 %v2796_v26  ;;  %v2263_v33 = vld [vmem:[%s3231_s24 + $0x2272] sm:$0x1]  ;;  %v2264_v9 = vld [vmem:[%s3231_s24 + $0x235a] sm:$0x1]  ;;  %v2261_v35 = vld [vmem:[%s3231_s24 + $0x20a2] sm:$0x1] }
 0x17e   : >>> { %2457 = vmatmul.mubr.msk.f32.gmra.mxu0 %vm325_vm9, %v3315_v38  ;;  %v1381_v34 = vsel %vm307_vm3, %v1380_v62, %v1379_v28  ;;  %2466 = vmatprep.mubr.msk.f32.mxu1 %vm2797_vm10, %v2796_v26  ;;  %v1516_v8 = vsel %vm298_vm0, %v1515_v29, %v2269_v50  ;;  %v2265_v36 = vld [vmem:[%s3231_s24 + $0x2442] sm:$0x1]  ;;  %v2266_v37 = vld [vmem:[%s3231_s24 + $0x252a] sm:$0x1]  ;;  %v2267_v21 = vld [vmem:[%s3231_s24 + $0x2612] sm:$0x1] }
 0x17f   : >>> { %v1383_v7 = vsel %vm310_vm4, %v1382_v49, %v1381_v34  ;;  %2476 = vmatprep.mubr.msk.f32.mxu0 %vm2797_vm10, %v2796_v26  ;;  %v1518_v40 = vsel %vm301_vm1, %v1517_v30, %v1516_v8  ;;  %v1501_v43 = vrot.slane %v2262_v32, 7  ;;  %v1503_v41 = vrot.slane %v2263_v33, 6  ;;  %v2268_v62 = vld [vmem:[%s3231_s24 + $0x26fa] sm:$0x1]  ;;  %v2297_v33 = vld [vmem:[%s3255_s29 + $0x40] sm:$0x3] }
 0x180   : >>> { %v1385_v44 = vsel %vm313_vm7, %v1384_v61, %v1383_v7  ;;  %v1520_v45 = vsel %vm304_vm2, %v1519_v31, %v1518_v40  ;;  %v1505_v57 = vrot.slane %v2264_v9, 5  ;;  %v1507_v60 = vrot.slane %v2265_v36, 4 }
 0x181   : >>> { %v1387_v50 = vsel %vm316_vm8, %v1386_v27, %v1385_v44  ;;  %2467 = vmatmul.mubr.msk.f32.gmra.mxu1 %vm325_vm9, %v3291_v46  ;;  %v1502_v49 = vsel %vm298_vm0, %v1501_v43, %v2261_v35  ;;  %v1509_v10 = vrot.slane %v2266_v37, 3  ;;  %v1511_v56 = vrot.slane %v2267_v21, 2  ;;  %v2284_v46 = vld [vmem:[%s3255_s29 + $0x20] sm:$0xff] }
 0x182   : >>> { %2475 = vmatpush3.msra.mxu0 %v1387_v50  ;;  %2469 = vmatprep.mubr.msk.f32.mxu1 %vm2797_vm10, %v2796_v26  ;;  %v1504_v61 = vsel %vm301_vm1, %v1503_v41, %v1502_v49  ;;  %v1513_v27 = vrot.slane %v2268_v62, 1 }
 0x183   : >>> { %2477 = vmatmul.mubr.msk.f32.vlgmr.msra.gmra.mxu0 %vm325_vm9, %v2283_v6  ;;  %2486 = vmatpush3.msk.msra.mxu1 %vm335_vm5, %v1520_v45  ;;  %v1506_v29 = vsel %vm304_vm2, %v1505_v57, %v1504_v61 }
 0x184   : >>> { %2479 = vmatprep.mubr.msk.f32.mxu0 %vm2797_vm10, %v2796_v26  ;;  %2487 = vmatprep.subr.mxu1 %v2796_v26  ;;  %v1508_v30 = vsel %vm307_vm3, %v1507_v60, %v1506_v29 }
 0x185   : >>> { %2470 = vmatmul.mubr.msk.f32.gmra.mxu1 %vm325_vm9, %v3315_v38  ;;  %2498 = vmatprep.subr.mxu0 %v2796_v26  ;;  %v1510_v31 = vsel %vm310_vm4, %v1509_v10, %v1508_v30  ;;  %v2285_v38 = vld [vmem:[%s3255_s29 + $0x28] sm:$0x3] }
 0x186   : >>> { %v1512_v28 = vsel %vm313_vm7, %v1511_v56, %v1510_v31  ;;  %2489 = vmatprep.mubr.msk.f32.mxu1 %vm2797_vm10, %v2796_v26  ;;  %2499 = vmatpush3.msk.msra.mxu0 %vm335_vm5, %v3281_v39  ;;  %v2295_v39 = vld [vmem:[%s3255_s29 + $0x30] sm:$0xff] }
 0x187   : >>> { %2480 = vmatmul.mubr.msk.f32.gmra.mxu0 %vm325_vm9, %v2284_v46  ;;  %v1514_v32 = vsel %vm316_vm8, %v1513_v27, %v1512_v28  ;;  %2500 = vmatprep.subr.mxu0 %v2796_v26 }
 0x188   : >>> { %2482 = vmatprep.mubr.msk.f32.mxu0 %vm2797_vm10, %v2796_v26  ;;  %2488 = vmatpush3.msra.mxu1 %v1514_v32 }
 0x189   : >>> { %2490 = vmatmul.mubr.msk.f32.vlgmr.msra.gmra.mxu1 %vm325_vm9, %v2283_v6  ;;  %2501 = vmatpush3.msra.mxu0 %v3327_v42  ;;  %v2296_v42 = vld [vmem:[%s3255_s29 + $0x38] sm:$0xff] }
 0x18a   : >>> { %2492 = vmatprep.mubr.msk.f32.mxu1 %vm2797_vm10, %v2796_v26  ;;  %2511 = vmatprep.subr.mxu1 %v2796_v26 }
 0x18b   : >>> { %2483 = vmatmul.mubr.msk.f32.gmra.mxu0 %vm325_vm9, %v2285_v38 }
 0x18c   : >>> { %2502 = vmatprep.mubr.msk.f32.mxu0 %vm2797_vm10, %v2796_v26 }
 0x18d   : >>> { %2493 = vmatmul.mubr.msk.f32.gmra.mxu1 %vm325_vm9, %v2284_v46 }
 0x18e   : >>> { %2495 = vmatprep.mubr.msk.f32.mxu1 %vm2797_vm10, %v2796_v26 }
 0x18f   : >>> { %2503 = vmatmul.mubr.msk.f32.vlgmr.msra.gmra.mxu0 %vm325_vm9, %v2295_v39 }
 0x190   : >>> { %2505 = vmatprep.mubr.msk.f32.mxu0 %vm2797_vm10, %v2796_v26 }
 0x191   : >>> { %2496 = vmatmul.mubr.msk.f32.gmra.mxu1 %vm325_vm9, %v2285_v38 }
 0x192   : >>> { %2515 = vmatprep.mubr.msk.f32.mxu1 %vm2797_vm10, %v2796_v26 }
 0x193   : >>> { %2506 = vmatmul.mubr.msk.f32.gmra.mxu0 %vm325_vm9, %v2296_v42 }
 0x194   : >>> { %2508 = vmatprep.mubr.msk.f32.mxu0 %vm2797_vm10, %v2796_v26 }
 0x197   : >>> { %2509 = vmatmul.mubr.msk.f32.gmra.mxu0 %vm325_vm9, %v2297_v33 }
 0x1e0   : >>> { %v1708_v9 = vpop.permute.xlu0 %1707 }
 0x1e1   : >>> { %2512 = vmatpush3.msk.msra.mxu1 %vm335_vm5, %v1708_v9 }
 0x1e2   : >>> { %2513 = vmatprep.subr.mxu1 %v2796_v26 }
 0x1e7   : >>> { %v1706_v34 = vpop.permute.xlu0 %1705 }
 0x1e8   : >>> { %2514 = vmatpush3.msra.mxu1 %v1706_v34 }
 0x1e9   : >>> { %2516 = vmatmul.mubr.msk.f32.vlgmr.msra.gmra.mxu1 %vm325_vm9, %v2295_v39 }
 0x1ea   : >>> { %2518 = vmatprep.mubr.msk.f32.mxu1 %vm2797_vm10, %v2796_v26 }
 0x1ed   : >>> { %2519 = vmatmul.mubr.msk.f32.gmra.mxu1 %vm325_vm9, %v2296_v42 }
 0x1ee   : >>> { %2521 = vmatprep.mubr.msk.f32.mxu1 %vm2797_vm10, %v2796_v26 }
 0x1f1   : >>> { %2522 = vmatmul.mubr.msk.f32.gmra.mxu1 %vm325_vm9, %v2297_v33 }
 0x236   : >>> { %v1221_v8 = vpop.f32.mrf.mxu0 }
 0x237   : >>> { %v1235_v43 = vadd.f32 %v2786_v25, %v1221_v8 }
 0x238   : >>> { %v2452_v35 = vpop.f32.mrf.mxu0 }
 0x23a   : >>> { %v1226_v36 = vpop.f32.mrf.mxu0 }
 0x23b   : >>> { %v1236_v62 = vadd.f32 %v2782_v24, %v1226_v36 }
 0x23c   : >>> { %v2455_v37 = vpop.f32.mrf.mxu0 }
 0x23d   : >>> { %v1339_v7 = vpop.f32.mrf.mxu1 }
 0x23e   : >>> { %v1231_v40 = vpop.f32.mrf.mxu0  ;;  %v1353_v50 = vadd.f32 %v2774_v11, %v1339_v7 }
 0x23f   : >>> { %v2465_v21 = vpop.f32.mrf.mxu1  ;;  %v1237_v61 = vadd.f32 %v2778_v23, %v1231_v40 }
 0x240   : >>> { %v2458_v41 = vpop.f32.mrf.mxu0 }
 0x241   : >>> { %v1344_v44 = vpop.f32.mrf.mxu1 }
 0x242   : >>> { %v1354_v25 = vadd.f32 %v2770_v22, %v1344_v44 }
 0x243   : >>> { %v1472_v6 = vpop.f32.mrf.mxu0  ;;  %v2468_v45 = vpop.f32.mrf.mxu1 }
 0x244   : >>> { %v1486_v57 = vadd.f32 %v1472_v6, %v1235_v43 }
 0x245   : >>> { %v2478_v60 = vpop.f32.mrf.mxu0  ;;  %v1349_v26 = vpop.f32.mrf.mxu1 }
 0x246   : >>> { %v1355_v38 = vadd.f32 %v2766_v20, %v1349_v26 }
 0x247   : >>> { %v1477_v49 = vpop.f32.mrf.mxu0  ;;  %v2471_v10 = vpop.f32.mrf.mxu1 }
 0x248   : >>> { %v1487_v56 = vadd.f32 %v1477_v49, %v1236_v62  ;;  %v1829_v10 = vlaneseq (%p1028_p5) }
 0x249   : >>> { %v2481_v29 = vpop.f32.mrf.mxu0  ;;  %v1590_v27 = vpop.f32.mrf.mxu1 }
 0x24a   : >>> { %v1604_v46 = vadd.f32 %v1590_v27, %v1353_v50  ;;  %v2799_v50 = vmov (%p1028_p5), 1966171168   ;;  %v1813_v27 = vmax.f32 (%p1028_p5), %v1014_v58, %v1023_v59 }
 0x24b   : >>> { %v1482_v30 = vpop.f32.mrf.mxu0  ;;  %v2491_v31 = vpop.f32.mrf.mxu1  ;;  %v1827_v49 = vunpack.c.l.s4 (%p1028_p5), %v2799_v50 }
 0x24c   : >>> { %v1488_v28 = vadd.f32 %v1482_v30, %v1237_v61  ;;  %v1830_v30 = vshrl.u32 (%p1028_p5), %v1829_v10, 7 }
 0x24d   : >>> { %v2484_v32 = vpop.f32.mrf.mxu0  ;;  %v1595_v24 = vpop.f32.mrf.mxu1 }
 0x24e   : >>> { %v1605_v39 = vadd.f32 %v1595_v24, %v1354_v25 }
 0x24f   : >>> { %v1688_v42 = vpop.f32.mrf.mxu0  ;;  %v2494_v11 = vpop.f32.mrf.mxu1 }
 0x250   : >>> { %v1702_v33 = vadd.f32 %v1688_v42, %v1486_v57  }
 0x251   : >>> { %v2504_v9 = vpop.f32.mrf.mxu0  ;;  %v1600_v34 = vpop.f32.mrf.mxu1 }
 0x252   : >>> { %v1606_v23 = vadd.f32 %v1600_v34, %v1355_v38  ;;  %v3531_v25 = vmov %v1702_v33  ;;  %v1795_v57 = vmul.f32 (%p1028_p5), %v1702_v33, %v3146_v48 }
 0x253   : >>> { %v1693_v8 = vpop.f32.mrf.mxu0  ;;  %v2497_v35 = vpop.f32.mrf.mxu1 }
 0x254   : >>> { %v1703_v36 = vadd.f32 %v1693_v8, %v1487_v56   ;;  %v1798_v56 = vadd.f32 (%p1028_p5), %v1795_v57, %v3150_v52 }
 0x255   : >>> { %v2507_v37 = vpop.f32.mrf.mxu0 }
 0x256   : >>> { %v3530_v24 = vmov %v1703_v36  ;;  %v1796_v61 = vmul.f32 (%p1028_p5), %v1703_v36, %v3152_v53 }
 0x257   : >>> { %v1698_v22 = vpop.f32.mrf.mxu0 }
 0x258   : >>> { %v1704_v7 = vadd.f32 %v1698_v22, %v1488_v28   ;;  %v1801_v28 = vmax.f32 (%p1028_p5), %v1798_v56, 0.0 }
 0x259   : >>> { %v2510_v40 = vpop.f32.mrf.mxu0 }
 0x25a   : >> { %v1797_v31 = vmul.f32 (%p1028_p5), %v1704_v7, %v3144_v47 }
 0x25c   : >> { %v1800_v54 = vadd.f32 (%p1028_p5), %v1797_v31, %v3166_v63 }
 0x25e   : >> { %v1803_v42 = vmax.f32 (%p1028_p5), %v1800_v54, 0.0 }
 0x2a9   : >>> { %v1778_v21 = vpop.f32.mrf.mxu1 }
 0x2aa   : >>> { %v1792_v43 = vadd.f32 %v1778_v21, %v1604_v46   ;;  %v1828_v46 = vunpack.c.0.s8 (%p1028_p5), %v1827_v49 }
 0x2ab   : >>> { %v2517_v41 = vpop.f32.mrf.mxu1 }
 0x2ac   : >>> { %v3528_v11 = vmov %v1792_v43  ;;  %v1804_v26 = vmul.f32 (%p1028_p5), %v1792_v43, %v3146_v48  ;;  %v1799_v48 = vadd.f32 (%p1028_p5), %v1796_v61, %v3168_v13  ;;  %v1831_v58 = vsub.s32 (%p1028_p5), %v1828_v46, %v1830_v30 }
 0x2ad   : >>> { %v1783_v44 = vpop.f32.mrf.mxu1 }
 0x2ae   : >>> { %v1793_v6 = vadd.f32 %v1783_v44, %v1605_v39   ;;  %v1807_v29 = vadd.f32 (%p1028_p5), %v1804_v26, %v3150_v52  ;;  %v1802_v52 = vmax.f32 (%p1028_p5), %v1799_v48, 0.0 }
 0x2af   : >>> { %v2520_v20 = vpop.f32.mrf.mxu1 }
 0x2b0   : >>> { %v3527_v22 = vmov %v1793_v6  ;;  %1030 = sbr.rel (!%p1028_p5) target bundleno = 358 (0x166), region = 113  ;;  %v1805_v25 = vmul.f32 (%p1028_p5), %v1793_v6, %v3152_v53  ;;  %v1810_v32 = vmax.f32 (%p1028_p5), %v1807_v29, 0.0  ;;  %v1814_v53 = vmax.f32 (%p1028_p5), %v1015_v51, %v1024_v19 }
 0x2b1   : >>> { %v1788_v45 = vpop.f32.mrf.mxu1 }
 0x2b2   : >>> { %v1794_v62 = vadd.f32 %v1788_v45, %v1606_v23   ;;  %v3529_v23 = vmov %v1704_v7  ;;  %v1808_v24 = vadd.f32 (%p1028_p5), %v1805_v25, %v3168_v13  ;;  %v1816_v55 = vmax.f32 (%p1028_p5), %v1801_v28, %v1810_v32 }
 0x2b3   : >>> { %v2523_v60 = vpop.f32.mrf.mxu1 }
 0x2b4   : >>> { %v3526_v20 = vmov %v1794_v62  ;;  %v1806_v38 = vmul.f32 (%p1028_p5), %v1794_v62, %v3144_v47  ;;  %v1811_v59 = vmax.f32 (%p1028_p5), %v1808_v24, 0.0  ;;  %v1819_v11 = vmax.f32 (%p1028_p5), %v1813_v27, %v1816_v55 }
 0x2b5   : >> { %v1815_v47 = vmax.f32 %v1016_v17, %v1025_v18 }
 0x2b6   : >> { %v1809_v39 = vadd.f32 %v1806_v38, %v3166_v63  ;;  %v1817_v13 = vmax.f32 %v1802_v52, %v1811_v59  ;;  %v1832_v12 = vrot.slane %v1819_v11, %v1831_v58  ;;  %v1825_v16 = vcombine.high %v1819_v11, %v1819_v11 }
 0x2b8   : >> { %v1812_v33 = vmax.f32 %v1809_v39, 0.0  ;;  %v1820_v9 = vmax.f32 %v1814_v53, %v1817_v13  ;;  %v1848_v19 = vrot.slane %v1832_v12, %v1831_v58  ;;  %v1840_v63 = vcombine.high %v1832_v12, %v1832_v12 }
 0x2b9   : >> { %v1839_v34 = vrot.slane %v1825_v16, %v1831_v58 }
 0x2ba   : >> { %v1818_v51 = vmax.f32 %v1803_v42, %v1812_v33  ;;  %v1881_v23 = vrot.slane %v1820_v9, %v1831_v58  ;;  %v1874_v8 = vcombine.high %v1820_v9, %v1820_v9  ;;  %1965 = vst.msk [vmem:[%s3471_s30] sm:$0x1] %vm1964_vm11, %v1848_v19  ;;  %v1862_v14 = vrot.slane %v1840_v63, %v1831_v58 }
 0x2bb   : >> { %v1870_v17 = vcombine.high %v1848_v19, %v1848_v19  ;;  %v1855_v18 = vrot.slane %v1839_v34, %v1831_v58  ;;  %v1841_v35 = vcombine.high %v1839_v34, %v1839_v34 }
 0x2bc   : >> { %v1821_v15 = vmax.f32 %v1815_v47, %v1818_v51  ;;  %v1897_v36 = vrot.slane %v1881_v23, %v1831_v58  ;;  %v1889_v37 = vcombine.high %v1881_v23, %v1881_v23  ;;  %v1888_v22 = vrot.slane %v1874_v8, %v1831_v58  ;;  %1966 = vst.msk [vmem:[%s3471_s30 + $0x38] sm:$0x1] %vm1964_vm11, %v1862_v14 }
 0x2bd   : >> { %1967 = vst.msk [vmem:[%s3471_s30 + $0x70] sm:$0x1] %vm1964_vm11, %v1870_v17  ;;  %v1872_v40 = vcombine.high %v1862_v14, %v1862_v14  ;;  %1969 = vst.msk [vmem:[%s3471_s30 + $0xe0] sm:$0x1] %vm1964_vm11, %v1855_v18  ;;  %v1869_v21 = vrot.slane %v1841_v35, %v1831_v58  ;;  %v1871_v43 = vcombine.high %v1855_v18, %v1855_v18 }
 0x2be   : >> { %v1929_v7 = vrot.slane %v1821_v15, %v1831_v58  ;;  %1973 = vst.msk [vmem:[%s3471_s30 + $0x1c0] sm:$0x1] %vm1964_vm11, %v1897_v36  ;;  %v1911_v41 = vrot.slane %v1889_v37, %v1831_v58  ;;  %v1919_v44 = vcombine.high %v1897_v36, %v1897_v36  ;;  %v1904_v6 = vrot.slane %v1888_v22, %v1831_v58 }
 0x2bf   : >> { %v1890_v20 = vcombine.high %v1888_v22, %v1888_v22  ;;  %1968 = vst.msk [vmem:[%s3471_s30 + $0xa8] sm:$0x1] %vm1964_vm11, %v1872_v40  ;;  %1970 = vst.msk [vmem:[%s3471_s30 + $0x118] sm:$0x1] %vm1964_vm11, %v1869_v21  ;;  %v1873_v45 = vcombine.high %v1869_v21, %v1869_v21 }
 0x2c0   : >> { %1971 = vst.msk [vmem:[%s3471_s30 + $0x150] sm:$0x1] %vm1964_vm11, %v1871_v43  ;;  %v1937_v62 = vrot.slane %v1929_v7, %v1831_v58  ;;  %v1930_v60 = vcombine.high %v1929_v7, %v1929_v7  ;;  %1974 = vst.msk [vmem:[%s3471_s30 + $0x1f8] sm:$0x1] %vm1964_vm11, %v1911_v41  ;;  %v1921_v57 = vcombine.high %v1911_v41, %v1911_v41 }
 0x2c1   : >> { %1975 = vst.msk [vmem:[%s3471_s30 + $0x230] sm:$0x1] %vm1964_vm11, %v1919_v44  ;;  %1977 = vst.msk [vmem:[%s3471_s30 + $0x2a0] sm:$0x1] %vm1964_vm11, %v1904_v6  ;;  %v1918_v26 = vrot.slane %v1890_v20, %v1831_v58  ;;  %v1920_v50 = vcombine.high %v1904_v6, %v1904_v6  ;;  %208 = sbr.rel (!%p206_p6) target bundleno = 16 (0x10), region = 124 }
 0x2c2   : >> { %1972 = vst.msk [vmem:[%s3471_s30 + $0x188] sm:$0x1] %vm1964_vm11, %v1873_v45  ;;  %1981 = vst.msk [vmem:[%s3471_s30 + $0x380] sm:$0x1] %vm1964_vm11, %v1937_v62  ;;  %v1944_v49 = vrot.slane %v1930_v60, %v1831_v58 }
 0x2c3   : >> { %1976 = vst.msk [vmem:[%s3471_s30 + $0x268] sm:$0x1] %vm1964_vm11, %v1921_v57  ;;  %1978 = vst.msk [vmem:[%s3471_s30 + $0x2d8] sm:$0x1] %vm1964_vm11, %v1918_v26  ;;  %v1922_v10 = vcombine.high %v1918_v26, %v1918_v26 }
 0x2c4   : >> { %1979 = vst.msk [vmem:[%s3471_s30 + $0x310] sm:$0x1] %vm1964_vm11, %v1920_v50  ;;  %1982 = vst.msk [vmem:[%s3471_s30 + $0x3b8] sm:$0x1] %vm1964_vm11, %v1944_v49 }
 0x2c5   : >> { %1980 = vst.msk [vmem:[%s3471_s30 + $0x348] sm:$0x1] %vm1964_vm11, %v1922_v10 }
 0x2c6 PF: > { %s14_s15 = sadd.s32 1, %s2730_s15  }
 0x2c7   : > { %p11_p7 = scmp.ge.s32.totalorder %s14_s15, 4  }
 0x2c9   :  { %13 = sbr.rel (!%p11_p7) target bundleno = 1 (0x1), region = 135 }

// kernel: forward.10
= control target key start
LH: loop header
LB: loop body
LE: loop exit
PB: predicated region body
PF: predicated region fallthrough
CT: control target
= control target key end

     0   :  { %s2362_s15 = smov 0   ;;  %s2782_s0 = inlined_call_operand.vmem [shape: f32[2,2,18,58,29], index: 0, kind: input, shape index: {}]   ;;  %s2783_s1 = inlined_call_operand.vmem [shape: f32[9,12,18], index: 1, kind: input, shape index: {}]   ;;  %s2784_s2 = inlined_call_operand.vmem [shape: f32[12,1], index: 2, kind: input, shape index: {}]   ;;  %s2785_s3 = inlined_call_operand.vmem [shape: f32[12,1], index: 3, kind: input, shape index: {}]   ;;  %s2786_s4 = inlined_call_operand.vmem [shape: f32[2,12,28,28], index: 4, kind: output, shape index: {}]  }
   0x1 LB: > { %s1848_s16 = sadd.s32 4294967295, %s2287_s15   ;;  %p1852_p0 = scmp.ge.s32.totalorder %s2287_s15, 1  ;;  %s2287_s15 = sphi %s2362_s15, %s14_s15  }
   0x2   : > { %p162_p1 = scmp.lt.s32.totalorder %s2287_s15, 3 }
   0x4   : > { %p163_p2 = pnand %p1852_p0, %p162_p1 }
   0x5   : > { %p188_p3 = scmp.lt.s32.totalorder (!%p163_p2), %s1848_s16, 1  ;;  %s2400_s7 = smov (!%p163_p2), 0  }
   0x6   : > { %166 = sbr.rel (%p163_p2) target bundleno = 869 (0x365), region = 36 }
   0xb   : > { %v2373_v0 = vld [vmem:[%s2784_s2] sm:$0xff]  ;;  %v2378_v1 = vld [vmem:[%s2784_s2 + $0x8] sm:$0xf]  ;;  %s2796_s16 = smov (!%p188_p3, %s1848_s16), 1 }
   0xc   : > { %v2383_v2 = vld [vmem:[%s2785_s3] sm:$0xff]  ;;  %v2388_v3 = vld [vmem:[%s2785_s3 + $0x8] sm:$0xf]  ;;  %s2133_s25 = smul.u32 2304, %s2796_s16 }
   0xd   : > { %s2134_s26 = smul.u32 384, %s2796_s16 }
   0xe   : > { %s2393_s29 = scalar_lea.vmem %s2782_s0, %s2133_s25 }
   0xf   : > { %s2398_s6 = scalar_lea.vmem %s2786_s4, %s2134_s26 }
  0x10 LB: >> { %v2405_v4 = vmov 0.0   ;;  %v2407_v5 = vmov 0.0   ;;  %v2409_v6 = vmov 0.0   ;;  %v2411_v7 = vmov 0.0   ;;  %s2413_s8 = smov 0   ;;  %s2291_s7 = sphi %s2400_s7, %s207_s7  }
  0x11 LB: >>> { %s1855_s9 = sshll.u32 %s2291_s7, 1  ;;  %vm283_vm0 = vcmask 1041409   ;;  %vm286_vm1 = vcmask 1042434   ;;  %vm289_vm2 = vcmask 1043459   ;;  %s1875_s11 = smul.u32 48, %s2311_s8  ;;  %vm292_vm3 = vcmask 1044484   ;;  %s2311_s8 = sphi %s2413_s8, %s213_s8   ;;  %v2307_v7 = vphi %v2411_v7, %v2790_v7   ;;  %v2303_v6 = vphi %v2409_v6, %v2789_v6   ;;  %v2299_v5 = vphi %v2407_v5, %v2788_v5   ;;  %v2295_v4 = vphi %v2405_v4, %v2787_v4  }
  0x12   : >>> { %s219_s10 = sadd.s32 %s2311_s8, %s1855_s9  ;;  %vm295_vm4 = vcmask 1045509   ;;  %vm328_vm5 = vcmask 1041408   ;;  %vm321_vm6 = vcmask 146432   ;;  %s2333_s17 = smov 127   ;;  %vm298_vm7 = vcmask 1046534  }
  0x13   : >>> { %s2436_s12 = scalar_lea.vmem %s2393_s29, %s219_s10  ;;  %s2444_s16 = scalar_lea.vmem %s2783_s1, %s1875_s11  ;;  %vm301_vm8 = vcmask 1047559  }
  0x14   : >>> { %v237_v8 = vld [vmem:[%s2436_s12 + $0x400] sm:$0x1]  ;;  %s213_s8 = sadd.s32 1, %s2311_s8  }
  0x15   : >>> { %v238_v9 = vld [vmem:[%s2436_s12 + $0x440] sm:$0x1]  ;;  %p210_p4 = scmp.ge.s32.totalorder %s213_s8, 3  }
  0x16   : >>> { %v229_v10 = vld [vmem:[%s2436_s12 + $0x200] sm:$0x1]  ;;  %v317_v11 = vrot.slane %v238_v9, 7  ;;  %s2600_s18 = smov (%p210_p4), 0  }
  0x17   : >>> { %v230_v12 = vld [vmem:[%s2436_s12 + $0x240] sm:$0x1] }
  0x18   : >>> { %v231_v13 = vld [vmem:[%s2436_s12 + $0x280] sm:$0x1]  ;;  %v318_v18 = vsel %vm283_vm0, %v317_v11, %v237_v8  ;;  %v303_v21 = vrot.slane %v230_v12, 7 }
  0x19   : >>> { %v262_v14 = vld [vmem:[%s2444_s16] sm:$0xff]  ;;  %v305_v22 = vrot.slane %v231_v13, 6  ;;  %629 = vrot.lane.b32.xlu0 %v318_v18, %s2333_s17  ;;  %2025 = vmatprep.subr.msk.mxu0 %vm328_vm5, %v318_v18 }
  0x1a   : >>> { %v232_v15 = vld [vmem:[%s2436_s12 + $0x2c0] sm:$0x1]  ;;  %2031 = vmatprep.mubr.msk.f32.mxu0 %vm321_vm6, %v262_v14  ;;  %2040 = vmatprep.mubr.msk.f32.mxu1 %vm321_vm6, %v262_v14  ;;  %v304_v27 = vsel %vm283_vm0, %v303_v21, %v229_v10 }
  0x1b   : >>> { %v233_v16 = vld [vmem:[%s2436_s12 + $0x300] sm:$0x1]  ;;  %v307_v23 = vrot.slane %v232_v15, 5  ;;  %2026 = vmatpush3.msk.msra.mxu0 %vm328_vm5, %v318_v18  ;;  %v306_v32 = vsel %vm286_vm1, %v305_v22, %v304_v27 }
  0x1c   : >>> { %v234_v17 = vld [vmem:[%s2436_s12 + $0x340] sm:$0x1]  ;;  %v309_v24 = vrot.slane %v233_v16, 4 }
  0x1d   : >>> { %v235_v19 = vld [vmem:[%s2436_s12 + $0x380] sm:$0x1]  ;;  %v311_v25 = vrot.slane %v234_v17, 3  ;;  %v308_v36 = vsel %vm289_vm2, %v307_v23, %v306_v32  ;;  %v1883_v32 = vld [vmem:[%s2444_s16 + $0x10] sm:$0xff] }
  0x1e   : >>> { %v236_v20 = vld [vmem:[%s2436_s12 + $0x3c0] sm:$0x1]  ;;  %v313_v28 = vrot.slane %v235_v19, 2  ;;  %v310_v41 = vsel %vm292_vm3, %v309_v24, %v308_v36 }
  0x1f   : >>> { %v221_v26 = vld [vmem:[%s2436_s12] sm:$0x1]  ;;  %v315_v29 = vrot.slane %v236_v20, 1  ;;  %v312_v45 = vsel %vm295_vm4, %v311_v25, %v310_v41 }
  0x20   : >>> { %v222_v30 = vld [vmem:[%s2436_s12 + $0x40] sm:$0x1]  ;;  %v314_v51 = vsel %vm298_vm7, %v313_v28, %v312_v45 }
  0x21   : >>> { %v223_v31 = vld [vmem:[%s2436_s12 + $0x80] sm:$0x1]  ;;  %v282_v39 = vrot.slane %v222_v30, 7  ;;  %v316_v57 = vsel %vm301_vm8, %v315_v29, %v314_v51  ;;  %v1884_v51 = vld [vmem:[%s2444_s16 + $0x18] sm:$0xf] }
  0x22   : >>> { %v224_v33 = vld [vmem:[%s2436_s12 + $0xc0] sm:$0x1]  ;;  %v285_v40 = vrot.slane %v223_v31, 6  ;;  %627 = vrot.lane.b32.xlu0 %v316_v57, %s2333_s17  ;;  %2027 = vmatprep.subr.mxu0 %v316_v57 }
  0x23   : >>> { %v225_v34 = vld [vmem:[%s2436_s12 + $0x100] sm:$0x1]  ;;  %v288_v42 = vrot.slane %v224_v33, 5  ;;  %v284_v46 = vsel %vm283_vm0, %v282_v39, %v221_v26  ;;  %2028 = vmatpush3.msra.mxu0 %v316_v57 }
  0x24   : >>> { %v226_v35 = vld [vmem:[%s2436_s12 + $0x140] sm:$0x1]  ;;  %v291_v43 = vrot.slane %v225_v34, 4  ;;  %v287_v52 = vsel %vm286_vm1, %v285_v40, %v284_v46 }
  0x25   : >>> { %v227_v37 = vld [vmem:[%s2436_s12 + $0x180] sm:$0x1]  ;;  %v294_v47 = vrot.slane %v226_v35, 3  ;;  %v290_v58 = vsel %vm289_vm2, %v288_v42, %v287_v52 }
  0x26   : >>> { %v228_v38 = vld [vmem:[%s2436_s12 + $0x1c0] sm:$0x1]  ;;  %v297_v48 = vrot.slane %v227_v37, 2  ;;  %v293_v62 = vsel %vm292_vm3, %v291_v43, %v290_v58  ;;  %v263_v37 = vld [vmem:[%s2444_s16 + $0x8] sm:$0xf] }
  0x27   : >>> { %v1873_v44 = vld [vmem:[%s2436_s12 + $0x880] sm:$0x1]  ;;  %v300_v53 = vrot.slane %v228_v38, 1  ;;  %v296_v11 = vsel %vm295_vm4, %v294_v47, %v293_v62 }
  0x28   : >>> { %v1874_v49 = vld [vmem:[%s2436_s12 + $0x8c0] sm:$0x1]  ;;  %v299_v16 = vsel %vm298_vm7, %v297_v48, %v296_v11 }
  0x29   : >>> { %v1865_v50 = vld [vmem:[%s2436_s12 + $0x680] sm:$0x1]  ;;  %v454_v54 = vrot.slane %v1874_v49, 7  ;;  %v302_v22 = vsel %vm301_vm8, %v300_v53, %v299_v16 }
  0x2a   : >>> { %v1866_v55 = vld [vmem:[%s2436_s12 + $0x6c0] sm:$0x1]  ;;  %625 = vrot.lane.b32.xlu1 %v302_v22, %s2333_s17  ;;  %2029 = vmatprep.subr.mxu0 %v302_v22 }
  0x2b   : >>> { %v1867_v56 = vld [vmem:[%s2436_s12 + $0x700] sm:$0x1]  ;;  %v455_v63 = vsel %vm283_vm0, %v454_v54, %v1873_v44  ;;  %v440_v9 = vrot.slane %v1866_v55, 7  ;;  %2030 = vmatpush3.msra.mxu0 %v302_v22 }
  0x2c   : >>> { %v1868_v59 = vld [vmem:[%s2436_s12 + $0x740] sm:$0x1]  ;;  %v442_v10 = vrot.slane %v1867_v56, 6  ;;  %2034 = vmatprep.subr.msk.mxu1 %vm328_vm5, %v455_v63  ;;  %2043 = vmatprep.subr.msk.mxu0 %vm328_vm5, %v455_v63  ;;  %v1893_v56 = vld [vmem:[%s2444_s16 + $0x28] sm:$0xf] }
  0x2d   : >>> { %v1869_v60 = vld [vmem:[%s2436_s12 + $0x780] sm:$0x1]  ;;  %v444_v13 = vrot.slane %v1868_v59, 5  ;;  %v441_v17 = vsel %vm283_vm0, %v440_v9, %v1865_v50  ;;  %2035 = vmatpush3.msk.msra.mxu1 %vm328_vm5, %v455_v63  ;;  %2032 = vmatmul.mubr.msk.f32.vlgmr.msra.gmra.mxu0 %vm321_vm6, %v263_v37 }
  0x2e   : >>> { %v1870_v61 = vld [vmem:[%s2436_s12 + $0x7c0] sm:$0x1]  ;;  %v446_v14 = vrot.slane %v1869_v60, 4  ;;  %v443_v23 = vsel %vm286_vm1, %v442_v10, %v441_v17  ;;  %2044 = vmatpush3.msk.msra.mxu0 %vm328_vm5, %v455_v63  ;;  %2049 = vmatprep.mubr.msk.f32.mxu0 %vm321_vm6, %v1883_v32 }
  0x2f   : >>> { %v1871_v8 = vld [vmem:[%s2436_s12 + $0x800] sm:$0x1]  ;;  %v448_v18 = vrot.slane %v1870_v61, 3  ;;  %v445_v27 = vsel %vm289_vm2, %v444_v13, %v443_v23  ;;  %804 = vrot.lane.b32.xlu1 %v455_v63, %s2333_s17 }
  0x30   : >>> { %v1872_v12 = vld [vmem:[%s2436_s12 + $0x840] sm:$0x1]  ;;  %v450_v19 = vrot.slane %v1871_v8, 2  ;;  %v447_v33 = vsel %vm292_vm3, %v446_v14, %v445_v27 }
  0x31   : >>> { %v1857_v15 = vld [vmem:[%s2436_s12 + $0x480] sm:$0x1]  ;;  %v452_v28 = vrot.slane %v1872_v12, 1  ;;  %v449_v38 = vsel %vm295_vm4, %v448_v18, %v447_v33 }
  0x32   : >>> { %v1858_v20 = vld [vmem:[%s2436_s12 + $0x4c0] sm:$0x1]  ;;  %v451_v41 = vsel %vm298_vm7, %v450_v19, %v449_v38 }
  0x33   : >>> { %v1859_v21 = vld [vmem:[%s2436_s12 + $0x500] sm:$0x1]  ;;  %v426_v30 = vrot.slane %v1858_v20, 7  ;;  %v453_v44 = vsel %vm301_vm8, %v452_v28, %v451_v41  ;;  %v2592_v41 = vmov (%p210_p4), 0.0  }
  0x34   : >>> { %v1860_v24 = vld [vmem:[%s2436_s12 + $0x540] sm:$0x1]  ;;  %v428_v31 = vrot.slane %v1859_v21, 6  ;;  %802 = vrot.lane.b32.xlu0 %v453_v44, %s2333_s17  ;;  %2036 = vmatprep.subr.mxu1 %v453_v44 }
  0x35   : >>> { %v1861_v25 = vld [vmem:[%s2436_s12 + $0x580] sm:$0x1]  ;;  %v430_v35 = vrot.slane %v1860_v24, 5  ;;  %v427_v39 = vsel %vm283_vm0, %v426_v30, %v1857_v15  ;;  %2045 = vmatprep.subr.mxu0 %v453_v44  ;;  %2037 = vmatpush3.msra.mxu1 %v453_v44 }
  0x36   : >>> { %v1862_v26 = vld [vmem:[%s2436_s12 + $0x5c0] sm:$0x1]  ;;  %v432_v36 = vrot.slane %v1861_v25, 4  ;;  %v429_v42 = vsel %vm286_vm1, %v428_v31, %v427_v39  ;;  %2046 = vmatpush3.msra.mxu0 %v453_v44  ;;  %v2598_v44 = vmov (%p210_p4), 0.0  }
  0x37   : >>> { %v1863_v29 = vld [vmem:[%s2436_s12 + $0x600] sm:$0x1]  ;;  %v434_v40 = vrot.slane %v1862_v26, 3  ;;  %v431_v45 = vsel %vm289_vm2, %v430_v35, %v429_v42  ;;  %v2594_v42 = vmov (%p210_p4), 0.0  }
  0x38   : >>> { %v1864_v34 = vld [vmem:[%s2436_s12 + $0x640] sm:$0x1]  ;;  %v436_v43 = vrot.slane %v1863_v29, 2  ;;  %v433_v47 = vsel %vm292_vm3, %v432_v36, %v431_v45 }
  0x39   : >>> { %v438_v46 = vrot.slane %v1864_v34, 1  ;;  %v435_v48 = vsel %vm295_vm4, %v434_v40, %v433_v47  ;;  %v1892_v52 = vld [vmem:[%s2444_s16 + $0x20] sm:$0xff] }
  0x3a   : >>> { %v437_v49 = vsel %vm298_vm7, %v436_v43, %v435_v48  ;;  %v2596_v43 = vmov (%p210_p4), 0.0  }
  0x3b   : >>> { %v439_v50 = vsel %vm301_vm8, %v438_v46, %v437_v49 }
  0x3c   : >>> { %800 = vrot.lane.b32.xlu1 %v439_v50, %s2333_s17  ;;  %2038 = vmatprep.subr.mxu1 %v439_v50 }
  0x3d   : >>> { %2047 = vmatprep.subr.mxu0 %v439_v50  ;;  %2039 = vmatpush3.msra.mxu1 %v439_v50 }
  0x3e   : >>> { %2048 = vmatpush3.msra.mxu0 %v439_v50  ;;  %2041 = vmatmul.mubr.msk.f32.vlgmr.msra.gmra.mxu1 %vm321_vm6, %v263_v37 }
  0x3f   : >>> { %2050 = vmatmul.mubr.msk.f32.vlgmr.msra.gmra.mxu0 %vm321_vm6, %v1884_v51  ;;  %2058 = vmatprep.mubr.msk.f32.mxu1 %vm321_vm6, %v1883_v32 }
  0x40   : >>> { %2067 = vmatprep.mubr.msk.f32.mxu0 %vm321_vm6, %v1892_v52 }
  0x8b   : >>> { %v630_v53 = vpop.permute.xlu0 %629 }
  0x8c   : >>> { %2052 = vmatprep.subr.msk.mxu1 %vm328_vm5, %v630_v53  ;;  %2061 = vmatprep.subr.msk.mxu0 %vm328_vm5, %v630_v53 }
  0x8d   : >>> { %2053 = vmatpush3.msk.msra.mxu1 %vm328_vm5, %v630_v53  ;;  %2062 = vmatpush3.msk.msra.mxu0 %vm328_vm5, %v630_v53 }
  0x94   : >>> { %v628_v54 = vpop.permute.xlu0 %627 }
  0x95   : >>> { %2054 = vmatprep.subr.mxu1 %v628_v54  ;;  %2063 = vmatprep.subr.mxu0 %v628_v54 }
  0x96   : >>> { %2055 = vmatpush3.msra.mxu1 %v628_v54  ;;  %2064 = vmatpush3.msra.mxu0 %v628_v54 }
  0x9c   : >>> { %v626_v55 = vpop.permute.xlu1 %625 }
  0x9d   : >>> { %2056 = vmatprep.subr.mxu1 %v626_v55  ;;  %2065 = vmatprep.subr.mxu0 %v626_v55 }
  0x9e   : >>> { %2057 = vmatpush3.msra.mxu1 %v626_v55  ;;  %2066 = vmatpush3.msra.mxu0 %v626_v55 }
  0x9f   : >>> { %2059 = vmatmul.mubr.msk.f32.vlgmr.msra.gmra.mxu1 %vm321_vm6, %v1884_v51  ;;  %2068 = vmatmul.mubr.msk.f32.vlgmr.msra.gmra.mxu0 %vm321_vm6, %v1893_v56 }
  0xa0   : >>> { %2076 = vmatprep.mubr.msk.f32.mxu1 %vm321_vm6, %v1892_v52 }
  0xa1   : >>> { %v805_v57 = vpop.permute.xlu1 %804 }
  0xa2   : >>> { %2070 = vmatprep.subr.msk.mxu1 %vm328_vm5, %v805_v57 }
  0xa3   : >>> { %2071 = vmatpush3.msk.msra.mxu1 %vm328_vm5, %v805_v57 }
  0xa6   : >>> { %v803_v58 = vpop.permute.xlu0 %802 }
  0xa7   : >>> { %2072 = vmatprep.subr.mxu1 %v803_v58 }
  0xa8   : >>> { %2073 = vmatpush3.msra.mxu1 %v803_v58 }
  0xae   : >>> { %v801_v59 = vpop.permute.xlu1 %800 }
  0xaf   : >>> { %2074 = vmatprep.subr.mxu1 %v801_v59 }
  0xb0   : >>> { %2075 = vmatpush3.msra.mxu1 %v801_v59 }
  0xb1   : >>> { %2077 = vmatmul.mubr.msk.f32.vlgmr.msra.gmra.mxu1 %vm321_vm6, %v1893_v56 }
  0xed   : >>> { %v2033_v60 = vpop.f32.mrf.mxu0 }
  0xee   : >>> { %v407_v63 = vadd.f32 %v2303_v6, %v2033_v60 }
  0xef   : >>> { %v397_v61 = vpop.f32.mrf.mxu0 }
  0xf0   : >>> { %v406_v9 = vadd.f32 %v2307_v7, %v397_v61 }
  0xfe   : >>> { %v2042_v10 = vpop.f32.mrf.mxu1 }
  0xff   : >>> { %v2051_v62 = vpop.f32.mrf.mxu0  ;;  %v536_v19 = vadd.f32 %v2295_v4, %v2042_v10 }
 0x100   : >>> { %v624_v11 = vadd.f32 %v2051_v62, %v407_v63  ;;  %v526_v13 = vpop.f32.mrf.mxu1 }
 0x101   : >>> { %v614_v8 = vpop.f32.mrf.mxu0  ;;  %v535_v21 = vadd.f32 %v2299_v5, %v526_v13 }
 0x102   : >>> { %v623_v14 = vadd.f32 %v614_v8, %v406_v9 }
 0x15f   : >>> { %v2069_v12 = vpop.f32.mrf.mxu0  ;;  %v2060_v17 = vpop.f32.mrf.mxu1 }
 0x160   : >>> { %v799_v15 = vadd.f32 %v2069_v12, %v624_v11   ;;  %v711_v22 = vadd.f32 %v2060_v17, %v536_v19 }
 0x161   : >>> { %v789_v16 = vpop.f32.mrf.mxu0  ;;  %v701_v20 = vpop.f32.mrf.mxu1 }
 0x162   : >>> { %v798_v18 = vadd.f32 %v789_v16, %v623_v14   ;;  %v710_v6 = vadd.f32 %v701_v20, %v535_v21 }
 0x164   : >>> { %v2790_v7 = vmov %v798_v18 }
 0x165   : >> { %v2334_v7 = vmov (%p210_p4), 0  }
 0x166   : >> { %2236 = vset.pattern.permute.xlu1 (%p210_p4), %v2334_v7  ;;  %2235 = vset.pattern.permute.xlu0 (%p210_p4), %v2334_v7 }
 0x167   : >> { %901 = vperm.xlu1 (%p210_p4), %2236, %v2383_v2   ;;  %889 = vperm.xlu0 (%p210_p4), %2235, %v2373_v0  }
 0x16b   : >> { %906 = vperm.xlu1 (%p210_p4), %2236, %v2388_v3   ;;  %894 = vperm.xlu0 (%p210_p4), %2235, %v2378_v1  }
 0x171   : >>> { %v2078_v23 = vpop.f32.mrf.mxu1 }
 0x172   : >>> { %v886_v24 = vadd.f32 %v2078_v23, %v711_v22   ;;  %212 = sbr.rel (!%p210_p4) target bundleno = 17 (0x11), region = 98 }
 0x173   : >>> { %v876_v25 = vpop.f32.mrf.mxu1 }
 0x174   : >>> { %v885_v26 = vadd.f32 %v876_v25, %v710_v6   ;;  %v2787_v4 = vmov %v886_v24  ;;  %v2789_v6 = vmov %v799_v15 }
 0x176   : >>> { %v2788_v5 = vmov %v885_v26 }
 0x1e2   : >> { %v2564_v27 = vpop.permute.xlu1 %901  ;;  %v2566_v28 = vpop.permute.xlu0 %889 }
 0x1e3   : >> { %v897_v29 = vmul.f32 %v2566_v28, %v798_v18  ;;  %v913_v30 = vmul.f32 %v2566_v28, %v885_v26 }
 0x1e5   : >> { %v2571_v4 = vadd.f32 %v2564_v27, %v897_v29  ;;  %v2574_v5 = vadd.f32 %v913_v30, %v2564_v27 }
 0x1e6   : >> { %v2576_v31 = vpop.permute.xlu0 %894  ;;  %v2582_v36 = vpop.permute.xlu1 %906 }
 0x1e7   : >> { %v911_v32 = vmax.f32 %v2571_v4, 0.0  ;;  %v917_v33 = vmax.f32 %v2574_v5, 0.0  ;;  %v898_v34 = vmul.f32 %v2576_v31, %v799_v15  ;;  %v914_v35 = vmul.f32 %v2576_v31, %v886_v24 }
 0x1e9   : >> { %v2585_v37 = vadd.f32 %v2582_v36, %v898_v34  ;;  %v2588_v38 = vadd.f32 %v914_v35, %v2582_v36 }
 0x1eb   : >> { %v912_v39 = vmax.f32 %v2585_v37, 0.0  ;;  %v918_v40 = vmax.f32 %v2588_v38, 0.0 }
 0x1ec LB: >>> { %s1767_s19 = sadd.s32 %s2331_s18, %s1855_s9  ;;  %s1938_s20 = smul.u32 48, %s2331_s18  ;;  %s2331_s18 = sphi %s2600_s18, %s924_s18   ;;  %v2327_v44 = vphi %v2598_v44, %v2794_v44   ;;  %v2323_v43 = vphi %v2596_v43, %v2793_v43   ;;  %v2319_v42 = vphi %v2594_v42, %v2792_v42   ;;  %v2315_v41 = vphi %v2592_v41, %v2791_v41  }
 0x1ed   : >>> { %s2622_s21 = scalar_lea.vmem %s2393_s29, %s1767_s19  ;;  %s2335_s25 = smov 127  }
 0x1ee   : >>> { %v1917_v45 = vld [vmem:[%s2622_s21 + $0x401] sm:$0x1]  ;;  %s2630_s24 = scalar_lea.vmem %s2783_s1, %s1938_s20  ;;  %s924_s18 = sadd.s32 1, %s2331_s18  }
 0x1ef   : >>> { %v1918_v46 = vld [vmem:[%s2622_s21 + $0x441] sm:$0x1]  ;;  %p921_p5 = scmp.ge.s32.totalorder %s924_s18, 3  }
 0x1f0   : >>> { %v1909_v47 = vld [vmem:[%s2622_s21 + $0x201] sm:$0x1]  ;;  %v1029_v48 = vrot.slane %v1918_v46, 7  ;;  %s1704_s26 = scalar_lea.vmem (%p921_p5), %s2398_s6, %s2291_s7  ;;  %vm1705_vm9 = vcmask (%p921_p5), 221184   ;;  %s207_s7 = sadd.s32 (%p921_p5), 1, %s2291_s7  }
 0x1f1   : >>> { %v1910_v49 = vld [vmem:[%s2622_s21 + $0x241] sm:$0x1]  ;;  %p204_p6 = scmp.ge.s32.totalorder (%p921_p5), %s207_s7, 28  }
 0x1f2   : >>> { %v1911_v50 = vld [vmem:[%s2622_s21 + $0x281] sm:$0x1]  ;;  %v1030_v55 = vsel %vm283_vm0, %v1029_v48, %v1917_v45  ;;  %v1015_v58 = vrot.slane %v1910_v49, 7 }
 0x1f3   : >>> { %v974_v51 = vld [vmem:[%s2630_s24] sm:$0xff]  ;;  %v1017_v59 = vrot.slane %v1911_v50, 6  ;;  %1341 = vrot.lane.b32.xlu0 %v1030_v55, %s2335_s25  ;;  %2079 = vmatprep.subr.msk.mxu0 %vm328_vm5, %v1030_v55 }
 0x1f4   : >>> { %v1912_v52 = vld [vmem:[%s2622_s21 + $0x2c1] sm:$0x1]  ;;  %2085 = vmatprep.mubr.msk.f32.mxu0 %vm321_vm6, %v974_v51  ;;  %2094 = vmatprep.mubr.msk.f32.mxu1 %vm321_vm6, %v974_v51  ;;  %v1016_v8 = vsel %vm283_vm0, %v1015_v58, %v1909_v47 }
 0x1f5   : >>> { %v1913_v53 = vld [vmem:[%s2622_s21 + $0x301] sm:$0x1]  ;;  %v1019_v60 = vrot.slane %v1912_v52, 5  ;;  %2080 = vmatpush3.msk.msra.mxu0 %vm328_vm5, %v1030_v55  ;;  %v1018_v13 = vsel %vm286_vm1, %v1017_v59, %v1016_v8 }
 0x1f6   : >>> { %v1914_v54 = vld [vmem:[%s2622_s21 + $0x341] sm:$0x1]  ;;  %v1021_v61 = vrot.slane %v1913_v53, 4 }
 0x1f7   : >>> { %v1915_v56 = vld [vmem:[%s2622_s21 + $0x381] sm:$0x1]  ;;  %v1023_v62 = vrot.slane %v1914_v54, 3  ;;  %v1020_v17 = vsel %vm289_vm2, %v1019_v60, %v1018_v13 }
 0x1f8   : >>> { %v1916_v57 = vld [vmem:[%s2622_s21 + $0x3c1] sm:$0x1]  ;;  %v1025_v9 = vrot.slane %v1915_v56, 2  ;;  %v1022_v22 = vsel %vm292_vm3, %v1021_v61, %v1020_v17 }
 0x1f9   : >>> { %v1901_v63 = vld [vmem:[%s2622_s21 + $0x1] sm:$0x1]  ;;  %v1027_v10 = vrot.slane %v1916_v57, 1  ;;  %v1024_v25 = vsel %vm295_vm4, %v1023_v62, %v1022_v22 }
 0x1fa   : >>> { %v1902_v11 = vld [vmem:[%s2622_s21 + $0x41] sm:$0x1]  ;;  %v1026_v35 = vsel %vm298_vm7, %v1025_v9, %v1024_v25 }
 0x1fb   : >>> { %v1903_v12 = vld [vmem:[%s2622_s21 + $0x81] sm:$0x1]  ;;  %v994_v20 = vrot.slane %v1902_v11, 7  ;;  %v1028_v50 = vsel %vm301_vm8, %v1027_v10, %v1026_v35 }
 0x1fc   : >>> { %v1904_v14 = vld [vmem:[%s2622_s21 + $0xc1] sm:$0x1]  ;;  %v997_v21 = vrot.slane %v1903_v12, 6  ;;  %1339 = vrot.lane.b32.xlu0 %v1028_v50, %s2335_s25  ;;  %2081 = vmatprep.subr.mxu0 %v1028_v50 }
 0x1fd   : >>> { %v1905_v15 = vld [vmem:[%s2622_s21 + $0x101] sm:$0x1]  ;;  %v1000_v23 = vrot.slane %v1904_v14, 5  ;;  %v996_v26 = vsel %vm283_vm0, %v994_v20, %v1901_v63  ;;  %2082 = vmatpush3.msra.mxu0 %v1028_v50 }
 0x1fe   : >>> { %v1906_v16 = vld [vmem:[%s2622_s21 + $0x141] sm:$0x1]  ;;  %v1003_v6 = vrot.slane %v1905_v15, 4  ;;  %v999_v45 = vsel %vm286_vm1, %v997_v21, %v996_v26 }
 0x1ff   : >>> { %v1907_v18 = vld [vmem:[%s2622_s21 + $0x181] sm:$0x1]  ;;  %v1006_v7 = vrot.slane %v1906_v16, 3  ;;  %v1002_v51 = vsel %vm289_vm2, %v1000_v23, %v999_v45 }
 0x200   : >>> { %v1908_v19 = vld [vmem:[%s2622_s21 + $0x1c1] sm:$0x1]  ;;  %v1009_v29 = vrot.slane %v1907_v18, 2  ;;  %v1005_v55 = vsel %vm292_vm3, %v1003_v6, %v1002_v51 }
 0x201   : >>> { %v1936_v24 = vld [vmem:[%s2622_s21 + $0x881] sm:$0x1]  ;;  %v1012_v46 = vrot.slane %v1908_v19, 1  ;;  %v1008_v60 = vsel %vm295_vm4, %v1006_v7, %v1005_v55 }
 0x202   : >>> { %v1937_v30 = vld [vmem:[%s2622_s21 + $0x8c1] sm:$0x1]  ;;  %v1011_v9 = vsel %vm298_vm7, %v1009_v29, %v1008_v60 }
 0x203   : >>> { %v1928_v34 = vld [vmem:[%s2622_s21 + $0x681] sm:$0x1]  ;;  %v1166_v47 = vrot.slane %v1937_v30, 7  ;;  %v1014_v15 = vsel %vm301_vm8, %v1012_v46, %v1011_v9  ;;  %v975_v30 = vld [vmem:[%s2630_s24 + $0x8] sm:$0xf] }
 0x204   : >>> { %v1929_v48 = vld [vmem:[%s2622_s21 + $0x6c1] sm:$0x1]  ;;  %1337 = vrot.lane.b32.xlu1 %v1014_v15, %s2335_s25  ;;  %2083 = vmatprep.subr.mxu0 %v1014_v15 }
 0x205   : >>> { %v1930_v49 = vld [vmem:[%s2622_s21 + $0x701] sm:$0x1]  ;;  %v1167_v56 = vsel %vm283_vm0, %v1166_v47, %v1936_v24  ;;  %v1152_v58 = vrot.slane %v1929_v48, 7  ;;  %v1946_v24 = vld [vmem:[%s2630_s24 + $0x10] sm:$0xff]  ;;  %2084 = vmatpush3.msra.mxu0 %v1014_v15 }
 0x206   : >>> { %v1931_v52 = vld [vmem:[%s2622_s21 + $0x741] sm:$0x1]  ;;  %v1154_v59 = vrot.slane %v1930_v49, 6  ;;  %2088 = vmatprep.subr.msk.mxu1 %vm328_vm5, %v1167_v56  ;;  %2097 = vmatprep.subr.msk.mxu0 %vm328_vm5, %v1167_v56 }
 0x207   : >>> { %v1932_v53 = vld [vmem:[%s2622_s21 + $0x781] sm:$0x1]  ;;  %v1156_v62 = vrot.slane %v1931_v52, 5  ;;  %v1153_v10 = vsel %vm283_vm0, %v1152_v58, %v1928_v34  ;;  %2089 = vmatpush3.msk.msra.mxu1 %vm328_vm5, %v1167_v56  ;;  %2086 = vmatmul.mubr.msk.f32.vlgmr.msra.gmra.mxu0 %vm321_vm6, %v975_v30 }
 0x208   : >>> { %v1933_v54 = vld [vmem:[%s2622_s21 + $0x7c1] sm:$0x1]  ;;  %v1158_v63 = vrot.slane %v1932_v53, 4  ;;  %v1155_v16 = vsel %vm286_vm1, %v1154_v59, %v1153_v10  ;;  %2098 = vmatpush3.msk.msra.mxu0 %vm328_vm5, %v1167_v56  ;;  %2103 = vmatprep.mubr.msk.f32.mxu0 %vm321_vm6, %v1946_v24 }
 0x209   : >>> { %v1934_v57 = vld [vmem:[%s2622_s21 + $0x801] sm:$0x1]  ;;  %v1160_v11 = vrot.slane %v1933_v54, 3  ;;  %v1157_v20 = vsel %vm289_vm2, %v1156_v62, %v1155_v16  ;;  %1516 = vrot.lane.b32.xlu1 %v1167_v56, %s2335_s25  ;;  %v1947_v56 = vld [vmem:[%s2630_s24 + $0x18] sm:$0xf] }
 0x20a   : >>> { %v1935_v61 = vld [vmem:[%s2622_s21 + $0x841] sm:$0x1]  ;;  %v1162_v12 = vrot.slane %v1934_v57, 2  ;;  %v1159_v25 = vsel %vm292_vm3, %v1158_v63, %v1157_v20 }
 0x20b   : >>> { %v1920_v8 = vld [vmem:[%s2622_s21 + $0x481] sm:$0x1]  ;;  %v1164_v21 = vrot.slane %v1935_v61, 1  ;;  %v1161_v34 = vsel %vm295_vm4, %v1160_v11, %v1159_v25  ;;  %v1956_v61 = vld [vmem:[%s2630_s24 + $0x28] sm:$0xf] }
 0x20c   : >>> { %v1921_v13 = vld [vmem:[%s2622_s21 + $0x4c1] sm:$0x1]  ;;  %v1163_v46 = vsel %vm298_vm7, %v1162_v12, %v1161_v34 }
 0x20d   : >>> { %v1922_v14 = vld [vmem:[%s2622_s21 + $0x501] sm:$0x1]  ;;  %v1138_v23 = vrot.slane %v1921_v13, 7  ;;  %v1165_v49 = vsel %vm301_vm8, %v1164_v21, %v1163_v46 }
 0x20e   : >>> { %v1923_v17 = vld [vmem:[%s2622_s21 + $0x541] sm:$0x1]  ;;  %v1140_v6 = vrot.slane %v1922_v14, 6  ;;  %1514 = vrot.lane.b32.xlu0 %v1165_v49, %s2335_s25  ;;  %2090 = vmatprep.subr.mxu1 %v1165_v49 }
 0x20f   : >>> { %v1924_v18 = vld [vmem:[%s2622_s21 + $0x581] sm:$0x1]  ;;  %v1142_v7 = vrot.slane %v1923_v17, 5  ;;  %v1139_v35 = vsel %vm283_vm0, %v1138_v23, %v1920_v8  ;;  %2099 = vmatprep.subr.mxu0 %v1165_v49  ;;  %2091 = vmatpush3.msra.mxu1 %v1165_v49 }
 0x210   : >>> { %v1925_v19 = vld [vmem:[%s2622_s21 + $0x5c1] sm:$0x1]  ;;  %v1144_v29 = vrot.slane %v1924_v18, 4  ;;  %v1141_v47 = vsel %vm286_vm1, %v1140_v6, %v1139_v35  ;;  %2100 = vmatpush3.msra.mxu0 %v1165_v49 }
 0x211   : >>> { %v1926_v22 = vld [vmem:[%s2622_s21 + $0x601] sm:$0x1]  ;;  %v1146_v45 = vrot.slane %v1925_v19, 3  ;;  %v1143_v50 = vsel %vm289_vm2, %v1142_v7, %v1141_v47  ;;  %v1623_v47 = vlaneseq (%p921_p5) }
 0x212   : >>> { %v1927_v26 = vld [vmem:[%s2622_s21 + $0x641] sm:$0x1]  ;;  %v1148_v48 = vrot.slane %v1926_v22, 2  ;;  %v1145_v52 = vsel %vm292_vm3, %v1144_v29, %v1143_v50 }
 0x213   : >>> { %v1150_v51 = vrot.slane %v1927_v26, 1  ;;  %v1147_v53 = vsel %vm295_vm4, %v1146_v45, %v1145_v52  ;;  %v1955_v57 = vld [vmem:[%s2630_s24 + $0x20] sm:$0xff]  ;;  %v2336_v45 = vmov (%p921_p5), 1966171168  }
 0x214   : >>> { %v1149_v54 = vsel %vm298_vm7, %v1148_v48, %v1147_v53  ;;  %v1621_v46 = vunpack.c.l.s4 (%p921_p5), %v2336_v45  ;;  %v1624_v53 = vshrl.u32 (%p921_p5), %v1623_v47, 7 }
 0x215   : >>> { %v1151_v55 = vsel %vm301_vm8, %v1150_v51, %v1149_v54 }
 0x216   : >>> { %1512 = vrot.lane.b32.xlu1 %v1151_v55, %s2335_s25  ;;  %2092 = vmatprep.subr.mxu1 %v1151_v55  ;;  %v1622_v52 = vunpack.c.0.s8 (%p921_p5), %v1621_v46 }
 0x217   : >>> { %2101 = vmatprep.subr.mxu0 %v1151_v55  ;;  %2093 = vmatpush3.msra.mxu1 %v1151_v55 }
 0x218   : >>> { %2102 = vmatpush3.msra.mxu0 %v1151_v55  ;;  %2095 = vmatmul.mubr.msk.f32.vlgmr.msra.gmra.mxu1 %vm321_vm6, %v975_v30 }
 0x219   : >>> { %2104 = vmatmul.mubr.msk.f32.vlgmr.msra.gmra.mxu0 %vm321_vm6, %v1947_v56  ;;  %2112 = vmatprep.mubr.msk.f32.mxu1 %vm321_vm6, %v1946_v24 }
 0x21a   : >>> { %2121 = vmatprep.mubr.msk.f32.mxu0 %vm321_vm6, %v1955_v57 }
 0x265   : >>> { %v1342_v58 = vpop.permute.xlu0 %1341 }
 0x266   : >>> { %2106 = vmatprep.subr.msk.mxu1 %vm328_vm5, %v1342_v58  ;;  %2115 = vmatprep.subr.msk.mxu0 %vm328_vm5, %v1342_v58 }
 0x267   : >>> { %2107 = vmatpush3.msk.msra.mxu1 %vm328_vm5, %v1342_v58  ;;  %2116 = vmatpush3.msk.msra.mxu0 %vm328_vm5, %v1342_v58 }
 0x26e   : >>> { %v1340_v59 = vpop.permute.xlu0 %1339 }
 0x26f   : >>> { %2108 = vmatprep.subr.mxu1 %v1340_v59  ;;  %2117 = vmatprep.subr.mxu0 %v1340_v59 }
 0x270   : >>> { %2109 = vmatpush3.msra.mxu1 %v1340_v59  ;;  %2118 = vmatpush3.msra.mxu0 %v1340_v59 }
 0x276   : >>> { %v1338_v60 = vpop.permute.xlu1 %1337 }
 0x277   : >>> { %2110 = vmatprep.subr.mxu1 %v1338_v60  ;;  %2119 = vmatprep.subr.mxu0 %v1338_v60 }
 0x278   : >>> { %2111 = vmatpush3.msra.mxu1 %v1338_v60  ;;  %2120 = vmatpush3.msra.mxu0 %v1338_v60 }
 0x279   : >>> { %2113 = vmatmul.mubr.msk.f32.vlgmr.msra.gmra.mxu1 %vm321_vm6, %v1947_v56  ;;  %2122 = vmatmul.mubr.msk.f32.vlgmr.msra.gmra.mxu0 %vm321_vm6, %v1956_v61 }
 0x27a   : >>> { %2130 = vmatprep.mubr.msk.f32.mxu1 %vm321_vm6, %v1955_v57 }
 0x27b   : >>> { %v1517_v62 = vpop.permute.xlu1 %1516 }
 0x27c   : >>> { %2124 = vmatprep.subr.msk.mxu1 %vm328_vm5, %v1517_v62 }
 0x27d   : >>> { %2125 = vmatpush3.msk.msra.mxu1 %vm328_vm5, %v1517_v62 }
 0x280   : >>> { %v1515_v63 = vpop.permute.xlu0 %1514 }
 0x281   : >>> { %2126 = vmatprep.subr.mxu1 %v1515_v63 }
 0x282   : >>> { %2127 = vmatpush3.msra.mxu1 %v1515_v63 }
 0x288   : >>> { %v1513_v8 = vpop.permute.xlu1 %1512 }
 0x289   : >>> { %2128 = vmatprep.subr.mxu1 %v1513_v8 }
 0x28a   : >>> { %2129 = vmatpush3.msra.mxu1 %v1513_v8 }
 0x28b   : >>> { %2131 = vmatmul.mubr.msk.f32.vlgmr.msra.gmra.mxu1 %vm321_vm6, %v1956_v61 }
 0x2c7   : >>> { %v2087_v9 = vpop.f32.mrf.mxu0 }
 0x2c8   : >>> { %v1119_v12 = vadd.f32 %v2323_v43, %v2087_v9 }
 0x2c9   : >>> { %v1109_v10 = vpop.f32.mrf.mxu0 }
 0x2ca   : >>> { %v1118_v14 = vadd.f32 %v2327_v44, %v1109_v10 }
 0x2d8   : >>> { %v2096_v15 = vpop.f32.mrf.mxu1 }
 0x2d9   : >>> { %v2105_v11 = vpop.f32.mrf.mxu0  ;;  %v1248_v6 = vadd.f32 %v2315_v41, %v2096_v15 }
 0x2da   : >>> { %v1336_v16 = vadd.f32 %v2105_v11, %v1119_v12  ;;  %v1238_v18 = vpop.f32.mrf.mxu1 }
 0x2db   : >>> { %v1326_v13 = vpop.f32.mrf.mxu0  ;;  %v1247_v25 = vadd.f32 %v2319_v42, %v1238_v18 }
 0x2dc   : >>> { %v1335_v19 = vadd.f32 %v1326_v13, %v1118_v14 }
 0x339   : >>> { %v2123_v17 = vpop.f32.mrf.mxu0  ;;  %v2114_v22 = vpop.f32.mrf.mxu1 }
 0x33a   : >>> { %v1511_v20 = vadd.f32 %v2123_v17, %v1336_v16   ;;  %v1423_v26 = vadd.f32 %v2114_v22, %v1248_v6 }
 0x33b   : >>> { %v1501_v21 = vpop.f32.mrf.mxu0  ;;  %v1413_v24 = vpop.f32.mrf.mxu1 }
 0x33c   : >>> { %v1510_v23 = vadd.f32 %v1501_v21, %v1335_v19   ;;  %v1422_v43 = vadd.f32 %v1413_v24, %v1247_v25  ;;  %v1600_v48 = vmul.f32 (%p921_p5), %v1511_v20, %v2576_v31 }
 0x33e   : >>> { %v2794_v44 = vmov %v1510_v23 }
 0x33f   : >> { %v1599_v44 = vmul.f32 (%p921_p5), %v1510_v23, %v2566_v28 }
 0x341   : >> { %v1601_v49 = vadd.f32 (%p921_p5), %v1599_v44, %v2564_v27 }
 0x34b   : >>> { %v2132_v7 = vpop.f32.mrf.mxu1 }
 0x34c   : >>> { %v1598_v29 = vadd.f32 %v2132_v7, %v1423_v26   ;;  %923 = sbr.rel (!%p921_p5) target bundleno = 492 (0x1ec), region = 109 }
 0x34d   : >>> { %v1588_v30 = vpop.f32.mrf.mxu1 }
 0x34e   : >>> { %v1597_v34 = vadd.f32 %v1588_v30, %v1422_v43   ;;  %v2791_v41 = vmov %v1598_v29  ;;  %v2793_v43 = vmov %v1511_v20  ;;  %v1606_v51 = vmul.f32 (%p921_p5), %v1598_v29, %v2576_v31 }
 0x34f   : >> { %v1602_v41 = vadd.f32 (%p921_p5), %v1600_v48, %v2582_v36  ;;  %v1612_v31 = vmax.f32 (%p921_p5), %v912_v39, %v918_v40 }
 0x350   : >>> { %v2792_v42 = vmov %v1597_v34  ;;  %v1605_v35 = vmul.f32 (%p921_p5), %v1597_v34, %v2566_v28  ;;  %v1611_v28 = vmax.f32 (%p921_p5), %v911_v32, %v917_v33  ;;  %v1608_v55 = vadd.f32 (%p921_p5), %v1606_v51, %v2582_v36 }
 0x351   : >> { %v1603_v42 = vmax.f32 %v1601_v49, 0.0  ;;  %v1604_v56 = vmax.f32 %v1602_v41, 0.0 }
 0x352   : >> { %v1607_v50 = vadd.f32 %v1605_v35, %v2564_v27  ;;  %v1625_v27 = vsub.s32 %v1622_v52, %v1624_v53  ;;  %v1610_v58 = vmax.f32 %v1608_v55, 0.0 }
 0x354   : >> { %v1609_v54 = vmax.f32 %v1607_v50, 0.0  ;;  %v1614_v60 = vmax.f32 %v1604_v56, %v1610_v58 }
 0x356   : >> { %v1613_v57 = vmax.f32 %v1603_v42, %v1609_v54  ;;  %v1616_v63 = vmax.f32 %v1612_v31, %v1614_v60 }
 0x358   : >> { %v1615_v59 = vmax.f32 %v1611_v28, %v1613_v57  ;;  %v1674_v33 = vrot.slane %v1616_v63, %v1625_v27 }
 0x35a   : >> { %v1626_v61 = vrot.slane %v1615_v59, %v1625_v27  ;;  %v1619_v62 = vcombine.high %v1615_v59, %v1615_v59  ;;  %v1682_v10 = vrot.slane %v1674_v33, %v1625_v27  ;;  %v1675_v37 = vcombine.high %v1674_v33, %v1674_v33 }
 0x35c   : >> { %v1642_v4 = vrot.slane %v1626_v61, %v1625_v27  ;;  %v1634_v5 = vcombine.high %v1626_v61, %v1626_v61  ;;  %v1633_v32 = vrot.slane %v1619_v62, %v1625_v27  ;;  %1714 = vst.msk [vmem:[%s1704_s26 + $0x100] sm:$0x1] %vm1705_vm9, %v1682_v10  ;;  %v1689_v12 = vrot.slane %v1675_v37, %v1625_v27 }
 0x35d   : >> { %v1690_v13 = vcombine.high %v1682_v10, %v1682_v10 }
 0x35e   : >> { %1706 = vst.msk [vmem:[%s1704_s26] sm:$0x1] %vm1705_vm9, %v1642_v4  ;;  %v1656_v36 = vrot.slane %v1634_v5, %v1625_v27  ;;  %v1664_v8 = vcombine.high %v1642_v4, %v1642_v4  ;;  %v1649_v9 = vrot.slane %v1633_v32, %v1625_v27  ;;  %v1635_v38 = vcombine.high %v1633_v32, %v1633_v32 }
 0x35f   : >> { %1715 = vst.msk [vmem:[%s1704_s26 + $0x120] sm:$0x1] %vm1705_vm9, %v1689_v12  ;;  %1716 = vst.msk [vmem:[%s1704_s26 + $0x140] sm:$0x1] %vm1705_vm9, %v1690_v13  ;;  %v1691_v15 = vcombine.high %v1689_v12, %v1689_v12 }
 0x360   : >> { %1707 = vst.msk [vmem:[%s1704_s26 + $0x20] sm:$0x1] %vm1705_vm9, %v1656_v36  ;;  %1708 = vst.msk [vmem:[%s1704_s26 + $0x40] sm:$0x1] %vm1705_vm9, %v1664_v8  ;;  %v1666_v39 = vcombine.high %v1656_v36, %v1656_v36  ;;  %v1663_v40 = vrot.slane %v1635_v38, %v1625_v27  ;;  %v1665_v11 = vcombine.high %v1649_v9, %v1649_v9  ;;  %206 = sbr.rel (!%p204_p6) target bundleno = 16 (0x10), region = 120 }
 0x361   : >> { %1710 = vst.msk [vmem:[%s1704_s26 + $0x80] sm:$0x1] %vm1705_vm9, %v1649_v9  ;;  %1717 = vst.msk [vmem:[%s1704_s26 + $0x160] sm:$0x1] %vm1705_vm9, %v1691_v15 }
 0x362   : >> { %1709 = vst.msk [vmem:[%s1704_s26 + $0x60] sm:$0x1] %vm1705_vm9, %v1666_v39  ;;  %1711 = vst.msk [vmem:[%s1704_s26 + $0xa0] sm:$0x1] %vm1705_vm9, %v1663_v40  ;;  %v1667_v14 = vcombine.high %v1663_v40, %v1663_v40 }
 0x363   : >> { %1712 = vst.msk [vmem:[%s1704_s26 + $0xc0] sm:$0x1] %vm1705_vm9, %v1665_v11 }
 0x364   : >> { %1713 = vst.msk [vmem:[%s1704_s26 + $0xe0] sm:$0x1] %vm1705_vm9, %v1667_v14 }
 0x365 PF: > { %s14_s15 = sadd.s32 1, %s2287_s15  }
 0x366   : > { %p11_p7 = scmp.ge.s32.totalorder %s14_s15, 4  }
 0x368   :  { %13 = sbr.rel (!%p11_p7) target bundleno = 1 (0x1), region = 131 }

// kernel: forward.11
= control target key start
LH: loop header
LB: loop body
LE: loop exit
PB: predicated region body
PF: predicated region fallthrough
CT: control target
= control target key end

     0   :  { %s1941_s15 = smov 0   ;;  %s2255_s0 = inlined_call_operand.vmem [shape: f32[2,2,12,30,15], index: 0, kind: input, shape index: {}]   ;;  %s2256_s1 = inlined_call_operand.vmem [shape: f32[9,6,12], index: 1, kind: input, shape index: {}]   ;;  %s2257_s2 = inlined_call_operand.vmem [shape: f32[6,1], index: 2, kind: input, shape index: {}]   ;;  %s2258_s3 = inlined_call_operand.vmem [shape: f32[6,1], index: 3, kind: input, shape index: {}]   ;;  %s2259_s4 = inlined_call_operand.vmem [shape: f32[2,6,14,14], index: 4, kind: output, shape index: {}]  }
   0x1 LB: > { %s1566_s16 = sadd.s32 4294967295, %s1878_s15   ;;  %p1570_p0 = scmp.ge.s32.totalorder %s1878_s15, 1  ;;  %s1878_s15 = sphi %s1941_s15, %s14_s15  }
   0x2   : > { %p162_p1 = scmp.lt.s32.totalorder %s1878_s15, 3 }
   0x4   : > { %p163_p2 = pnand %p1570_p0, %p162_p1 }
   0x5   : > { %p188_p3 = scmp.lt.s32.totalorder (!%p163_p2), %s1566_s16, 1  ;;  %s1969_s29 = smov (!%p163_p2), 0  }
   0x6   : > { %166 = sbr.rel (%p163_p2) target bundleno = 848 (0x350), region = 36 }
   0xb   : > { %v1952_v0 = vld [vmem:[%s2257_s2] sm:$0x3f]  ;;  %s2265_s16 = smov (!%p188_p3, %s1566_s16), 1 }
   0xc   : > { %v1957_v1 = vld [vmem:[%s2258_s3] sm:$0x3f]  ;;  %s1769_s21 = smul.u32 768, %s2265_s16 }
   0xd   : > { %s1770_s22 = smul.u32 96, %s2265_s16 }
   0xe   : > { %s1962_s25 = scalar_lea.vmem %s2255_s0, %s1769_s21 }
   0xf   : > { %s1967_s28 = scalar_lea.vmem %s2259_s4, %s1770_s22 }
  0x10 LB: >> { %v1974_v2 = vmov 0.0   ;;  %v1976_v3 = vmov 0.0   ;;  %s1978_s30 = smov 0   ;;  %s1882_s29 = sphi %s1969_s29, %s205_s29  }
  0x11 LB: >>> { %s1573_s5 = sshll.u32 %s1882_s29, 1  ;;  %vm260_vm0 = vcmask 1041409   ;;  %v1908_v4 = vmov 0.0   ;;  %vm263_vm1 = vcmask 1042434   ;;  %vm266_vm2 = vcmask 1043459   ;;  %s1587_s8 = smul.u32 24, %s1894_s30  ;;  %s1894_s30 = sphi %s1978_s30, %s211_s30   ;;  %v1890_v3 = vphi %v1976_v3, %v2261_v3   ;;  %v1886_v2 = vphi %v1974_v2, %v2260_v2  }
  0x12   : >>> { %s215_s6 = sadd.s32 %s1894_s30, %s1573_s5  ;;  %1685 = vmatprep.subr.mxu0 %v1908_v4  ;;  %1692 = vmatprep.subr.mxu1 %v1908_v4  ;;  %vm269_vm3 = vcmask 1044484   ;;  %vm291_vm4 = vcmask 1043456   ;;  %vm1909_vm5 = vmmov 0   ;;  %vm272_vm6 = vcmask 1045509   ;;  %s1910_s9 = smov 127  }
  0x13   : >>> { %s1996_s7 = scalar_lea.vmem %s1962_s25, %s215_s6  ;;  %1689 = vmatprep.mubr.msk.f32.mxu0 %vm1909_vm5, %v1908_v4  ;;  %1696 = vmatprep.mubr.msk.f32.mxu1 %vm1909_vm5, %v1908_v4  ;;  %vm275_vm7 = vcmask 1046534   ;;  %vm278_vm8 = vcmask 1047559   ;;  %s2044_s12 = scalar_lea.vmem %s2256_s1, %s1587_s8  ;;  %vm287_vm9 = vcmask 97280  }
  0x14   : >>> { %v225_v5 = vld [vmem:[%s1996_s7 + $0x100] sm:$0x1]  ;;  %s211_s30 = sadd.s32 1, %s1894_s30  }
  0x15   : >>> { %v226_v6 = vld [vmem:[%s1996_s7 + $0x120] sm:$0x1]  ;;  %p208_p4 = scmp.ge.s32.totalorder %s211_s30, 3  }
  0x16   : >>> { %v227_v7 = vld [vmem:[%s1996_s7 + $0x140] sm:$0x1]  ;;  %v280_v13 = vrot.slane %v226_v6, 7  ;;  %s2120_s13 = smov (%p208_p4), 0  }
  0x17   : >>> { %v228_v8 = vld [vmem:[%s1996_s7 + $0x160] sm:$0x1]  ;;  %v282_v14 = vrot.slane %v227_v7, 6 }
  0x18   : >>> { %v1575_v9 = vld [vmem:[%s1996_s7 + $0x180] sm:$0x1]  ;;  %v284_v15 = vrot.slane %v228_v8, 5  ;;  %v281_v20 = vsel %vm260_vm0, %v280_v13, %v225_v5 }
  0x19   : >>> { %v1576_v10 = vld [vmem:[%s1996_s7 + $0x1a0] sm:$0x1]  ;;  %v283_v24 = vsel %vm263_vm1, %v282_v14, %v281_v20 }
  0x1a   : >>> { %v1577_v11 = vld [vmem:[%s1996_s7 + $0x1c0] sm:$0x1]  ;;  %v377_v16 = vrot.slane %v1576_v10, 7  ;;  %v285_v30 = vsel %vm266_vm2, %v284_v15, %v283_v24  ;;  %v1599_v15 = vld [vmem:[%s2044_s12 + $0x10] sm:$0x3f] }
  0x1b   : >>> { %v1578_v12 = vld [vmem:[%s1996_s7 + $0x1e0] sm:$0x1]  ;;  %v379_v17 = vrot.slane %v1577_v11, 6  ;;  %551 = vrot.lane.b32.xlu0 %v285_v30, %s1910_s9  ;;  %1686 = vmatpush3.msk.msra.mxu0 %vm291_vm4, %v285_v30  ;;  %v1593_v11 = vld [vmem:[%s2044_s12 + $0x8] sm:$0x3f] }
  0x1c   : >>> { %v381_v18 = vrot.slane %v1578_v12, 5  ;;  %v217_v19 = vld [vmem:[%s1996_s7] sm:$0x1]  ;;  %v378_v25 = vsel %vm260_vm0, %v377_v16, %v1575_v9  ;;  %1687 = vmatprep.subr.mxu0 %v1908_v4 }
  0x1d   : >>> { %v218_v21 = vld [vmem:[%s1996_s7 + $0x20] sm:$0x1]  ;;  %v380_v31 = vsel %vm263_vm1, %v379_v17, %v378_v25 }
  0x1e   : >>> { %v219_v22 = vld [vmem:[%s1996_s7 + $0x40] sm:$0x1]  ;;  %v259_v26 = vrot.slane %v218_v21, 7  ;;  %v382_v36 = vsel %vm266_vm2, %v381_v18, %v380_v31 }
  0x1f   : >>> { %v220_v23 = vld [vmem:[%s1996_s7 + $0x60] sm:$0x1]  ;;  %v262_v27 = vrot.slane %v219_v22, 6 }
  0x20   : >>> { %v1583_v28 = vld [vmem:[%s1996_s7 + $0x280] sm:$0x1]  ;;  %v265_v32 = vrot.slane %v220_v23, 5  ;;  %v261_v37 = vsel %vm260_vm0, %v259_v26, %v217_v19 }
  0x21   : >>> { %v1584_v29 = vld [vmem:[%s1996_s7 + $0x2a0] sm:$0x1]  ;;  %v264_v42 = vsel %vm263_vm1, %v262_v27, %v261_v37 }
  0x22   : >>> { %v1585_v33 = vld [vmem:[%s1996_s7 + $0x2c0] sm:$0x1]  ;;  %v391_v35 = vrot.slane %v1584_v29, 7  ;;  %v267_v48 = vsel %vm266_vm2, %v265_v32, %v264_v42  ;;  %v2118_v42 = vmov (%p208_p4), 0.0  }
  0x23   : >>> { %v1586_v34 = vld [vmem:[%s1996_s7 + $0x2e0] sm:$0x1]  ;;  %v393_v38 = vrot.slane %v1585_v33, 6 }
  0x24   : >>> { %v395_v39 = vrot.slane %v1586_v34, 5  ;;  %v221_v40 = vld [vmem:[%s1996_s7 + $0x80] sm:$0x1]  ;;  %v392_v43 = vsel %vm260_vm0, %v391_v35, %v1583_v28 }
  0x25   : >>> { %v222_v41 = vld [vmem:[%s1996_s7 + $0xa0] sm:$0x1]  ;;  %v268_v46 = vrot.slane %v221_v40, 4  ;;  %v394_v49 = vsel %vm263_vm1, %v393_v38, %v392_v43 }
  0x26   : >>> { %v223_v44 = vld [vmem:[%s1996_s7 + $0xc0] sm:$0x1]  ;;  %v271_v47 = vrot.slane %v222_v41, 3  ;;  %v396_v54 = vsel %vm266_vm2, %v395_v39, %v394_v49  ;;  %v2116_v41 = vmov (%p208_p4), 0.0  }
  0x27   : >>> { %v224_v45 = vld [vmem:[%s1996_s7 + $0xe0] sm:$0x1]  ;;  %v274_v50 = vrot.slane %v223_v44, 2  ;;  %v270_v55 = vsel %vm269_vm3, %v268_v46, %v267_v48  ;;  %707 = vrot.lane.b32.xlu1 %v396_v54, %s1910_s9  ;;  %1693 = vmatpush3.msk.msra.mxu1 %vm291_vm4, %v396_v54 }
  0x28   : >>> { %v277_v51 = vrot.slane %v224_v45, 1  ;;  %v1579_v52 = vld [vmem:[%s1996_s7 + $0x200] sm:$0x1]  ;;  %v273_v60 = vsel %vm272_vm6, %v271_v47, %v270_v55  ;;  %1694 = vmatprep.subr.mxu1 %v1908_v4 }
  0x29   : >>> { %v1580_v53 = vld [vmem:[%s1996_s7 + $0x220] sm:$0x1]  ;;  %v383_v58 = vrot.slane %v1579_v52, 4  ;;  %v276_v63 = vsel %vm275_vm7, %v274_v50, %v273_v60 }
  0x2a   : >>> { %v1581_v56 = vld [vmem:[%s1996_s7 + $0x240] sm:$0x1]  ;;  %v385_v59 = vrot.slane %v1580_v53, 3  ;;  %v279_v7 = vsel %vm278_vm8, %v277_v51, %v276_v63 }
  0x2b   : >>> { %v1582_v57 = vld [vmem:[%s1996_s7 + $0x260] sm:$0x1]  ;;  %v387_v61 = vrot.slane %v1581_v56, 2  ;;  %v384_v5 = vsel %vm269_vm3, %v383_v58, %v382_v36  ;;  %549 = vrot.lane.b32.xlu0 %v279_v7, %s1910_s9  ;;  %1688 = vmatpush3.msra.mxu0 %v279_v7 }
  0x2c   : >>> { %v389_v62 = vrot.slane %v1582_v57, 1  ;;  %v246_v6 = vld [vmem:[%s2044_s12] sm:$0x3f]  ;;  %v386_v8 = vsel %vm272_vm6, %v385_v59, %v384_v5  ;;  %1699 = vmatprep.subr.mxu0 %v1908_v4 }
  0x2d   : >>> { %v388_v9 = vsel %vm275_vm7, %v387_v61, %v386_v8  ;;  %1690 = vmatmul.mubr.msk.f32.vlgmr.msra.gmra.mxu0 %vm287_vm9, %v246_v6 }
  0x2e   : >>> { %v390_v10 = vsel %vm278_vm8, %v389_v62, %v388_v9  ;;  %1700 = vmatpush3.msk.msra.mxu0 %vm291_vm4, %v396_v54  ;;  %1703 = vmatprep.mubr.msk.f32.mxu0 %vm1909_vm5, %v1908_v4 }
  0x2f   : >>> { %705 = vrot.lane.b32.xlu1 %v390_v10, %s1910_s9  ;;  %1701 = vmatprep.subr.mxu0 %v1908_v4 }
  0x30   : >>> { %1695 = vmatpush3.msra.mxu1 %v390_v10  ;;  %1702 = vmatpush3.msra.mxu0 %v390_v10 }
  0x31   : >>> { %1706 = vmatprep.subr.mxu1 %v1908_v4  ;;  %1713 = vmatprep.subr.mxu0 %v1908_v4 }
  0x32   : >>> { %1697 = vmatmul.mubr.msk.f32.vlgmr.msra.gmra.mxu1 %vm287_vm9, %v246_v6  ;;  %1704 = vmatmul.mubr.msk.f32.vlgmr.msra.gmra.mxu0 %vm287_vm9, %v1593_v11 }
  0x33   : >>> { %1710 = vmatprep.mubr.msk.f32.mxu1 %vm1909_vm5, %v1908_v4  ;;  %1717 = vmatprep.mubr.msk.f32.mxu0 %vm1909_vm5, %v1908_v4 }
  0x8d   : >>> { %v552_v12 = vpop.permute.xlu0 %551 }
  0x8e   : >>> { %1707 = vmatpush3.msk.msra.mxu1 %vm291_vm4, %v552_v12  ;;  %1714 = vmatpush3.msk.msra.mxu0 %vm291_vm4, %v552_v12 }
  0x8f   : >>> { %1708 = vmatprep.subr.mxu1 %v1908_v4  ;;  %1715 = vmatprep.subr.mxu0 %v1908_v4 }
  0x99   : >>> { %v708_v13 = vpop.permute.xlu1 %707 }
  0x9d   : >>> { %v550_v14 = vpop.permute.xlu0 %549 }
  0x9e   : >>> { %1709 = vmatpush3.msra.mxu1 %v550_v14  ;;  %1716 = vmatpush3.msra.mxu0 %v550_v14 }
  0x9f   : >>> { %1711 = vmatmul.mubr.msk.f32.vlgmr.msra.gmra.mxu1 %vm287_vm9, %v1593_v11  ;;  %1720 = vmatprep.subr.mxu1 %v1908_v4 }
  0xa0   : >>> { %1718 = vmatmul.mubr.msk.f32.vlgmr.msra.gmra.mxu0 %vm287_vm9, %v1599_v15  ;;  %1721 = vmatpush3.msk.msra.mxu1 %vm291_vm4, %v708_v13 }
  0xa1   : >>> { %v706_v16 = vpop.permute.xlu1 %705  ;;  %1722 = vmatprep.subr.mxu1 %v1908_v4  ;;  %1724 = vmatprep.mubr.msk.f32.mxu1 %vm1909_vm5, %v1908_v4 }
  0xa2   : >>> { %1723 = vmatpush3.msra.mxu1 %v706_v16 }
  0xa3   : >>> { %1725 = vmatmul.mubr.msk.f32.vlgmr.msra.gmra.mxu1 %vm287_vm9, %v1599_v15 }
  0xed   : >>> { %v360_v17 = vpop.f32.mrf.mxu0 }
  0xee   : >>> { %v364_v18 = vadd.f32 %v1890_v3, %v360_v17 }
  0xef   : >>> { %v1691_v19 = vpop.f32.mrf.mxu0 }
  0xf2   : >>> { %v466_v20 = vpop.f32.mrf.mxu1  ;;  %v544_v21 = vpop.f32.mrf.mxu0 }
  0xf3   : >>> { %v548_v22 = vadd.f32 %v544_v21, %v364_v18  ;;  %v470_v26 = vadd.f32 %v1886_v2, %v466_v20 }
  0xf4   : >>> { %v1698_v23 = vpop.f32.mrf.mxu1  ;;  %v1705_v24 = vpop.f32.mrf.mxu0 }
 0x15f   : >>> { %v622_v25 = vpop.f32.mrf.mxu1 }
 0x160   : >>> { %v700_v27 = vpop.f32.mrf.mxu0  ;;  %v626_v30 = vadd.f32 %v622_v25, %v470_v26 }
 0x161   : >>> { %v704_v28 = vadd.f32 %v700_v27, %v548_v22   ;;  %v1712_v29 = vpop.f32.mrf.mxu1 }
 0x162   : >>> { %v1719_v4 = vpop.f32.mrf.mxu0  ;;  %210 = sbr.rel (!%p208_p4) target bundleno = 17 (0x11), region = 98 }
 0x163   : >>> { %v778_v31 = vpop.f32.mrf.mxu1  ;;  %v2261_v3 = vmov %v704_v28 }
 0x164   : >>> { %v782_v32 = vadd.f32 %v778_v31, %v626_v30   ;;  %v1911_v3 = vmov (%p208_p4), 0  }
 0x165   : >>> { %v1726_v33 = vpop.f32.mrf.mxu1  ;;  %1843 = vset.pattern.permute.xlu0 (%p208_p4), %v1911_v3 }
 0x166   : >>> { %v2260_v2 = vmov %v782_v32  ;;  %785 = vperm.xlu0 (%p208_p4), %1843, %v1952_v0  }
 0x16a   : >> { %791 = vperm.xlu0 %1843, %v1957_v1  }
 0x1e1   : >> { %v2102_v34 = vpop.permute.xlu0 %785 }
 0x1e2   : >> { %v788_v35 = vmul.f32 %v2102_v34, %v704_v28  ;;  %v796_v36 = vmul.f32 %v2102_v34, %v782_v32 }
 0x1e5   : >> { %v2106_v37 = vpop.permute.xlu0 %791 }
 0x1e6   : >> { %v2109_v38 = vadd.f32 %v2106_v37, %v788_v35  ;;  %v2112_v39 = vadd.f32 %v796_v36, %v2106_v37 }
 0x1e8   : >> { %v795_v2 = vmax.f32 %v2109_v38, 0.0  ;;  %v798_v40 = vmax.f32 %v2112_v39, 0.0 }
 0x1e9 LB: >>> { %v1912_v43 = vmov 0.0   ;;  %vm1913_vm10 = vmmov 0   ;;  %s1497_s14 = sadd.s32 %s1906_s13, %s1573_s5  ;;  %s1914_s17 = smov 127   ;;  %s1906_s13 = sphi %s2120_s13, %s804_s13   ;;  %v1902_v42 = vphi %v2118_v42, %v2263_v42   ;;  %v1898_v41 = vphi %v2116_v41, %v2262_v41  }
 0x1ea   : >>> { %1727 = vmatprep.subr.mxu0 %v1912_v43  ;;  %1731 = vmatprep.mubr.msk.f32.mxu0 %vm1913_vm10, %v1912_v43  ;;  %s2141_s16 = scalar_lea.vmem %s1962_s25, %s1497_s14  ;;  %s1630_s18 = smul.u32 24, %s1906_s13 }
 0x1eb   : >>> { %1734 = vmatprep.subr.mxu1 %v1912_v43  ;;  %1738 = vmatprep.mubr.msk.f32.mxu1 %vm1913_vm10, %v1912_v43  ;;  %v1613_v44 = vld [vmem:[%s2141_s16 + $0x101] sm:$0x1]  ;;  %s804_s13 = sadd.s32 1, %s1906_s13  }
 0x1ec   : >>> { %v1614_v45 = vld [vmem:[%s2141_s16 + $0x121] sm:$0x1]  ;;  %s2185_s21 = scalar_lea.vmem %s2256_s1, %s1630_s18  ;;  %p801_p5 = scmp.ge.s32.totalorder %s804_s13, 3  }
 0x1ed   : >>> { %v1615_v46 = vld [vmem:[%s2141_s16 + $0x141] sm:$0x1]  ;;  %v874_v48 = vrot.slane %v1614_v45, 7  ;;  %s1440_s22 = scalar_lea.vmem (%p801_p5), %s1967_s28, %s1882_s29  ;;  %vm1441_vm11 = vcmask (%p801_p5), 106496   ;;  %s205_s29 = sadd.s32 (%p801_p5), 1, %s1882_s29  }
 0x1ee   : >>> { %v1616_v47 = vld [vmem:[%s2141_s16 + $0x161] sm:$0x1]  ;;  %v876_v49 = vrot.slane %v1615_v46, 6  ;;  %p202_p6 = scmp.ge.s32.totalorder (%p801_p5), %s205_s29, 14  }
 0x1ef   : >>> { %v1626_v50 = vld [vmem:[%s2141_s16 + $0x281] sm:$0x1]  ;;  %v878_v51 = vrot.slane %v1616_v47, 5  ;;  %v875_v54 = vsel %vm260_vm0, %v874_v48, %v1613_v44 }
 0x1f0   : >>> { %v1627_v52 = vld [vmem:[%s2141_s16 + $0x2a1] sm:$0x1]  ;;  %v877_v59 = vsel %vm263_vm1, %v876_v49, %v875_v54 }
 0x1f1   : >>> { %v1628_v53 = vld [vmem:[%s2141_s16 + $0x2c1] sm:$0x1]  ;;  %v985_v56 = vrot.slane %v1627_v52, 7  ;;  %v879_v63 = vsel %vm266_vm2, %v878_v51, %v877_v59 }
 0x1f2   : >>> { %v1629_v55 = vld [vmem:[%s2141_s16 + $0x2e1] sm:$0x1]  ;;  %v987_v57 = vrot.slane %v1628_v53, 6  ;;  %1145 = vrot.lane.b32.xlu0 %v879_v63, %s1914_s17  ;;  %1728 = vmatpush3.msk.msra.mxu0 %vm291_vm4, %v879_v63 }
 0x1f3   : >>> { %v1605_v58 = vld [vmem:[%s2141_s16 + $0x1] sm:$0x1]  ;;  %v989_v60 = vrot.slane %v1629_v55, 5  ;;  %v986_v5 = vsel %vm260_vm0, %v985_v56, %v1626_v50  ;;  %1729 = vmatprep.subr.mxu0 %v1912_v43  ;;  %v1636_v56 = vld [vmem:[%s2185_s21 + $0x8] sm:$0x3f] }
 0x1f4   : >>> { %v1606_v61 = vld [vmem:[%s2141_s16 + $0x21] sm:$0x1]  ;;  %v988_v9 = vsel %vm263_vm1, %v987_v57, %v986_v5 }
 0x1f5   : >>> { %v1607_v62 = vld [vmem:[%s2141_s16 + $0x41] sm:$0x1]  ;;  %v853_v11 = vrot.slane %v1606_v61, 7  ;;  %v990_v13 = vsel %vm266_vm2, %v989_v60, %v988_v9  ;;  %v1642_v60 = vld [vmem:[%s2185_s21 + $0x10] sm:$0x3f] }
 0x1f6   : >>> { %v1608_v6 = vld [vmem:[%s2141_s16 + $0x61] sm:$0x1]  ;;  %v856_v12 = vrot.slane %v1607_v62, 6  ;;  %1301 = vrot.lane.b32.xlu1 %v990_v13, %s1914_s17  ;;  %1735 = vmatpush3.msk.msra.mxu1 %vm291_vm4, %v990_v13 }
 0x1f7   : >>> { %v1609_v7 = vld [vmem:[%s2141_s16 + $0x81] sm:$0x1]  ;;  %v859_v15 = vrot.slane %v1608_v6, 5  ;;  %v855_v18 = vsel %vm260_vm0, %v853_v11, %v1605_v58  ;;  %1736 = vmatprep.subr.mxu1 %v1912_v43 }
 0x1f8   : >>> { %v1610_v8 = vld [vmem:[%s2141_s16 + $0xa1] sm:$0x1]  ;;  %v862_v16 = vrot.slane %v1609_v7, 4  ;;  %v858_v23 = vsel %vm263_vm1, %v856_v12, %v855_v18 }
 0x1f9   : >>> { %v1611_v10 = vld [vmem:[%s2141_s16 + $0xc1] sm:$0x1]  ;;  %v865_v19 = vrot.slane %v1610_v8, 3  ;;  %v861_v27 = vsel %vm266_vm2, %v859_v15, %v858_v23  ;;  %v1391_v23 = vlaneseq (%p801_p5) }
 0x1fa   : >>> { %v1612_v14 = vld [vmem:[%s2141_s16 + $0xe1] sm:$0x1]  ;;  %v868_v20 = vrot.slane %v1611_v10, 2  ;;  %v864_v31 = vsel %vm269_vm3, %v862_v16, %v861_v27 }
 0x1fb   : >>> { %v1618_v17 = vld [vmem:[%s2141_s16 + $0x181] sm:$0x1]  ;;  %v871_v28 = vrot.slane %v1612_v14, 1  ;;  %v867_v35 = vsel %vm272_vm6, %v865_v19, %v864_v31  ;;  %v1392_v27 = vshrl.u32 (%p801_p5), %v1391_v23, 7 }
 0x1fc   : >>> { %v1619_v21 = vld [vmem:[%s2141_s16 + $0x1a1] sm:$0x1]  ;;  %v870_v45 = vsel %vm275_vm7, %v868_v20, %v867_v35 }
 0x1fd   : >>> { %v1620_v22 = vld [vmem:[%s2141_s16 + $0x1c1] sm:$0x1]  ;;  %v971_v30 = vrot.slane %v1619_v21, 7  ;;  %v873_v49 = vsel %vm278_vm8, %v871_v28, %v870_v45  ;;  %v1915_v21 = vmov (%p801_p5), 1966171168  }
 0x1fe   : >>> { %v1621_v24 = vld [vmem:[%s2141_s16 + $0x1e1] sm:$0x1]  ;;  %v973_v4 = vrot.slane %v1620_v22, 6  ;;  %1143 = vrot.lane.b32.xlu0 %v873_v49, %s1914_s17  ;;  %1730 = vmatpush3.msra.mxu0 %v873_v49  ;;  %v1389_v22 = vunpack.c.l.s4 (%p801_p5), %v1915_v21 }
 0x1ff   : >>> { %v1622_v25 = vld [vmem:[%s2141_s16 + $0x201] sm:$0x1]  ;;  %v975_v33 = vrot.slane %v1621_v24, 5  ;;  %v972_v36 = vsel %vm260_vm0, %v971_v30, %v1618_v17  ;;  %1741 = vmatprep.subr.mxu0 %v1912_v43 }
 0x200   : >>> { %v1623_v26 = vld [vmem:[%s2141_s16 + $0x221] sm:$0x1]  ;;  %v977_v3 = vrot.slane %v1622_v25, 4  ;;  %v974_v46 = vsel %vm263_vm1, %v973_v4, %v972_v36 }
 0x201   : >>> { %v1624_v29 = vld [vmem:[%s2141_s16 + $0x241] sm:$0x1]  ;;  %v979_v44 = vrot.slane %v1623_v26, 3  ;;  %v976_v50 = vsel %vm266_vm2, %v975_v33, %v974_v46  ;;  %v1390_v26 = vunpack.c.0.s8 (%p801_p5), %v1389_v22 }
 0x202   : >>> { %v1625_v32 = vld [vmem:[%s2141_s16 + $0x261] sm:$0x1]  ;;  %v981_v47 = vrot.slane %v1624_v29, 2  ;;  %v978_v52 = vsel %vm269_vm3, %v977_v3, %v976_v50 }
 0x203   : >>> { %v840_v48 = vld [vmem:[%s2185_s21] sm:$0x3f]  ;;  %v983_v51 = vrot.slane %v1625_v32, 1  ;;  %v980_v53 = vsel %vm272_vm6, %v979_v44, %v978_v52 }
 0x204   : >>> { %1732 = vmatmul.mubr.msk.f32.vlgmr.msra.gmra.mxu0 %vm287_vm9, %v840_v48  ;;  %v982_v54 = vsel %vm275_vm7, %v981_v47, %v980_v53 }
 0x205   : >>> { %1742 = vmatpush3.msk.msra.mxu0 %vm291_vm4, %v990_v13  ;;  %1745 = vmatprep.mubr.msk.f32.mxu0 %vm1913_vm10, %v1912_v43  ;;  %v984_v55 = vsel %vm278_vm8, %v983_v51, %v982_v54 }
 0x206   : >>> { %1743 = vmatprep.subr.mxu0 %v1912_v43  ;;  %1299 = vrot.lane.b32.xlu1 %v984_v55, %s1914_s17 }
 0x207   : >>> { %1737 = vmatpush3.msra.mxu1 %v984_v55  ;;  %1744 = vmatpush3.msra.mxu0 %v984_v55 }
 0x208   : >>> { %1748 = vmatprep.subr.mxu1 %v1912_v43  ;;  %1755 = vmatprep.subr.mxu0 %v1912_v43 }
 0x209   : >>> { %1739 = vmatmul.mubr.msk.f32.vlgmr.msra.gmra.mxu1 %vm287_vm9, %v840_v48  ;;  %1746 = vmatmul.mubr.msk.f32.vlgmr.msra.gmra.mxu0 %vm287_vm9, %v1636_v56 }
 0x20a   : >>> { %1752 = vmatprep.mubr.msk.f32.mxu1 %vm1913_vm10, %v1912_v43  ;;  %1759 = vmatprep.mubr.msk.f32.mxu0 %vm1913_vm10, %v1912_v43 }
 0x264   : >>> { %v1146_v57 = vpop.permute.xlu0 %1145 }
 0x265   : >>> { %1749 = vmatpush3.msk.msra.mxu1 %vm291_vm4, %v1146_v57  ;;  %1756 = vmatpush3.msk.msra.mxu0 %vm291_vm4, %v1146_v57 }
 0x266   : >>> { %1750 = vmatprep.subr.mxu1 %v1912_v43  ;;  %1757 = vmatprep.subr.mxu0 %v1912_v43 }
 0x268   : >>> { %v1302_v58 = vpop.permute.xlu1 %1301 }
 0x270   : >>> { %v1144_v59 = vpop.permute.xlu0 %1143 }
 0x271   : >>> { %1751 = vmatpush3.msra.mxu1 %v1144_v59  ;;  %1758 = vmatpush3.msra.mxu0 %v1144_v59 }
 0x272   : >>> { %1753 = vmatmul.mubr.msk.f32.vlgmr.msra.gmra.mxu1 %vm287_vm9, %v1636_v56  ;;  %1762 = vmatprep.subr.mxu1 %v1912_v43 }
 0x273   : >>> { %1760 = vmatmul.mubr.msk.f32.vlgmr.msra.gmra.mxu0 %vm287_vm9, %v1642_v60  ;;  %1763 = vmatpush3.msk.msra.mxu1 %vm291_vm4, %v1302_v58 }
 0x274   : >>> { %1764 = vmatprep.subr.mxu1 %v1912_v43  ;;  %1766 = vmatprep.mubr.msk.f32.mxu1 %vm1913_vm10, %v1912_v43 }
 0x278   : >>> { %v1300_v61 = vpop.permute.xlu1 %1299 }
 0x279   : >>> { %1765 = vmatpush3.msra.mxu1 %v1300_v61 }
 0x27a   : >>> { %1767 = vmatmul.mubr.msk.f32.vlgmr.msra.gmra.mxu1 %vm287_vm9, %v1642_v60 }
 0x2c4   : >>> { %v954_v62 = vpop.f32.mrf.mxu0 }
 0x2c5   : >>> { %v958_v5 = vadd.f32 %v1902_v42, %v954_v62 }
 0x2c6   : >>> { %v1733_v63 = vpop.f32.mrf.mxu0 }
 0x2c9   : >>> { %v1060_v6 = vpop.f32.mrf.mxu1  ;;  %v1138_v7 = vpop.f32.mrf.mxu0 }
 0x2ca   : >>> { %v1142_v9 = vadd.f32 %v1138_v7, %v958_v5  ;;  %v1064_v12 = vadd.f32 %v1898_v41, %v1060_v6 }
 0x2cb   : >>> { %v1740_v8 = vpop.f32.mrf.mxu1  ;;  %v1747_v10 = vpop.f32.mrf.mxu0 }
 0x332   : >>> { %v1216_v11 = vpop.f32.mrf.mxu1 }
 0x333   : >>> { %v1294_v13 = vpop.f32.mrf.mxu0  ;;  %v1220_v16 = vadd.f32 %v1216_v11, %v1064_v12 }
 0x334   : >>> { %v1298_v14 = vadd.f32 %v1294_v13, %v1142_v9   ;;  %v1754_v15 = vpop.f32.mrf.mxu1 }
 0x335   : >>> { %v1761_v43 = vpop.f32.mrf.mxu0 }
 0x336   : >>> { %v2263_v42 = vmov %v1298_v14 }
 0x337   : >> { %v1377_v42 = vmul.f32 (%p801_p5), %v1298_v14, %v2102_v34 }
 0x339   : >> { %803 = sbr.rel (!%p801_p5) target bundleno = 489 (0x1e9), region = 109  ;;  %v1378_v24 = vadd.f32 (%p801_p5), %v1377_v42, %v2106_v37 }
 0x33a   : >>> { %v1372_v17 = vpop.f32.mrf.mxu1 }
 0x33b   : >>> { %v1376_v18 = vadd.f32 %v1372_v17, %v1220_v16   ;;  %v1379_v28 = vmax.f32 (%p801_p5), %v1378_v24, 0.0 }
 0x33c   : >>> { %v1768_v19 = vpop.f32.mrf.mxu1 }
 0x33d   : >>> { %v2262_v41 = vmov %v1376_v18  ;;  %v1380_v20 = vmul.f32 (%p801_p5), %v1376_v18, %v2102_v34  ;;  %v1393_v34 = vsub.s32 (%p801_p5), %v1390_v26, %v1392_v27 }
 0x33e   : >> { %v1383_v41 = vmax.f32 %v795_v2, %v798_v40 }
 0x33f   : >> { %v1381_v25 = vadd.f32 %v1380_v20, %v2106_v37 }
 0x341   : >> { %v1382_v29 = vmax.f32 %v1381_v25, 0.0 }
 0x343   : >> { %v1384_v30 = vmax.f32 %v1379_v28, %v1382_v29 }
 0x345   : >> { %v1385_v4 = vmax.f32 %v1383_v41, %v1384_v30 }
 0x347   : >> { %v1394_v31 = vrot.slane %v1385_v4, %v1393_v34  ;;  %v1387_v32 = vcombine.high %v1385_v4, %v1385_v4 }
 0x349   : >> { %v1410_v33 = vrot.slane %v1394_v31, %v1393_v34  ;;  %v1402_v3 = vcombine.high %v1394_v31, %v1394_v31  ;;  %v1401_v35 = vrot.slane %v1387_v32, %v1393_v34 }
 0x34b   : >> { %1442 = vst.msk [vmem:[%s1440_s22] sm:$0x1] %vm1441_vm11, %v1410_v33  ;;  %v1424_v37 = vrot.slane %v1402_v3, %v1393_v34  ;;  %v1432_v36 = vcombine.high %v1410_v33, %v1410_v33  ;;  %v1417_v44 = vrot.slane %v1401_v35, %v1393_v34  ;;  %v1403_v45 = vcombine.high %v1401_v35, %v1401_v35  ;;  %204 = sbr.rel (!%p202_p6) target bundleno = 16 (0x10), region = 120 }
 0x34d   : >> { %1443 = vst.msk [vmem:[%s1440_s22 + $0x10] sm:$0x1] %vm1441_vm11, %v1424_v37  ;;  %1444 = vst.msk [vmem:[%s1440_s22 + $0x20] sm:$0x1] %vm1441_vm11, %v1432_v36  ;;  %v1433_v39 = vcombine.high %v1424_v37, %v1424_v37  ;;  %v1431_v38 = vrot.slane %v1403_v45, %v1393_v34 }
 0x34e   : >> { %1446 = vst.msk [vmem:[%s1440_s22 + $0x40] sm:$0x1] %vm1441_vm11, %v1417_v44 }
 0x34f   : >> { %1445 = vst.msk [vmem:[%s1440_s22 + $0x30] sm:$0x1] %vm1441_vm11, %v1433_v39  ;;  %1447 = vst.msk [vmem:[%s1440_s22 + $0x50] sm:$0x1] %vm1441_vm11, %v1431_v38 }
 0x350 PF: > { %s14_s15 = sadd.s32 1, %s1878_s15  }
 0x351   : > { %p11_p7 = scmp.ge.s32.totalorder %s14_s15, 4  }
 0x353   :  { %13 = sbr.rel (!%p11_p7) target bundleno = 1 (0x1), region = 131 }

// kernel: forward.12
= control target key start
LH: loop header
LB: loop body
LE: loop exit
PB: predicated region body
PF: predicated region fallthrough
CT: control target
= control target key end

     0   :  { %s1749_s15 = smov 0   ;;  %s1969_s0 = inlined_call_operand.vmem [shape: f32[2,2,6,16,8], index: 0, kind: input, shape index: {}]   ;;  %s1970_s1 = inlined_call_operand.vmem [shape: f32[9,3,6], index: 1, kind: input, shape index: {}]   ;;  %s1971_s2 = inlined_call_operand.vmem [shape: f32[3,1], index: 2, kind: input, shape index: {}]   ;;  %s1972_s3 = inlined_call_operand.vmem [shape: f32[3,1], index: 3, kind: input, shape index: {}]   ;;  %s1973_s4 = inlined_call_operand.vmem [shape: f32[2,3,7,7], index: 4, kind: output, shape index: {}]  }
   0x1 LB: > { %s1428_s16 = sadd.s32 4294967295, %s1686_s15   ;;  %p1432_p0 = scmp.ge.s32.totalorder %s1686_s15, 1  ;;  %s1686_s15 = sphi %s1749_s15, %s14_s15  }
   0x2   : > { %p162_p1 = scmp.lt.s32.totalorder %s1686_s15, 3 }
   0x4   : > { %p163_p2 = pnand %p1432_p0, %p162_p1 }
   0x5   : > { %p188_p3 = scmp.lt.s32.totalorder (!%p163_p2), %s1428_s16, 1  ;;  %s1777_s29 = smov (!%p163_p2), 0  }
   0x6   : > { %166 = sbr.rel (%p163_p2) target bundleno = 690 (0x2b2), region = 36 }
   0xb   : > { %v1760_v0 = vld [vmem:[%s1971_s2] sm:$0x7]  ;;  %s1979_s16 = smov (!%p188_p3, %s1428_s16), 1 }
   0xc   : > { %v1765_v1 = vld [vmem:[%s1972_s3] sm:$0x7]  ;;  %s1577_s21 = smul.u32 192, %s1979_s16 }
   0xd   : > { %s1578_s22 = smul.u32 24, %s1979_s16 }
   0xe   : > { %s1770_s25 = scalar_lea.vmem %s1969_s0, %s1577_s21 }
   0xf   : > { %s1775_s28 = scalar_lea.vmem %s1973_s4, %s1578_s22 }
  0x10 LB: >> { %v1782_v2 = vmov 0.0   ;;  %v1784_v3 = vmov 0.0   ;;  %s1786_s30 = smov 0   ;;  %s1690_s29 = sphi %s1777_s29, %s205_s29  }
  0x11 LB: >>> { %s1435_s5 = sshll.u32 %s1690_s29, 1  ;;  %v1716_v4 = vmov 0.0   ;;  %vm1717_vm0 = vmmov 0   ;;  %vm242_vm1 = vcmask 1041409   ;;  %vm245_vm2 = vcmask 1042434   ;;  %s1443_s8 = smul.u32 12, %s1702_s30  ;;  %s1702_s30 = sphi %s1786_s30, %s211_s30   ;;  %v1698_v3 = vphi %v1784_v3, %v1975_v3   ;;  %v1694_v2 = vphi %v1782_v2, %v1974_v2  }
  0x12   : >>> { %s215_s6 = sadd.s32 %s1702_s30, %s1435_s5  ;;  %1517 = vmatprep.subr.mxu0 %v1716_v4  ;;  %1519 = vmatprep.mubr.msk.f32.mxu0 %vm1717_vm0, %v1716_v4  ;;  %vm248_vm3 = vcmask 1043459   ;;  %vm251_vm4 = vcmask 1044484   ;;  %vm254_vm5 = vcmask 1045509   ;;  %vm260_vm6 = vcmask 1045504   ;;  %s1718_s12 = smov 127  }
  0x13   : >>> { %s216_s7 = scalar_lea.vmem %s1770_s25, %s215_s6  ;;  %1522 = vmatprep.subr.mxu1 %v1716_v4  ;;  %1524 = vmatprep.mubr.msk.f32.mxu1 %vm1717_vm0, %v1716_v4  ;;  %s1813_s11 = scalar_lea.vmem %s1970_s1, %s1443_s8  ;;  %vm256_vm7 = vcmask 48128  }
  0x14   : >>> { %v217_v5 = vld [vmem:[%s216_s7] sm:$0x1]  ;;  %v218_v6 = vld [vmem:[%s216_s7 + $0x10] sm:$0x1]  ;;  %v1449_v38 = vld [vmem:[%s1813_s11 + $0x4] sm:$0x7] }
  0x15   : >>> { %v219_v7 = vld [vmem:[%s216_s7 + $0x20] sm:$0x1]  ;;  %v220_v8 = vld [vmem:[%s216_s7 + $0x30] sm:$0x1]  ;;  %v241_v11 = vrot.slane %v218_v6, 7  ;;  %s211_s30 = sadd.s32 1, %s1702_s30  }
  0x16   : >>> { %v221_v9 = vld [vmem:[%s216_s7 + $0x40] sm:$0x1]  ;;  %v222_v10 = vld [vmem:[%s216_s7 + $0x50] sm:$0x1]  ;;  %v244_v12 = vrot.slane %v219_v7, 6  ;;  %v247_v13 = vrot.slane %v220_v8, 5 }
  0x17   : >>> { %v1437_v14 = vld [vmem:[%s216_s7 + $0x60] sm:$0x1]  ;;  %v250_v15 = vrot.slane %v221_v9, 4  ;;  %v253_v16 = vrot.slane %v222_v10, 3  ;;  %v1438_v17 = vld [vmem:[%s216_s7 + $0x70] sm:$0x1]  ;;  %v243_v19 = vsel %vm242_vm1, %v241_v11, %v217_v5 }
  0x18   : >>> { %v1439_v18 = vld [vmem:[%s216_s7 + $0x80] sm:$0x1]  ;;  %v1440_v20 = vld [vmem:[%s216_s7 + $0x90] sm:$0x1]  ;;  %v246_v23 = vsel %vm245_vm2, %v244_v12, %v243_v19  ;;  %v340_v24 = vrot.slane %v1438_v17, 7  ;;  %p208_p4 = scmp.ge.s32.totalorder %s211_s30, 3  }
  0x19   : >>> { %v1441_v21 = vld [vmem:[%s216_s7 + $0xa0] sm:$0x1]  ;;  %v1442_v22 = vld [vmem:[%s216_s7 + $0xb0] sm:$0x1]  ;;  %v342_v25 = vrot.slane %v1439_v18, 6  ;;  %v344_v26 = vrot.slane %v1440_v20, 5  ;;  %v249_v27 = vsel %vm248_vm3, %v247_v13, %v246_v23 }
  0x1a   : >>> { %v346_v28 = vrot.slane %v1441_v21, 4  ;;  %v252_v29 = vsel %vm251_vm4, %v250_v15, %v249_v27  ;;  %v341_v30 = vsel %vm242_vm1, %v340_v24, %v1437_v14  ;;  %v348_v31 = vrot.slane %v1442_v22, 3  ;;  %v234_v32 = vld [vmem:[%s1813_s11] sm:$0x7]  ;;  %v1455_v40 = vld [vmem:[%s1813_s11 + $0x8] sm:$0x7] }
  0x1b   : >>> { %v255_v33 = vsel %vm254_vm5, %v253_v16, %v252_v29  ;;  %v343_v34 = vsel %vm245_vm2, %v342_v25, %v341_v30  ;;  %v1719_v60 = vmov (%p208_p4), 0   ;;  %v1876_v7 = vmov (%p208_p4), 0.0   ;;  %s1880_s13 = smov (%p208_p4), 0  }
  0x1c   : >>> { %501 = vrot.lane.b32.xlu0 %v255_v33, %s1718_s12  ;;  %v345_v35 = vsel %vm248_vm3, %v344_v26, %v343_v34  ;;  %1518 = vmatpush3.msk.msra.mxu0 %vm260_vm6, %v255_v33  ;;  %v1878_v8 = vmov (%p208_p4), 0.0  }
  0x1d   : >>> { %v347_v36 = vsel %vm251_vm4, %v346_v28, %v345_v35  ;;  %1520 = vmatmul.mubr.msk.f32.vlgmr.msra.gmra.mxu0 %vm256_vm7, %v234_v32  ;;  %1527 = vmatprep.subr.mxu0 %v1716_v4 }
  0x1e   : >>> { %v349_v37 = vsel %vm254_vm5, %v348_v31, %v347_v36  ;;  %1529 = vmatprep.mubr.msk.f32.mxu0 %vm1717_vm0, %v1716_v4  ;;  %1651 = vset.pattern.permute.xlu0 (%p208_p4), %v1719_v60 }
  0x1f   : >>> { %1523 = vmatpush3.msk.msra.mxu1 %vm260_vm6, %v349_v37  ;;  %1528 = vmatpush3.msk.msra.mxu0 %vm260_vm6, %v349_v37 }
  0x20   : >>> { %654 = vrot.lane.b32.xlu0 %v349_v37, %s1718_s12  ;;  %1525 = vmatmul.mubr.msk.f32.vlgmr.msra.gmra.mxu1 %vm256_vm7, %v234_v32 }
  0x21   : >>> { %1532 = vmatprep.subr.mxu1 %v1716_v4  ;;  %1537 = vmatprep.subr.mxu0 %v1716_v4 }
  0x22   : >>> { %1530 = vmatmul.mubr.msk.f32.vlgmr.msra.gmra.mxu0 %vm256_vm7, %v1449_v38  ;;  %1534 = vmatprep.mubr.msk.f32.mxu1 %vm1717_vm0, %v1716_v4 }
  0x23   : >>> { %1539 = vmatprep.mubr.msk.f32.mxu0 %vm1717_vm0, %v1716_v4 }
  0x24   : >> { %731 = vperm.xlu0 (%p208_p4), %1651, %v1760_v0  }
  0x28   : >> { %737 = vperm.xlu0 (%p208_p4), %1651, %v1765_v1  }
  0x8e   : >>> { %v502_v39 = vpop.permute.xlu0 %501 }
  0x8f   : >>> { %1533 = vmatpush3.msk.msra.mxu1 %vm260_vm6, %v502_v39  ;;  %1538 = vmatpush3.msk.msra.mxu0 %vm260_vm6, %v502_v39 }
  0x90   : >>> { %1535 = vmatmul.mubr.msk.f32.vlgmr.msra.gmra.mxu1 %vm256_vm7, %v1449_v38  ;;  %1542 = vmatprep.subr.mxu1 %v1716_v4 }
  0x91   : >>> { %1540 = vmatmul.mubr.msk.f32.vlgmr.msra.gmra.mxu0 %vm256_vm7, %v1455_v40  ;;  %1544 = vmatprep.mubr.msk.f32.mxu1 %vm1717_vm0, %v1716_v4 }
  0x92   : >>> { %v655_v41 = vpop.permute.xlu0 %654 }
  0x93   : >>> { %1543 = vmatpush3.msk.msra.mxu1 %vm260_vm6, %v655_v41 }
  0x94   : >>> { %1545 = vmatmul.mubr.msk.f32.vlgmr.msra.gmra.mxu1 %vm256_vm7, %v1455_v40 }
  0x9f   : >> { %v1862_v61 = vpop.permute.xlu0 (%p208_p4), %731 }
  0xdd   : >>> { %v329_v42 = vpop.f32.mrf.mxu0 }
  0xde   : >>> { %v333_v43 = vadd.f32 %v1698_v3, %v329_v42 }
  0xdf   : >>> { %v1521_v44 = vpop.f32.mrf.mxu0 }
  0xe0   : >>> { %v418_v45 = vpop.f32.mrf.mxu1 }
  0xe1   : >>> { %v422_v51 = vadd.f32 %v1694_v2, %v418_v45 }
  0xe2   : >>> { %v1526_v46 = vpop.f32.mrf.mxu1  ;;  %v496_v47 = vpop.f32.mrf.mxu0 }
  0xe3   : >>> { %v500_v48 = vadd.f32 %v496_v47, %v333_v43 }
  0xe4   : >>> { %v1531_v49 = vpop.f32.mrf.mxu0 }
 0x150   : >>> { %v571_v50 = vpop.f32.mrf.mxu1 }
 0x151   : >>> { %v649_v52 = vpop.f32.mrf.mxu0  ;;  %v575_v55 = vadd.f32 %v571_v50, %v422_v51 }
 0x152   : >>> { %v1536_v53 = vpop.f32.mrf.mxu1  ;;  %v653_v54 = vadd.f32 %v649_v52, %v500_v48  }
 0x153   : >>> { %v1541_v56 = vpop.f32.mrf.mxu0  ;;  %210 = sbr.rel (!%p208_p4) target bundleno = 17 (0x11), region = 98 }
 0x154   : >>> { %v724_v57 = vpop.f32.mrf.mxu1  ;;  %v1975_v3 = vmov %v653_v54  ;;  %v734_v62 = vmul.f32 (%p208_p4), %v1862_v61, %v653_v54 }
 0x155   : >>> { %v728_v58 = vadd.f32 %v724_v57, %v575_v55   ;;  %v1866_v3 = vpop.permute.xlu0 (%p208_p4), %737 }
 0x156   : >>> { %v1546_v59 = vpop.f32.mrf.mxu1  ;;  %v1869_v4 = vadd.f32 (%p208_p4), %v1866_v3, %v734_v62 }
 0x157   : >>> { %v1974_v2 = vmov %v728_v58  ;;  %v742_v63 = vmul.f32 (%p208_p4), %v1862_v61, %v728_v58 }
 0x158   : >> { %v741_v2 = vmax.f32 %v1869_v4, 0.0 }
 0x159   : >> { %v1872_v5 = vadd.f32 %v742_v63, %v1866_v3 }
 0x15b   : >> { %v744_v6 = vmax.f32 %v1872_v5, 0.0 }
 0x15c LB: >>> { %v1720_v9 = vmov 0.0   ;;  %vm1721_vm8 = vmmov 0   ;;  %s1359_s14 = sadd.s32 %s1714_s13, %s1435_s5  ;;  %s1474_s17 = smul.u32 12, %s1714_s13  ;;  %s1714_s13 = sphi %s1880_s13, %s750_s13   ;;  %v1710_v8 = vphi %v1878_v8, %v1977_v8   ;;  %v1706_v7 = vphi %v1876_v7, %v1976_v7  }
 0x15d   : >>> { %1547 = vmatprep.subr.mxu0 %v1720_v9  ;;  %1549 = vmatprep.mubr.msk.f32.mxu0 %vm1721_vm8, %v1720_v9  ;;  %s1360_s16 = scalar_lea.vmem %s1770_s25, %s1359_s14  ;;  %s1722_s21 = smov 127  }
 0x15e   : >>> { %1552 = vmatprep.subr.mxu1 %v1720_v9  ;;  %1554 = vmatprep.mubr.msk.f32.mxu1 %vm1721_vm8, %v1720_v9  ;;  %v1461_v10 = vld [vmem:[%s1360_s16 + $0x1] sm:$0x1]  ;;  %v1462_v11 = vld [vmem:[%s1360_s16 + $0x11] sm:$0x1]  ;;  %s1906_s20 = scalar_lea.vmem %s1970_s1, %s1474_s17  ;;  %s750_s13 = sadd.s32 1, %s1714_s13  }
 0x15f   : >>> { %v1463_v12 = vld [vmem:[%s1360_s16 + $0x21] sm:$0x1]  ;;  %v1464_v13 = vld [vmem:[%s1360_s16 + $0x31] sm:$0x1]  ;;  %v781_v16 = vrot.slane %v1462_v11, 7  ;;  %p747_p5 = scmp.ge.s32.totalorder %s750_s13, 3  }
 0x160   : >>> { %v1465_v14 = vld [vmem:[%s1360_s16 + $0x41] sm:$0x1]  ;;  %v1466_v15 = vld [vmem:[%s1360_s16 + $0x51] sm:$0x1]  ;;  %v784_v17 = vrot.slane %v1463_v12, 6  ;;  %v787_v18 = vrot.slane %v1464_v13, 5  ;;  %s1305_s22 = scalar_lea.vmem (%p747_p5), %s1775_s28, %s1690_s29 }
 0x161   : >>> { %v1468_v19 = vld [vmem:[%s1360_s16 + $0x61] sm:$0x1]  ;;  %v790_v20 = vrot.slane %v1465_v14, 4  ;;  %v793_v21 = vrot.slane %v1466_v15, 3  ;;  %v1469_v22 = vld [vmem:[%s1360_s16 + $0x71] sm:$0x1]  ;;  %v783_v24 = vsel %vm242_vm1, %v781_v16, %v1461_v10  ;;  %v1282_v14 = vlaneseq (%p747_p5) }
 0x162   : >>> { %v1470_v23 = vld [vmem:[%s1360_s16 + $0x81] sm:$0x1]  ;;  %v1471_v25 = vld [vmem:[%s1360_s16 + $0x91] sm:$0x1]  ;;  %v786_v28 = vsel %vm245_vm2, %v784_v17, %v783_v24  ;;  %v880_v29 = vrot.slane %v1469_v22, 7  ;;  %vm1306_vm9 = vcmask (%p747_p5), 49152  }
 0x163   : >>> { %v1472_v26 = vld [vmem:[%s1360_s16 + $0xa1] sm:$0x1]  ;;  %v1473_v27 = vld [vmem:[%s1360_s16 + $0xb1] sm:$0x1]  ;;  %v882_v30 = vrot.slane %v1470_v23, 6  ;;  %v884_v31 = vrot.slane %v1471_v25, 5  ;;  %v789_v32 = vsel %vm248_vm3, %v787_v18, %v786_v28 }
 0x164   : >>> { %v886_v33 = vrot.slane %v1472_v26, 4  ;;  %v792_v34 = vsel %vm251_vm4, %v790_v20, %v789_v32  ;;  %v881_v35 = vsel %vm242_vm1, %v880_v29, %v1468_v19  ;;  %v888_v36 = vrot.slane %v1473_v27, 3  ;;  %v774_v37 = vld [vmem:[%s1906_s20] sm:$0x7]  ;;  %v1480_v43 = vld [vmem:[%s1906_s20 + $0x4] sm:$0x7] }
 0x165   : >>> { %v795_v38 = vsel %vm254_vm5, %v793_v21, %v792_v34  ;;  %v883_v39 = vsel %vm245_vm2, %v882_v30, %v881_v35  ;;  %v1486_v45 = vld [vmem:[%s1906_s20 + $0x8] sm:$0x7]  ;;  %v1723_v12 = vmov (%p747_p5), 1966171168   ;;  %v1283_v18 = vshrl.u32 (%p747_p5), %v1282_v14, 7  ;;  %s205_s29 = sadd.s32 (%p747_p5), 1, %s1690_s29  }
 0x166   : >>> { %1041 = vrot.lane.b32.xlu0 %v795_v38, %s1722_s21  ;;  %v885_v40 = vsel %vm248_vm3, %v884_v31, %v883_v39  ;;  %1548 = vmatpush3.msk.msra.mxu0 %vm260_vm6, %v795_v38  ;;  %v1280_v13 = vunpack.c.l.s4 (%p747_p5), %v1723_v12  ;;  %p202_p6 = scmp.ge.s32.totalorder (%p747_p5), %s205_s29, 7  }
 0x167   : >>> { %v887_v41 = vsel %vm251_vm4, %v886_v33, %v885_v40  ;;  %1550 = vmatmul.mubr.msk.f32.vlgmr.msra.gmra.mxu0 %vm256_vm7, %v774_v37  ;;  %1557 = vmatprep.subr.mxu0 %v1720_v9 }
 0x168   : >>> { %v889_v42 = vsel %vm254_vm5, %v888_v36, %v887_v41  ;;  %1559 = vmatprep.mubr.msk.f32.mxu0 %vm1721_vm8, %v1720_v9  ;;  %v1281_v17 = vunpack.c.0.s8 (%p747_p5), %v1280_v13 }
 0x169   : >>> { %1553 = vmatpush3.msk.msra.mxu1 %vm260_vm6, %v889_v42  ;;  %1558 = vmatpush3.msk.msra.mxu0 %vm260_vm6, %v889_v42 }
 0x16a   : >>> { %1194 = vrot.lane.b32.xlu0 %v889_v42, %s1722_s21  ;;  %1555 = vmatmul.mubr.msk.f32.vlgmr.msra.gmra.mxu1 %vm256_vm7, %v774_v37  ;;  %v1284_v22 = vsub.s32 (%p747_p5), %v1281_v17, %v1283_v18 }
 0x16b   : >>> { %1562 = vmatprep.subr.mxu1 %v1720_v9  ;;  %1567 = vmatprep.subr.mxu0 %v1720_v9 }
 0x16c   : >>> { %1560 = vmatmul.mubr.msk.f32.vlgmr.msra.gmra.mxu0 %vm256_vm7, %v1480_v43  ;;  %1564 = vmatprep.mubr.msk.f32.mxu1 %vm1721_vm8, %v1720_v9 }
 0x16d   : >>> { %1569 = vmatprep.mubr.msk.f32.mxu0 %vm1721_vm8, %v1720_v9 }
 0x1d8   : >>> { %v1042_v44 = vpop.permute.xlu0 %1041 }
 0x1d9   : >>> { %1563 = vmatpush3.msk.msra.mxu1 %vm260_vm6, %v1042_v44  ;;  %1568 = vmatpush3.msk.msra.mxu0 %vm260_vm6, %v1042_v44 }
 0x1da   : >>> { %1565 = vmatmul.mubr.msk.f32.vlgmr.msra.gmra.mxu1 %vm256_vm7, %v1480_v43  ;;  %1572 = vmatprep.subr.mxu1 %v1720_v9 }
 0x1db   : >>> { %1570 = vmatmul.mubr.msk.f32.vlgmr.msra.gmra.mxu0 %vm256_vm7, %v1486_v45  ;;  %1574 = vmatprep.mubr.msk.f32.mxu1 %vm1721_vm8, %v1720_v9 }
 0x1dc   : >>> { %v1195_v46 = vpop.permute.xlu0 %1194 }
 0x1dd   : >>> { %1573 = vmatpush3.msk.msra.mxu1 %vm260_vm6, %v1195_v46 }
 0x1de   : >>> { %1575 = vmatmul.mubr.msk.f32.vlgmr.msra.gmra.mxu1 %vm256_vm7, %v1486_v45 }
 0x227   : >>> { %v869_v47 = vpop.f32.mrf.mxu0 }
 0x228   : >>> { %v873_v48 = vadd.f32 %v1710_v8, %v869_v47 }
 0x229   : >>> { %v1551_v49 = vpop.f32.mrf.mxu0 }
 0x22a   : >>> { %v958_v50 = vpop.f32.mrf.mxu1 }
 0x22b   : >>> { %v962_v56 = vadd.f32 %v1706_v7, %v958_v50 }
 0x22c   : >>> { %v1556_v51 = vpop.f32.mrf.mxu1  ;;  %v1036_v52 = vpop.f32.mrf.mxu0 }
 0x22d   : >>> { %v1040_v53 = vadd.f32 %v1036_v52, %v873_v48 }
 0x22e   : >>> { %v1561_v54 = vpop.f32.mrf.mxu0 }
 0x29a   : >>> { %v1111_v55 = vpop.f32.mrf.mxu1 }
 0x29b   : >>> { %v1189_v57 = vpop.f32.mrf.mxu0  ;;  %v1115_v60 = vadd.f32 %v1111_v55, %v962_v56 }
 0x29c   : >>> { %v1566_v58 = vpop.f32.mrf.mxu1  ;;  %v1193_v59 = vadd.f32 %v1189_v57, %v1040_v53  }
 0x29d   : >>> { %v1571_v62 = vpop.f32.mrf.mxu0  ;;  %749 = sbr.rel (!%p747_p5) target bundleno = 348 (0x15c), region = 109 }
 0x29e   : >>> { %v1264_v63 = vpop.f32.mrf.mxu1  ;;  %v1977_v8 = vmov %v1193_v59 }
 0x29f   : >>> { %v1268_v9 = vadd.f32 %v1264_v63, %v1115_v60   ;;  %v1269_v8 = vmul.f32 (%p747_p5), %v1193_v59, %v1862_v61 }
 0x2a0   : >>> { %v1576_v10 = vpop.f32.mrf.mxu1 }
 0x2a1   : >>> { %v1976_v7 = vmov %v1268_v9  ;;  %v1272_v11 = vmul.f32 (%p747_p5), %v1268_v9, %v1862_v61  ;;  %v1270_v15 = vadd.f32 (%p747_p5), %v1269_v8, %v1866_v3 }
 0x2a2   : >> { %v1275_v7 = vmax.f32 %v741_v2, %v744_v6 }
 0x2a3   : >> { %v1273_v16 = vadd.f32 %v1272_v11, %v1866_v3  ;;  %v1271_v19 = vmax.f32 %v1270_v15, 0.0 }
 0x2a5   : >> { %v1274_v20 = vmax.f32 %v1273_v16, 0.0 }
 0x2a7   : >> { %v1276_v21 = vmax.f32 %v1271_v19, %v1274_v20 }
 0x2a9   : >> { %v1277_v23 = vmax.f32 %v1275_v7, %v1276_v21 }
 0x2ab   : >> { %v1285_v61 = vrot.slane %v1277_v23, %v1284_v22 }
 0x2ad   : >> { %v1293_v24 = vrot.slane %v1285_v61, %v1284_v22  ;;  %v1286_v25 = vcombine.high %v1285_v61, %v1285_v61  ;;  %204 = sbr.rel (!%p202_p6) target bundleno = 16 (0x10), region = 120 }
 0x2af   : >> { %1307 = vst.msk [vmem:[%s1305_s22] sm:$0x1] %vm1306_vm9, %v1293_v24  ;;  %v1300_v26 = vrot.slane %v1286_v25, %v1284_v22  ;;  %v1301_v3 = vcombine.high %v1293_v24, %v1293_v24 }
 0x2b1   : >> { %1308 = vst.msk [vmem:[%s1305_s22 + $0x8] sm:$0x1] %vm1306_vm9, %v1300_v26  ;;  %1309 = vst.msk [vmem:[%s1305_s22 + $0x10] sm:$0x1] %vm1306_vm9, %v1301_v3 }
 0x2b2 PF: > { %s14_s15 = sadd.s32 1, %s1686_s15  }
 0x2b3   : > { %p11_p7 = scmp.ge.s32.totalorder %s14_s15, 4  }
 0x2b5   :  { %13 = sbr.rel (!%p11_p7) target bundleno = 1 (0x1), region = 131 }

// kernel: forward.13
= control target key start
LH: loop header
LB: loop body
LE: loop exit
PB: predicated region body
PF: predicated region fallthrough
CT: control target
= control target key end

     0   :  { %v665_v1 = vmov 0.0   ;;  %vm76_vm0 = vcmask 154624   ;;  %s958_s0 = inlined_call_operand.vmem [shape: f32[2,147], index: 0, kind: input, shape index: {}]   ;;  %s959_s1 = inlined_call_operand.vmem [shape: f32[147,128], index: 1, kind: input, shape index: {}]   ;;  %s960_s2 = inlined_call_operand.vmem [shape: f32[1,128], index: 2, kind: input, shape index: {}]   ;;  %s961_s3 = inlined_call_operand.vmem [shape: f32[128,64], index: 3, kind: input, shape index: {}]   ;;  %s962_s4 = inlined_call_operand.vmem [shape: f32[1,64], index: 4, kind: input, shape index: {}]   ;;  %s963_s5 = inlined_call_operand.vmem [shape: f32[64,32], index: 5, kind: input, shape index: {}]   ;;  %s964_s6 = inlined_call_operand.vmem [shape: f32[1,32], index: 6, kind: input, shape index: {}]   ;;  %s965_s7 = inlined_call_operand.vmem [shape: f32[32,16], index: 7, kind: input, shape index: {}]   ;;  %s966_s8 = inlined_call_operand.vmem [shape: f32[1,16], index: 8, kind: input, shape index: {}]   ;;  %s967_s9 = inlined_call_operand.vmem [shape: f32[16,8], index: 9, kind: input, shape index: {}]   ;;  %s968_s10 = inlined_call_operand.vmem [shape: f32[1,8], index: 10, kind: input, shape index: {}]   ;;  %s969_s11 = inlined_call_operand.hbm [shape: f32[2,8], index: 11, kind: output, shape index: {}]  }
   0x1   :  { %v55_v0 = vld [vmem:[%s959_s1 + $0x78] sm:$0xff]  ;;  %83 = vmatprep.subr.mxu0 %v665_v1  ;;  %v54_v2 = vld [vmem:[%s959_s1 + $0x70] sm:$0xff]  ;;  %568 = vmatprep.subr.mxu1 %v665_v1  ;;  %v53_v3 = vld [vmem:[%s959_s1 + $0x68] sm:$0xff] }
   0x2   :  { %84 = vmatpush1.msra.mxu0 %v55_v0  ;;  %v52_v4 = vld [vmem:[%s959_s1 + $0x60] sm:$0xff]  ;;  %v169_v6 = vld [vmem:[%s961_s3 + $0x78] sm:$0xff]  ;;  %v168_v9 = vld [vmem:[%s961_s3 + $0x70] sm:$0xff] }
   0x3   :  { %85 = vmatprep.subr.mxu0 %v665_v1  ;;  %v747_v5 = vld.sshfl [vmem:[%s958_s0] sm:$0x33 pattern:$0x76325410]  ;;  %v51_v7 = vld [vmem:[%s959_s1 + $0x58] sm:$0xff]  ;;  %569 = vmatpush3.msra.mxu1 %v169_v6  ;;  %v50_v10 = vld [vmem:[%s959_s1 + $0x50] sm:$0xff] }
   0x4   :  { %86 = vmatpush1.msra.mxu0 %v54_v2  ;;  %v74_v8 = vcombine.high %v747_v5, %v747_v5  ;;  %570 = vmatprep.subr.mxu1 %v665_v1  ;;  %v167_v11 = vld [vmem:[%s961_s3 + $0x68] sm:$0xff]  ;;  %v166_v13 = vld [vmem:[%s961_s3 + $0x60] sm:$0xff] }
   0x5   :  { %87 = vmatprep.subr.mxu0 %v665_v1  ;;  %571 = vmatpush3.msra.mxu1 %v168_v9  ;;  %v49_v12 = vld [vmem:[%s959_s1 + $0x48] sm:$0xff] }
   0x6   :  { %88 = vmatpush1.msra.mxu0 %v53_v3  ;;  %526 = vmatprep.mubr.msk.f32.mxu0 %vm76_vm0, %v74_v8 }
   0x7   :  { %89 = vmatprep.subr.mxu0 %v665_v1  ;;  %572 = vmatprep.subr.mxu1 %v665_v1 }
   0x8   :  { %90 = vmatpush1.msra.mxu0 %v52_v4 }
   0x9   :  { %91 = vmatprep.subr.mxu0 %v665_v1 }
   0xa   :  { %92 = vmatpush1.msra.mxu0 %v51_v7 }
   0xb   :  { %93 = vmatprep.subr.mxu0 %v665_v1 }
   0xc   :  { %16 = vsyncpa [#allocation3], 0  ;;  %94 = vmatpush1.msra.mxu0 %v50_v10  ;;  %573 = vmatpush3.msra.mxu1 %v167_v11  ;;  %v48_v14 = vld [vmem:[%s959_s1 + $0x40] sm:$0xff]  ;;  %v165_v15 = vld [vmem:[%s961_s3 + $0x58] sm:$0xff]  ;;  %vm79_vm1 = vcmask 1042432   ;;  %vm666_vm2 = vmmov 0  }
   0xd   :  { %95 = vmatprep.subr.mxu0 %v665_v1  ;;  %574 = vmatprep.subr.mxu1 %v665_v1  ;;  %v47_v16 = vld [vmem:[%s959_s1 + $0x38] sm:$0xff]  ;;  %v164_v17 = vld [vmem:[%s961_s3 + $0x50] sm:$0xff]  ;;  %v163_v19 = vld [vmem:[%s961_s3 + $0x48] sm:$0xff]  ;;  %vm263_vm3 = vcmask 523264   ;;  %vm349_vm4 = vcmask 261120   ;;  %vm433_vm5 = vcmask 130048  }
   0xe   :  { %96 = vmatpush1.msra.mxu0 %v49_v12  ;;  %575 = vmatpush3.msra.mxu1 %v166_v13  ;;  %v46_v18 = vld [vmem:[%s959_s1 + $0x30] sm:$0xff]  ;;  %v45_v20 = vld [vmem:[%s959_s1 + $0x28] sm:$0xff]  ;;  %v162_v21 = vld [vmem:[%s961_s3 + $0x40] sm:$0xff]  ;;  %s667_s17 = smov [#allocation2]   ;;  %vm507_vm6 = vcmask 58368  }
   0xf   :  { %97 = vmatprep.subr.mxu0 %v665_v1  ;;  %576 = vmatprep.subr.mxu1 %v665_v1  ;;  %v44_v22 = vld [vmem:[%s959_s1 + $0x20] sm:$0xff]  ;;  %v161_v23 = vld [vmem:[%s961_s3 + $0x38] sm:$0xff]  ;;  %v160_v25 = vld [vmem:[%s961_s3 + $0x30] sm:$0xff]  ;;  %s515_s18 = sshll.u32 %s667_s17, 4  ;;  %s516_s18 = int_to_ptr.vmem [resolvable:$true] %s515_s18 }
  0x10   :  { %98 = vmatpush1.msra.mxu0 %v48_v14  ;;  %577 = vmatpush3.msra.mxu1 %v165_v15  ;;  %v43_v24 = vld [vmem:[%s959_s1 + $0x18] sm:$0xff]  ;;  %v42_v26 = vld [vmem:[%s959_s1 + $0x10] sm:$0xff]  ;;  %v159_v27 = vld [vmem:[%s961_s3 + $0x28] sm:$0xff]  ;;  %p648_p1 = scmp.lt.s32.totalorder %s516_s18, %s516_s18 }
  0x11   :  { %99 = vmatprep.subr.mxu0 %v665_v1  ;;  %578 = vmatprep.subr.mxu1 %v665_v1  ;;  %v41_v28 = vld [vmem:[%s959_s1 + $0x8] sm:$0xff]  ;;  %v158_v29 = vld [vmem:[%s961_s3 + $0x20] sm:$0xff]  ;;  %v157_v31 = vld [vmem:[%s961_s3 + $0x18] sm:$0xff] }
  0x12   :  { %100 = vmatpush1.msra.mxu0 %v47_v16  ;;  %579 = vmatpush3.msra.mxu1 %v164_v17  ;;  %v40_v30 = vld [vmem:[%s959_s1] sm:$0xff]  ;;  %v58_v32 = vld [vmem:[%s959_s1 + $0x90] sm:$0x7]  ;;  %v57_v33 = vld [vmem:[%s959_s1 + $0x88] sm:$0xff] }
  0x13   :  { %101 = vmatprep.subr.mxu0 %v665_v1  ;;  %580 = vmatprep.subr.mxu1 %v665_v1  ;;  %v56_v34 = vld [vmem:[%s959_s1 + $0x80] sm:$0xff]  ;;  %v156_v35 = vld [vmem:[%s961_s3 + $0x10] sm:$0xff]  ;;  %v155_v36 = vld [vmem:[%s961_s3 + $0x8] sm:$0xff] }
  0x14   :  { %102 = vmatpush1.msra.mxu0 %v46_v18  ;;  %581 = vmatpush3.msra.mxu1 %v163_v19  ;;  %v154_v37 = vld [vmem:[%s961_s3] sm:$0xff]  ;;  %v255_v43 = vld [vmem:[%s963_s5 + $0x38] sm:$0xff]  ;;  %v254_v44 = vld [vmem:[%s963_s5 + $0x30] sm:$0xff] }
  0x15   :  { %103 = vmatprep.subr.mxu0 %v665_v1  ;;  %582 = vmatprep.subr.mxu1 %v665_v1  ;;  %v523_v38 = vld [vmem:[%s960_s2] ss:$0 sm:$0xff]  ;;  %v253_v45 = vld [vmem:[%s963_s5 + $0x28] sm:$0xff]  ;;  %v251_v47 = vld [vmem:[%s963_s5 + $0x18] sm:$0xff] }
  0x16   :  { %104 = vmatpush1.msra.mxu0 %v45_v20  ;;  %583 = vmatpush3.msra.mxu1 %v162_v21  ;;  %v252_v46 = vld [vmem:[%s963_s5 + $0x20] sm:$0xff]  ;;  %v250_v48 = vld [vmem:[%s963_s5 + $0x10] sm:$0xff]  ;;  %v249_v49 = vld [vmem:[%s963_s5 + $0x8] sm:$0xff] }
  0x17   :  { %105 = vmatprep.subr.mxu0 %v665_v1  ;;  %584 = vmatprep.subr.mxu1 %v665_v1  ;;  %v248_v50 = vld [vmem:[%s963_s5] sm:$0xff]  ;;  %v341_v51 = vld [vmem:[%s965_s7 + $0x18] sm:$0xff]  ;;  %v340_v57 = vld [vmem:[%s965_s7 + $0x10] sm:$0xff] }
  0x18   :  { %106 = vmatpush1.msra.mxu0 %v44_v22  ;;  %585 = vmatpush3.msra.mxu1 %v161_v23  ;;  %v527_v52 = vld [vmem:[%s962_s4] ss:$0 sm:$0xff]  ;;  %v339_v58 = vld [vmem:[%s965_s7 + $0x8] sm:$0xff] }
  0x19   :  { %107 = vmatprep.subr.mxu0 %v665_v1  ;;  %586 = vmatprep.subr.mxu1 %v665_v1  ;;  %v338_v59 = vld [vmem:[%s965_s7] sm:$0xff]  ;;  %v425_v2 = vld [vmem:[%s967_s9 + $0x8] sm:$0xff] }
  0x1a   :  { %108 = vmatpush1.msra.mxu0 %v43_v24  ;;  %587 = vmatpush3.msra.mxu1 %v160_v25  ;;  %v528_v60 = vld [vmem:[%s964_s6] ss:$0 sm:$0xff] }
  0x1b   :  { %109 = vmatprep.subr.mxu0 %v665_v1  ;;  %588 = vmatprep.subr.mxu1 %v665_v1  ;;  %v424_v3 = vld [vmem:[%s967_s9] sm:$0xff]  ;;  %s643_s9 = scalar_lea.vmem %s516_s18, 32 }
  0x1c   :  { %110 = vmatpush1.msra.mxu0 %v42_v26  ;;  %589 = vmatpush3.msra.mxu1 %v159_v27  ;;  %v530_v4 = vld [vmem:[%s966_s8] ss:$0 sm:$0xff]  ;;  %p644_p0 = scmp.ne.s32.totalorder %s516_s18, %s643_s9  ;;  %p649_p2 = scmp.lt.s32.totalorder %s643_s9, %s643_s9 }
  0x1d   :  { %111 = vmatprep.subr.mxu0 %v665_v1  ;;  %590 = vmatprep.subr.mxu1 %v665_v1  ;;  %v532_v9 = vld [vmem:[%s968_s10] ss:$0 sm:$0xff] }
  0x1e   :  { %112 = vmatpush1.msra.mxu0 %v41_v28  ;;  %591 = vmatpush3.msra.mxu1 %v158_v29  ;;  %p650_p3 = por %p649_p2, %p648_p1 }
  0x1f   :  { %113 = vmatprep.subr.mxu0 %v665_v1  ;;  %592 = vmatprep.subr.mxu1 %v665_v1 }
  0x20   :  { %114 = vmatpush1.msra.mxu0 %v40_v30  ;;  %593 = vmatpush3.msra.mxu1 %v157_v31  ;;  %p651_p4 = pnand %p650_p3, %p644_p0 }
  0x21   :  { %141 = vmatprep.subr.mxu0 %v665_v1  ;;  %594 = vmatprep.subr.mxu1 %v665_v1 }
  0x22   :  { %525 = vmatpush2.msk.msra.mxu0 %vm79_vm1, %v58_v32  ;;  %595 = vmatpush3.msra.mxu1 %v156_v35 }
  0x23   :  { %143 = vmatprep.subr.mxu0 %v665_v1  ;;  %596 = vmatprep.subr.mxu1 %v665_v1 }
  0x24   :  { %144 = vmatpush2.msra.mxu0 %v57_v33  ;;  %597 = vmatpush3.msra.mxu1 %v155_v36 }
  0x25   :  { %145 = vmatprep.subr.mxu0 %v665_v1  ;;  %598 = vmatprep.subr.mxu1 %v665_v1 }
  0x26   :  { %146 = vmatpush2.msra.mxu0 %v56_v34  ;;  %599 = vmatpush3.msra.mxu1 %v154_v37 }
  0x27   :  { %148 = vmatmul.mubr.f32.vlgmr.msra.gmra.mxu0 %v747_v5  ;;  %622 = vmatprep.subr.mxu0 %v665_v1 }
  0x28   :  { %600 = vmatprep.mubr.msk.f32.mxu1 %vm666_vm2, %v665_v1  ;;  %603 = vmatprep.subr.mxu1 %v665_v1 }
  0x29   :  { %630 = vmatprep.mubr.msk.f32.mxu0 %vm666_vm2, %v665_v1  ;;  %623 = vmatpush3.msra.mxu0 %v341_v51 }
  0x2a   :  { %624 = vmatprep.subr.mxu0 %v665_v1 }
  0x2b   :  { %625 = vmatpush3.msra.mxu0 %v340_v57 }
  0x2c   :  { %626 = vmatprep.subr.mxu0 %v665_v1 }
  0x2d   :  { %627 = vmatpush3.msra.mxu0 %v339_v58 }
  0x2e   :  { %628 = vmatprep.subr.mxu0 %v665_v1 }
  0x2f   :  { %629 = vmatpush3.msra.mxu0 %v338_v59 }
  0x30   :  { %633 = vmatprep.subr.mxu0 %v665_v1 }
  0xe7   :  { %v149_v39 = vpop.f32.mrf.mxu0 }
  0xe8   :  { %v150_v40 = vadd.f32 %v523_v38, %v149_v39 }
  0xe9   :  { %v151_v41 = vpop.f32.mrf.mxu0 }
  0xea   :  { %v153_v42 = vmax.f32 %v150_v40, 0.0 }
  0xec   :  { %601 = vmatmul.mubr.f32.vlgmr.msra.gmra.mxu1 %v153_v42 }
  0xed   :  { %604 = vmatpush3.msra.mxu1 %v255_v43  ;;  %619 = vmatprep.mubr.msk.f32.mxu1 %vm666_vm2, %v665_v1 }
  0xee   :  { %605 = vmatprep.subr.mxu1 %v665_v1 }
  0xef   :  { %606 = vmatpush3.msra.mxu1 %v254_v44 }
  0xf0   :  { %607 = vmatprep.subr.mxu1 %v665_v1 }
  0xf1   :  { %608 = vmatpush3.msra.mxu1 %v253_v45 }
  0xf2   :  { %609 = vmatprep.subr.mxu1 %v665_v1 }
  0xf3   :  { %610 = vmatpush3.msra.mxu1 %v252_v46 }
  0xf4   :  { %611 = vmatprep.subr.mxu1 %v665_v1 }
  0xf5   :  { %612 = vmatpush3.msra.mxu1 %v251_v47 }
  0xf6   :  { %613 = vmatprep.subr.mxu1 %v665_v1 }
  0xf7   :  { %614 = vmatpush3.msra.mxu1 %v250_v48 }
  0xf8   :  { %615 = vmatprep.subr.mxu1 %v665_v1 }
  0xf9   :  { %616 = vmatpush3.msra.mxu1 %v249_v49 }
  0xfa   :  { %617 = vmatprep.subr.mxu1 %v665_v1 }
  0xfb   :  { %618 = vmatpush3.msra.mxu1 %v248_v50 }
 0x1ac   :  { %v243_v53 = vpop.f32.mrf.mxu1 }
 0x1ad   :  { %v244_v54 = vadd.f32 %v527_v52, %v243_v53 }
 0x1ae   :  { %v602_v55 = vpop.f32.mrf.mxu1 }
 0x1af   :  { %v247_v56 = vmax.f32 %v244_v54, 0.0 }
 0x1b1   :  { %620 = vmatmul.mubr.msk.f32.vlgmr.msra.gmra.mxu1 %vm263_vm3, %v247_v56 }
 0x271   :  { %v333_v61 = vpop.f32.mrf.mxu1 }
 0x272   :  { %v334_v62 = vadd.f32 %v528_v60, %v333_v61 }
 0x273   :  { %v621_v63 = vpop.f32.mrf.mxu1 }
 0x274   :  { %v337_v0 = vmax.f32 %v334_v62, 0.0 }
 0x276   :  { %631 = vmatmul.mubr.msk.f32.vlgmr.msra.gmra.mxu0 %vm349_vm4, %v337_v0 }
 0x277   :  { %637 = vmatprep.mubr.msk.f32.mxu0 %vm666_vm2, %v665_v1  ;;  %634 = vmatpush3.msra.mxu0 %v425_v2 }
 0x278   :  { %635 = vmatprep.subr.mxu0 %v665_v1 }
 0x279   :  { %636 = vmatpush3.msra.mxu0 %v424_v3 }
 0x336   :  { %v419_v5 = vpop.f32.mrf.mxu0 }
 0x337   :  { %v420_v6 = vadd.f32 %v530_v4, %v419_v5 }
 0x338   :  { %v632_v7 = vpop.f32.mrf.mxu0 }
 0x339   :  { %v423_v8 = vmax.f32 %v420_v6, 0.0 }
 0x33b   :  { %638 = vmatmul.mubr.msk.f32.vlgmr.msra.gmra.mxu0 %vm433_vm5, %v423_v8 }
 0x3fb   :  { %v503_v1 = vpop.f32.mrf.mxu0 }
 0x3fc   :  { %v504_v10 = vadd.f32 %v532_v9, %v503_v1 }
 0x3fd   :  { %v639_v11 = vpop.f32.mrf.mxu0 }
 0x3fe   :  { %508 = vst.msk [vmem:[#allocation2] sm:$0x3] %vm507_vm6, %v504_v10 }
 0x3ff   :  { %654 = shalt.err (!%p651_p4)
}
 0x400   :  { %518 = dma.vmem_to_hbm [thread:$0]  %s516_s18, 32, %s969_s11, [#allocation3]  }
 0x401   :  { %663 = dma.done.wait [#allocation3], 32  }
 0x402   :  { %664 = vsyncadd [#allocation3], 4294967264 }
 0x403   :  { %522 = vsyncpa [#allocation3], 1 }

</bundles_post_ra>
